<compile_context>
chip_gen: v7x
topology: tpu7x:2x2x1
jax: 0.10.0
libtpu: 0.0.40
codegen_flags: <defaults>
</compile_context>

<pallas_src>
import jax
import jax.numpy as jnp
from jax.experimental import pallas as pl
from jax.experimental.pallas import tpu as pltpu


def _fused_mlp_kernel(x_ref, w1_ref, s1_ref, b1_ref, w2_ref, s2_ref, b2_ref,
                      o_ref):
    """relu(relu(x @ W1q * s1 + b1) @ W2q * s2 + b2), all in one invocation."""
    xb = x_ref[...]                                   # (B, 2048) bf16

    # Layer 1: int8 weights widened to bf16 (exact), f32 accumulation on MXU,
    # per-output-channel dequant scale applied to the accumulation.
    w1 = w1_ref[...].astype(jnp.bfloat16)             # (2048, 1024)
    h = jnp.dot(xb, w1, preferred_element_type=jnp.float32)
    h = jnp.maximum(h * s1_ref[...] + b1_ref[...], 0.0)

    # Layer 2: same scheme over the full 1024 output columns.
    w2 = w2_ref[...].astype(jnp.bfloat16)             # (1024, 1024)
    o = jnp.dot(h.astype(jnp.bfloat16), w2, preferred_element_type=jnp.float32)
    o_ref[...] = jnp.maximum(o * s2_ref[...] + b2_ref[...], 0.0).astype(
        o_ref.dtype)


def fused_mlp(x2d, w1_q, s1, b1, w2_q, s2, b2):
    """Fused 2-layer MLP forward in a single pallas_call.

    x2d:(B,2048) bf16, w1_q:(2048,1024) int8, w2_q:(1024,1024) int8,
    s1/b1/s2/b2:(1,1024) f32.
    """
    B, K1 = x2d.shape
    K1_, N1 = w1_q.shape
    N1_, N2 = w2_q.shape
    assert K1 == K1_ and N1 == N1_
    assert s1.shape == (1, N1) and b1.shape == (1, N1)
    assert s2.shape == (1, N2) and b2.shape == (1, N2)

    # TODO(synk): if this layer runs repeatedly (inference loop), keep the
    # ~3 MiB of packed weights VMEM-resident across calls (cross-call prefetch
    # or fusion into the surrounding kernel) instead of re-streaming from HBM.
    # On v7x a further ~2x on the DMA path is available by sharding the hidden
    # dim across the 2 TensorCores and summing the two (B,1024) partials.
    return pl.pallas_call(
        _fused_mlp_kernel,
        out_shape=jax.ShapeDtypeStruct((B, N2), jnp.float32),
        grid_spec=pltpu.PrefetchScalarGridSpec(
            num_scalar_prefetch=0,
            grid=(1,),                                  # single TC-friendly step
            in_specs=[
                pl.BlockSpec((B, K1), lambda i: (0, 0)),   # x  (bf16)
                pl.BlockSpec((K1, N1), lambda i: (0, 0)),  # W1 (int8)
                pl.BlockSpec((1, N1), lambda i: (0, 0)),   # s1
                pl.BlockSpec((1, N1), lambda i: (0, 0)),   # b1
                pl.BlockSpec((N1, N2), lambda i: (0, 0)),  # W2 (int8)
                pl.BlockSpec((1, N2), lambda i: (0, 0)),   # s2
                pl.BlockSpec((1, N2), lambda i: (0, 0)),   # b2
            ],
            out_specs=pl.BlockSpec((B, N2), lambda i: (0, 0)),
        ),
        compiler_params=pltpu.CompilerParams(
            dimension_semantics=("arbitrary",),
            vmem_limit_bytes=32 * 1024 * 1024,          # ~6.5 MiB used; safe on v5e..v7x
        ),
    )(x2d, w1_q, s1, b1, w2_q, s2, b2)


def fully_connected_layer(x, packed_params):
    """Forward pass matching the PyTorch module (x flattened to (B, 2048))."""
    B = x.shape[0]
    # x.view(B, -1); cast to bf16 once here (halves the x DMA, no in-kernel pack).
    x2d = x.reshape(B, -1).astype(jnp.bfloat16)
    w1_q, s1, b1, w2_q, s2, b2 = packed_params
    # Note: if B grows, add an M grid axis (multiples of 16 sublanes for bf16)
    # and re-derive the VMEM budget against v7x's 64 MiB.
    return fused_mlp(x2d, w1_q, s1, b1, w2_q, s2, b2)


def init_params(key, dtype=jnp.float32):
    """PyTorch-Linear-style init: U(-1/sqrt(in), 1/sqrt(in)), (out, in) layout."""
    k1, k2, k3, k4 = jax.random.split(key, 4)
    bound1 = 1.0 / (2048.0 ** 0.5)
    bound2 = 1.0 / (1024.0 ** 0.5)
    w1 = jax.random.uniform(k1, (1024, 2048), dtype, -bound1, bound1)
    b1 = jax.random.uniform(k2, (1024,), dtype, -bound1, bound1)
    w2 = jax.random.uniform(k3, (1024, 1024), dtype, -bound2, bound2)
    b2 = jax.random.uniform(k4, (1024,), dtype, -bound2, bound2)
    return w1, b1, w2, b2


def _quantize_per_out_channel(w_t):
    """Symmetric int8 per-output-channel quantization of an (in, out) matrix."""
    amax = jnp.max(jnp.abs(w_t), axis=0, keepdims=True)         # (1, out)
    scale = jnp.maximum(amax, 1e-8) / 127.0
    q = jnp.clip(jnp.round(w_t / scale), -127.0, 127.0).astype(jnp.int8)
    return q, scale.astype(jnp.float32)


def prepare_params(params):
    """One-time packing: transpose to (in, out), quantize weights to int8."""
    w1, b1, w2, b2 = params
    w1_q, s1 = _quantize_per_out_channel(jnp.asarray(w1.T, jnp.float32))
    w2_q, s2 = _quantize_per_out_channel(jnp.asarray(w2.T, jnp.float32))
    return (w1_q, s1, b1.reshape(1, -1).astype(jnp.float32),
            w2_q, s2, b2.reshape(1, -1).astype(jnp.float32))


if __name__ == "__main__":
    key = jax.random.PRNGKey(0)
    pkey, xkey = jax.random.split(key)
    params = init_params(pkey)               # PyTorch-style f32 (reference)
    packed = prepare_params(params)          # int8 weights + scales (done once)

    # Small batch; flattened feature count must be 2048 for Linear(2048, 1024).
    B = 2
    x = jax.random.normal(xkey, (B, 2, 32, 32), jnp.float32)   # 2*32*32 = 2048

    out = fully_connected_layer(x, packed)
    out = jax.block_until_ready(out)
    assert out.shape == (B, 1024)

    # Reference 1: mirrors the kernel numerics exactly (bf16 activations,
    # int8 weights widened to bf16, f32 accumulation, scale applied post-acc).
    w1_q, s1, b1r, w2_q, s2, b2r = packed
    x2d = x.reshape(B, -1).astype(jnp.bfloat16)
    h = jnp.dot(x2d, w1_q.astype(jnp.bfloat16),
                preferred_element_type=jnp.float32) * s1 + b1r
    h = jnp.maximum(h, 0.0)
    ref = jnp.dot(h.astype(jnp.bfloat16), w2_q.astype(jnp.bfloat16),
                  preferred_element_type=jnp.float32) * s2 + b2r
    ref = jnp.maximum(ref, 0.0)
    assert jnp.allclose(out, ref, atol=1e-2, rtol=1e-2), float(
        jnp.max(jnp.abs(out - ref)))

    # Reference 2 (sanity): full-precision PyTorch semantics; loose tolerance
    # accounts for the intentional bf16-activation / int8-weight trade.
    w1, b1f, w2, b2f = params
    hf = jnp.maximum(x.reshape(B, -1) @ w1.T + b1f, 0.0)
    reff = jnp.maximum(hf @ w2.T + b2f, 0.0)
    assert jnp.allclose(out, reff, atol=1e-1, rtol=1e-1), float(
        jnp.max(jnp.abs(out - reff)))

    print("KERNEL_OK")
</pallas_src>

<mosaic_0001>
module attributes {stable_mosaic.version = 11 : i64} {
  func.func @_fused_mlp_kernel(%arg0: i32, %arg1: memref<2x2048xbf16, #tpu.memory_space<vmem>>, %arg2: memref<2048x1024xi8, #tpu.memory_space<vmem>>, %arg3: memref<1x1024xf32, #tpu.memory_space<vmem>>, %arg4: memref<1x1024xf32, #tpu.memory_space<vmem>>, %arg5: memref<1024x1024xi8, #tpu.memory_space<vmem>>, %arg6: memref<1x1024xf32, #tpu.memory_space<vmem>>, %arg7: memref<1x1024xf32, #tpu.memory_space<vmem>>, %arg8: memref<2x1024xf32, #tpu.memory_space<vmem>>) attributes {dimension_semantics = [#tpu.dimension_semantics<arbitrary>], iteration_bounds = array<i64: 1>, scalar_prefetch = 0 : i64, scratch_operands = 0 : i64, tpu.core_type = #tpu.core_type<tc>, window_params = [{pipeline_mode = #tpu.pipeline_mode<synchronous>, transform_indices = @transform_0, window_bounds = array<i64: 2, 2048>}, {pipeline_mode = #tpu.pipeline_mode<synchronous>, transform_indices = @transform_1, window_bounds = array<i64: 2048, 1024>}, {pipeline_mode = #tpu.pipeline_mode<synchronous>, transform_indices = @transform_2, window_bounds = array<i64: 1, 1024>}, {pipeline_mode = #tpu.pipeline_mode<synchronous>, transform_indices = @transform_3, window_bounds = array<i64: 1, 1024>}, {pipeline_mode = #tpu.pipeline_mode<synchronous>, transform_indices = @transform_4, window_bounds = array<i64: 1024, 1024>}, {pipeline_mode = #tpu.pipeline_mode<synchronous>, transform_indices = @transform_5, window_bounds = array<i64: 1, 1024>}, {pipeline_mode = #tpu.pipeline_mode<synchronous>, transform_indices = @transform_6, window_bounds = array<i64: 1, 1024>}, {pipeline_mode = #tpu.pipeline_mode<synchronous>, transform_indices = @transform_7, window_bounds = array<i64: 2, 1024>}]} {
    %c0 = arith.constant 0 : index
    %c0_0 = arith.constant 0 : index
    %0 = vector.load %arg1[%c0, %c0_0] : memref<2x2048xbf16, #tpu.memory_space<vmem>>, vector<2x2048xbf16>
    %c0_1 = arith.constant 0 : index
    %c0_2 = arith.constant 0 : index
    %1 = vector.load %arg2[%c0_1, %c0_2] : memref<2048x1024xi8, #tpu.memory_space<vmem>>, vector<2048x1024xi8>
    %2 = arith.sitofp %1 : vector<2048x1024xi8> to vector<2048x1024xbf16>
    %cst = arith.constant dense<0.000000e+00> : vector<2x1024xf32>
    %3 = tpu.matmul %0, %2, %cst {dimension_numbers = #tpu.dot_dimension_numbers<[1], [0], [0], [1], [0, 0, 1, 1], [], []>} : vector<2x2048xbf16>, vector<2048x1024xbf16>, vector<2x1024xf32> -> vector<2x1024xf32>
    %c0_3 = arith.constant 0 : index
    %c0_4 = arith.constant 0 : index
    %4 = vector.load %arg3[%c0_3, %c0_4] : memref<1x1024xf32, #tpu.memory_space<vmem>>, vector<1x1024xf32>
    %5 = vector.broadcast %4 : vector<1x1024xf32> to vector<2x1024xf32>
    %6 = arith.mulf %3, %5 : vector<2x1024xf32>
    %c0_5 = arith.constant 0 : index
    %c0_6 = arith.constant 0 : index
    %7 = vector.load %arg4[%c0_5, %c0_6] : memref<1x1024xf32, #tpu.memory_space<vmem>>, vector<1x1024xf32>
    %8 = vector.broadcast %7 : vector<1x1024xf32> to vector<2x1024xf32>
    %9 = arith.addf %6, %8 : vector<2x1024xf32>
    %cst_7 = arith.constant 0.000000e+00 : f32
    %10 = vector.broadcast %cst_7 : f32 to vector<2x1024xf32>
    %11 = arith.maximumf %9, %10 : vector<2x1024xf32>
    %c0_8 = arith.constant 0 : index
    %c0_9 = arith.constant 0 : index
    %12 = vector.load %arg5[%c0_8, %c0_9] : memref<1024x1024xi8, #tpu.memory_space<vmem>>, vector<1024x1024xi8>
    %13 = arith.sitofp %12 : vector<1024x1024xi8> to vector<1024x1024xbf16>
    %14 = arith.truncf %11 : vector<2x1024xf32> to vector<2x1024xbf16>
    %cst_10 = arith.constant dense<0.000000e+00> : vector<2x1024xf32>
    %15 = tpu.matmul %14, %13, %cst_10 {dimension_numbers = #tpu.dot_dimension_numbers<[1], [0], [0], [1], [0, 0, 1, 1], [], []>} : vector<2x1024xbf16>, vector<1024x1024xbf16>, vector<2x1024xf32> -> vector<2x1024xf32>
    %c0_11 = arith.constant 0 : index
    %c0_12 = arith.constant 0 : index
    %16 = vector.load %arg6[%c0_11, %c0_12] : memref<1x1024xf32, #tpu.memory_space<vmem>>, vector<1x1024xf32>
    %17 = vector.broadcast %16 : vector<1x1024xf32> to vector<2x1024xf32>
    %18 = arith.mulf %15, %17 : vector<2x1024xf32>
    %c0_13 = arith.constant 0 : index
    %c0_14 = arith.constant 0 : index
    %19 = vector.load %arg7[%c0_13, %c0_14] : memref<1x1024xf32, #tpu.memory_space<vmem>>, vector<1x1024xf32>
    %20 = vector.broadcast %19 : vector<1x1024xf32> to vector<2x1024xf32>
    %21 = arith.addf %18, %20 : vector<2x1024xf32>
    %cst_15 = arith.constant 0.000000e+00 : f32
    %22 = vector.broadcast %cst_15 : f32 to vector<2x1024xf32>
    %23 = arith.maximumf %21, %22 : vector<2x1024xf32>
    %c0_16 = arith.constant 0 : index
    %c0_17 = arith.constant 0 : index
    %24 = vector.load %arg8[%c0_16, %c0_17] : memref<2x1024xf32, #tpu.memory_space<vmem>>, vector<2x1024xf32>
    tpu.vector_store %arg8[%c0_16, %c0_17], %23 {strides = array<i32>} : memref<2x1024xf32, #tpu.memory_space<vmem>>, vector<2x1024xf32>,
    return
  }
  func.func @transform_0(%arg0: i32) -> (i32, i32) {
    %c0_i32 = arith.constant 0 : i32
    %c0_i32_0 = arith.constant 0 : i32
    %c0_i32_1 = arith.constant 0 : i32
    return %c0_i32, %c0_i32_0 : i32, i32
  }
  func.func @transform_1(%arg0: i32) -> (i32, i32) {
    %c0_i32 = arith.constant 0 : i32
    %c0_i32_0 = arith.constant 0 : i32
    %c0_i32_1 = arith.constant 0 : i32
    return %c0_i32, %c0_i32_0 : i32, i32
  }
  func.func @transform_2(%arg0: i32) -> (i32, i32) {
    %c0_i32 = arith.constant 0 : i32
    %c0_i32_0 = arith.constant 0 : i32
    %c0_i32_1 = arith.constant 0 : i32
    return %c0_i32, %c0_i32_0 : i32, i32
  }
  func.func @transform_3(%arg0: i32) -> (i32, i32) {
    %c0_i32 = arith.constant 0 : i32
    %c0_i32_0 = arith.constant 0 : i32
    %c0_i32_1 = arith.constant 0 : i32
    return %c0_i32, %c0_i32_0 : i32, i32
  }
  func.func @transform_4(%arg0: i32) -> (i32, i32) {
    %c0_i32 = arith.constant 0 : i32
    %c0_i32_0 = arith.constant 0 : i32
    %c0_i32_1 = arith.constant 0 : i32
    return %c0_i32, %c0_i32_0 : i32, i32
  }
  func.func @transform_5(%arg0: i32) -> (i32, i32) {
    %c0_i32 = arith.constant 0 : i32
    %c0_i32_0 = arith.constant 0 : i32
    %c0_i32_1 = arith.constant 0 : i32
    return %c0_i32, %c0_i32_0 : i32, i32
  }
  func.func @transform_6(%arg0: i32) -> (i32, i32) {
    %c0_i32 = arith.constant 0 : i32
    %c0_i32_0 = arith.constant 0 : i32
    %c0_i32_1 = arith.constant 0 : i32
    return %c0_i32, %c0_i32_0 : i32, i32
  }
  func.func @transform_7(%arg0: i32) -> (i32, i32) {
    %c0_i32 = arith.constant 0 : i32
    %c0_i32_0 = arith.constant 0 : i32
    %c0_i32_1 = arith.constant 0 : i32
    return %c0_i32, %c0_i32_0 : i32, i32
  }
}

</mosaic_0001>

<bundles_post_ra>
// kernel: tpu_custom_call.1
= control target key start
LH: loop header
LB: loop body
LE: loop exit
PB: predicated region body
PF: predicated region fallthrough
CT: control target
= control target key end

     0   :  { %12 = vsyncpa [#allocation3], 0  ;;  %s5643_s0 = inlined_call_operand.hbm [shape: bf16[2,2048], index: 0, kind: input, shape index: {}]   ;;  %s5644_s1 = inlined_call_operand.hbm [shape: s8[2048,1024], index: 1, kind: input, shape index: {}]   ;;  %s5645_s2 = inlined_call_operand.hbm [shape: f32[1,1024], index: 2, kind: input, shape index: {}]   ;;  %s5646_s3 = inlined_call_operand.hbm [shape: f32[1,1024], index: 3, kind: input, shape index: {}]   ;;  %s5647_s4 = inlined_call_operand.hbm [shape: s8[1024,1024], index: 4, kind: input, shape index: {}]   ;;  %s5648_s5 = inlined_call_operand.hbm [shape: f32[1,1024], index: 5, kind: input, shape index: {}]   ;;  %s5649_s6 = inlined_call_operand.hbm [shape: f32[1,1024], index: 6, kind: input, shape index: {}]   ;;  %s5650_s7 = inlined_call_operand.hbm [shape: f32[2,1024], index: 7, kind: output, shape index: {}]  }
   0x1   :  { %13 = vsyncpa [#allocation6], 0 }
   0x2   :  { %14 = vsyncpa [#allocation9], 0 }
   0x3   :  { %15 = vsyncpa [#allocation12], 0 }
   0x4   :  { %16 = vsyncpa [#allocation4], 0  ;;  %s5152_s24 = smov [#allocation5]   ;;  %s4966_s28 = scalar_lea.hbm %s5644_s1, 65536 }
   0x5   :  { %s32_s25 = sshll.u32 %s5152_s24, 4  ;;  %p4967_p0 = scmp.ne.s32.totalorder %s5644_s1, %s4966_s28  ;;  %s33_s25 = int_to_ptr.vmem [resolvable:$true] %s32_s25 }
   0x6   :  { %p4970_p1 = scmp.lt.u32.totalorder %s4966_s28, %s5644_s1 }
   0x8   :  { %p4972_p2 = pnand %p4970_p1, %p4967_p0 }
   0xa   :  { %4975 = shalt.err (!%p4972_p2)
}
   0xb   :  { %s4976_s10 = scalar_lea.vmem %s33_s25, 65536  ;;  %p4981_p4 = scmp.lt.s32.totalorder %s33_s25, %s33_s25 }
   0xc   :  { %p4977_p3 = scmp.ne.s32.totalorder %s33_s25, %s4976_s10  ;;  %p4982_p5 = scmp.lt.s32.totalorder %s4976_s10, %s4976_s10 }
   0xe   :  { %p4983_p6 = por %p4982_p5, %p4981_p4 }
  0x10   :  { %p4984_p7 = pnand %p4983_p6, %p4977_p3 }
  0x12   :  { %4987 = shalt.err (!%p4984_p7)
}
  0x13   :  { %s5153_s11 = smov 1024   ;;  %s5154_s12 = smov 64  }
  0x14   :  { %38 = dma.hbm_to_vmem [thread:$0]  %s5644_s1, 65536, %s33_s25, [#allocation6], %s5153_s11, %s5153_s11, %s5154_s12  }
  0x15   :  { %s5155_s15 = smov [#allocation8]   ;;  %s5156_s17 = smov [#allocation11]  }
  0x16   :  { %s55_s16 = sshll.u32 %s5155_s15, 4  ;;  %s77_s18 = sshll.u32 %s5156_s17, 4  ;;  %s56_s16 = int_to_ptr.vmem [resolvable:$true] %s55_s16  ;;  %s78_s18 = int_to_ptr.vmem [resolvable:$true] %s77_s18 }
  0x17   :  { %s4988_s21 = scalar_lea.hbm %s5646_s3, 128 }
  0x18   :  { %p4989_p8 = scmp.ne.s32.totalorder %s5646_s3, %s4988_s21  ;;  %p4992_p9 = scmp.lt.u32.totalorder %s4988_s21, %s5646_s3 }
  0x1a   :  { %p4994_p10 = pnand %p4992_p9, %p4989_p8 }
  0x1c   :  { %4997 = shalt.err (!%p4994_p10)
}
  0x1d   :  { %s4998_s1 = scalar_lea.vmem %s56_s16, 128  ;;  %p5003_p12 = scmp.lt.s32.totalorder %s56_s16, %s56_s16 }
  0x1e   :  { %p4999_p11 = scmp.ne.s32.totalorder %s56_s16, %s4998_s1  ;;  %p5004_p13 = scmp.lt.s32.totalorder %s4998_s1, %s4998_s1 }
  0x20   :  { %p5005_p0 = por %p5004_p13, %p5003_p12 }
  0x22   :  { %p5006_p1 = pnand %p5005_p0, %p4999_p11 }
  0x24   :  { %5009 = shalt.err (!%p5006_p1)
}
  0x25   :  { %58 = dma.hbm_to_vmem [thread:$0]  %s5646_s3, 128, %s56_s16, [#allocation9]  }
  0x26   :  { %s5010_s30 = scalar_lea.hbm %s5648_s5, 128 }
  0x27   :  { %p5011_p2 = scmp.ne.s32.totalorder %s5648_s5, %s5010_s30  ;;  %p5014_p3 = scmp.lt.u32.totalorder %s5010_s30, %s5648_s5 }
  0x29   :  { %p5016_p4 = pnand %p5014_p3, %p5011_p2 }
  0x2b   :  { %5019 = shalt.err (!%p5016_p4)
}
  0x2c   :  { %s5020_s14 = scalar_lea.vmem %s78_s18, 128  ;;  %p5025_p6 = scmp.lt.s32.totalorder %s78_s18, %s78_s18 }
  0x2d   :  { %p5021_p5 = scmp.ne.s32.totalorder %s78_s18, %s5020_s14  ;;  %p5026_p7 = scmp.lt.s32.totalorder %s5020_s14, %s5020_s14 }
  0x2f   :  { %p5027_p8 = por %p5026_p7, %p5025_p6 }
  0x31   :  { %p5028_p9 = pnand %p5027_p8, %p5021_p5 }
  0x33   :  { %5031 = shalt.err (!%p5028_p9)
}
  0x34   :  { %80 = dma.hbm_to_vmem [thread:$0]  %s5648_s5, 128, %s78_s18, [#allocation12]  }
  0x35   :  { %s5157_s16 = smov [#allocation2]   ;;  %s5158_s19 = smov [#allocation7]  }
  0x36   :  { %s23_s17 = sshll.u32 %s5157_s16, 4  ;;  %s45_s20 = sshll.u32 %s5158_s19, 4  ;;  %s24_s17 = int_to_ptr.vmem [resolvable:$true] %s23_s17  ;;  %s46_s20 = int_to_ptr.vmem [resolvable:$true] %s45_s20 }
  0x37   :  { %s5032_s23 = scalar_lea.hbm %s5643_s0, 256 }
  0x38   :  { %p5033_p10 = scmp.ne.s32.totalorder %s5643_s0, %s5032_s23  ;;  %p5036_p11 = scmp.lt.u32.totalorder %s5032_s23, %s5643_s0 }
  0x3a   :  { %p5038_p12 = pnand %p5036_p11, %p5033_p10 }
  0x3c   :  { %5041 = shalt.err (!%p5038_p12)
}
  0x3d   :  { %s5042_s5 = scalar_lea.vmem %s24_s17, 256  ;;  %p5047_p0 = scmp.lt.s32.totalorder %s24_s17, %s24_s17 }
  0x3e   :  { %p5043_p13 = scmp.ne.s32.totalorder %s24_s17, %s5042_s5  ;;  %p5048_p1 = scmp.lt.s32.totalorder %s5042_s5, %s5042_s5 }
  0x40   :  { %p5049_p2 = por %p5048_p1, %p5047_p0 }
  0x42   :  { %p5050_p3 = pnand %p5049_p2, %p5043_p13 }
  0x44   :  { %5053 = shalt.err (!%p5050_p3)
}
  0x45   :  { %26 = dma.hbm_to_vmem [thread:$0]  %s5643_s0, 256, %s24_s17, [#allocation3]  }
  0x46   :  { %s5054_s30 = scalar_lea.hbm %s5645_s2, 128 }
  0x47   :  { %p5055_p4 = scmp.ne.s32.totalorder %s5645_s2, %s5054_s30  ;;  %p5058_p5 = scmp.lt.u32.totalorder %s5054_s30, %s5645_s2 }
  0x49   :  { %p5060_p6 = pnand %p5058_p5, %p5055_p4 }
  0x4b   :  { %5063 = shalt.err (!%p5060_p6)
}
  0x4c   :  { %s5064_s14 = scalar_lea.vmem %s46_s20, 128  ;;  %p5069_p8 = scmp.lt.s32.totalorder %s46_s20, %s46_s20 }
  0x4d   :  { %p5065_p7 = scmp.ne.s32.totalorder %s46_s20, %s5064_s14  ;;  %p5070_p9 = scmp.lt.s32.totalorder %s5064_s14, %s5064_s14 }
  0x4f   :  { %p5071_p10 = por %p5070_p9, %p5069_p8 }
  0x51   :  { %p5072_p11 = pnand %p5071_p10, %p5065_p7 }
  0x53   :  { %5075 = shalt.err (!%p5072_p11)
}
  0x54   :  { %48 = dma.hbm_to_vmem [thread:$0]  %s5645_s2, 128, %s46_s20, [#allocation6]  }
  0x55   :  { %s5159_s15 = smov [#allocation10]   ;;  %s5160_s17 = smov [#allocation13]  }
  0x56   :  { %s64_s16 = sshll.u32 %s5159_s15, 4  ;;  %s87_s19 = sshll.u32 %s5160_s17, 4  ;;  %s65_s16 = int_to_ptr.vmem [resolvable:$true] %s64_s16  ;;  %s88_s19 = int_to_ptr.vmem [resolvable:$true] %s87_s19 }
  0x57   :  { %s5076_s23 = scalar_lea.hbm %s5647_s4, 32768 }
  0x58   :  { %p5077_p12 = scmp.ne.s32.totalorder %s5647_s4, %s5076_s23  ;;  %p5080_p13 = scmp.lt.u32.totalorder %s5076_s23, %s5647_s4 }
  0x5a   :  { %p5082_p0 = pnand %p5080_p13, %p5077_p12 }
  0x5c   :  { %5085 = shalt.err (!%p5082_p0)
}
  0x5d   :  { %s5086_s2 = scalar_lea.vmem %s65_s16, 32768  ;;  %p5091_p2 = scmp.lt.s32.totalorder %s65_s16, %s65_s16 }
  0x5e   :  { %p5087_p1 = scmp.ne.s32.totalorder %s65_s16, %s5086_s2  ;;  %p5092_p3 = scmp.lt.s32.totalorder %s5086_s2, %s5086_s2 }
  0x60   :  { %p5093_p4 = por %p5092_p3, %p5091_p2 }
  0x62   :  { %p5094_p5 = pnand %p5093_p4, %p5087_p1 }
  0x64   :  { %5097 = shalt.err (!%p5094_p5)
}
  0x65   :  { %70 = dma.hbm_to_vmem [thread:$0]  %s5647_s4, 32768, %s65_s16, [#allocation9], %s5153_s11, %s5153_s11, %s5154_s12  }
  0x66   :  { %s5098_s28 = scalar_lea.hbm %s5649_s6, 128 }
  0x67   :  { %p5099_p6 = scmp.ne.s32.totalorder %s5649_s6, %s5098_s28  ;;  %p5102_p7 = scmp.lt.u32.totalorder %s5098_s28, %s5649_s6 }
  0x69   :  { %p5104_p8 = pnand %p5102_p7, %p5099_p6 }
  0x6b   :  { %5107 = shalt.err (!%p5104_p8)
}
  0x6c   :  { %s5108_s10 = scalar_lea.vmem %s88_s19, 128  ;;  %p5113_p10 = scmp.lt.s32.totalorder %s88_s19, %s88_s19 }
  0x6d   :  { %p5109_p9 = scmp.ne.s32.totalorder %s88_s19, %s5108_s10  ;;  %p5114_p11 = scmp.lt.s32.totalorder %s5108_s10, %s5108_s10 }
  0x6f   :  { %p5115_p12 = por %p5114_p11, %p5113_p10 }
  0x71   :  { %p5116_p13 = pnand %p5115_p12, %p5109_p9 }
  0x73   :  { %5119 = shalt.err (!%p5116_p13)
}
  0x74   :  { %90 = dma.hbm_to_vmem [thread:$0]  %s5649_s6, 128, %s88_s19, [#allocation12]  }
  0x75   :  { %5142 = dma.done.wait [#allocation3], 256  }
  0x76   :  { %5143 = vsyncadd [#allocation3], 4294967040 }
  0x77   :  { %5144 = dma.done.wait [#allocation6], 65664  }
  0x78   :  { %5145 = vsyncadd [#allocation6], 4294901632 }
  0x79   :  { %5146 = dma.done.wait [#allocation9], 32896  }
  0x7a   :  { %5147 = vsyncadd [#allocation9], 4294934400 }
  0x7b   :  { %5148 = dma.done.wait [#allocation12], 256  }
  0x7c   :  { %5149 = vsyncadd [#allocation12], 4294967040  ;;  %v115_v0 = vld [vmem:[#allocation5 + $0x8] sm:$0xff]  ;;  %v117_v1 = vld [vmem:[#allocation5 + $0x18] sm:$0xff]  ;;  %v5161_v18 = vmov 1966171168   ;;  %v1656_v20 = vlaneseq }
  0x7d   :  { %v114_v2 = vld [vmem:[#allocation5] sm:$0xff]  ;;  %v627_v3 = vunpack.c.l.s8.bf16 %v115_v0  ;;  %v635_v4 = vunpack.c.h.s8.bf16 %v115_v0  ;;  %v629_v5 = vunpack.c.l.s8.bf16 %v117_v1  ;;  %v637_v6 = vunpack.c.h.s8.bf16 %v117_v1  ;;  %v116_v7 = vld [vmem:[#allocation5 + $0x10] sm:$0xff]  ;;  %v123_v10 = vld [vmem:[#allocation5 + $0x48] sm:$0xff]  ;;  %s5163_s6 = smov [#allocation14]  }
  0x7e   :  { %v626_v8 = vunpack.c.l.s8.bf16 %v114_v2  ;;  %v628_v9 = vunpack.c.l.s8.bf16 %v116_v7  ;;  %v125_v11 = vld [vmem:[#allocation5 + $0x58] sm:$0xff]  ;;  %v634_v12 = vunpack.c.h.s8.bf16 %v114_v2  ;;  %v636_v13 = vunpack.c.h.s8.bf16 %v116_v7  ;;  %v122_v16 = vld [vmem:[#allocation5 + $0x40] sm:$0xff]  ;;  %v124_v17 = vld [vmem:[#allocation5 + $0x50] sm:$0xff]  ;;  %s4778_s12 = sshll.u32 %s5163_s6, 4  ;;  %s4779_s12 = int_to_ptr.vmem [resolvable:$true] %s4778_s12 }
  0x7f   :  { %1766 = vmatprep.subr.bf16.mxu0 %v627_v3  ;;  %2094 = vmatprep.subr.bf16.mxu1 %v629_v5  ;;  %v643_v14 = vunpack.c.l.s8.bf16 %v123_v10  ;;  %v645_v15 = vunpack.c.l.s8.bf16 %v125_v11  ;;  %v1654_v19 = vunpack.c.l.s4 %v5161_v18  ;;  %v642_v21 = vunpack.c.l.s8.bf16 %v122_v16  ;;  %v131_v27 = vld [vmem:[#allocation5 + $0x88] sm:$0xff]  ;;  %v133_v28 = vld [vmem:[#allocation5 + $0x98] sm:$0xff]  ;;  %v130_v33 = vld [vmem:[#allocation5 + $0x80] sm:$0xff]  ;;  %s5120_s13 = scalar_lea.vmem %s4779_s12, 256  ;;  %p5125_p1 = scmp.lt.s32.totalorder %s4779_s12, %s4779_s12 }
  0x80   :  { %1767 = vmatpush1.bf16.msra.mxu0 %v626_v8  ;;  %2095 = vmatpush1.bf16.msra.mxu1 %v628_v9  ;;  %v644_v22 = vunpack.c.l.s8.bf16 %v124_v17  ;;  %v651_v23 = vunpack.c.h.s8.bf16 %v123_v10  ;;  %v653_v24 = vunpack.c.h.s8.bf16 %v125_v11  ;;  %v5294_v26 = vshrl.u32 %v1656_v20, 7  ;;  %v132_v34 = vld [vmem:[#allocation5 + $0x90] sm:$0xff]  ;;  %v139_v42 = vld [vmem:[#allocation5 + $0xc8] sm:$0xff]  ;;  %v141_v43 = vld [vmem:[#allocation5 + $0xd8] sm:$0xff]  ;;  %p5121_p0 = scmp.ne.s32.totalorder %s4779_s12, %s5120_s13  ;;  %p5126_p2 = scmp.lt.s32.totalorder %s5120_s13, %s5120_s13 }
  0x81   :  { %1768 = vmatprep.subr.bf16.mxu0 %v635_v4  ;;  %2096 = vmatprep.subr.bf16.mxu1 %v637_v6  ;;  %v1655_v25 = vunpack.c.0.s8 %v1654_v19  ;;  %v650_v29 = vunpack.c.h.s8.bf16 %v122_v16  ;;  %v652_v30 = vunpack.c.h.s8.bf16 %v124_v17  ;;  %v659_v31 = vunpack.c.l.s8.bf16 %v131_v27  ;;  %v5299_v36 = vld [vmem:[#allocation2] sm:$0xff]  ;;  %v138_v49 = vld [vmem:[#allocation5 + $0xc0] sm:$0xff]  ;;  %v147_v56 = vld [vmem:[#allocation5 + $0x108] sm:$0xff] }
  0x82   :  { %v661_v32 = vunpack.c.l.s8.bf16 %v133_v28  ;;  %v658_v37 = vunpack.c.l.s8.bf16 %v130_v33  ;;  %v660_v38 = vunpack.c.l.s8.bf16 %v132_v34  ;;  %v667_v39 = vunpack.c.h.s8.bf16 %v131_v27  ;;  %v140_v50 = vld [vmem:[#allocation5 + $0xd0] sm:$0xff]  ;;  %v149_v57 = vld [vmem:[#allocation5 + $0x118] sm:$0xff]  ;;  %v146_v62 = vld [vmem:[#allocation5 + $0x100] sm:$0xff]  ;;  %p5127_p3 = por %p5126_p2, %p5125_p1 }
  0x83   :  { %v5297_v35 = vsub.s32 %v1655_v25, %v5294_v26  ;;  %v669_v40 = vunpack.c.h.s8.bf16 %v133_v28  ;;  %v666_v45 = vunpack.c.h.s8.bf16 %v130_v33  ;;  %v668_v46 = vunpack.c.h.s8.bf16 %v132_v34  ;;  %v148_v63 = vld [vmem:[#allocation5 + $0x110] sm:$0xff]  ;;  %v155_v4 = vld [vmem:[#allocation5 + $0x148] sm:$0xff]  ;;  %v157_v5 = vld [vmem:[#allocation5 + $0x158] sm:$0xff] }
  0x84   :  { %1769 = vmatpush1.bf16.msra.mxu0 %v634_v12  ;;  %2097 = vmatpush1.bf16.msra.mxu1 %v636_v13  ;;  %v675_v47 = vunpack.c.l.s8.bf16 %v139_v42  ;;  %v677_v48 = vunpack.c.l.s8.bf16 %v141_v43  ;;  %v674_v52 = vunpack.c.l.s8.bf16 %v138_v49  ;;  %v676_v53 = vunpack.c.l.s8.bf16 %v140_v50  ;;  %v154_v10 = vld [vmem:[#allocation5 + $0x140] sm:$0xff]  ;;  %v156_v11 = vld [vmem:[#allocation5 + $0x150] sm:$0xff]  ;;  %v163_v16 = vld [vmem:[#allocation5 + $0x188] sm:$0xff]  ;;  %p5128_p4 = pnand %p5127_p3, %p5121_p0 }
  0x85   :  { %1770 = vmatprep.subr.bf16.mxu0 %v643_v14  ;;  %2098 = vmatprep.subr.bf16.mxu1 %v645_v15  ;;  %v5303_v41 = vrot.slane %v5299_v36, %v5297_v35  ;;  %v683_v54 = vunpack.c.h.s8.bf16 %v139_v42  ;;  %v685_v55 = vunpack.c.h.s8.bf16 %v141_v43  ;;  %v682_v58 = vunpack.c.h.s8.bf16 %v138_v49  ;;  %v165_v17 = vld [vmem:[#allocation5 + $0x198] sm:$0xff] }
  0x86   :  { %v684_v59 = vunpack.c.h.s8.bf16 %v140_v50  ;;  %v691_v60 = vunpack.c.l.s8.bf16 %v147_v56  ;;  %v693_v61 = vunpack.c.l.s8.bf16 %v149_v57  ;;  %v690_v0 = vunpack.c.l.s8.bf16 %v146_v62  ;;  %v178_v50 = vld [vmem:[#allocation5 + $0x200] sm:$0xff] }
  0x87   :  { %v1667_v44 = vcombine.high %v5303_v41, %v5303_v41  ;;  %v692_v1 = vunpack.c.l.s8.bf16 %v148_v63  ;;  %v699_v2 = vunpack.c.h.s8.bf16 %v147_v56  ;;  %v701_v3 = vunpack.c.h.s8.bf16 %v149_v57 }
  0x88   :  { %1771 = vmatpush1.bf16.msra.mxu0 %v642_v21  ;;  %2099 = vmatpush1.bf16.msra.mxu1 %v644_v22  ;;  %v698_v6 = vunpack.c.h.s8.bf16 %v146_v62  ;;  %v700_v7 = vunpack.c.h.s8.bf16 %v148_v63  ;;  %v707_v8 = vunpack.c.l.s8.bf16 %v155_v4  ;;  %v709_v9 = vunpack.c.l.s8.bf16 %v157_v5  ;;  %v162_v22 = vld [vmem:[#allocation5 + $0x180] sm:$0xff] }
  0x89   :  { %1772 = vmatprep.subr.bf16.mxu0 %v651_v23  ;;  %2100 = vmatprep.subr.bf16.mxu1 %v653_v24  ;;  %v5308_v51 = vrot.slane %v1667_v44, %v5297_v35  ;;  %v706_v12 = vunpack.c.l.s8.bf16 %v154_v10  ;;  %v708_v13 = vunpack.c.l.s8.bf16 %v156_v11  ;;  %v715_v14 = vunpack.c.h.s8.bf16 %v155_v4  ;;  %v164_v23 = vld [vmem:[#allocation5 + $0x190] sm:$0xff]  ;;  %v179_v44 = vld [vmem:[#allocation5 + $0x208] sm:$0xff] }
  0x8a   :  { %v717_v15 = vunpack.c.h.s8.bf16 %v157_v5  ;;  %v714_v18 = vunpack.c.h.s8.bf16 %v154_v10  ;;  %v716_v19 = vunpack.c.h.s8.bf16 %v156_v11  ;;  %v723_v20 = vunpack.c.l.s8.bf16 %v163_v16 }
  0x8b   :  { %1798 = vmatprep.mubr.bf16.mxu0 %v5308_v51  ;;  %2126 = vmatprep.mubr.bf16.mxu1 %v5308_v51  ;;  %v725_v21 = vunpack.c.l.s8.bf16 %v165_v17  ;;  %v722_v24 = vunpack.c.l.s8.bf16 %v162_v22  ;;  %v724_v25 = vunpack.c.l.s8.bf16 %v164_v23  ;;  %v731_v27 = vunpack.c.h.s8.bf16 %v163_v16 }
  0x8c   :  { %1773 = vmatpush1.bf16.msra.mxu0 %v650_v29  ;;  %2101 = vmatpush1.bf16.msra.mxu1 %v652_v30  ;;  %v733_v28 = vunpack.c.h.s8.bf16 %v165_v17  ;;  %v171_v29 = vld [vmem:[#allocation5 + $0x1c8] sm:$0xff]  ;;  %v173_v30 = vld [vmem:[#allocation5 + $0x1d8] sm:$0xff]  ;;  %v763_v56 = vunpack.c.h.s8.bf16 %v179_v44 }
  0x8d   :  { %1774 = vmatprep.subr.bf16.mxu0 %v659_v31  ;;  %2102 = vmatprep.subr.bf16.mxu1 %v661_v32  ;;  %v730_v31 = vunpack.c.h.s8.bf16 %v162_v22  ;;  %v732_v32 = vunpack.c.h.s8.bf16 %v164_v23  ;;  %v739_v33 = vunpack.c.l.s8.bf16 %v171_v29  ;;  %v741_v34 = vunpack.c.l.s8.bf16 %v173_v30 }
  0x8e   :  { %v747_v42 = vunpack.c.h.s8.bf16 %v171_v29  ;;  %v749_v43 = vunpack.c.h.s8.bf16 %v173_v30 }
  0x90   :  { %1775 = vmatpush1.bf16.msra.mxu0 %v658_v37  ;;  %2103 = vmatpush1.bf16.msra.mxu1 %v660_v38  ;;  %v170_v37 = vld [vmem:[#allocation5 + $0x1c0] sm:$0xff]  ;;  %v172_v38 = vld [vmem:[#allocation5 + $0x1d0] sm:$0xff] }
  0x91   :  { %1776 = vmatprep.subr.bf16.mxu0 %v667_v39  ;;  %2104 = vmatprep.subr.bf16.mxu1 %v669_v40  ;;  %v738_v39 = vunpack.c.l.s8.bf16 %v170_v37  ;;  %v740_v40 = vunpack.c.l.s8.bf16 %v172_v38 }
  0x94   :  { %1777 = vmatpush1.bf16.msra.mxu0 %v666_v45  ;;  %2105 = vmatpush1.bf16.msra.mxu1 %v668_v46  ;;  %v181_v45 = vld [vmem:[#allocation5 + $0x218] sm:$0xff]  ;;  %v746_v46 = vunpack.c.h.s8.bf16 %v170_v37 }
  0x95   :  { %1778 = vmatprep.subr.bf16.mxu0 %v675_v47  ;;  %2106 = vmatprep.subr.bf16.mxu1 %v677_v48  ;;  %v748_v47 = vunpack.c.h.s8.bf16 %v172_v38  ;;  %v755_v48 = vunpack.c.l.s8.bf16 %v179_v44  ;;  %v757_v49 = vunpack.c.l.s8.bf16 %v181_v45  ;;  %v765_v57 = vunpack.c.h.s8.bf16 %v181_v45 }
  0x98   :  { %1779 = vmatpush1.bf16.msra.mxu0 %v674_v52  ;;  %2107 = vmatpush1.bf16.msra.mxu1 %v676_v53  ;;  %v180_v52 = vld [vmem:[#allocation5 + $0x210] sm:$0xff]  ;;  %v5314_v53 = vrot.slane %v5303_v41, %v5297_v35  ;;  %v762_v41 = vunpack.c.h.s8.bf16 %v178_v50 }
  0x99   :  { %1780 = vmatprep.subr.bf16.mxu0 %v683_v54  ;;  %2108 = vmatprep.subr.bf16.mxu1 %v685_v55  ;;  %v754_v54 = vunpack.c.l.s8.bf16 %v178_v50  ;;  %v756_v55 = vunpack.c.l.s8.bf16 %v180_v52 }
  0x9c   :  { %1781 = vmatpush1.bf16.msra.mxu0 %v682_v58  ;;  %2109 = vmatpush1.bf16.msra.mxu1 %v684_v59  ;;  %v187_v58 = vld [vmem:[#allocation5 + $0x248] sm:$0xff]  ;;  %v189_v59 = vld [vmem:[#allocation5 + $0x258] sm:$0xff] }
  0x9d   :  { %1782 = vmatprep.subr.bf16.mxu0 %v691_v60  ;;  %2110 = vmatprep.subr.bf16.mxu1 %v693_v61  ;;  %v5318_v60 = vcombine.high %v5308_v51, %v5308_v51  ;;  %v764_v61 = vunpack.c.h.s8.bf16 %v180_v52  ;;  %v771_v62 = vunpack.c.l.s8.bf16 %v187_v58  ;;  %v773_v63 = vunpack.c.l.s8.bf16 %v189_v59 }
  0x9e   :  { %v779_v4 = vunpack.c.h.s8.bf16 %v187_v58  ;;  %v781_v5 = vunpack.c.h.s8.bf16 %v189_v59 }
  0xa0   :  { %1783 = vmatpush1.bf16.msra.mxu0 %v690_v0  ;;  %2111 = vmatpush1.bf16.msra.mxu1 %v692_v1  ;;  %v186_v0 = vld [vmem:[#allocation5 + $0x240] sm:$0xff]  ;;  %v188_v1 = vld [vmem:[#allocation5 + $0x250] sm:$0xff] }
  0xa1   :  { %1784 = vmatprep.subr.bf16.mxu0 %v699_v2  ;;  %2112 = vmatprep.subr.bf16.mxu1 %v701_v3  ;;  %v770_v2 = vunpack.c.l.s8.bf16 %v186_v0  ;;  %v772_v3 = vunpack.c.l.s8.bf16 %v188_v1 }
  0xa4   :  { %1785 = vmatpush1.bf16.msra.mxu0 %v698_v6  ;;  %2113 = vmatpush1.bf16.msra.mxu1 %v700_v7  ;;  %v195_v6 = vld [vmem:[#allocation5 + $0x288] sm:$0xff]  ;;  %v197_v7 = vld [vmem:[#allocation5 + $0x298] sm:$0xff] }
  0xa5   :  { %1786 = vmatprep.subr.bf16.mxu0 %v707_v8  ;;  %2114 = vmatprep.subr.bf16.mxu1 %v709_v9  ;;  %v778_v8 = vunpack.c.h.s8.bf16 %v186_v0  ;;  %v780_v9 = vunpack.c.h.s8.bf16 %v188_v1  ;;  %v787_v10 = vunpack.c.l.s8.bf16 %v195_v6  ;;  %v789_v11 = vunpack.c.l.s8.bf16 %v197_v7 }
  0xa6   :  { %v795_v16 = vunpack.c.h.s8.bf16 %v195_v6  ;;  %v797_v17 = vunpack.c.h.s8.bf16 %v197_v7 }
  0xa8   :  { %1787 = vmatpush1.bf16.msra.mxu0 %v706_v12  ;;  %2115 = vmatpush1.bf16.msra.mxu1 %v708_v13  ;;  %v194_v12 = vld [vmem:[#allocation5 + $0x280] sm:$0xff]  ;;  %v196_v13 = vld [vmem:[#allocation5 + $0x290] sm:$0xff] }
  0xa9   :  { %1788 = vmatprep.subr.bf16.mxu0 %v715_v14  ;;  %2116 = vmatprep.subr.bf16.mxu1 %v717_v15  ;;  %v786_v14 = vunpack.c.l.s8.bf16 %v194_v12  ;;  %v788_v15 = vunpack.c.l.s8.bf16 %v196_v13 }
  0xac   :  { %1789 = vmatpush1.bf16.msra.mxu0 %v714_v18  ;;  %2117 = vmatpush1.bf16.msra.mxu1 %v716_v19  ;;  %v203_v18 = vld [vmem:[#allocation5 + $0x2c8] sm:$0xff]  ;;  %v205_v19 = vld [vmem:[#allocation5 + $0x2d8] sm:$0xff] }
  0xad   :  { %1790 = vmatprep.subr.bf16.mxu0 %v723_v20  ;;  %2118 = vmatprep.subr.bf16.mxu1 %v725_v21  ;;  %v794_v20 = vunpack.c.h.s8.bf16 %v194_v12  ;;  %v796_v21 = vunpack.c.h.s8.bf16 %v196_v13  ;;  %v803_v22 = vunpack.c.l.s8.bf16 %v203_v18  ;;  %v805_v23 = vunpack.c.l.s8.bf16 %v205_v19 }
  0xae   :  { %v811_v29 = vunpack.c.h.s8.bf16 %v203_v18  ;;  %v813_v30 = vunpack.c.h.s8.bf16 %v205_v19 }
  0xb0   :  { %1791 = vmatpush1.bf16.msra.mxu0 %v722_v24  ;;  %2119 = vmatpush1.bf16.msra.mxu1 %v724_v25  ;;  %v202_v24 = vld [vmem:[#allocation5 + $0x2c0] sm:$0xff]  ;;  %v204_v25 = vld [vmem:[#allocation5 + $0x2d0] sm:$0xff] }
  0xb1   :  { %1792 = vmatprep.subr.bf16.mxu0 %v731_v27  ;;  %2120 = vmatprep.subr.bf16.mxu1 %v733_v28  ;;  %v802_v27 = vunpack.c.l.s8.bf16 %v202_v24  ;;  %v804_v28 = vunpack.c.l.s8.bf16 %v204_v25 }
  0xb4   :  { %1793 = vmatpush1.bf16.msra.mxu0 %v730_v31  ;;  %2121 = vmatpush1.bf16.msra.mxu1 %v732_v32  ;;  %v211_v31 = vld [vmem:[#allocation5 + $0x308] sm:$0xff]  ;;  %v213_v32 = vld [vmem:[#allocation5 + $0x318] sm:$0xff] }
  0xb5   :  { %1794 = vmatprep.subr.bf16.mxu0 %v739_v33  ;;  %2122 = vmatprep.subr.bf16.mxu1 %v741_v34  ;;  %v810_v33 = vunpack.c.h.s8.bf16 %v202_v24  ;;  %v812_v34 = vunpack.c.h.s8.bf16 %v204_v25  ;;  %v819_v37 = vunpack.c.l.s8.bf16 %v211_v31  ;;  %v821_v38 = vunpack.c.l.s8.bf16 %v213_v32 }
  0xb6   :  { %v827_v44 = vunpack.c.h.s8.bf16 %v211_v31  ;;  %v829_v45 = vunpack.c.h.s8.bf16 %v213_v32  ;;  %v5333_v31 = vcombine.high %v5314_v53, %v5314_v53 }
  0xb8   :  { %1795 = vmatpush1.bf16.msra.mxu0 %v738_v39  ;;  %2123 = vmatpush1.bf16.msra.mxu1 %v740_v40  ;;  %v210_v39 = vld [vmem:[#allocation5 + $0x300] sm:$0xff]  ;;  %v212_v40 = vld [vmem:[#allocation5 + $0x310] sm:$0xff] }
  0xb9   :  { %1796 = vmatprep.subr.bf16.mxu0 %v747_v42  ;;  %2124 = vmatprep.subr.bf16.mxu1 %v749_v43  ;;  %v818_v42 = vunpack.c.l.s8.bf16 %v210_v39  ;;  %v820_v43 = vunpack.c.l.s8.bf16 %v212_v40 }
  0xbc   :  { %1797 = vmatpush1.bf16.msra.mxu0 %v746_v46  ;;  %2125 = vmatpush1.bf16.msra.mxu1 %v748_v47  ;;  %v219_v46 = vld [vmem:[#allocation5 + $0x348] sm:$0xff]  ;;  %v221_v47 = vld [vmem:[#allocation5 + $0x358] sm:$0xff] }
  0xbd   :  { %1807 = vmatprep.subr.bf16.mxu0 %v755_v48  ;;  %2135 = vmatprep.subr.bf16.mxu1 %v757_v49  ;;  %v826_v48 = vunpack.c.h.s8.bf16 %v210_v39  ;;  %v828_v49 = vunpack.c.h.s8.bf16 %v212_v40  ;;  %v835_v50 = vunpack.c.l.s8.bf16 %v219_v46  ;;  %v837_v52 = vunpack.c.l.s8.bf16 %v221_v47  ;;  %v253_v39 = vld [vmem:[#allocation5 + $0x458] sm:$0xff] }
  0xbe   :  { %v843_v58 = vunpack.c.h.s8.bf16 %v219_v46  ;;  %v845_v59 = vunpack.c.h.s8.bf16 %v221_v47  ;;  %v250_v46 = vld [vmem:[#allocation5 + $0x440] sm:$0xff]  ;;  %v252_v47 = vld [vmem:[#allocation5 + $0x450] sm:$0xff] }
  0xbf   :  { %1799 = vmatmul.mubr.bf16.vlgmr.msra.gmra.mrb[0].mxu0 %v5314_v53  ;;  %2127 = vmatmul.mubr.bf16.vlgmr.msra.gmra.mrb[0].mxu1 %v5314_v53 }
  0xc0   :  { %1808 = vmatpush1.bf16.msra.mxu0 %v754_v54  ;;  %2136 = vmatpush1.bf16.msra.mxu1 %v756_v55  ;;  %v218_v54 = vld [vmem:[#allocation5 + $0x340] sm:$0xff]  ;;  %v220_v55 = vld [vmem:[#allocation5 + $0x350] sm:$0xff] }
  0xc1   :  { %1809 = vmatprep.subr.bf16.mxu0 %v763_v56  ;;  %2137 = vmatprep.subr.bf16.mxu1 %v765_v57  ;;  %v834_v56 = vunpack.c.l.s8.bf16 %v218_v54  ;;  %v836_v57 = vunpack.c.l.s8.bf16 %v220_v55 }
  0xc2   :  { %1839 = vmatprep.mubr.bf16.mxu0 %v5318_v60  ;;  %2167 = vmatprep.mubr.bf16.mxu1 %v5318_v60 }
  0xc4   :  { %1810 = vmatpush1.bf16.msra.mxu0 %v762_v41  ;;  %2138 = vmatpush1.bf16.msra.mxu1 %v764_v61  ;;  %v227_v41 = vld [vmem:[#allocation5 + $0x388] sm:$0xff]  ;;  %v229_v61 = vld [vmem:[#allocation5 + $0x398] sm:$0xff] }
  0xc5   :  { %1811 = vmatprep.subr.bf16.mxu0 %v771_v62  ;;  %2139 = vmatprep.subr.bf16.mxu1 %v773_v63  ;;  %v842_v62 = vunpack.c.h.s8.bf16 %v218_v54  ;;  %v844_v63 = vunpack.c.h.s8.bf16 %v220_v55  ;;  %v851_v0 = vunpack.c.l.s8.bf16 %v227_v41  ;;  %v853_v1 = vunpack.c.l.s8.bf16 %v229_v61  ;;  %v259_v54 = vld [vmem:[#allocation5 + $0x488] sm:$0xff]  ;;  %v261_v55 = vld [vmem:[#allocation5 + $0x498] sm:$0xff] }
  0xc6   :  { %v859_v6 = vunpack.c.h.s8.bf16 %v227_v41  ;;  %v861_v7 = vunpack.c.h.s8.bf16 %v229_v61  ;;  %v258_v41 = vld [vmem:[#allocation5 + $0x480] sm:$0xff]  ;;  %v260_v61 = vld [vmem:[#allocation5 + $0x490] sm:$0xff] }
  0xc8   :  { %1812 = vmatpush1.bf16.msra.mxu0 %v770_v2  ;;  %2140 = vmatpush1.bf16.msra.mxu1 %v772_v3  ;;  %v226_v2 = vld [vmem:[#allocation5 + $0x380] sm:$0xff]  ;;  %v228_v3 = vld [vmem:[#allocation5 + $0x390] sm:$0xff] }
  0xc9   :  { %1813 = vmatprep.subr.bf16.mxu0 %v779_v4  ;;  %2141 = vmatprep.subr.bf16.mxu1 %v781_v5  ;;  %v850_v4 = vunpack.c.l.s8.bf16 %v226_v2  ;;  %v852_v5 = vunpack.c.l.s8.bf16 %v228_v3 }
  0xcc   :  { %1814 = vmatpush1.bf16.msra.mxu0 %v778_v8  ;;  %2142 = vmatpush1.bf16.msra.mxu1 %v780_v9  ;;  %v235_v8 = vld [vmem:[#allocation5 + $0x3c8] sm:$0xff]  ;;  %v237_v9 = vld [vmem:[#allocation5 + $0x3d8] sm:$0xff] }
  0xcd   :  { %1815 = vmatprep.subr.bf16.mxu0 %v787_v10  ;;  %2143 = vmatprep.subr.bf16.mxu1 %v789_v11  ;;  %v858_v10 = vunpack.c.h.s8.bf16 %v226_v2  ;;  %v860_v11 = vunpack.c.h.s8.bf16 %v228_v3  ;;  %v867_v12 = vunpack.c.l.s8.bf16 %v235_v8  ;;  %v869_v13 = vunpack.c.l.s8.bf16 %v237_v9  ;;  %v267_v2 = vld [vmem:[#allocation5 + $0x4c8] sm:$0xff]  ;;  %v269_v3 = vld [vmem:[#allocation5 + $0x4d8] sm:$0xff] }
  0xce   :  { %v875_v19 = vunpack.c.h.s8.bf16 %v235_v8  ;;  %v266_v8 = vld [vmem:[#allocation5 + $0x4c0] sm:$0xff] }
  0xd0   :  { %1816 = vmatpush1.bf16.msra.mxu0 %v786_v14  ;;  %2144 = vmatpush1.bf16.msra.mxu1 %v788_v15  ;;  %v234_v14 = vld [vmem:[#allocation5 + $0x3c0] sm:$0xff]  ;;  %v236_v15 = vld [vmem:[#allocation5 + $0x3d0] sm:$0xff] }
  0xd1   :  { %1817 = vmatprep.subr.bf16.mxu0 %v795_v16  ;;  %2145 = vmatprep.subr.bf16.mxu1 %v797_v17  ;;  %v1652_v16 = vcombine.high %v5299_v36, %v5299_v36  ;;  %v866_v17 = vunpack.c.l.s8.bf16 %v234_v14  ;;  %v868_v18 = vunpack.c.l.s8.bf16 %v236_v15  ;;  %v874_v24 = vunpack.c.h.s8.bf16 %v234_v14  ;;  %v275_v14 = vld [vmem:[#allocation5 + $0x508] sm:$0xff] }
  0xd2   :  { %v876_v25 = vunpack.c.h.s8.bf16 %v236_v15  ;;  %v277_v15 = vld [vmem:[#allocation5 + $0x518] sm:$0xff] }
  0xd4   :  { %1818 = vmatpush1.bf16.msra.mxu0 %v794_v20  ;;  %2146 = vmatpush1.bf16.msra.mxu1 %v796_v21  ;;  %v877_v20 = vunpack.c.h.s8.bf16 %v237_v9  ;;  %v243_v21 = vld [vmem:[#allocation5 + $0x408] sm:$0xff]  ;;  %v268_v9 = vld [vmem:[#allocation5 + $0x4d0] sm:$0xff] }
  0xd5   :  { %1819 = vmatprep.subr.bf16.mxu0 %v803_v22  ;;  %2147 = vmatprep.subr.bf16.mxu1 %v805_v23  ;;  %v245_v22 = vld [vmem:[#allocation5 + $0x418] sm:$0xff]  ;;  %v5327_v23 = vrot.slane %v1652_v16, %v5297_v35  ;;  %v883_v36 = vunpack.c.l.s8.bf16 %v243_v21  ;;  %v938_v16 = vunpack.c.h.s8.bf16 %v266_v8 }
  0xd8   :  { %1820 = vmatpush1.bf16.msra.mxu0 %v802_v27  ;;  %2148 = vmatpush1.bf16.msra.mxu1 %v804_v28  ;;  %v885_v27 = vunpack.c.l.s8.bf16 %v245_v22  ;;  %v242_v28 = vld [vmem:[#allocation5 + $0x400] sm:$0xff] }
  0xd9   :  { %1821 = vmatprep.subr.bf16.mxu0 %v811_v29  ;;  %2149 = vmatprep.subr.bf16.mxu1 %v813_v30  ;;  %v244_v29 = vld [vmem:[#allocation5 + $0x410] sm:$0xff]  ;;  %v1668_v30 = vcombine.high %v5327_v23, %v5327_v23  ;;  %v882_v32 = vunpack.c.l.s8.bf16 %v242_v28 }
  0xdb   :  { %v5336_v40 = vrot.slane %v1668_v30, %v5297_v35 }
  0xdc   :  { %1822 = vmatpush1.bf16.msra.mxu0 %v810_v33  ;;  %2150 = vmatpush1.bf16.msra.mxu1 %v812_v34  ;;  %v884_v33 = vunpack.c.l.s8.bf16 %v244_v29  ;;  %v891_v34 = vunpack.c.h.s8.bf16 %v243_v21  ;;  %v276_v21 = vld [vmem:[#allocation5 + $0x510] sm:$0xff] }
  0xdd   :  { %1823 = vmatprep.subr.bf16.mxu0 %v819_v37  ;;  %2151 = vmatprep.subr.bf16.mxu1 %v821_v38  ;;  %v893_v37 = vunpack.c.h.s8.bf16 %v245_v22  ;;  %v251_v38 = vld [vmem:[#allocation5 + $0x448] sm:$0xff]  ;;  %v956_v30 = vunpack.c.h.s8.bf16 %v276_v21 }
  0xe0   :  { %1824 = vmatpush1.bf16.msra.mxu0 %v818_v42  ;;  %2152 = vmatpush1.bf16.msra.mxu1 %v820_v43  ;;  %v890_v42 = vunpack.c.h.s8.bf16 %v242_v28  ;;  %v892_v43 = vunpack.c.h.s8.bf16 %v244_v29  ;;  %v285_v28 = vld [vmem:[#allocation5 + $0x558] sm:$0xff] }
  0xe1   :  { %1825 = vmatprep.subr.bf16.mxu0 %v827_v44  ;;  %2153 = vmatprep.subr.bf16.mxu1 %v829_v45  ;;  %v899_v44 = vunpack.c.l.s8.bf16 %v251_v38  ;;  %v901_v45 = vunpack.c.l.s8.bf16 %v253_v39 }
  0xe4   :  { %1826 = vmatpush1.bf16.msra.mxu0 %v826_v48  ;;  %2154 = vmatpush1.bf16.msra.mxu1 %v828_v49  ;;  %v898_v48 = vunpack.c.l.s8.bf16 %v250_v46  ;;  %v900_v49 = vunpack.c.l.s8.bf16 %v252_v47 }
  0xe5   :  { %1827 = vmatprep.subr.bf16.mxu0 %v835_v50  ;;  %2155 = vmatprep.subr.bf16.mxu1 %v837_v52  ;;  %v907_v50 = vunpack.c.h.s8.bf16 %v251_v38  ;;  %v909_v52 = vunpack.c.h.s8.bf16 %v253_v39 }
  0xe8   :  { %1828 = vmatpush1.bf16.msra.mxu0 %v834_v56  ;;  %2156 = vmatpush1.bf16.msra.mxu1 %v836_v57  ;;  %v906_v56 = vunpack.c.h.s8.bf16 %v250_v46  ;;  %v908_v57 = vunpack.c.h.s8.bf16 %v252_v47 }
  0xe9   :  { %1829 = vmatprep.subr.bf16.mxu0 %v843_v58  ;;  %2157 = vmatprep.subr.bf16.mxu1 %v845_v59  ;;  %v915_v58 = vunpack.c.l.s8.bf16 %v259_v54  ;;  %v917_v59 = vunpack.c.l.s8.bf16 %v261_v55 }
  0xec   :  { %1830 = vmatpush1.bf16.msra.mxu0 %v842_v62  ;;  %2158 = vmatpush1.bf16.msra.mxu1 %v844_v63  ;;  %v914_v62 = vunpack.c.l.s8.bf16 %v258_v41  ;;  %v916_v63 = vunpack.c.l.s8.bf16 %v260_v61 }
  0xed   :  { %1831 = vmatprep.subr.bf16.mxu0 %v851_v0  ;;  %2159 = vmatprep.subr.bf16.mxu1 %v853_v1  ;;  %v923_v0 = vunpack.c.h.s8.bf16 %v259_v54  ;;  %v925_v1 = vunpack.c.h.s8.bf16 %v261_v55 }
  0xf0   :  { %1832 = vmatpush1.bf16.msra.mxu0 %v850_v4  ;;  %2160 = vmatpush1.bf16.msra.mxu1 %v852_v5  ;;  %v922_v4 = vunpack.c.h.s8.bf16 %v258_v41  ;;  %v924_v5 = vunpack.c.h.s8.bf16 %v260_v61 }
  0xf1   :  { %1833 = vmatprep.subr.bf16.mxu0 %v859_v6  ;;  %2161 = vmatprep.subr.bf16.mxu1 %v861_v7  ;;  %v931_v6 = vunpack.c.l.s8.bf16 %v267_v2  ;;  %v933_v7 = vunpack.c.l.s8.bf16 %v269_v3 }
  0xf4   :  { %1834 = vmatpush1.bf16.msra.mxu0 %v858_v10  ;;  %2162 = vmatpush1.bf16.msra.mxu1 %v860_v11  ;;  %v930_v10 = vunpack.c.l.s8.bf16 %v266_v8  ;;  %v932_v11 = vunpack.c.l.s8.bf16 %v268_v9 }
  0xf5   :  { %1835 = vmatprep.subr.bf16.mxu0 %v867_v12  ;;  %2163 = vmatprep.subr.bf16.mxu1 %v869_v13  ;;  %v939_v12 = vunpack.c.h.s8.bf16 %v267_v2  ;;  %v941_v13 = vunpack.c.h.s8.bf16 %v269_v3 }
  0xf8   :  { %1836 = vmatpush1.bf16.msra.mxu0 %v866_v17  ;;  %2164 = vmatpush1.bf16.msra.mxu1 %v868_v18  ;;  %v940_v17 = vunpack.c.h.s8.bf16 %v268_v9  ;;  %v947_v18 = vunpack.c.l.s8.bf16 %v275_v14 }
  0xf9   :  { %1837 = vmatprep.subr.bf16.mxu0 %v875_v19  ;;  %2165 = vmatprep.subr.bf16.mxu1 %v877_v20  ;;  %v949_v19 = vunpack.c.l.s8.bf16 %v277_v15  ;;  %v274_v20 = vld [vmem:[#allocation5 + $0x500] sm:$0xff] }
  0xfa   :  { %v946_v22 = vunpack.c.l.s8.bf16 %v274_v20  ;;  %v954_v29 = vunpack.c.h.s8.bf16 %v274_v20  ;;  %v317_v20 = vld [vmem:[#allocation5 + $0x658] sm:$0xff] }
  0xfc   :  { %1838 = vmatpush1.bf16.msra.mxu0 %v874_v24  ;;  %2166 = vmatpush1.bf16.msra.mxu1 %v876_v25  ;;  %v948_v24 = vunpack.c.l.s8.bf16 %v276_v21  ;;  %v955_v25 = vunpack.c.h.s8.bf16 %v275_v14  ;;  %v5344_v14 = vrot.slane %v5327_v23, %v5297_v35  ;;  %v5348_v21 = vcombine.high %v5336_v40, %v5336_v40 }
  0xfd   :  { %1848 = vmatprep.subr.bf16.mxu0 %v883_v36  ;;  %2176 = vmatprep.subr.bf16.mxu1 %v885_v27  ;;  %v957_v36 = vunpack.c.h.s8.bf16 %v277_v15  ;;  %v283_v27 = vld [vmem:[#allocation5 + $0x548] sm:$0xff] }
  0xff   :  { %1840 = vmatmul.mubr.bf16.vlgmr.msra.gmra.mrb[0].mxu0 %v5333_v31  ;;  %2168 = vmatmul.mubr.bf16.vlgmr.msra.gmra.mrb[0].mxu1 %v5333_v31 }
 0x100   :  { %1849 = vmatpush1.bf16.msra.mxu0 %v882_v32  ;;  %2177 = vmatpush1.bf16.msra.mxu1 %v884_v33  ;;  %v963_v32 = vunpack.c.l.s8.bf16 %v283_v27  ;;  %v965_v33 = vunpack.c.l.s8.bf16 %v285_v28 }
 0x101   :  { %1850 = vmatprep.subr.bf16.mxu0 %v891_v34  ;;  %2178 = vmatprep.subr.bf16.mxu1 %v893_v37  ;;  %v282_v34 = vld [vmem:[#allocation5 + $0x540] sm:$0xff]  ;;  %v284_v37 = vld [vmem:[#allocation5 + $0x550] sm:$0xff] }
 0x102   :  { %1880 = vmatprep.mubr.bf16.mxu0 %v5336_v40  ;;  %2208 = vmatprep.mubr.bf16.mxu1 %v5336_v40  ;;  %v962_v38 = vunpack.c.l.s8.bf16 %v282_v34  ;;  %v964_v39 = vunpack.c.l.s8.bf16 %v284_v37  ;;  %v970_v46 = vunpack.c.h.s8.bf16 %v282_v34  ;;  %v972_v47 = vunpack.c.h.s8.bf16 %v284_v37  ;;  %v325_v34 = vld [vmem:[#allocation5 + $0x698] sm:$0xff] }
 0x104   :  { %1851 = vmatpush1.bf16.msra.mxu0 %v890_v42  ;;  %2179 = vmatpush1.bf16.msra.mxu1 %v892_v43  ;;  %v971_v42 = vunpack.c.h.s8.bf16 %v283_v27  ;;  %v973_v43 = vunpack.c.h.s8.bf16 %v285_v28  ;;  %v316_v27 = vld [vmem:[#allocation5 + $0x650] sm:$0xff] }
 0x105   :  { %1852 = vmatprep.subr.bf16.mxu0 %v899_v44  ;;  %2180 = vmatprep.subr.bf16.mxu1 %v901_v45  ;;  %v291_v44 = vld [vmem:[#allocation5 + $0x588] sm:$0xff]  ;;  %v293_v45 = vld [vmem:[#allocation5 + $0x598] sm:$0xff] }
 0x108   :  { %1853 = vmatpush1.bf16.msra.mxu0 %v898_v48  ;;  %2181 = vmatpush1.bf16.msra.mxu1 %v900_v49  ;;  %v979_v48 = vunpack.c.l.s8.bf16 %v291_v44  ;;  %v981_v49 = vunpack.c.l.s8.bf16 %v293_v45 }
 0x109   :  { %1854 = vmatprep.subr.bf16.mxu0 %v907_v50  ;;  %2182 = vmatprep.subr.bf16.mxu1 %v909_v52  ;;  %v290_v50 = vld [vmem:[#allocation5 + $0x580] sm:$0xff]  ;;  %v292_v52 = vld [vmem:[#allocation5 + $0x590] sm:$0xff] }
 0x10a   :  { %v978_v54 = vunpack.c.l.s8.bf16 %v290_v50  ;;  %v980_v55 = vunpack.c.l.s8.bf16 %v292_v52  ;;  %v986_v41 = vunpack.c.h.s8.bf16 %v290_v50  ;;  %v988_v61 = vunpack.c.h.s8.bf16 %v292_v52  ;;  %v333_v50 = vld [vmem:[#allocation5 + $0x6d8] sm:$0xff] }
 0x10c   :  { %1855 = vmatpush1.bf16.msra.mxu0 %v906_v56  ;;  %2183 = vmatpush1.bf16.msra.mxu1 %v908_v57  ;;  %v987_v56 = vunpack.c.h.s8.bf16 %v291_v44  ;;  %v989_v57 = vunpack.c.h.s8.bf16 %v293_v45  ;;  %v324_v44 = vld [vmem:[#allocation5 + $0x690] sm:$0xff] }
 0x10d   :  { %1856 = vmatprep.subr.bf16.mxu0 %v915_v58  ;;  %2184 = vmatprep.subr.bf16.mxu1 %v917_v59  ;;  %v299_v58 = vld [vmem:[#allocation5 + $0x5c8] sm:$0xff]  ;;  %v301_v59 = vld [vmem:[#allocation5 + $0x5d8] sm:$0xff] }
 0x110   :  { %1857 = vmatpush1.bf16.msra.mxu0 %v914_v62  ;;  %2185 = vmatpush1.bf16.msra.mxu1 %v916_v63  ;;  %v995_v62 = vunpack.c.l.s8.bf16 %v299_v58  ;;  %v997_v63 = vunpack.c.l.s8.bf16 %v301_v59 }
 0x111   :  { %1858 = vmatprep.subr.bf16.mxu0 %v923_v0  ;;  %2186 = vmatprep.subr.bf16.mxu1 %v925_v1  ;;  %v298_v0 = vld [vmem:[#allocation5 + $0x5c0] sm:$0xff]  ;;  %v300_v1 = vld [vmem:[#allocation5 + $0x5d0] sm:$0xff] }
 0x112   :  { %v994_v2 = vunpack.c.l.s8.bf16 %v298_v0  ;;  %v996_v3 = vunpack.c.l.s8.bf16 %v300_v1  ;;  %v1002_v8 = vunpack.c.h.s8.bf16 %v298_v0  ;;  %v1004_v9 = vunpack.c.h.s8.bf16 %v300_v1  ;;  %v341_v0 = vld [vmem:[#allocation5 + $0x718] sm:$0xff] }
 0x114   :  { %1859 = vmatpush1.bf16.msra.mxu0 %v922_v4  ;;  %2187 = vmatpush1.bf16.msra.mxu1 %v924_v5  ;;  %v1003_v4 = vunpack.c.h.s8.bf16 %v299_v58  ;;  %v1005_v5 = vunpack.c.h.s8.bf16 %v301_v59  ;;  %v332_v58 = vld [vmem:[#allocation5 + $0x6d0] sm:$0xff] }
 0x115   :  { %1860 = vmatprep.subr.bf16.mxu0 %v931_v6  ;;  %2188 = vmatprep.subr.bf16.mxu1 %v933_v7  ;;  %v307_v6 = vld [vmem:[#allocation5 + $0x608] sm:$0xff]  ;;  %v309_v7 = vld [vmem:[#allocation5 + $0x618] sm:$0xff] }
 0x118   :  { %1861 = vmatpush1.bf16.msra.mxu0 %v930_v10  ;;  %2189 = vmatpush1.bf16.msra.mxu1 %v932_v11  ;;  %v1011_v10 = vunpack.c.l.s8.bf16 %v307_v6  ;;  %v1013_v11 = vunpack.c.l.s8.bf16 %v309_v7 }
 0x119   :  { %1862 = vmatprep.subr.bf16.mxu0 %v939_v12  ;;  %2190 = vmatprep.subr.bf16.mxu1 %v941_v13  ;;  %v306_v12 = vld [vmem:[#allocation5 + $0x600] sm:$0xff]  ;;  %v308_v13 = vld [vmem:[#allocation5 + $0x610] sm:$0xff] }
 0x11a   :  { %v1010_v15 = vunpack.c.l.s8.bf16 %v306_v12  ;;  %v1018_v23 = vunpack.c.h.s8.bf16 %v306_v12  ;;  %v349_v12 = vld [vmem:[#allocation5 + $0x758] sm:$0xff] }
 0x11c   :  { %1863 = vmatpush1.bf16.msra.mxu0 %v938_v16  ;;  %2191 = vmatpush1.bf16.msra.mxu1 %v940_v17  ;;  %v1012_v16 = vunpack.c.l.s8.bf16 %v308_v13  ;;  %v1019_v17 = vunpack.c.h.s8.bf16 %v307_v6  ;;  %v340_v6 = vld [vmem:[#allocation5 + $0x710] sm:$0xff] }
 0x11d   :  { %1864 = vmatprep.subr.bf16.mxu0 %v947_v18  ;;  %2192 = vmatprep.subr.bf16.mxu1 %v949_v19  ;;  %v1021_v18 = vunpack.c.h.s8.bf16 %v309_v7  ;;  %v315_v19 = vld [vmem:[#allocation5 + $0x648] sm:$0xff] }
 0x120   :  { %1865 = vmatpush1.bf16.msra.mxu0 %v946_v22  ;;  %2193 = vmatpush1.bf16.msra.mxu1 %v948_v24  ;;  %v1020_v22 = vunpack.c.h.s8.bf16 %v308_v13  ;;  %v1027_v24 = vunpack.c.l.s8.bf16 %v315_v19 }
 0x121   :  { %1866 = vmatprep.subr.bf16.mxu0 %v955_v25  ;;  %2194 = vmatprep.subr.bf16.mxu1 %v957_v36  ;;  %v1029_v25 = vunpack.c.l.s8.bf16 %v317_v20  ;;  %v314_v36 = vld [vmem:[#allocation5 + $0x640] sm:$0xff] }
 0x122   :  { %v1026_v28 = vunpack.c.l.s8.bf16 %v314_v36  ;;  %v1034_v37 = vunpack.c.h.s8.bf16 %v314_v36  ;;  %v357_v36 = vld [vmem:[#allocation5 + $0x798] sm:$0xff] }
 0x124   :  { %1867 = vmatpush1.bf16.msra.mxu0 %v954_v29  ;;  %2195 = vmatpush1.bf16.msra.mxu1 %v956_v30  ;;  %v1028_v29 = vunpack.c.l.s8.bf16 %v316_v27  ;;  %v1035_v30 = vunpack.c.h.s8.bf16 %v315_v19  ;;  %v348_v19 = vld [vmem:[#allocation5 + $0x750] sm:$0xff] }
 0x125   :  { %1868 = vmatprep.subr.bf16.mxu0 %v963_v32  ;;  %2196 = vmatprep.subr.bf16.mxu1 %v965_v33  ;;  %v1037_v32 = vunpack.c.h.s8.bf16 %v317_v20  ;;  %v323_v33 = vld [vmem:[#allocation5 + $0x688] sm:$0xff] }
 0x128   :  { %1869 = vmatpush1.bf16.msra.mxu0 %v962_v38  ;;  %2197 = vmatpush1.bf16.msra.mxu1 %v964_v39  ;;  %v1036_v38 = vunpack.c.h.s8.bf16 %v316_v27  ;;  %v1043_v39 = vunpack.c.l.s8.bf16 %v323_v33 }
 0x129   :  { %1870 = vmatprep.subr.bf16.mxu0 %v971_v42  ;;  %2198 = vmatprep.subr.bf16.mxu1 %v973_v43  ;;  %v1045_v42 = vunpack.c.l.s8.bf16 %v325_v34  ;;  %v322_v43 = vld [vmem:[#allocation5 + $0x680] sm:$0xff] }
 0x12a   :  { %v1042_v45 = vunpack.c.l.s8.bf16 %v322_v43  ;;  %v1050_v52 = vunpack.c.h.s8.bf16 %v322_v43  ;;  %v365_v43 = vld [vmem:[#allocation5 + $0x7d8] sm:$0xff] }
 0x12c   :  { %1871 = vmatpush1.bf16.msra.mxu0 %v970_v46  ;;  %2199 = vmatpush1.bf16.msra.mxu1 %v972_v47  ;;  %v1044_v46 = vunpack.c.l.s8.bf16 %v324_v44  ;;  %v1051_v47 = vunpack.c.h.s8.bf16 %v323_v33  ;;  %v356_v33 = vld [vmem:[#allocation5 + $0x790] sm:$0xff] }
 0x12d   :  { %1872 = vmatprep.subr.bf16.mxu0 %v979_v48  ;;  %2200 = vmatprep.subr.bf16.mxu1 %v981_v49  ;;  %v1053_v48 = vunpack.c.h.s8.bf16 %v325_v34  ;;  %v331_v49 = vld [vmem:[#allocation5 + $0x6c8] sm:$0xff] }
 0x130   :  { %1873 = vmatpush1.bf16.msra.mxu0 %v978_v54  ;;  %2201 = vmatpush1.bf16.msra.mxu1 %v980_v55  ;;  %v1052_v54 = vunpack.c.h.s8.bf16 %v324_v44  ;;  %v1059_v55 = vunpack.c.l.s8.bf16 %v331_v49 }
 0x131   :  { %1874 = vmatprep.subr.bf16.mxu0 %v987_v56  ;;  %2202 = vmatprep.subr.bf16.mxu1 %v989_v57  ;;  %v1061_v56 = vunpack.c.l.s8.bf16 %v333_v50  ;;  %v330_v57 = vld [vmem:[#allocation5 + $0x6c0] sm:$0xff] }
 0x132   :  { %v1058_v59 = vunpack.c.l.s8.bf16 %v330_v57  ;;  %v1066_v1 = vunpack.c.h.s8.bf16 %v330_v57  ;;  %v371_v57 = vld [vmem:[#allocation5 + $0x808] sm:$0xff] }
 0x134   :  { %1875 = vmatpush1.bf16.msra.mxu0 %v986_v41  ;;  %2203 = vmatpush1.bf16.msra.mxu1 %v988_v61  ;;  %v1060_v41 = vunpack.c.l.s8.bf16 %v332_v58  ;;  %v1067_v61 = vunpack.c.h.s8.bf16 %v331_v49  ;;  %v364_v49 = vld [vmem:[#allocation5 + $0x7d0] sm:$0xff] }
 0x135   :  { %1876 = vmatprep.subr.bf16.mxu0 %v995_v62  ;;  %2204 = vmatprep.subr.bf16.mxu1 %v997_v63  ;;  %v1069_v62 = vunpack.c.h.s8.bf16 %v333_v50  ;;  %v339_v63 = vld [vmem:[#allocation5 + $0x708] sm:$0xff]  ;;  %v5354_v50 = vld [vmem:[#allocation2 + $0x8] sm:$0xff] }
 0x138   :  { %1877 = vmatpush1.bf16.msra.mxu0 %v994_v2  ;;  %2205 = vmatpush1.bf16.msra.mxu1 %v996_v3  ;;  %v1068_v2 = vunpack.c.h.s8.bf16 %v332_v58  ;;  %v1075_v3 = vunpack.c.l.s8.bf16 %v339_v63  ;;  %v373_v58 = vld [vmem:[#allocation5 + $0x818] sm:$0xff] }
 0x139   :  { %1878 = vmatprep.subr.bf16.mxu0 %v1003_v4  ;;  %2206 = vmatprep.subr.bf16.mxu1 %v1005_v5  ;;  %v1077_v4 = vunpack.c.l.s8.bf16 %v341_v0  ;;  %v338_v5 = vld [vmem:[#allocation5 + $0x700] sm:$0xff] }
 0x13a   :  { %v1074_v7 = vunpack.c.l.s8.bf16 %v338_v5  ;;  %v1082_v13 = vunpack.c.h.s8.bf16 %v338_v5 }
 0x13c   :  { %1879 = vmatpush1.bf16.msra.mxu0 %v1002_v8  ;;  %2207 = vmatpush1.bf16.msra.mxu1 %v1004_v9  ;;  %v1076_v8 = vunpack.c.l.s8.bf16 %v340_v6  ;;  %v1083_v9 = vunpack.c.h.s8.bf16 %v339_v63  ;;  %v1141_v63 = vunpack.c.l.s8.bf16 %v373_v58 }
 0x13d   :  { %1889 = vmatprep.subr.bf16.mxu0 %v1011_v10  ;;  %2217 = vmatprep.subr.bf16.mxu1 %v1013_v11  ;;  %v1085_v10 = vunpack.c.h.s8.bf16 %v341_v0  ;;  %v347_v11 = vld [vmem:[#allocation5 + $0x748] sm:$0xff]  ;;  %v370_v0 = vld [vmem:[#allocation5 + $0x800] sm:$0xff] }
 0x13f   :  { %1881 = vmatmul.mubr.bf16.vlgmr.msra.gmra.mrb[0].mxu0 %v5344_v14  ;;  %2209 = vmatmul.mubr.bf16.vlgmr.msra.gmra.mrb[0].mxu1 %v5344_v14 }
 0x140   :  { %1890 = vmatpush1.bf16.msra.mxu0 %v1010_v15  ;;  %2218 = vmatpush1.bf16.msra.mxu1 %v1012_v16  ;;  %v1084_v15 = vunpack.c.h.s8.bf16 %v340_v6  ;;  %v1091_v16 = vunpack.c.l.s8.bf16 %v347_v11  ;;  %v1147_v6 = vunpack.c.h.s8.bf16 %v371_v57 }
 0x141   :  { %1891 = vmatprep.subr.bf16.mxu0 %v1019_v17  ;;  %2219 = vmatprep.subr.bf16.mxu1 %v1021_v18  ;;  %v1093_v17 = vunpack.c.l.s8.bf16 %v349_v12  ;;  %v346_v18 = vld [vmem:[#allocation5 + $0x740] sm:$0xff] }
 0x142   :  { %1921 = vmatprep.mubr.bf16.mxu0 %v5348_v21  ;;  %2249 = vmatprep.mubr.bf16.mxu1 %v5348_v21  ;;  %v1090_v20 = vunpack.c.l.s8.bf16 %v346_v18  ;;  %v1098_v27 = vunpack.c.h.s8.bf16 %v346_v18 }
 0x144   :  { %1892 = vmatpush1.bf16.msra.mxu0 %v1018_v23  ;;  %2220 = vmatpush1.bf16.msra.mxu1 %v1020_v22  ;;  %v1092_v23 = vunpack.c.l.s8.bf16 %v348_v19  ;;  %v1099_v22 = vunpack.c.h.s8.bf16 %v347_v11  ;;  %v1146_v11 = vunpack.c.h.s8.bf16 %v370_v0 }
 0x145   :  { %1893 = vmatprep.subr.bf16.mxu0 %v1027_v24  ;;  %2221 = vmatprep.subr.bf16.mxu1 %v1029_v25  ;;  %v1101_v24 = vunpack.c.h.s8.bf16 %v349_v12  ;;  %v355_v25 = vld [vmem:[#allocation5 + $0x788] sm:$0xff] }
 0x148   :  { %1894 = vmatpush1.bf16.msra.mxu0 %v1026_v28  ;;  %2222 = vmatpush1.bf16.msra.mxu1 %v1028_v29  ;;  %v1100_v28 = vunpack.c.h.s8.bf16 %v348_v19  ;;  %v1107_v29 = vunpack.c.l.s8.bf16 %v355_v25 }
 0x149   :  { %1895 = vmatprep.subr.bf16.mxu0 %v1035_v30  ;;  %2223 = vmatprep.subr.bf16.mxu1 %v1037_v32  ;;  %v1109_v30 = vunpack.c.l.s8.bf16 %v357_v36  ;;  %v354_v32 = vld [vmem:[#allocation5 + $0x780] sm:$0xff] }
 0x14a   :  { %v1106_v34 = vunpack.c.l.s8.bf16 %v354_v32  ;;  %v1114_v44 = vunpack.c.h.s8.bf16 %v354_v32 }
 0x14c   :  { %1896 = vmatpush1.bf16.msra.mxu0 %v1034_v37  ;;  %2224 = vmatpush1.bf16.msra.mxu1 %v1036_v38  ;;  %v1108_v37 = vunpack.c.l.s8.bf16 %v356_v33  ;;  %v1115_v38 = vunpack.c.h.s8.bf16 %v355_v25 }
 0x14d   :  { %1897 = vmatprep.subr.bf16.mxu0 %v1043_v39  ;;  %2225 = vmatprep.subr.bf16.mxu1 %v1045_v42  ;;  %v1117_v39 = vunpack.c.h.s8.bf16 %v357_v36  ;;  %v363_v42 = vld [vmem:[#allocation5 + $0x7c8] sm:$0xff] }
 0x150   :  { %1898 = vmatpush1.bf16.msra.mxu0 %v1042_v45  ;;  %2226 = vmatpush1.bf16.msra.mxu1 %v1044_v46  ;;  %v1116_v45 = vunpack.c.h.s8.bf16 %v356_v33  ;;  %v1123_v46 = vunpack.c.l.s8.bf16 %v363_v42 }
 0x151   :  { %1899 = vmatprep.subr.bf16.mxu0 %v1051_v47  ;;  %2227 = vmatprep.subr.bf16.mxu1 %v1053_v48  ;;  %v1125_v47 = vunpack.c.l.s8.bf16 %v365_v43  ;;  %v362_v48 = vld [vmem:[#allocation5 + $0x7c0] sm:$0xff] }
 0x154   :  { %1900 = vmatpush1.bf16.msra.mxu0 %v1050_v52  ;;  %2228 = vmatpush1.bf16.msra.mxu1 %v1052_v54  ;;  %v1122_v52 = vunpack.c.l.s8.bf16 %v362_v48  ;;  %v1124_v54 = vunpack.c.l.s8.bf16 %v364_v49 }
 0x155   :  { %1901 = vmatprep.subr.bf16.mxu0 %v1059_v55  ;;  %2229 = vmatprep.subr.bf16.mxu1 %v1061_v56  ;;  %v1131_v55 = vunpack.c.h.s8.bf16 %v363_v42  ;;  %v1133_v56 = vunpack.c.h.s8.bf16 %v365_v43 }
 0x158   :  { %1902 = vmatpush1.bf16.msra.mxu0 %v1058_v59  ;;  %2230 = vmatpush1.bf16.msra.mxu1 %v1060_v41  ;;  %v5358_v59 = vrot.slane %v5354_v50, %v5297_v35  ;;  %v1130_v41 = vunpack.c.h.s8.bf16 %v362_v48 }
 0x159   :  { %1903 = vmatprep.subr.bf16.mxu0 %v1067_v61  ;;  %2231 = vmatprep.subr.bf16.mxu1 %v1069_v62  ;;  %v1132_v61 = vunpack.c.h.s8.bf16 %v364_v49  ;;  %v1139_v62 = vunpack.c.l.s8.bf16 %v371_v57 }
 0x15c   :  { %1904 = vmatpush1.bf16.msra.mxu0 %v1066_v1  ;;  %2232 = vmatpush1.bf16.msra.mxu1 %v1068_v2  ;;  %v372_v1 = vld [vmem:[#allocation5 + $0x810] sm:$0xff]  ;;  %v1716_v2 = vcombine.high %v5358_v59, %v5358_v59 }
 0x15d   :  { %1905 = vmatprep.subr.bf16.mxu0 %v1075_v3  ;;  %2233 = vmatprep.subr.bf16.mxu1 %v1077_v4  ;;  %v5364_v3 = vcombine.high %v5344_v14, %v5344_v14  ;;  %v1138_v4 = vunpack.c.l.s8.bf16 %v370_v0  ;;  %v1140_v5 = vunpack.c.l.s8.bf16 %v372_v1  ;;  %v1148_v12 = vunpack.c.h.s8.bf16 %v372_v1 }
 0x160   :  { %1906 = vmatpush1.bf16.msra.mxu0 %v1074_v7  ;;  %2234 = vmatpush1.bf16.msra.mxu1 %v1076_v8  ;;  %v1149_v7 = vunpack.c.h.s8.bf16 %v373_v58  ;;  %v379_v8 = vld [vmem:[#allocation5 + $0x848] sm:$0xff] }
 0x161   :  { %1907 = vmatprep.subr.bf16.mxu0 %v1083_v9  ;;  %2235 = vmatprep.subr.bf16.mxu1 %v1085_v10  ;;  %v381_v9 = vld [vmem:[#allocation5 + $0x858] sm:$0xff]  ;;  %v5367_v10 = vrot.slane %v1716_v2, %v5297_v35 }
 0x164   :  { %1908 = vmatpush1.bf16.msra.mxu0 %v1082_v13  ;;  %2236 = vmatpush1.bf16.msra.mxu1 %v1084_v15  ;;  %v1155_v13 = vunpack.c.l.s8.bf16 %v379_v8  ;;  %v1157_v15 = vunpack.c.l.s8.bf16 %v381_v9 }
 0x165   :  { %1909 = vmatprep.subr.bf16.mxu0 %v1091_v16  ;;  %2237 = vmatprep.subr.bf16.mxu1 %v1093_v17  ;;  %v378_v16 = vld [vmem:[#allocation5 + $0x840] sm:$0xff]  ;;  %v380_v17 = vld [vmem:[#allocation5 + $0x850] sm:$0xff] }
 0x166   :  { %v1154_v18 = vunpack.c.l.s8.bf16 %v378_v16  ;;  %v1156_v19 = vunpack.c.l.s8.bf16 %v380_v17  ;;  %v1162_v25 = vunpack.c.h.s8.bf16 %v378_v16  ;;  %v1164_v36 = vunpack.c.h.s8.bf16 %v380_v17 }
 0x168   :  { %1910 = vmatpush1.bf16.msra.mxu0 %v1090_v20  ;;  %2238 = vmatpush1.bf16.msra.mxu1 %v1092_v23  ;;  %v1163_v20 = vunpack.c.h.s8.bf16 %v379_v8  ;;  %v1165_v23 = vunpack.c.h.s8.bf16 %v381_v9 }
 0x169   :  { %1911 = vmatprep.subr.bf16.mxu0 %v1099_v22  ;;  %2239 = vmatprep.subr.bf16.mxu1 %v1101_v24  ;;  %v387_v22 = vld [vmem:[#allocation5 + $0x888] sm:$0xff]  ;;  %v389_v24 = vld [vmem:[#allocation5 + $0x898] sm:$0xff] }
 0x16c   :  { %1912 = vmatpush1.bf16.msra.mxu0 %v1098_v27  ;;  %2240 = vmatpush1.bf16.msra.mxu1 %v1100_v28  ;;  %v1171_v27 = vunpack.c.l.s8.bf16 %v387_v22  ;;  %v1173_v28 = vunpack.c.l.s8.bf16 %v389_v24 }
 0x16d   :  { %1913 = vmatprep.subr.bf16.mxu0 %v1107_v29  ;;  %2241 = vmatprep.subr.bf16.mxu1 %v1109_v30  ;;  %v386_v29 = vld [vmem:[#allocation5 + $0x880] sm:$0xff]  ;;  %v388_v30 = vld [vmem:[#allocation5 + $0x890] sm:$0xff] }
 0x16e   :  { %v1170_v32 = vunpack.c.l.s8.bf16 %v386_v29  ;;  %v1172_v33 = vunpack.c.l.s8.bf16 %v388_v30  ;;  %v1178_v42 = vunpack.c.h.s8.bf16 %v386_v29  ;;  %v1180_v43 = vunpack.c.h.s8.bf16 %v388_v30 }
 0x170   :  { %1914 = vmatpush1.bf16.msra.mxu0 %v1106_v34  ;;  %2242 = vmatpush1.bf16.msra.mxu1 %v1108_v37  ;;  %v1179_v34 = vunpack.c.h.s8.bf16 %v387_v22  ;;  %v1181_v37 = vunpack.c.h.s8.bf16 %v389_v24 }
 0x171   :  { %1915 = vmatprep.subr.bf16.mxu0 %v1115_v38  ;;  %2243 = vmatprep.subr.bf16.mxu1 %v1117_v39  ;;  %v395_v38 = vld [vmem:[#allocation5 + $0x8c8] sm:$0xff]  ;;  %v397_v39 = vld [vmem:[#allocation5 + $0x8d8] sm:$0xff] }
 0x174   :  { %1916 = vmatpush1.bf16.msra.mxu0 %v1114_v44  ;;  %2244 = vmatpush1.bf16.msra.mxu1 %v1116_v45  ;;  %v1187_v44 = vunpack.c.l.s8.bf16 %v395_v38  ;;  %v1189_v45 = vunpack.c.l.s8.bf16 %v397_v39 }
 0x175   :  { %1917 = vmatprep.subr.bf16.mxu0 %v1123_v46  ;;  %2245 = vmatprep.subr.bf16.mxu1 %v1125_v47  ;;  %v394_v46 = vld [vmem:[#allocation5 + $0x8c0] sm:$0xff]  ;;  %v396_v47 = vld [vmem:[#allocation5 + $0x8d0] sm:$0xff] }
 0x176   :  { %v1186_v48 = vunpack.c.l.s8.bf16 %v394_v46  ;;  %v1188_v49 = vunpack.c.l.s8.bf16 %v396_v47  ;;  %v1194_v57 = vunpack.c.h.s8.bf16 %v394_v46  ;;  %v1196_v58 = vunpack.c.h.s8.bf16 %v396_v47 }
 0x178   :  { %1918 = vmatpush1.bf16.msra.mxu0 %v1122_v52  ;;  %2246 = vmatpush1.bf16.msra.mxu1 %v1124_v54  ;;  %v1195_v52 = vunpack.c.h.s8.bf16 %v395_v38  ;;  %v1197_v54 = vunpack.c.h.s8.bf16 %v397_v39 }
 0x179   :  { %1919 = vmatprep.subr.bf16.mxu0 %v1131_v55  ;;  %2247 = vmatprep.subr.bf16.mxu1 %v1133_v56  ;;  %v403_v55 = vld [vmem:[#allocation5 + $0x908] sm:$0xff]  ;;  %v405_v56 = vld [vmem:[#allocation5 + $0x918] sm:$0xff] }
 0x17a   :  { %v1211_v2 = vunpack.c.h.s8.bf16 %v403_v55 }
 0x17c   :  { %1920 = vmatpush1.bf16.msra.mxu0 %v1130_v41  ;;  %2248 = vmatpush1.bf16.msra.mxu1 %v1132_v61  ;;  %v1203_v41 = vunpack.c.l.s8.bf16 %v403_v55  ;;  %v1205_v61 = vunpack.c.l.s8.bf16 %v405_v56 }
 0x17d   :  { %1930 = vmatprep.subr.bf16.mxu0 %v1139_v62  ;;  %2258 = vmatprep.subr.bf16.mxu1 %v1141_v63  ;;  %v402_v62 = vld [vmem:[#allocation5 + $0x900] sm:$0xff]  ;;  %v404_v63 = vld [vmem:[#allocation5 + $0x910] sm:$0xff] }
 0x17e   :  { %v1202_v0 = vunpack.c.l.s8.bf16 %v402_v62  ;;  %v1204_v1 = vunpack.c.l.s8.bf16 %v404_v63  ;;  %v1212_v8 = vunpack.c.h.s8.bf16 %v404_v63 }
 0x17f   :  { %1922 = vmatmul.mubr.bf16.vlgmr.msra.gmra.mrb[0].mxu0 %v5364_v3  ;;  %2250 = vmatmul.mubr.bf16.vlgmr.msra.gmra.mrb[0].mxu1 %v5364_v3 }
 0x180   :  { %1931 = vmatpush1.bf16.msra.mxu0 %v1138_v4  ;;  %2259 = vmatpush1.bf16.msra.mxu1 %v1140_v5  ;;  %v1213_v4 = vunpack.c.h.s8.bf16 %v405_v56  ;;  %v411_v5 = vld [vmem:[#allocation5 + $0x948] sm:$0xff] }
 0x181   :  { %1932 = vmatprep.subr.bf16.mxu0 %v1147_v6  ;;  %2260 = vmatprep.subr.bf16.mxu1 %v1149_v7  ;;  %v413_v6 = vld [vmem:[#allocation5 + $0x958] sm:$0xff]  ;;  %v1210_v7 = vunpack.c.h.s8.bf16 %v402_v62  ;;  %v1219_v9 = vunpack.c.l.s8.bf16 %v411_v5  ;;  %v1227_v17 = vunpack.c.h.s8.bf16 %v411_v5  ;;  %v5379_v5 = vcombine.high %v5367_v10, %v5367_v10 }
 0x182   :  { %1962 = vmatprep.mubr.bf16.mxu0 %v5367_v10  ;;  %2290 = vmatprep.mubr.bf16.mxu1 %v5367_v10 }
 0x184   :  { %1933 = vmatpush1.bf16.msra.mxu0 %v1146_v11  ;;  %2261 = vmatpush1.bf16.msra.mxu1 %v1148_v12  ;;  %v1221_v11 = vunpack.c.l.s8.bf16 %v413_v6  ;;  %v410_v12 = vld [vmem:[#allocation5 + $0x940] sm:$0xff] }
 0x185   :  { %1934 = vmatprep.subr.bf16.mxu0 %v1155_v13  ;;  %2262 = vmatprep.subr.bf16.mxu1 %v1157_v15  ;;  %v412_v13 = vld [vmem:[#allocation5 + $0x950] sm:$0xff]  ;;  %v1218_v15 = vunpack.c.l.s8.bf16 %v410_v12 }
 0x186   :  { %v1220_v16 = vunpack.c.l.s8.bf16 %v412_v13  ;;  %v1228_v22 = vunpack.c.h.s8.bf16 %v412_v13 }
 0x188   :  { %1935 = vmatpush1.bf16.msra.mxu0 %v1154_v18  ;;  %2263 = vmatpush1.bf16.msra.mxu1 %v1156_v19  ;;  %v1229_v18 = vunpack.c.h.s8.bf16 %v413_v6  ;;  %v419_v19 = vld [vmem:[#allocation5 + $0x988] sm:$0xff] }
 0x189   :  { %1936 = vmatprep.subr.bf16.mxu0 %v1163_v20  ;;  %2264 = vmatprep.subr.bf16.mxu1 %v1165_v23  ;;  %v421_v20 = vld [vmem:[#allocation5 + $0x998] sm:$0xff]  ;;  %v1226_v23 = vunpack.c.h.s8.bf16 %v410_v12  ;;  %v1235_v24 = vunpack.c.l.s8.bf16 %v419_v19  ;;  %v1243_v30 = vunpack.c.h.s8.bf16 %v419_v19 }
 0x18c   :  { %1937 = vmatpush1.bf16.msra.mxu0 %v1162_v25  ;;  %2265 = vmatpush1.bf16.msra.mxu1 %v1164_v36  ;;  %v1237_v25 = vunpack.c.l.s8.bf16 %v421_v20  ;;  %v418_v36 = vld [vmem:[#allocation5 + $0x980] sm:$0xff] }
 0x18d   :  { %1938 = vmatprep.subr.bf16.mxu0 %v1171_v27  ;;  %2266 = vmatprep.subr.bf16.mxu1 %v1173_v28  ;;  %v420_v27 = vld [vmem:[#allocation5 + $0x990] sm:$0xff]  ;;  %v1234_v28 = vunpack.c.l.s8.bf16 %v418_v36 }
 0x18e   :  { %v1236_v29 = vunpack.c.l.s8.bf16 %v420_v27  ;;  %v1244_v38 = vunpack.c.h.s8.bf16 %v420_v27 }
 0x190   :  { %1939 = vmatpush1.bf16.msra.mxu0 %v1170_v32  ;;  %2267 = vmatpush1.bf16.msra.mxu1 %v1172_v33  ;;  %v1245_v32 = vunpack.c.h.s8.bf16 %v421_v20  ;;  %v427_v33 = vld [vmem:[#allocation5 + $0x9c8] sm:$0xff] }
 0x191   :  { %1940 = vmatprep.subr.bf16.mxu0 %v1179_v34  ;;  %2268 = vmatprep.subr.bf16.mxu1 %v1181_v37  ;;  %v429_v34 = vld [vmem:[#allocation5 + $0x9d8] sm:$0xff]  ;;  %v1242_v37 = vunpack.c.h.s8.bf16 %v418_v36  ;;  %v1251_v39 = vunpack.c.l.s8.bf16 %v427_v33  ;;  %v1259_v47 = vunpack.c.h.s8.bf16 %v427_v33 }
 0x194   :  { %1941 = vmatpush1.bf16.msra.mxu0 %v1178_v42  ;;  %2269 = vmatpush1.bf16.msra.mxu1 %v1180_v43  ;;  %v1253_v42 = vunpack.c.l.s8.bf16 %v429_v34  ;;  %v426_v43 = vld [vmem:[#allocation5 + $0x9c0] sm:$0xff] }
 0x195   :  { %1942 = vmatprep.subr.bf16.mxu0 %v1187_v44  ;;  %2270 = vmatprep.subr.bf16.mxu1 %v1189_v45  ;;  %v428_v44 = vld [vmem:[#allocation5 + $0x9d0] sm:$0xff]  ;;  %v1250_v45 = vunpack.c.l.s8.bf16 %v426_v43 }
 0x196   :  { %v1252_v46 = vunpack.c.l.s8.bf16 %v428_v44  ;;  %v1260_v55 = vunpack.c.h.s8.bf16 %v428_v44 }
 0x198   :  { %1943 = vmatpush1.bf16.msra.mxu0 %v1186_v48  ;;  %2271 = vmatpush1.bf16.msra.mxu1 %v1188_v49  ;;  %v1261_v48 = vunpack.c.h.s8.bf16 %v429_v34  ;;  %v435_v49 = vld [vmem:[#allocation5 + $0xa08] sm:$0xff] }
 0x199   :  { %1944 = vmatprep.subr.bf16.mxu0 %v1195_v52  ;;  %2272 = vmatprep.subr.bf16.mxu1 %v1197_v54  ;;  %v437_v52 = vld [vmem:[#allocation5 + $0xa18] sm:$0xff]  ;;  %v1258_v54 = vunpack.c.h.s8.bf16 %v426_v43  ;;  %v1267_v56 = vunpack.c.l.s8.bf16 %v435_v49 }
 0x19c   :  { %1945 = vmatpush1.bf16.msra.mxu0 %v1194_v57  ;;  %2273 = vmatpush1.bf16.msra.mxu1 %v1196_v58  ;;  %v1269_v57 = vunpack.c.l.s8.bf16 %v437_v52  ;;  %v434_v58 = vld [vmem:[#allocation5 + $0xa00] sm:$0xff] }
 0x19d   :  { %1946 = vmatprep.subr.bf16.mxu0 %v1203_v41  ;;  %2274 = vmatprep.subr.bf16.mxu1 %v1205_v61  ;;  %v436_v41 = vld [vmem:[#allocation5 + $0xa10] sm:$0xff]  ;;  %v5375_v61 = vrot.slane %v5358_v59, %v5297_v35  ;;  %v1266_v62 = vunpack.c.l.s8.bf16 %v434_v58  ;;  %v1274_v59 = vunpack.c.h.s8.bf16 %v434_v58 }
 0x19e   :  { %v1268_v63 = vunpack.c.l.s8.bf16 %v436_v41  ;;  %v1276_v6 = vunpack.c.h.s8.bf16 %v436_v41 }
 0x1a0   :  { %1947 = vmatpush1.bf16.msra.mxu0 %v1202_v0  ;;  %2275 = vmatpush1.bf16.msra.mxu1 %v1204_v1  ;;  %v1275_v0 = vunpack.c.h.s8.bf16 %v435_v49  ;;  %v1277_v1 = vunpack.c.h.s8.bf16 %v437_v52 }
 0x1a1   :  { %1948 = vmatprep.subr.bf16.mxu0 %v1211_v2  ;;  %2276 = vmatprep.subr.bf16.mxu1 %v1213_v4  ;;  %v443_v2 = vld [vmem:[#allocation5 + $0xa48] sm:$0xff]  ;;  %v445_v4 = vld [vmem:[#allocation5 + $0xa58] sm:$0xff] }
 0x1a4   :  { %1949 = vmatpush1.bf16.msra.mxu0 %v1210_v7  ;;  %2277 = vmatpush1.bf16.msra.mxu1 %v1212_v8  ;;  %v1283_v7 = vunpack.c.l.s8.bf16 %v443_v2  ;;  %v1285_v8 = vunpack.c.l.s8.bf16 %v445_v4 }
 0x1a5   :  { %1950 = vmatprep.subr.bf16.mxu0 %v1219_v9  ;;  %2278 = vmatprep.subr.bf16.mxu1 %v1221_v11  ;;  %v442_v9 = vld [vmem:[#allocation5 + $0xa40] sm:$0xff]  ;;  %v444_v11 = vld [vmem:[#allocation5 + $0xa50] sm:$0xff] }
 0x1a6   :  { %v1282_v12 = vunpack.c.l.s8.bf16 %v442_v9  ;;  %v1284_v13 = vunpack.c.l.s8.bf16 %v444_v11  ;;  %v1290_v19 = vunpack.c.h.s8.bf16 %v442_v9  ;;  %v1292_v20 = vunpack.c.h.s8.bf16 %v444_v11 }
 0x1a8   :  { %1951 = vmatpush1.bf16.msra.mxu0 %v1218_v15  ;;  %2279 = vmatpush1.bf16.msra.mxu1 %v1220_v16  ;;  %v1291_v15 = vunpack.c.h.s8.bf16 %v443_v2  ;;  %v1293_v16 = vunpack.c.h.s8.bf16 %v445_v4 }
 0x1a9   :  { %1952 = vmatprep.subr.bf16.mxu0 %v1227_v17  ;;  %2280 = vmatprep.subr.bf16.mxu1 %v1229_v18  ;;  %v451_v17 = vld [vmem:[#allocation5 + $0xa88] sm:$0xff]  ;;  %v453_v18 = vld [vmem:[#allocation5 + $0xa98] sm:$0xff] }
 0x1ac   :  { %1953 = vmatpush1.bf16.msra.mxu0 %v1226_v23  ;;  %2281 = vmatpush1.bf16.msra.mxu1 %v1228_v22  ;;  %v1299_v23 = vunpack.c.l.s8.bf16 %v451_v17  ;;  %v1301_v22 = vunpack.c.l.s8.bf16 %v453_v18 }
 0x1ad   :  { %1954 = vmatprep.subr.bf16.mxu0 %v1235_v24  ;;  %2282 = vmatprep.subr.bf16.mxu1 %v1237_v25  ;;  %v450_v24 = vld [vmem:[#allocation5 + $0xa80] sm:$0xff]  ;;  %v452_v25 = vld [vmem:[#allocation5 + $0xa90] sm:$0xff] }
 0x1ae   :  { %v1298_v36 = vunpack.c.l.s8.bf16 %v450_v24  ;;  %v1300_v27 = vunpack.c.l.s8.bf16 %v452_v25  ;;  %v1306_v33 = vunpack.c.h.s8.bf16 %v450_v24  ;;  %v1308_v34 = vunpack.c.h.s8.bf16 %v452_v25 }
 0x1b0   :  { %1955 = vmatpush1.bf16.msra.mxu0 %v1234_v28  ;;  %2283 = vmatpush1.bf16.msra.mxu1 %v1236_v29  ;;  %v1307_v28 = vunpack.c.h.s8.bf16 %v451_v17  ;;  %v1309_v29 = vunpack.c.h.s8.bf16 %v453_v18 }
 0x1b1   :  { %1956 = vmatprep.subr.bf16.mxu0 %v1243_v30  ;;  %2284 = vmatprep.subr.bf16.mxu1 %v1245_v32  ;;  %v459_v30 = vld [vmem:[#allocation5 + $0xac8] sm:$0xff]  ;;  %v461_v32 = vld [vmem:[#allocation5 + $0xad8] sm:$0xff] }
 0x1b4   :  { %1957 = vmatpush1.bf16.msra.mxu0 %v1242_v37  ;;  %2285 = vmatpush1.bf16.msra.mxu1 %v1244_v38  ;;  %v1315_v37 = vunpack.c.l.s8.bf16 %v459_v30  ;;  %v1317_v38 = vunpack.c.l.s8.bf16 %v461_v32 }
 0x1b5   :  { %1958 = vmatprep.subr.bf16.mxu0 %v1251_v39  ;;  %2286 = vmatprep.subr.bf16.mxu1 %v1253_v42  ;;  %v458_v39 = vld [vmem:[#allocation5 + $0xac0] sm:$0xff]  ;;  %v460_v42 = vld [vmem:[#allocation5 + $0xad0] sm:$0xff] }
 0x1b6   :  { %v1314_v43 = vunpack.c.l.s8.bf16 %v458_v39  ;;  %v1316_v44 = vunpack.c.l.s8.bf16 %v460_v42  ;;  %v1322_v49 = vunpack.c.h.s8.bf16 %v458_v39  ;;  %v1324_v52 = vunpack.c.h.s8.bf16 %v460_v42 }
 0x1b7   :  { %v1701_v39 = vcombine.high %v5354_v50, %v5354_v50 }
 0x1b8   :  { %1959 = vmatpush1.bf16.msra.mxu0 %v1250_v45  ;;  %2287 = vmatpush1.bf16.msra.mxu1 %v1252_v46  ;;  %v1323_v45 = vunpack.c.h.s8.bf16 %v459_v30  ;;  %v1325_v46 = vunpack.c.h.s8.bf16 %v461_v32 }
 0x1b9   :  { %1960 = vmatprep.subr.bf16.mxu0 %v1259_v47  ;;  %2288 = vmatprep.subr.bf16.mxu1 %v1261_v48  ;;  %v467_v47 = vld [vmem:[#allocation5 + $0xb08] sm:$0xff]  ;;  %v469_v48 = vld [vmem:[#allocation5 + $0xb18] sm:$0xff] }
 0x1bc   :  { %1961 = vmatpush1.bf16.msra.mxu0 %v1258_v54  ;;  %2289 = vmatpush1.bf16.msra.mxu1 %v1260_v55  ;;  %v1331_v54 = vunpack.c.l.s8.bf16 %v467_v47  ;;  %v1333_v55 = vunpack.c.l.s8.bf16 %v469_v48 }
 0x1bd   :  { %1971 = vmatprep.subr.bf16.mxu0 %v1267_v56  ;;  %2299 = vmatprep.subr.bf16.mxu1 %v1269_v57  ;;  %v466_v56 = vld [vmem:[#allocation5 + $0xb00] sm:$0xff]  ;;  %v468_v57 = vld [vmem:[#allocation5 + $0xb10] sm:$0xff] }
 0x1be   :  { %v1330_v58 = vunpack.c.l.s8.bf16 %v466_v56  ;;  %v1332_v41 = vunpack.c.l.s8.bf16 %v468_v57  ;;  %v1338_v2 = vunpack.c.h.s8.bf16 %v466_v56  ;;  %v1340_v4 = vunpack.c.h.s8.bf16 %v468_v57  ;;  %v500_v56 = vld [vmem:[#allocation5 + $0xc10] sm:$0xff] }
 0x1bf   :  { %1963 = vmatmul.mubr.bf16.vlgmr.msra.gmra.mrb[0].mxu0 %v5375_v61  ;;  %2291 = vmatmul.mubr.bf16.vlgmr.msra.gmra.mrb[0].mxu1 %v5375_v61 }
 0x1c0   :  { %1972 = vmatpush1.bf16.msra.mxu0 %v1266_v62  ;;  %2300 = vmatpush1.bf16.msra.mxu1 %v1268_v63  ;;  %v1339_v62 = vunpack.c.h.s8.bf16 %v467_v47  ;;  %v1341_v63 = vunpack.c.h.s8.bf16 %v469_v48  ;;  %v501_v47 = vld [vmem:[#allocation5 + $0xc18] sm:$0xff]  ;;  %v5388_v48 = vrot.slane %v1701_v39, %v5297_v35  ;;  %v522_v39 = vld [vmem:[#allocation5 + $0xcc0] sm:$0xff] }
 0x1c1   :  { %1973 = vmatprep.subr.bf16.mxu0 %v1275_v0  ;;  %2301 = vmatprep.subr.bf16.mxu1 %v1277_v1  ;;  %v475_v0 = vld [vmem:[#allocation5 + $0xb48] sm:$0xff]  ;;  %v477_v1 = vld [vmem:[#allocation5 + $0xb58] sm:$0xff] }
 0x1c2   :  { %2003 = vmatprep.mubr.bf16.mxu0 %v5379_v5  ;;  %2331 = vmatprep.mubr.bf16.mxu1 %v5379_v5  ;;  %v1717_v57 = vcombine.high %v5388_v48, %v5388_v48 }
 0x1c4   :  { %1974 = vmatpush1.bf16.msra.mxu0 %v1274_v59  ;;  %2302 = vmatpush1.bf16.msra.mxu1 %v1276_v6  ;;  %v1347_v59 = vunpack.c.l.s8.bf16 %v475_v0  ;;  %v1349_v6 = vunpack.c.l.s8.bf16 %v477_v1 }
 0x1c5   :  { %1975 = vmatprep.subr.bf16.mxu0 %v1283_v7  ;;  %2303 = vmatprep.subr.bf16.mxu1 %v1285_v8  ;;  %v474_v7 = vld [vmem:[#allocation5 + $0xb40] sm:$0xff]  ;;  %v476_v8 = vld [vmem:[#allocation5 + $0xb50] sm:$0xff] }
 0x1c6   :  { %v1346_v9 = vunpack.c.l.s8.bf16 %v474_v7  ;;  %v1348_v11 = vunpack.c.l.s8.bf16 %v476_v8  ;;  %v1354_v17 = vunpack.c.h.s8.bf16 %v474_v7  ;;  %v1356_v18 = vunpack.c.h.s8.bf16 %v476_v8 }
 0x1c8   :  { %1976 = vmatpush1.bf16.msra.mxu0 %v1282_v12  ;;  %2304 = vmatpush1.bf16.msra.mxu1 %v1284_v13  ;;  %v1355_v12 = vunpack.c.h.s8.bf16 %v475_v0  ;;  %v1357_v13 = vunpack.c.h.s8.bf16 %v477_v1  ;;  %v1405_v0 = vunpack.c.h.s8.bf16 %v501_v47  ;;  %v507_v1 = vld [vmem:[#allocation5 + $0xc48] sm:$0xff] }
 0x1c9   :  { %1977 = vmatprep.subr.bf16.mxu0 %v1291_v15  ;;  %2305 = vmatprep.subr.bf16.mxu1 %v1293_v16  ;;  %v483_v15 = vld [vmem:[#allocation5 + $0xb88] sm:$0xff]  ;;  %v485_v16 = vld [vmem:[#allocation5 + $0xb98] sm:$0xff]  ;;  %v1411_v7 = vunpack.c.l.s8.bf16 %v507_v1 }
 0x1cc   :  { %1978 = vmatpush1.bf16.msra.mxu0 %v1290_v19  ;;  %2306 = vmatpush1.bf16.msra.mxu1 %v1292_v20  ;;  %v1363_v19 = vunpack.c.l.s8.bf16 %v483_v15  ;;  %v1365_v20 = vunpack.c.l.s8.bf16 %v485_v16 }
 0x1cd   :  { %1979 = vmatprep.subr.bf16.mxu0 %v1299_v23  ;;  %2307 = vmatprep.subr.bf16.mxu1 %v1301_v22  ;;  %v482_v23 = vld [vmem:[#allocation5 + $0xb80] sm:$0xff]  ;;  %v484_v22 = vld [vmem:[#allocation5 + $0xb90] sm:$0xff] }
 0x1ce   :  { %v1362_v24 = vunpack.c.l.s8.bf16 %v482_v23  ;;  %v1364_v25 = vunpack.c.l.s8.bf16 %v484_v22  ;;  %v1370_v30 = vunpack.c.h.s8.bf16 %v482_v23  ;;  %v1372_v32 = vunpack.c.h.s8.bf16 %v484_v22 }
 0x1d0   :  { %1980 = vmatpush1.bf16.msra.mxu0 %v1298_v36  ;;  %2308 = vmatpush1.bf16.msra.mxu1 %v1300_v27  ;;  %v1371_v36 = vunpack.c.h.s8.bf16 %v483_v15  ;;  %v1373_v27 = vunpack.c.h.s8.bf16 %v485_v16  ;;  %v1419_v15 = vunpack.c.h.s8.bf16 %v507_v1  ;;  %v539_v1 = vld [vmem:[#allocation5 + $0xd48] sm:$0xff] }
 0x1d1   :  { %1981 = vmatprep.subr.bf16.mxu0 %v1307_v28  ;;  %2309 = vmatprep.subr.bf16.mxu1 %v1309_v29  ;;  %v491_v28 = vld [vmem:[#allocation5 + $0xbc8] sm:$0xff]  ;;  %v493_v29 = vld [vmem:[#allocation5 + $0xbd8] sm:$0xff] }
 0x1d4   :  { %1982 = vmatpush1.bf16.msra.mxu0 %v1306_v33  ;;  %2310 = vmatpush1.bf16.msra.mxu1 %v1308_v34  ;;  %v1379_v33 = vunpack.c.l.s8.bf16 %v491_v28  ;;  %v1381_v34 = vunpack.c.l.s8.bf16 %v493_v29 }
 0x1d5   :  { %1983 = vmatprep.subr.bf16.mxu0 %v1315_v37  ;;  %2311 = vmatprep.subr.bf16.mxu1 %v1317_v38  ;;  %v490_v37 = vld [vmem:[#allocation5 + $0xbc0] sm:$0xff]  ;;  %v492_v38 = vld [vmem:[#allocation5 + $0xbd0] sm:$0xff] }
 0x1d6   :  { %v1378_v42 = vunpack.c.l.s8.bf16 %v490_v37 }
 0x1d8   :  { %1984 = vmatpush1.bf16.msra.mxu0 %v1314_v43  ;;  %2312 = vmatpush1.bf16.msra.mxu1 %v1316_v44  ;;  %v1380_v43 = vunpack.c.l.s8.bf16 %v492_v38  ;;  %v1387_v44 = vunpack.c.h.s8.bf16 %v491_v28 }
 0x1d9   :  { %1985 = vmatprep.subr.bf16.mxu0 %v1323_v45  ;;  %2313 = vmatprep.subr.bf16.mxu1 %v1325_v46  ;;  %v1389_v45 = vunpack.c.h.s8.bf16 %v493_v29  ;;  %v499_v46 = vld [vmem:[#allocation5 + $0xc08] sm:$0xff] }
 0x1da   :  { %v1395_v50 = vunpack.c.l.s8.bf16 %v499_v46 }
 0x1dc   :  { %1986 = vmatpush1.bf16.msra.mxu0 %v1322_v49  ;;  %2314 = vmatpush1.bf16.msra.mxu1 %v1324_v52  ;;  %v1386_v49 = vunpack.c.h.s8.bf16 %v490_v37  ;;  %v1388_v52 = vunpack.c.h.s8.bf16 %v492_v38 }
 0x1dd   :  { %1987 = vmatprep.subr.bf16.mxu0 %v1331_v54  ;;  %2315 = vmatprep.subr.bf16.mxu1 %v1333_v55  ;;  %v1397_v54 = vunpack.c.l.s8.bf16 %v501_v47  ;;  %v498_v55 = vld [vmem:[#allocation5 + $0xc00] sm:$0xff]  ;;  %v531_v47 = vld [vmem:[#allocation5 + $0xd08] sm:$0xff] }
 0x1e0   :  { %1988 = vmatpush1.bf16.msra.mxu0 %v1330_v58  ;;  %2316 = vmatpush1.bf16.msra.mxu1 %v1332_v41  ;;  %v5394_v58 = vcombine.high %v5375_v61, %v5375_v61  ;;  %v1394_v41 = vunpack.c.l.s8.bf16 %v498_v55 }
 0x1e1   :  { %1989 = vmatprep.subr.bf16.mxu0 %v1339_v62  ;;  %2317 = vmatprep.subr.bf16.mxu1 %v1341_v63  ;;  %v1396_v62 = vunpack.c.l.s8.bf16 %v500_v56  ;;  %v1403_v63 = vunpack.c.h.s8.bf16 %v499_v46 }
 0x1e4   :  { %1990 = vmatpush1.bf16.msra.mxu0 %v1338_v2  ;;  %2318 = vmatpush1.bf16.msra.mxu1 %v1340_v4  ;;  %v509_v2 = vld [vmem:[#allocation5 + $0xc58] sm:$0xff]  ;;  %v5397_v4 = vrot.slane %v1717_v57, %v5297_v35  ;;  %v532_v57 = vld [vmem:[#allocation5 + $0xd10] sm:$0xff] }
 0x1e5   :  { %1991 = vmatprep.subr.bf16.mxu0 %v1347_v59  ;;  %2319 = vmatprep.subr.bf16.mxu1 %v1349_v6  ;;  %v1402_v59 = vunpack.c.h.s8.bf16 %v498_v55  ;;  %v1404_v6 = vunpack.c.h.s8.bf16 %v500_v56  ;;  %v1413_v8 = vunpack.c.l.s8.bf16 %v509_v2  ;;  %v1421_v16 = vunpack.c.h.s8.bf16 %v509_v2  ;;  %v530_v56 = vld [vmem:[#allocation5 + $0xd00] sm:$0xff]  ;;  %v541_v2 = vld [vmem:[#allocation5 + $0xd58] sm:$0xff] }
 0x1e8   :  { %1992 = vmatpush1.bf16.msra.mxu0 %v1346_v9  ;;  %2320 = vmatpush1.bf16.msra.mxu1 %v1348_v11  ;;  %v506_v9 = vld [vmem:[#allocation5 + $0xc40] sm:$0xff]  ;;  %v508_v11 = vld [vmem:[#allocation5 + $0xc50] sm:$0xff] }
 0x1e9   :  { %1993 = vmatprep.subr.bf16.mxu0 %v1355_v12  ;;  %2321 = vmatprep.subr.bf16.mxu1 %v1357_v13  ;;  %v1410_v12 = vunpack.c.l.s8.bf16 %v506_v9  ;;  %v1412_v13 = vunpack.c.l.s8.bf16 %v508_v11 }
 0x1ec   :  { %1994 = vmatpush1.bf16.msra.mxu0 %v1354_v17  ;;  %2322 = vmatpush1.bf16.msra.mxu1 %v1356_v18  ;;  %v515_v17 = vld [vmem:[#allocation5 + $0xc88] sm:$0xff]  ;;  %v517_v18 = vld [vmem:[#allocation5 + $0xc98] sm:$0xff] }
 0x1ed   :  { %1995 = vmatprep.subr.bf16.mxu0 %v1363_v19  ;;  %2323 = vmatprep.subr.bf16.mxu1 %v1365_v20  ;;  %v1418_v19 = vunpack.c.h.s8.bf16 %v506_v9  ;;  %v1420_v20 = vunpack.c.h.s8.bf16 %v508_v11  ;;  %v1427_v23 = vunpack.c.l.s8.bf16 %v515_v17  ;;  %v1429_v22 = vunpack.c.l.s8.bf16 %v517_v18  ;;  %v538_v9 = vld [vmem:[#allocation5 + $0xd40] sm:$0xff]  ;;  %v540_v11 = vld [vmem:[#allocation5 + $0xd50] sm:$0xff] }
 0x1ee   :  { %v1435_v28 = vunpack.c.h.s8.bf16 %v515_v17  ;;  %v1437_v29 = vunpack.c.h.s8.bf16 %v517_v18  ;;  %v547_v17 = vld [vmem:[#allocation5 + $0xd88] sm:$0xff]  ;;  %v549_v18 = vld [vmem:[#allocation5 + $0xd98] sm:$0xff] }
 0x1f0   :  { %1996 = vmatpush1.bf16.msra.mxu0 %v1362_v24  ;;  %2324 = vmatpush1.bf16.msra.mxu1 %v1364_v25  ;;  %v514_v24 = vld [vmem:[#allocation5 + $0xc80] sm:$0xff]  ;;  %v516_v25 = vld [vmem:[#allocation5 + $0xc90] sm:$0xff] }
 0x1f1   :  { %1997 = vmatprep.subr.bf16.mxu0 %v1371_v36  ;;  %2325 = vmatprep.subr.bf16.mxu1 %v1373_v27  ;;  %v1426_v36 = vunpack.c.l.s8.bf16 %v514_v24  ;;  %v1428_v27 = vunpack.c.l.s8.bf16 %v516_v25 }
 0x1f4   :  { %1998 = vmatpush1.bf16.msra.mxu0 %v1370_v30  ;;  %2326 = vmatpush1.bf16.msra.mxu1 %v1372_v32  ;;  %v523_v30 = vld [vmem:[#allocation5 + $0xcc8] sm:$0xff]  ;;  %v525_v32 = vld [vmem:[#allocation5 + $0xcd8] sm:$0xff] }
 0x1f5   :  { %1999 = vmatprep.subr.bf16.mxu0 %v1379_v33  ;;  %2327 = vmatprep.subr.bf16.mxu1 %v1381_v34  ;;  %v1434_v33 = vunpack.c.h.s8.bf16 %v514_v24  ;;  %v1436_v34 = vunpack.c.h.s8.bf16 %v516_v25  ;;  %v1443_v37 = vunpack.c.l.s8.bf16 %v523_v30  ;;  %v1445_v38 = vunpack.c.l.s8.bf16 %v525_v32  ;;  %v546_v24 = vld [vmem:[#allocation5 + $0xd80] sm:$0xff]  ;;  %v548_v25 = vld [vmem:[#allocation5 + $0xd90] sm:$0xff] }
 0x1f6   :  { %v1453_v46 = vunpack.c.h.s8.bf16 %v525_v32  ;;  %v557_v32 = vld [vmem:[#allocation5 + $0xdd8] sm:$0xff] }
 0x1f8   :  { %2000 = vmatpush1.bf16.msra.mxu0 %v1378_v42  ;;  %2328 = vmatpush1.bf16.msra.mxu1 %v1380_v43  ;;  %v524_v42 = vld [vmem:[#allocation5 + $0xcd0] sm:$0xff]  ;;  %v1442_v43 = vunpack.c.l.s8.bf16 %v522_v39 }
 0x1f9   :  { %2001 = vmatprep.subr.bf16.mxu0 %v1387_v44  ;;  %2329 = vmatprep.subr.bf16.mxu1 %v1389_v45  ;;  %v1444_v44 = vunpack.c.l.s8.bf16 %v524_v42  ;;  %v1451_v45 = vunpack.c.h.s8.bf16 %v523_v30  ;;  %v555_v30 = vld [vmem:[#allocation5 + $0xdc8] sm:$0xff] }
 0x1fc   :  { %2002 = vmatpush1.bf16.msra.mxu0 %v1386_v49  ;;  %2330 = vmatpush1.bf16.msra.mxu1 %v1388_v52  ;;  %v533_v49 = vld [vmem:[#allocation5 + $0xd18] sm:$0xff]  ;;  %v1450_v52 = vunpack.c.h.s8.bf16 %v522_v39  ;;  %v554_v39 = vld [vmem:[#allocation5 + $0xdc0] sm:$0xff] }
 0x1fd   :  { %2012 = vmatprep.subr.bf16.mxu0 %v1395_v50  ;;  %2340 = vmatprep.subr.bf16.mxu1 %v1397_v54  ;;  %v1452_v50 = vunpack.c.h.s8.bf16 %v524_v42  ;;  %v1459_v54 = vunpack.c.l.s8.bf16 %v531_v47  ;;  %v1461_v55 = vunpack.c.l.s8.bf16 %v533_v49  ;;  %v556_v42 = vld [vmem:[#allocation5 + $0xdd0] sm:$0xff] }
 0x1ff   :  { %2004 = vmatmul.mubr.bf16.vlgmr.msra.gmra.mrb[0].mxu0 %v5394_v58  ;;  %2332 = vmatmul.mubr.bf16.vlgmr.msra.gmra.mrb[0].mxu1 %v5394_v58 }
 0x200   :  { %2013 = vmatpush1.bf16.msra.mxu0 %v1394_v41  ;;  %2341 = vmatpush1.bf16.msra.mxu1 %v1396_v62  ;;  %v1458_v41 = vunpack.c.l.s8.bf16 %v530_v56  ;;  %v1460_v62 = vunpack.c.l.s8.bf16 %v532_v57 }
 0x201   :  { %2014 = vmatprep.subr.bf16.mxu0 %v1403_v63  ;;  %2342 = vmatprep.subr.bf16.mxu1 %v1405_v0  ;;  %v1467_v63 = vunpack.c.h.s8.bf16 %v531_v47  ;;  %v1469_v0 = vunpack.c.h.s8.bf16 %v533_v49  ;;  %v563_v47 = vld [vmem:[#allocation5 + $0xe08] sm:$0xff]  ;;  %v565_v49 = vld [vmem:[#allocation5 + $0xe18] sm:$0xff] }
 0x202   :  { %2044 = vmatprep.mubr.bf16.mxu0 %v5397_v4  ;;  %2372 = vmatprep.mubr.bf16.mxu1 %v5397_v4 }
 0x204   :  { %2015 = vmatpush1.bf16.msra.mxu0 %v1402_v59  ;;  %2343 = vmatpush1.bf16.msra.mxu1 %v1404_v6  ;;  %v1466_v59 = vunpack.c.h.s8.bf16 %v530_v56  ;;  %v1468_v6 = vunpack.c.h.s8.bf16 %v532_v57  ;;  %v562_v56 = vld [vmem:[#allocation5 + $0xe00] sm:$0xff]  ;;  %v564_v57 = vld [vmem:[#allocation5 + $0xe10] sm:$0xff] }
 0x205   :  { %2016 = vmatprep.subr.bf16.mxu0 %v1411_v7  ;;  %2344 = vmatprep.subr.bf16.mxu1 %v1413_v8  ;;  %v1475_v7 = vunpack.c.l.s8.bf16 %v539_v1  ;;  %v1477_v8 = vunpack.c.l.s8.bf16 %v541_v2 }
 0x208   :  { %2017 = vmatpush1.bf16.msra.mxu0 %v1410_v12  ;;  %2345 = vmatpush1.bf16.msra.mxu1 %v1412_v13  ;;  %v1474_v12 = vunpack.c.l.s8.bf16 %v538_v9  ;;  %v1476_v13 = vunpack.c.l.s8.bf16 %v540_v11 }
 0x209   :  { %2018 = vmatprep.subr.bf16.mxu0 %v1419_v15  ;;  %2346 = vmatprep.subr.bf16.mxu1 %v1421_v16  ;;  %v1483_v15 = vunpack.c.h.s8.bf16 %v539_v1  ;;  %v1485_v16 = vunpack.c.h.s8.bf16 %v541_v2  ;;  %v1533_v1 = vunpack.c.h.s8.bf16 %v565_v49  ;;  %v571_v2 = vld [vmem:[#allocation5 + $0xe48] sm:$0xff] }
 0x20c   :  { %2019 = vmatpush1.bf16.msra.mxu0 %v1418_v19  ;;  %2347 = vmatpush1.bf16.msra.mxu1 %v1420_v20  ;;  %v1482_v19 = vunpack.c.h.s8.bf16 %v538_v9  ;;  %v1484_v20 = vunpack.c.h.s8.bf16 %v540_v11  ;;  %v570_v9 = vld [vmem:[#allocation5 + $0xe40] sm:$0xff]  ;;  %v572_v11 = vld [vmem:[#allocation5 + $0xe50] sm:$0xff] }
 0x20d   :  { %2020 = vmatprep.subr.bf16.mxu0 %v1427_v23  ;;  %2348 = vmatprep.subr.bf16.mxu1 %v1429_v22  ;;  %v1491_v23 = vunpack.c.l.s8.bf16 %v547_v17  ;;  %v1493_v22 = vunpack.c.l.s8.bf16 %v549_v18 }
 0x210   :  { %2021 = vmatpush1.bf16.msra.mxu0 %v1426_v36  ;;  %2349 = vmatpush1.bf16.msra.mxu1 %v1428_v27  ;;  %v1490_v36 = vunpack.c.l.s8.bf16 %v546_v24  ;;  %v1492_v27 = vunpack.c.l.s8.bf16 %v548_v25 }
 0x211   :  { %2022 = vmatprep.subr.bf16.mxu0 %v1435_v28  ;;  %2350 = vmatprep.subr.bf16.mxu1 %v1437_v29  ;;  %v1499_v28 = vunpack.c.h.s8.bf16 %v547_v17  ;;  %v1501_v29 = vunpack.c.h.s8.bf16 %v549_v18  ;;  %v579_v17 = vld [vmem:[#allocation5 + $0xe88] sm:$0xff]  ;;  %v581_v18 = vld [vmem:[#allocation5 + $0xe98] sm:$0xff] }
 0x214   :  { %2023 = vmatpush1.bf16.msra.mxu0 %v1434_v33  ;;  %2351 = vmatpush1.bf16.msra.mxu1 %v1436_v34  ;;  %v1498_v33 = vunpack.c.h.s8.bf16 %v546_v24  ;;  %v1500_v34 = vunpack.c.h.s8.bf16 %v548_v25  ;;  %v578_v24 = vld [vmem:[#allocation5 + $0xe80] sm:$0xff]  ;;  %v580_v25 = vld [vmem:[#allocation5 + $0xe90] sm:$0xff] }
 0x215   :  { %2024 = vmatprep.subr.bf16.mxu0 %v1443_v37  ;;  %2352 = vmatprep.subr.bf16.mxu1 %v1445_v38  ;;  %v1507_v37 = vunpack.c.l.s8.bf16 %v555_v30  ;;  %v1509_v38 = vunpack.c.l.s8.bf16 %v557_v32 }
 0x218   :  { %2025 = vmatpush1.bf16.msra.mxu0 %v1442_v43  ;;  %2353 = vmatpush1.bf16.msra.mxu1 %v1444_v44  ;;  %v1506_v43 = vunpack.c.l.s8.bf16 %v554_v39  ;;  %v1508_v44 = vunpack.c.l.s8.bf16 %v556_v42 }
 0x219   :  { %2026 = vmatprep.subr.bf16.mxu0 %v1451_v45  ;;  %2354 = vmatprep.subr.bf16.mxu1 %v1453_v46  ;;  %v1515_v45 = vunpack.c.h.s8.bf16 %v555_v30  ;;  %v1517_v46 = vunpack.c.h.s8.bf16 %v557_v32  ;;  %v587_v30 = vld [vmem:[#allocation5 + $0xec8] sm:$0xff]  ;;  %v589_v32 = vld [vmem:[#allocation5 + $0xed8] sm:$0xff] }
 0x21c   :  { %2027 = vmatpush1.bf16.msra.mxu0 %v1450_v52  ;;  %2355 = vmatpush1.bf16.msra.mxu1 %v1452_v50  ;;  %v1514_v52 = vunpack.c.h.s8.bf16 %v554_v39  ;;  %v1516_v50 = vunpack.c.h.s8.bf16 %v556_v42  ;;  %v586_v39 = vld [vmem:[#allocation5 + $0xec0] sm:$0xff]  ;;  %v588_v42 = vld [vmem:[#allocation5 + $0xed0] sm:$0xff] }
 0x21d   :  { %2028 = vmatprep.subr.bf16.mxu0 %v1459_v54  ;;  %2356 = vmatprep.subr.bf16.mxu1 %v1461_v55  ;;  %v1523_v54 = vunpack.c.l.s8.bf16 %v563_v47  ;;  %v1525_v55 = vunpack.c.l.s8.bf16 %v565_v49  ;;  %v597_v49 = vld [vmem:[#allocation5 + $0xf18] sm:$0xff] }
 0x220   :  { %2029 = vmatpush1.bf16.msra.mxu0 %v1458_v41  ;;  %2357 = vmatpush1.bf16.msra.mxu1 %v1460_v62  ;;  %v5405_v41 = vrot.slane %v5388_v48, %v5297_v35  ;;  %v1522_v62 = vunpack.c.l.s8.bf16 %v562_v56  ;;  %v1530_v35 = vunpack.c.h.s8.bf16 %v562_v56  ;;  %v1532_v48 = vunpack.c.h.s8.bf16 %v564_v57  ;;  %v594_v56 = vld [vmem:[#allocation5 + $0xf00] sm:$0xff] }
 0x221   :  { %2030 = vmatprep.subr.bf16.mxu0 %v1467_v63  ;;  %2358 = vmatprep.subr.bf16.mxu1 %v1469_v0  ;;  %v1524_v63 = vunpack.c.l.s8.bf16 %v564_v57  ;;  %v1531_v0 = vunpack.c.h.s8.bf16 %v563_v47  ;;  %v595_v47 = vld [vmem:[#allocation5 + $0xf08] sm:$0xff]  ;;  %v596_v57 = vld [vmem:[#allocation5 + $0xf10] sm:$0xff] }
 0x224   :  { %2031 = vmatpush1.bf16.msra.mxu0 %v1466_v59  ;;  %2359 = vmatpush1.bf16.msra.mxu1 %v1468_v6  ;;  %v573_v59 = vld [vmem:[#allocation5 + $0xe58] sm:$0xff]  ;;  %v5409_v6 = vcombine.high %v5397_v4, %v5397_v4 }
 0x225   :  { %2032 = vmatprep.subr.bf16.mxu0 %v1475_v7  ;;  %2360 = vmatprep.subr.bf16.mxu1 %v1477_v8  ;;  %v1539_v7 = vunpack.c.l.s8.bf16 %v571_v2  ;;  %v1541_v8 = vunpack.c.l.s8.bf16 %v573_v59 }
 0x228   :  { %2033 = vmatpush1.bf16.msra.mxu0 %v1474_v12  ;;  %2361 = vmatpush1.bf16.msra.mxu1 %v1476_v13  ;;  %v1538_v12 = vunpack.c.l.s8.bf16 %v570_v9  ;;  %v1540_v13 = vunpack.c.l.s8.bf16 %v572_v11 }
 0x229   :  { %2034 = vmatprep.subr.bf16.mxu0 %v1483_v15  ;;  %2362 = vmatprep.subr.bf16.mxu1 %v1485_v16  ;;  %v1547_v15 = vunpack.c.h.s8.bf16 %v571_v2  ;;  %v1549_v16 = vunpack.c.h.s8.bf16 %v573_v59  ;;  %v603_v2 = vld [vmem:[#allocation5 + $0xf48] sm:$0xff]  ;;  %v605_v59 = vld [vmem:[#allocation5 + $0xf58] sm:$0xff] }
 0x22c   :  { %2035 = vmatpush1.bf16.msra.mxu0 %v1482_v19  ;;  %2363 = vmatpush1.bf16.msra.mxu1 %v1484_v20  ;;  %v1546_v19 = vunpack.c.h.s8.bf16 %v570_v9  ;;  %v1548_v20 = vunpack.c.h.s8.bf16 %v572_v11  ;;  %v602_v9 = vld [vmem:[#allocation5 + $0xf40] sm:$0xff]  ;;  %v604_v11 = vld [vmem:[#allocation5 + $0xf50] sm:$0xff] }
 0x22d   :  { %2036 = vmatprep.subr.bf16.mxu0 %v1491_v23  ;;  %2364 = vmatprep.subr.bf16.mxu1 %v1493_v22  ;;  %v1555_v23 = vunpack.c.l.s8.bf16 %v579_v17  ;;  %v1557_v22 = vunpack.c.l.s8.bf16 %v581_v18 }
 0x230   :  { %2037 = vmatpush1.bf16.msra.mxu0 %v1490_v36  ;;  %2365 = vmatpush1.bf16.msra.mxu1 %v1492_v27  ;;  %v1554_v36 = vunpack.c.l.s8.bf16 %v578_v24  ;;  %v1556_v27 = vunpack.c.l.s8.bf16 %v580_v25 }
 0x231   :  { %2038 = vmatprep.subr.bf16.mxu0 %v1499_v28  ;;  %2366 = vmatprep.subr.bf16.mxu1 %v1501_v29  ;;  %v1563_v28 = vunpack.c.h.s8.bf16 %v579_v17  ;;  %v1565_v29 = vunpack.c.h.s8.bf16 %v581_v18  ;;  %v611_v17 = vld [vmem:[#allocation5 + $0xf88] sm:$0xff]  ;;  %v613_v18 = vld [vmem:[#allocation5 + $0xf98] sm:$0xff] }
 0x234   :  { %2039 = vmatpush1.bf16.msra.mxu0 %v1498_v33  ;;  %2367 = vmatpush1.bf16.msra.mxu1 %v1500_v34  ;;  %v1562_v33 = vunpack.c.h.s8.bf16 %v578_v24  ;;  %v1564_v34 = vunpack.c.h.s8.bf16 %v580_v25  ;;  %v610_v24 = vld [vmem:[#allocation5 + $0xf80] sm:$0xff]  ;;  %v612_v25 = vld [vmem:[#allocation5 + $0xf90] sm:$0xff] }
 0x235   :  { %2040 = vmatprep.subr.bf16.mxu0 %v1507_v37  ;;  %2368 = vmatprep.subr.bf16.mxu1 %v1509_v38  ;;  %v1571_v37 = vunpack.c.l.s8.bf16 %v587_v30  ;;  %v1573_v38 = vunpack.c.l.s8.bf16 %v589_v32 }
 0x238   :  { %2041 = vmatpush1.bf16.msra.mxu0 %v1506_v43  ;;  %2369 = vmatpush1.bf16.msra.mxu1 %v1508_v44  ;;  %v1570_v43 = vunpack.c.l.s8.bf16 %v586_v39  ;;  %v1572_v44 = vunpack.c.l.s8.bf16 %v588_v42 }
 0x239   :  { %2042 = vmatprep.subr.bf16.mxu0 %v1515_v45  ;;  %2370 = vmatprep.subr.bf16.mxu1 %v1517_v46  ;;  %v1579_v45 = vunpack.c.h.s8.bf16 %v587_v30  ;;  %v1581_v46 = vunpack.c.h.s8.bf16 %v589_v32  ;;  %v619_v30 = vld [vmem:[#allocation5 + $0xfc8] sm:$0xff]  ;;  %v621_v32 = vld [vmem:[#allocation5 + $0xfd8] sm:$0xff] }
 0x23c   :  { %2043 = vmatpush1.bf16.msra.mxu0 %v1514_v52  ;;  %2371 = vmatpush1.bf16.msra.mxu1 %v1516_v50  ;;  %v1578_v52 = vunpack.c.h.s8.bf16 %v586_v39  ;;  %v1580_v50 = vunpack.c.h.s8.bf16 %v588_v42  ;;  %v618_v39 = vld [vmem:[#allocation5 + $0xfc0] sm:$0xff]  ;;  %v620_v42 = vld [vmem:[#allocation5 + $0xfd0] sm:$0xff] }
 0x23d   :  { %2053 = vmatprep.subr.bf16.mxu0 %v1523_v54  ;;  %2381 = vmatprep.subr.bf16.mxu1 %v1525_v55  ;;  %v1587_v54 = vunpack.c.l.s8.bf16 %v595_v47  ;;  %v1589_v55 = vunpack.c.l.s8.bf16 %v597_v49 }
 0x23f   :  { %2045 = vmatmul.mubr.bf16.vlgmr.msra.gmra.mrb[0].mxu0 %v5405_v41  ;;  %2373 = vmatmul.mubr.bf16.vlgmr.msra.gmra.mrb[0].mxu1 %v5405_v41 }
 0x240   :  { %2054 = vmatpush1.bf16.msra.mxu0 %v1522_v62  ;;  %2382 = vmatpush1.bf16.msra.mxu1 %v1524_v63  ;;  %v1586_v62 = vunpack.c.l.s8.bf16 %v594_v56  ;;  %v1588_v63 = vunpack.c.l.s8.bf16 %v596_v57 }
 0x241   :  { %2055 = vmatprep.subr.bf16.mxu0 %v1531_v0  ;;  %2383 = vmatprep.subr.bf16.mxu1 %v1533_v1  ;;  %v1595_v0 = vunpack.c.h.s8.bf16 %v595_v47  ;;  %v1597_v1 = vunpack.c.h.s8.bf16 %v597_v49  ;;  %v119_v47 = vld [vmem:[#allocation5 + $0x28] sm:$0xff]  ;;  %v121_v49 = vld [vmem:[#allocation5 + $0x38] sm:$0xff] }
 0x242   :  { %2085 = vmatprep.mubr.bf16.mxu0 %v5409_v6  ;;  %2413 = vmatprep.mubr.bf16.mxu1 %v5409_v6 }
 0x244   :  { %2056 = vmatpush1.bf16.msra.mxu0 %v1530_v35  ;;  %2384 = vmatpush1.bf16.msra.mxu1 %v1532_v48  ;;  %v1594_v35 = vunpack.c.h.s8.bf16 %v594_v56  ;;  %v1596_v48 = vunpack.c.h.s8.bf16 %v596_v57  ;;  %v118_v56 = vld [vmem:[#allocation5 + $0x20] sm:$0xff]  ;;  %v120_v57 = vld [vmem:[#allocation5 + $0x30] sm:$0xff] }
 0x245   :  { %2057 = vmatprep.subr.bf16.mxu0 %v1539_v7  ;;  %2385 = vmatprep.subr.bf16.mxu1 %v1541_v8  ;;  %v1603_v7 = vunpack.c.l.s8.bf16 %v603_v2  ;;  %v1605_v8 = vunpack.c.l.s8.bf16 %v605_v59 }
 0x248   :  { %2058 = vmatpush1.bf16.msra.mxu0 %v1538_v12  ;;  %2386 = vmatpush1.bf16.msra.mxu1 %v1540_v13  ;;  %v1602_v12 = vunpack.c.l.s8.bf16 %v602_v9  ;;  %v1604_v13 = vunpack.c.l.s8.bf16 %v604_v11 }
 0x249   :  { %2059 = vmatprep.subr.bf16.mxu0 %v1547_v15  ;;  %2387 = vmatprep.subr.bf16.mxu1 %v1549_v16  ;;  %v1611_v15 = vunpack.c.h.s8.bf16 %v603_v2  ;;  %v1613_v16 = vunpack.c.h.s8.bf16 %v605_v59  ;;  %v641_v2 = vunpack.c.h.s8.bf16 %v121_v49  ;;  %v127_v59 = vld [vmem:[#allocation5 + $0x68] sm:$0xff] }
 0x24c   :  { %2060 = vmatpush1.bf16.msra.mxu0 %v1546_v19  ;;  %2388 = vmatpush1.bf16.msra.mxu1 %v1548_v20  ;;  %v1610_v19 = vunpack.c.h.s8.bf16 %v602_v9  ;;  %v1612_v20 = vunpack.c.h.s8.bf16 %v604_v11  ;;  %v126_v11 = vld [vmem:[#allocation5 + $0x60] sm:$0xff] }
 0x24d   :  { %2061 = vmatprep.subr.bf16.mxu0 %v1555_v23  ;;  %2389 = vmatprep.subr.bf16.mxu1 %v1557_v22  ;;  %v1619_v23 = vunpack.c.l.s8.bf16 %v611_v17  ;;  %v1621_v22 = vunpack.c.l.s8.bf16 %v613_v18 }
 0x250   :  { %2062 = vmatpush1.bf16.msra.mxu0 %v1554_v36  ;;  %2390 = vmatpush1.bf16.msra.mxu1 %v1556_v27  ;;  %v1618_v36 = vunpack.c.l.s8.bf16 %v610_v24  ;;  %v1620_v27 = vunpack.c.l.s8.bf16 %v612_v25 }
 0x251   :  { %2063 = vmatprep.subr.bf16.mxu0 %v1563_v28  ;;  %2391 = vmatprep.subr.bf16.mxu1 %v1565_v29  ;;  %v1627_v28 = vunpack.c.h.s8.bf16 %v611_v17  ;;  %v1629_v29 = vunpack.c.h.s8.bf16 %v613_v18  ;;  %v135_v18 = vld [vmem:[#allocation5 + $0xa8] sm:$0xff] }
 0x254   :  { %2064 = vmatpush1.bf16.msra.mxu0 %v1562_v33  ;;  %2392 = vmatpush1.bf16.msra.mxu1 %v1564_v34  ;;  %v1626_v33 = vunpack.c.h.s8.bf16 %v610_v24  ;;  %v1628_v34 = vunpack.c.h.s8.bf16 %v612_v25  ;;  %v134_v25 = vld [vmem:[#allocation5 + $0xa0] sm:$0xff] }
 0x255   :  { %2065 = vmatprep.subr.bf16.mxu0 %v1571_v37  ;;  %2393 = vmatprep.subr.bf16.mxu1 %v1573_v38  ;;  %v1635_v37 = vunpack.c.l.s8.bf16 %v619_v30  ;;  %v1637_v38 = vunpack.c.l.s8.bf16 %v621_v32 }
 0x258   :  { %2066 = vmatpush1.bf16.msra.mxu0 %v1570_v43  ;;  %2394 = vmatpush1.bf16.msra.mxu1 %v1572_v44  ;;  %v1634_v43 = vunpack.c.l.s8.bf16 %v618_v39  ;;  %v1636_v44 = vunpack.c.l.s8.bf16 %v620_v42 }
 0x259   :  { %2067 = vmatprep.subr.bf16.mxu0 %v1579_v45  ;;  %2395 = vmatprep.subr.bf16.mxu1 %v1581_v46  ;;  %v1643_v45 = vunpack.c.h.s8.bf16 %v619_v30  ;;  %v1645_v46 = vunpack.c.h.s8.bf16 %v621_v32  ;;  %v143_v30 = vld [vmem:[#allocation5 + $0xe8] sm:$0xff]  ;;  %v145_v32 = vld [vmem:[#allocation5 + $0xf8] sm:$0xff] }
 0x25c   :  { %2068 = vmatpush1.bf16.msra.mxu0 %v1578_v52  ;;  %2396 = vmatpush1.bf16.msra.mxu1 %v1580_v50  ;;  %v1642_v52 = vunpack.c.h.s8.bf16 %v618_v39  ;;  %v1644_v50 = vunpack.c.h.s8.bf16 %v620_v42  ;;  %v142_v39 = vld [vmem:[#allocation5 + $0xe0] sm:$0xff]  ;;  %v144_v42 = vld [vmem:[#allocation5 + $0xf0] sm:$0xff] }
 0x25d   :  { %2069 = vmatprep.subr.bf16.mxu0 %v1587_v54  ;;  %2397 = vmatprep.subr.bf16.mxu1 %v1589_v55  ;;  %v631_v54 = vunpack.c.l.s8.bf16 %v119_v47  ;;  %v633_v55 = vunpack.c.l.s8.bf16 %v121_v49  ;;  %v153_v49 = vld [vmem:[#allocation5 + $0x138] sm:$0xff] }
 0x260   :  { %2070 = vmatpush1.bf16.msra.mxu0 %v1586_v62  ;;  %2398 = vmatpush1.bf16.msra.mxu1 %v1588_v63  ;;  %v5417_v62 = vcombine.high %v5405_v41, %v5405_v41  ;;  %v630_v63 = vunpack.c.l.s8.bf16 %v118_v56 }
 0x261   :  { %2071 = vmatprep.subr.bf16.mxu0 %v1595_v0  ;;  %2399 = vmatprep.subr.bf16.mxu1 %v1597_v1  ;;  %v632_v0 = vunpack.c.l.s8.bf16 %v120_v57  ;;  %v639_v1 = vunpack.c.h.s8.bf16 %v119_v47  ;;  %v151_v47 = vld [vmem:[#allocation5 + $0x128] sm:$0xff] }
 0x264   :  { %2072 = vmatpush1.bf16.msra.mxu0 %v1594_v35  ;;  %2400 = vmatpush1.bf16.msra.mxu1 %v1596_v48  ;;  %v129_v35 = vld [vmem:[#allocation5 + $0x78] sm:$0xff]  ;;  %v638_v48 = vunpack.c.h.s8.bf16 %v118_v56  ;;  %v150_v56 = vld [vmem:[#allocation5 + $0x120] sm:$0xff] }
 0x265   :  { %2073 = vmatprep.subr.bf16.mxu0 %v1603_v7  ;;  %2401 = vmatprep.subr.bf16.mxu1 %v1605_v8  ;;  %v640_v7 = vunpack.c.h.s8.bf16 %v120_v57  ;;  %v647_v8 = vunpack.c.l.s8.bf16 %v127_v59  ;;  %v649_v9 = vunpack.c.l.s8.bf16 %v129_v35  ;;  %v657_v17 = vunpack.c.h.s8.bf16 %v129_v35  ;;  %v152_v57 = vld [vmem:[#allocation5 + $0x130] sm:$0xff]  ;;  %v161_v35 = vld [vmem:[#allocation5 + $0x178] sm:$0xff] }
 0x268   :  { %2074 = vmatpush1.bf16.msra.mxu0 %v1602_v12  ;;  %2402 = vmatpush1.bf16.msra.mxu1 %v1604_v13  ;;  %v128_v12 = vld [vmem:[#allocation5 + $0x70] sm:$0xff]  ;;  %v646_v13 = vunpack.c.l.s8.bf16 %v126_v11 }
 0x269   :  { %2075 = vmatprep.subr.bf16.mxu0 %v1611_v15  ;;  %2403 = vmatprep.subr.bf16.mxu1 %v1613_v16  ;;  %v648_v15 = vunpack.c.l.s8.bf16 %v128_v12  ;;  %v655_v16 = vunpack.c.h.s8.bf16 %v127_v59  ;;  %v159_v59 = vld [vmem:[#allocation5 + $0x168] sm:$0xff] }
 0x26c   :  { %2076 = vmatpush1.bf16.msra.mxu0 %v1610_v19  ;;  %2404 = vmatpush1.bf16.msra.mxu1 %v1612_v20  ;;  %v137_v19 = vld [vmem:[#allocation5 + $0xb8] sm:$0xff]  ;;  %v654_v20 = vunpack.c.h.s8.bf16 %v126_v11  ;;  %v158_v11 = vld [vmem:[#allocation5 + $0x160] sm:$0xff] }
 0x26d   :  { %2077 = vmatprep.subr.bf16.mxu0 %v1619_v23  ;;  %2405 = vmatprep.subr.bf16.mxu1 %v1621_v22  ;;  %v656_v23 = vunpack.c.h.s8.bf16 %v128_v12  ;;  %v663_v22 = vunpack.c.l.s8.bf16 %v135_v18  ;;  %v665_v24 = vunpack.c.l.s8.bf16 %v137_v19  ;;  %v160_v12 = vld [vmem:[#allocation5 + $0x170] sm:$0xff] }
 0x270   :  { %2078 = vmatpush1.bf16.msra.mxu0 %v1618_v36  ;;  %2406 = vmatpush1.bf16.msra.mxu1 %v1620_v27  ;;  %v662_v36 = vunpack.c.l.s8.bf16 %v134_v25 }
 0x271   :  { %2079 = vmatprep.subr.bf16.mxu0 %v1627_v28  ;;  %2407 = vmatprep.subr.bf16.mxu1 %v1629_v29  ;;  %v671_v28 = vunpack.c.h.s8.bf16 %v135_v18  ;;  %v673_v29 = vunpack.c.h.s8.bf16 %v137_v19  ;;  %v167_v18 = vld [vmem:[#allocation5 + $0x1a8] sm:$0xff]  ;;  %v169_v19 = vld [vmem:[#allocation5 + $0x1b8] sm:$0xff] }
 0x274   :  { %2080 = vmatpush1.bf16.msra.mxu0 %v1626_v33  ;;  %2408 = vmatpush1.bf16.msra.mxu1 %v1628_v34  ;;  %v670_v33 = vunpack.c.h.s8.bf16 %v134_v25  ;;  %v166_v25 = vld [vmem:[#allocation5 + $0x1a0] sm:$0xff] }
 0x275   :  { %2081 = vmatprep.subr.bf16.mxu0 %v1635_v37  ;;  %2409 = vmatprep.subr.bf16.mxu1 %v1637_v38  ;;  %v679_v37 = vunpack.c.l.s8.bf16 %v143_v30  ;;  %v681_v38 = vunpack.c.l.s8.bf16 %v145_v32 }
 0x278   :  { %2082 = vmatpush1.bf16.msra.mxu0 %v1634_v43  ;;  %2410 = vmatpush1.bf16.msra.mxu1 %v1636_v44  ;;  %v678_v43 = vunpack.c.l.s8.bf16 %v142_v39  ;;  %v680_v44 = vunpack.c.l.s8.bf16 %v144_v42 }
 0x279   :  { %2083 = vmatprep.subr.bf16.mxu0 %v1643_v45  ;;  %2411 = vmatprep.subr.bf16.mxu1 %v1645_v46  ;;  %v687_v45 = vunpack.c.h.s8.bf16 %v143_v30  ;;  %v689_v46 = vunpack.c.h.s8.bf16 %v145_v32  ;;  %v175_v30 = vld [vmem:[#allocation5 + $0x1e8] sm:$0xff]  ;;  %v177_v32 = vld [vmem:[#allocation5 + $0x1f8] sm:$0xff] }
 0x27c   :  { %2084 = vmatpush1.bf16.msra.mxu0 %v1642_v52  ;;  %2412 = vmatpush1.bf16.msra.mxu1 %v1644_v50  ;;  %v686_v52 = vunpack.c.h.s8.bf16 %v142_v39  ;;  %v688_v50 = vunpack.c.h.s8.bf16 %v144_v42  ;;  %v174_v39 = vld [vmem:[#allocation5 + $0x1e0] sm:$0xff]  ;;  %v176_v42 = vld [vmem:[#allocation5 + $0x1f0] sm:$0xff] }
 0x27d   :  { %2422 = vmatprep.subr.bf16.mxu0 %v631_v54  ;;  %2750 = vmatprep.subr.bf16.mxu1 %v633_v55  ;;  %v695_v54 = vunpack.c.l.s8.bf16 %v151_v47  ;;  %v697_v55 = vunpack.c.l.s8.bf16 %v153_v49 }
 0x27f   :  { %2086 = vmatmul.mubr.bf16.vlgmr.msra.gmra.mrb[0].mxu0 %v5417_v62  ;;  %2414 = vmatmul.mubr.bf16.vlgmr.msra.gmra.mrb[0].mxu1 %v5417_v62 }
 0x280   :  { %2423 = vmatpush1.bf16.msra.mxu0 %v630_v63  ;;  %2751 = vmatpush1.bf16.msra.mxu1 %v632_v0  ;;  %v694_v63 = vunpack.c.l.s8.bf16 %v150_v56  ;;  %v696_v0 = vunpack.c.l.s8.bf16 %v152_v57 }
 0x281   :  { %2424 = vmatprep.subr.bf16.mxu0 %v639_v1  ;;  %2752 = vmatprep.subr.bf16.mxu1 %v641_v2  ;;  %v703_v1 = vunpack.c.h.s8.bf16 %v151_v47  ;;  %v705_v2 = vunpack.c.h.s8.bf16 %v153_v49  ;;  %v183_v47 = vld [vmem:[#allocation5 + $0x228] sm:$0xff]  ;;  %v185_v49 = vld [vmem:[#allocation5 + $0x238] sm:$0xff] }
 0x282   :  { %2454 = vmatprep.mubr.bf16.mxu0 %v5308_v51  ;;  %2782 = vmatprep.mubr.bf16.mxu1 %v5308_v51  ;;  %v136_v51 = vld [vmem:[#allocation5 + $0xb0] sm:$0xff] }
 0x283   :  { %v664_v27 = vunpack.c.l.s8.bf16 %v136_v51  ;;  %v672_v34 = vunpack.c.h.s8.bf16 %v136_v51  ;;  %v168_v51 = vld [vmem:[#allocation5 + $0x1b0] sm:$0xff] }
 0x284   :  { %2425 = vmatpush1.bf16.msra.mxu0 %v638_v48  ;;  %2753 = vmatpush1.bf16.msra.mxu1 %v640_v7  ;;  %v702_v48 = vunpack.c.h.s8.bf16 %v150_v56  ;;  %v704_v7 = vunpack.c.h.s8.bf16 %v152_v57  ;;  %v182_v56 = vld [vmem:[#allocation5 + $0x220] sm:$0xff]  ;;  %v184_v57 = vld [vmem:[#allocation5 + $0x230] sm:$0xff] }
 0x285   :  { %2426 = vmatprep.subr.bf16.mxu0 %v647_v8  ;;  %2754 = vmatprep.subr.bf16.mxu1 %v649_v9  ;;  %v711_v8 = vunpack.c.l.s8.bf16 %v159_v59  ;;  %v713_v9 = vunpack.c.l.s8.bf16 %v161_v35 }
 0x288   :  { %2427 = vmatpush1.bf16.msra.mxu0 %v646_v13  ;;  %2755 = vmatpush1.bf16.msra.mxu1 %v648_v15  ;;  %v710_v13 = vunpack.c.l.s8.bf16 %v158_v11  ;;  %v712_v15 = vunpack.c.l.s8.bf16 %v160_v12 }
 0x289   :  { %2428 = vmatprep.subr.bf16.mxu0 %v655_v16  ;;  %2756 = vmatprep.subr.bf16.mxu1 %v657_v17  ;;  %v719_v16 = vunpack.c.h.s8.bf16 %v159_v59  ;;  %v721_v17 = vunpack.c.h.s8.bf16 %v161_v35  ;;  %v191_v59 = vld [vmem:[#allocation5 + $0x268] sm:$0xff]  ;;  %v193_v35 = vld [vmem:[#allocation5 + $0x278] sm:$0xff] }
 0x28c   :  { %2429 = vmatpush1.bf16.msra.mxu0 %v654_v20  ;;  %2757 = vmatpush1.bf16.msra.mxu1 %v656_v23  ;;  %v718_v20 = vunpack.c.h.s8.bf16 %v158_v11  ;;  %v720_v23 = vunpack.c.h.s8.bf16 %v160_v12  ;;  %v190_v11 = vld [vmem:[#allocation5 + $0x260] sm:$0xff]  ;;  %v192_v12 = vld [vmem:[#allocation5 + $0x270] sm:$0xff] }
 0x28d   :  { %2430 = vmatprep.subr.bf16.mxu0 %v663_v22  ;;  %2758 = vmatprep.subr.bf16.mxu1 %v665_v24  ;;  %v727_v22 = vunpack.c.l.s8.bf16 %v167_v18  ;;  %v729_v24 = vunpack.c.l.s8.bf16 %v169_v19 }
 0x290   :  { %2431 = vmatpush1.bf16.msra.mxu0 %v662_v36  ;;  %2759 = vmatpush1.bf16.msra.mxu1 %v664_v27  ;;  %v726_v36 = vunpack.c.l.s8.bf16 %v166_v25  ;;  %v728_v27 = vunpack.c.l.s8.bf16 %v168_v51 }
 0x291   :  { %2432 = vmatprep.subr.bf16.mxu0 %v671_v28  ;;  %2760 = vmatprep.subr.bf16.mxu1 %v673_v29  ;;  %v735_v28 = vunpack.c.h.s8.bf16 %v167_v18  ;;  %v737_v29 = vunpack.c.h.s8.bf16 %v169_v19  ;;  %v201_v18 = vld [vmem:[#allocation5 + $0x2b8] sm:$0xff]  ;;  %v782_v19 = vunpack.c.h.s8.bf16 %v190_v11 }
 0x294   :  { %2433 = vmatpush1.bf16.msra.mxu0 %v670_v33  ;;  %2761 = vmatpush1.bf16.msra.mxu1 %v672_v34  ;;  %v734_v33 = vunpack.c.h.s8.bf16 %v166_v25  ;;  %v736_v34 = vunpack.c.h.s8.bf16 %v168_v51 }
 0x295   :  { %2434 = vmatprep.subr.bf16.mxu0 %v679_v37  ;;  %2762 = vmatprep.subr.bf16.mxu1 %v681_v38  ;;  %v743_v37 = vunpack.c.l.s8.bf16 %v175_v30  ;;  %v745_v38 = vunpack.c.l.s8.bf16 %v177_v32 }
 0x298   :  { %2435 = vmatpush1.bf16.msra.mxu0 %v678_v43  ;;  %2763 = vmatpush1.bf16.msra.mxu1 %v680_v44  ;;  %v742_v43 = vunpack.c.l.s8.bf16 %v174_v39  ;;  %v744_v44 = vunpack.c.l.s8.bf16 %v176_v42 }
 0x299   :  { %2436 = vmatprep.subr.bf16.mxu0 %v687_v45  ;;  %2764 = vmatprep.subr.bf16.mxu1 %v689_v46  ;;  %v751_v45 = vunpack.c.h.s8.bf16 %v175_v30  ;;  %v753_v46 = vunpack.c.h.s8.bf16 %v177_v32 }
 0x29c   :  { %2437 = vmatpush1.bf16.msra.mxu0 %v686_v52  ;;  %2765 = vmatpush1.bf16.msra.mxu1 %v688_v50  ;;  %v750_v52 = vunpack.c.h.s8.bf16 %v174_v39  ;;  %v752_v50 = vunpack.c.h.s8.bf16 %v176_v42 }
 0x29d   :  { %2438 = vmatprep.subr.bf16.mxu0 %v695_v54  ;;  %2766 = vmatprep.subr.bf16.mxu1 %v697_v55  ;;  %v759_v54 = vunpack.c.l.s8.bf16 %v183_v47  ;;  %v761_v55 = vunpack.c.l.s8.bf16 %v185_v49 }
 0x2a0   :  { %2439 = vmatpush1.bf16.msra.mxu0 %v694_v63  ;;  %2767 = vmatpush1.bf16.msra.mxu1 %v696_v0  ;;  %v758_v63 = vunpack.c.l.s8.bf16 %v182_v56  ;;  %v760_v0 = vunpack.c.l.s8.bf16 %v184_v57 }
 0x2a1   :  { %2440 = vmatprep.subr.bf16.mxu0 %v703_v1  ;;  %2768 = vmatprep.subr.bf16.mxu1 %v705_v2  ;;  %v767_v1 = vunpack.c.h.s8.bf16 %v183_v47  ;;  %v769_v2 = vunpack.c.h.s8.bf16 %v185_v49 }
 0x2a4   :  { %2441 = vmatpush1.bf16.msra.mxu0 %v702_v48  ;;  %2769 = vmatpush1.bf16.msra.mxu1 %v704_v7  ;;  %v766_v48 = vunpack.c.h.s8.bf16 %v182_v56  ;;  %v768_v7 = vunpack.c.h.s8.bf16 %v184_v57 }
 0x2a5   :  { %2442 = vmatprep.subr.bf16.mxu0 %v711_v8  ;;  %2770 = vmatprep.subr.bf16.mxu1 %v713_v9  ;;  %v775_v8 = vunpack.c.l.s8.bf16 %v191_v59  ;;  %v777_v9 = vunpack.c.l.s8.bf16 %v193_v35 }
 0x2a8   :  { %2443 = vmatpush1.bf16.msra.mxu0 %v710_v13  ;;  %2771 = vmatpush1.bf16.msra.mxu1 %v712_v15  ;;  %v774_v13 = vunpack.c.l.s8.bf16 %v190_v11  ;;  %v776_v15 = vunpack.c.l.s8.bf16 %v192_v12 }
 0x2a9   :  { %2444 = vmatprep.subr.bf16.mxu0 %v719_v16  ;;  %2772 = vmatprep.subr.bf16.mxu1 %v721_v17  ;;  %v785_v16 = vunpack.c.h.s8.bf16 %v193_v35  ;;  %v199_v17 = vld [vmem:[#allocation5 + $0x2a8] sm:$0xff] }
 0x2ac   :  { %2445 = vmatpush1.bf16.msra.mxu0 %v718_v20  ;;  %2773 = vmatpush1.bf16.msra.mxu1 %v720_v23  ;;  %v784_v20 = vunpack.c.h.s8.bf16 %v192_v12  ;;  %v791_v23 = vunpack.c.l.s8.bf16 %v199_v17 }
 0x2ad   :  { %2446 = vmatprep.subr.bf16.mxu0 %v727_v22  ;;  %2774 = vmatprep.subr.bf16.mxu1 %v729_v24  ;;  %v793_v22 = vunpack.c.l.s8.bf16 %v201_v18  ;;  %v198_v24 = vld [vmem:[#allocation5 + $0x2a0] sm:$0xff] }
 0x2ae   :  { %v790_v25 = vunpack.c.l.s8.bf16 %v198_v24  ;;  %v798_v30 = vunpack.c.h.s8.bf16 %v198_v24 }
 0x2b0   :  { %2447 = vmatpush1.bf16.msra.mxu0 %v726_v36  ;;  %2775 = vmatpush1.bf16.msra.mxu1 %v728_v27  ;;  %v799_v36 = vunpack.c.h.s8.bf16 %v199_v17  ;;  %v801_v27 = vunpack.c.h.s8.bf16 %v201_v18 }
 0x2b1   :  { %2448 = vmatprep.subr.bf16.mxu0 %v735_v28  ;;  %2776 = vmatprep.subr.bf16.mxu1 %v737_v29  ;;  %v207_v28 = vld [vmem:[#allocation5 + $0x2e8] sm:$0xff]  ;;  %v209_v29 = vld [vmem:[#allocation5 + $0x2f8] sm:$0xff] }
 0x2b4   :  { %2449 = vmatpush1.bf16.msra.mxu0 %v734_v33  ;;  %2777 = vmatpush1.bf16.msra.mxu1 %v736_v34  ;;  %v807_v33 = vunpack.c.l.s8.bf16 %v207_v28  ;;  %v809_v34 = vunpack.c.l.s8.bf16 %v209_v29 }
 0x2b5   :  { %2450 = vmatprep.subr.bf16.mxu0 %v743_v37  ;;  %2778 = vmatprep.subr.bf16.mxu1 %v745_v38  ;;  %v206_v37 = vld [vmem:[#allocation5 + $0x2e0] sm:$0xff]  ;;  %v208_v38 = vld [vmem:[#allocation5 + $0x2f0] sm:$0xff] }
 0x2b6   :  { %v806_v39 = vunpack.c.l.s8.bf16 %v206_v37  ;;  %v808_v42 = vunpack.c.l.s8.bf16 %v208_v38  ;;  %v814_v47 = vunpack.c.h.s8.bf16 %v206_v37  ;;  %v816_v49 = vunpack.c.h.s8.bf16 %v208_v38 }
 0x2b8   :  { %2451 = vmatpush1.bf16.msra.mxu0 %v742_v43  ;;  %2779 = vmatpush1.bf16.msra.mxu1 %v744_v44  ;;  %v815_v43 = vunpack.c.h.s8.bf16 %v207_v28  ;;  %v817_v44 = vunpack.c.h.s8.bf16 %v209_v29 }
 0x2b9   :  { %2452 = vmatprep.subr.bf16.mxu0 %v751_v45  ;;  %2780 = vmatprep.subr.bf16.mxu1 %v753_v46  ;;  %v215_v45 = vld [vmem:[#allocation5 + $0x328] sm:$0xff]  ;;  %v217_v46 = vld [vmem:[#allocation5 + $0x338] sm:$0xff] }
 0x2bc   :  { %2453 = vmatpush1.bf16.msra.mxu0 %v750_v52  ;;  %2781 = vmatpush1.bf16.msra.mxu1 %v752_v50  ;;  %v823_v52 = vunpack.c.l.s8.bf16 %v215_v45  ;;  %v825_v50 = vunpack.c.l.s8.bf16 %v217_v46 }
 0x2bd   :  { %2463 = vmatprep.subr.bf16.mxu0 %v759_v54  ;;  %2791 = vmatprep.subr.bf16.mxu1 %v761_v55  ;;  %v214_v54 = vld [vmem:[#allocation5 + $0x320] sm:$0xff]  ;;  %v216_v55 = vld [vmem:[#allocation5 + $0x330] sm:$0xff] }
 0x2be   :  { %v822_v56 = vunpack.c.l.s8.bf16 %v214_v54  ;;  %v824_v57 = vunpack.c.l.s8.bf16 %v216_v55  ;;  %v832_v35 = vunpack.c.h.s8.bf16 %v216_v55 }
 0x2bf   :  { %2455 = vmatmul.mubr.bf16.vlgmr.msra.gmra.mrb[4].mxu0 %v5314_v53  ;;  %2783 = vmatmul.mubr.bf16.vlgmr.msra.gmra.mrb[4].mxu1 %v5314_v53  ;;  %v783_v53 = vunpack.c.h.s8.bf16 %v191_v59  ;;  %v830_v59 = vunpack.c.h.s8.bf16 %v214_v54 }
 0x2c0   :  { %2464 = vmatpush1.bf16.msra.mxu0 %v758_v63  ;;  %2792 = vmatpush1.bf16.msra.mxu1 %v760_v0  ;;  %v831_v63 = vunpack.c.h.s8.bf16 %v215_v45  ;;  %v833_v0 = vunpack.c.h.s8.bf16 %v217_v46 }
 0x2c1   :  { %2465 = vmatprep.subr.bf16.mxu0 %v767_v1  ;;  %2793 = vmatprep.subr.bf16.mxu1 %v769_v2  ;;  %v223_v1 = vld [vmem:[#allocation5 + $0x368] sm:$0xff]  ;;  %v225_v2 = vld [vmem:[#allocation5 + $0x378] sm:$0xff] }
 0x2c2   :  { %2495 = vmatprep.mubr.bf16.mxu0 %v5318_v60  ;;  %2823 = vmatprep.mubr.bf16.mxu1 %v5318_v60  ;;  %v200_v60 = vld [vmem:[#allocation5 + $0x2b0] sm:$0xff] }
 0x2c3   :  { %v792_v51 = vunpack.c.l.s8.bf16 %v200_v60  ;;  %v800_v32 = vunpack.c.h.s8.bf16 %v200_v60 }
 0x2c4   :  { %2466 = vmatpush1.bf16.msra.mxu0 %v766_v48  ;;  %2794 = vmatpush1.bf16.msra.mxu1 %v768_v7  ;;  %v839_v48 = vunpack.c.l.s8.bf16 %v223_v1  ;;  %v841_v7 = vunpack.c.l.s8.bf16 %v225_v2 }
 0x2c5   :  { %2467 = vmatprep.subr.bf16.mxu0 %v775_v8  ;;  %2795 = vmatprep.subr.bf16.mxu1 %v777_v9  ;;  %v222_v8 = vld [vmem:[#allocation5 + $0x360] sm:$0xff]  ;;  %v224_v9 = vld [vmem:[#allocation5 + $0x370] sm:$0xff] }
 0x2c6   :  { %v838_v11 = vunpack.c.l.s8.bf16 %v222_v8  ;;  %v840_v12 = vunpack.c.l.s8.bf16 %v224_v9  ;;  %v846_v17 = vunpack.c.h.s8.bf16 %v222_v8  ;;  %v848_v18 = vunpack.c.h.s8.bf16 %v224_v9 }
 0x2c8   :  { %2468 = vmatpush1.bf16.msra.mxu0 %v774_v13  ;;  %2796 = vmatpush1.bf16.msra.mxu1 %v776_v15  ;;  %v847_v13 = vunpack.c.h.s8.bf16 %v223_v1  ;;  %v849_v15 = vunpack.c.h.s8.bf16 %v225_v2 }
 0x2c9   :  { %2469 = vmatprep.subr.bf16.mxu0 %v783_v53  ;;  %2797 = vmatprep.subr.bf16.mxu1 %v785_v16  ;;  %v231_v53 = vld [vmem:[#allocation5 + $0x3a8] sm:$0xff]  ;;  %v233_v16 = vld [vmem:[#allocation5 + $0x3b8] sm:$0xff] }
 0x2cc   :  { %2470 = vmatpush1.bf16.msra.mxu0 %v782_v19  ;;  %2798 = vmatpush1.bf16.msra.mxu1 %v784_v20  ;;  %v855_v19 = vunpack.c.l.s8.bf16 %v231_v53  ;;  %v857_v20 = vunpack.c.l.s8.bf16 %v233_v16 }
 0x2cd   :  { %2471 = vmatprep.subr.bf16.mxu0 %v791_v23  ;;  %2799 = vmatprep.subr.bf16.mxu1 %v793_v22  ;;  %v230_v23 = vld [vmem:[#allocation5 + $0x3a0] sm:$0xff]  ;;  %v232_v22 = vld [vmem:[#allocation5 + $0x3b0] sm:$0xff] }
 0x2ce   :  { %v854_v24 = vunpack.c.l.s8.bf16 %v230_v23  ;;  %v856_v60 = vunpack.c.l.s8.bf16 %v232_v22  ;;  %v862_v28 = vunpack.c.h.s8.bf16 %v230_v23  ;;  %v864_v29 = vunpack.c.h.s8.bf16 %v232_v22 }
 0x2d0   :  { %2472 = vmatpush1.bf16.msra.mxu0 %v790_v25  ;;  %2800 = vmatpush1.bf16.msra.mxu1 %v792_v51  ;;  %v863_v25 = vunpack.c.h.s8.bf16 %v231_v53  ;;  %v865_v51 = vunpack.c.h.s8.bf16 %v233_v16 }
 0x2d1   :  { %2473 = vmatprep.subr.bf16.mxu0 %v799_v36  ;;  %2801 = vmatprep.subr.bf16.mxu1 %v801_v27  ;;  %v239_v36 = vld [vmem:[#allocation5 + $0x3e8] sm:$0xff]  ;;  %v241_v27 = vld [vmem:[#allocation5 + $0x3f8] sm:$0xff] }
 0x2d4   :  { %2474 = vmatpush1.bf16.msra.mxu0 %v798_v30  ;;  %2802 = vmatpush1.bf16.msra.mxu1 %v800_v32  ;;  %v871_v30 = vunpack.c.l.s8.bf16 %v239_v36  ;;  %v873_v32 = vunpack.c.l.s8.bf16 %v241_v27 }
 0x2d5   :  { %2475 = vmatprep.subr.bf16.mxu0 %v807_v33  ;;  %2803 = vmatprep.subr.bf16.mxu1 %v809_v34  ;;  %v238_v33 = vld [vmem:[#allocation5 + $0x3e0] sm:$0xff]  ;;  %v240_v34 = vld [vmem:[#allocation5 + $0x3f0] sm:$0xff] }
 0x2d6   :  { %v870_v37 = vunpack.c.l.s8.bf16 %v238_v33  ;;  %v872_v38 = vunpack.c.l.s8.bf16 %v240_v34  ;;  %v878_v45 = vunpack.c.h.s8.bf16 %v238_v33  ;;  %v880_v46 = vunpack.c.h.s8.bf16 %v240_v34 }
 0x2d8   :  { %2476 = vmatpush1.bf16.msra.mxu0 %v806_v39  ;;  %2804 = vmatpush1.bf16.msra.mxu1 %v808_v42  ;;  %v879_v39 = vunpack.c.h.s8.bf16 %v239_v36  ;;  %v881_v42 = vunpack.c.h.s8.bf16 %v241_v27 }
 0x2d9   :  { %2477 = vmatprep.subr.bf16.mxu0 %v815_v43  ;;  %2805 = vmatprep.subr.bf16.mxu1 %v817_v44  ;;  %v247_v43 = vld [vmem:[#allocation5 + $0x428] sm:$0xff]  ;;  %v249_v44 = vld [vmem:[#allocation5 + $0x438] sm:$0xff] }
 0x2dc   :  { %2478 = vmatpush1.bf16.msra.mxu0 %v814_v47  ;;  %2806 = vmatpush1.bf16.msra.mxu1 %v816_v49  ;;  %v887_v47 = vunpack.c.l.s8.bf16 %v247_v43  ;;  %v889_v49 = vunpack.c.l.s8.bf16 %v249_v44 }
 0x2dd   :  { %2479 = vmatprep.subr.bf16.mxu0 %v823_v52  ;;  %2807 = vmatprep.subr.bf16.mxu1 %v825_v50  ;;  %v246_v52 = vld [vmem:[#allocation5 + $0x420] sm:$0xff]  ;;  %v248_v50 = vld [vmem:[#allocation5 + $0x430] sm:$0xff] }
 0x2de   :  { %v886_v54 = vunpack.c.l.s8.bf16 %v246_v52  ;;  %v888_v55 = vunpack.c.l.s8.bf16 %v248_v50  ;;  %v894_v1 = vunpack.c.h.s8.bf16 %v246_v52  ;;  %v896_v2 = vunpack.c.h.s8.bf16 %v248_v50 }
 0x2e0   :  { %2480 = vmatpush1.bf16.msra.mxu0 %v822_v56  ;;  %2808 = vmatpush1.bf16.msra.mxu1 %v824_v57  ;;  %v895_v56 = vunpack.c.h.s8.bf16 %v247_v43  ;;  %v897_v57 = vunpack.c.h.s8.bf16 %v249_v44 }
 0x2e1   :  { %2481 = vmatprep.subr.bf16.mxu0 %v831_v63  ;;  %2809 = vmatprep.subr.bf16.mxu1 %v833_v0  ;;  %v255_v63 = vld [vmem:[#allocation5 + $0x468] sm:$0xff]  ;;  %v257_v0 = vld [vmem:[#allocation5 + $0x478] sm:$0xff] }
 0x2e4   :  { %2482 = vmatpush1.bf16.msra.mxu0 %v830_v59  ;;  %2810 = vmatpush1.bf16.msra.mxu1 %v832_v35  ;;  %v903_v59 = vunpack.c.l.s8.bf16 %v255_v63  ;;  %v905_v35 = vunpack.c.l.s8.bf16 %v257_v0 }
 0x2e5   :  { %2483 = vmatprep.subr.bf16.mxu0 %v839_v48  ;;  %2811 = vmatprep.subr.bf16.mxu1 %v841_v7  ;;  %v254_v48 = vld [vmem:[#allocation5 + $0x460] sm:$0xff]  ;;  %v256_v7 = vld [vmem:[#allocation5 + $0x470] sm:$0xff] }
 0x2e6   :  { %v902_v8 = vunpack.c.l.s8.bf16 %v254_v48  ;;  %v904_v9 = vunpack.c.l.s8.bf16 %v256_v7  ;;  %v912_v53 = vunpack.c.h.s8.bf16 %v256_v7 }
 0x2e8   :  { %2484 = vmatpush1.bf16.msra.mxu0 %v838_v11  ;;  %2812 = vmatpush1.bf16.msra.mxu1 %v840_v12  ;;  %v913_v11 = vunpack.c.h.s8.bf16 %v257_v0  ;;  %v263_v12 = vld [vmem:[#allocation5 + $0x4a8] sm:$0xff] }
 0x2e9   :  { %2485 = vmatprep.subr.bf16.mxu0 %v847_v13  ;;  %2813 = vmatprep.subr.bf16.mxu1 %v849_v15  ;;  %v265_v13 = vld [vmem:[#allocation5 + $0x4b8] sm:$0xff]  ;;  %v910_v15 = vunpack.c.h.s8.bf16 %v254_v48  ;;  %v919_v16 = vunpack.c.l.s8.bf16 %v263_v12  ;;  %v927_v23 = vunpack.c.h.s8.bf16 %v263_v12 }
 0x2ea   :  { %v929_v22 = vunpack.c.h.s8.bf16 %v265_v13 }
 0x2ec   :  { %2486 = vmatpush1.bf16.msra.mxu0 %v846_v17  ;;  %2814 = vmatpush1.bf16.msra.mxu1 %v848_v18  ;;  %v921_v17 = vunpack.c.l.s8.bf16 %v265_v13  ;;  %v262_v18 = vld [vmem:[#allocation5 + $0x4a0] sm:$0xff] }
 0x2ed   :  { %2487 = vmatprep.subr.bf16.mxu0 %v855_v19  ;;  %2815 = vmatprep.subr.bf16.mxu1 %v857_v20  ;;  %v918_v19 = vunpack.c.l.s8.bf16 %v262_v18 }
 0x2f0   :  { %2488 = vmatpush1.bf16.msra.mxu0 %v854_v24  ;;  %2816 = vmatpush1.bf16.msra.mxu1 %v856_v60  ;;  %v271_v24 = vld [vmem:[#allocation5 + $0x4e8] sm:$0xff]  ;;  %v273_v60 = vld [vmem:[#allocation5 + $0x4f8] sm:$0xff] }
 0x2f1   :  { %2489 = vmatprep.subr.bf16.mxu0 %v863_v25  ;;  %2817 = vmatprep.subr.bf16.mxu1 %v865_v51  ;;  %v926_v25 = vunpack.c.h.s8.bf16 %v262_v18  ;;  %v935_v36 = vunpack.c.l.s8.bf16 %v271_v24  ;;  %v937_v27 = vunpack.c.l.s8.bf16 %v273_v60  ;;  %v943_v33 = vunpack.c.h.s8.bf16 %v271_v24 }
 0x2f2   :  { %v945_v34 = vunpack.c.h.s8.bf16 %v273_v60 }
 0x2f4   :  { %2490 = vmatpush1.bf16.msra.mxu0 %v862_v28  ;;  %2818 = vmatpush1.bf16.msra.mxu1 %v864_v29  ;;  %v270_v28 = vld [vmem:[#allocation5 + $0x4e0] sm:$0xff]  ;;  %v272_v29 = vld [vmem:[#allocation5 + $0x4f0] sm:$0xff] }
 0x2f5   :  { %2491 = vmatprep.subr.bf16.mxu0 %v871_v30  ;;  %2819 = vmatprep.subr.bf16.mxu1 %v873_v32  ;;  %v934_v30 = vunpack.c.l.s8.bf16 %v270_v28  ;;  %v936_v32 = vunpack.c.l.s8.bf16 %v272_v29 }
 0x2f8   :  { %2492 = vmatpush1.bf16.msra.mxu0 %v870_v37  ;;  %2820 = vmatpush1.bf16.msra.mxu1 %v872_v38  ;;  %v279_v37 = vld [vmem:[#allocation5 + $0x528] sm:$0xff]  ;;  %v281_v38 = vld [vmem:[#allocation5 + $0x538] sm:$0xff] }
 0x2f9   :  { %2493 = vmatprep.subr.bf16.mxu0 %v879_v39  ;;  %2821 = vmatprep.subr.bf16.mxu1 %v881_v42  ;;  %v942_v39 = vunpack.c.h.s8.bf16 %v270_v28  ;;  %v944_v42 = vunpack.c.h.s8.bf16 %v272_v29  ;;  %v951_v43 = vunpack.c.l.s8.bf16 %v279_v37  ;;  %v953_v44 = vunpack.c.l.s8.bf16 %v281_v38 }
 0x2fa   :  { %v959_v52 = vunpack.c.h.s8.bf16 %v279_v37  ;;  %v961_v50 = vunpack.c.h.s8.bf16 %v281_v38 }
 0x2fc   :  { %2494 = vmatpush1.bf16.msra.mxu0 %v878_v45  ;;  %2822 = vmatpush1.bf16.msra.mxu1 %v880_v46  ;;  %v278_v45 = vld [vmem:[#allocation5 + $0x520] sm:$0xff]  ;;  %v280_v46 = vld [vmem:[#allocation5 + $0x530] sm:$0xff] }
 0x2fd   :  { %2504 = vmatprep.subr.bf16.mxu0 %v887_v47  ;;  %2832 = vmatprep.subr.bf16.mxu1 %v889_v49  ;;  %v950_v47 = vunpack.c.l.s8.bf16 %v278_v45  ;;  %v952_v49 = vunpack.c.l.s8.bf16 %v280_v46 }
 0x2ff   :  { %2496 = vmatmul.mubr.bf16.vlgmr.msra.gmra.mrb[4].mxu0 %v5333_v31  ;;  %2824 = vmatmul.mubr.bf16.vlgmr.msra.gmra.mrb[4].mxu1 %v5333_v31  ;;  %v911_v31 = vunpack.c.h.s8.bf16 %v255_v63 }
 0x300   :  { %2505 = vmatpush1.bf16.msra.mxu0 %v886_v54  ;;  %2833 = vmatpush1.bf16.msra.mxu1 %v888_v55  ;;  %v287_v54 = vld [vmem:[#allocation5 + $0x568] sm:$0xff]  ;;  %v289_v55 = vld [vmem:[#allocation5 + $0x578] sm:$0xff] }
 0x301   :  { %2506 = vmatprep.subr.bf16.mxu0 %v895_v56  ;;  %2834 = vmatprep.subr.bf16.mxu1 %v897_v57  ;;  %v958_v56 = vunpack.c.h.s8.bf16 %v278_v45  ;;  %v960_v57 = vunpack.c.h.s8.bf16 %v280_v46  ;;  %v967_v63 = vunpack.c.l.s8.bf16 %v287_v54  ;;  %v969_v0 = vunpack.c.l.s8.bf16 %v289_v55 }
 0x302   :  { %2536 = vmatprep.mubr.bf16.mxu0 %v5336_v40  ;;  %2864 = vmatprep.mubr.bf16.mxu1 %v5336_v40  ;;  %v264_v40 = vld [vmem:[#allocation5 + $0x4b0] sm:$0xff]  ;;  %v975_v48 = vunpack.c.h.s8.bf16 %v287_v54  ;;  %v977_v7 = vunpack.c.h.s8.bf16 %v289_v55 }
 0x303   :  { %v920_v20 = vunpack.c.l.s8.bf16 %v264_v40  ;;  %v928_v51 = vunpack.c.h.s8.bf16 %v264_v40 }
 0x304   :  { %2507 = vmatpush1.bf16.msra.mxu0 %v894_v1  ;;  %2835 = vmatpush1.bf16.msra.mxu1 %v896_v2  ;;  %v286_v1 = vld [vmem:[#allocation5 + $0x560] sm:$0xff]  ;;  %v288_v2 = vld [vmem:[#allocation5 + $0x570] sm:$0xff] }
 0x305   :  { %2508 = vmatprep.subr.bf16.mxu0 %v903_v59  ;;  %2836 = vmatprep.subr.bf16.mxu1 %v905_v35  ;;  %v966_v59 = vunpack.c.l.s8.bf16 %v286_v1  ;;  %v968_v35 = vunpack.c.l.s8.bf16 %v288_v2 }
 0x308   :  { %2509 = vmatpush1.bf16.msra.mxu0 %v902_v8  ;;  %2837 = vmatpush1.bf16.msra.mxu1 %v904_v9  ;;  %v295_v8 = vld [vmem:[#allocation5 + $0x5a8] sm:$0xff]  ;;  %v297_v9 = vld [vmem:[#allocation5 + $0x5b8] sm:$0xff] }
 0x309   :  { %2510 = vmatprep.subr.bf16.mxu0 %v911_v31  ;;  %2838 = vmatprep.subr.bf16.mxu1 %v913_v11  ;;  %v974_v31 = vunpack.c.h.s8.bf16 %v286_v1  ;;  %v976_v11 = vunpack.c.h.s8.bf16 %v288_v2  ;;  %v983_v12 = vunpack.c.l.s8.bf16 %v295_v8  ;;  %v985_v13 = vunpack.c.l.s8.bf16 %v297_v9  ;;  %v327_v2 = vld [vmem:[#allocation5 + $0x6a8] sm:$0xff] }
 0x30a   :  { %v991_v18 = vunpack.c.h.s8.bf16 %v295_v8  ;;  %v993_v40 = vunpack.c.h.s8.bf16 %v297_v9  ;;  %v326_v9 = vld [vmem:[#allocation5 + $0x6a0] sm:$0xff] }
 0x30c   :  { %2511 = vmatpush1.bf16.msra.mxu0 %v910_v15  ;;  %2839 = vmatpush1.bf16.msra.mxu1 %v912_v53  ;;  %v294_v15 = vld [vmem:[#allocation5 + $0x5a0] sm:$0xff]  ;;  %v296_v53 = vld [vmem:[#allocation5 + $0x5b0] sm:$0xff] }
 0x30d   :  { %2512 = vmatprep.subr.bf16.mxu0 %v919_v16  ;;  %2840 = vmatprep.subr.bf16.mxu1 %v921_v17  ;;  %v982_v16 = vunpack.c.l.s8.bf16 %v294_v15  ;;  %v984_v17 = vunpack.c.l.s8.bf16 %v296_v53 }
 0x310   :  { %2513 = vmatpush1.bf16.msra.mxu0 %v918_v19  ;;  %2841 = vmatpush1.bf16.msra.mxu1 %v920_v20  ;;  %v303_v19 = vld [vmem:[#allocation5 + $0x5e8] sm:$0xff]  ;;  %v305_v20 = vld [vmem:[#allocation5 + $0x5f8] sm:$0xff] }
 0x311   :  { %2514 = vmatprep.subr.bf16.mxu0 %v927_v23  ;;  %2842 = vmatprep.subr.bf16.mxu1 %v929_v22  ;;  %v990_v23 = vunpack.c.h.s8.bf16 %v294_v15  ;;  %v992_v22 = vunpack.c.h.s8.bf16 %v296_v53  ;;  %v999_v24 = vunpack.c.l.s8.bf16 %v303_v19  ;;  %v1001_v60 = vunpack.c.l.s8.bf16 %v305_v20  ;;  %v335_v15 = vld [vmem:[#allocation5 + $0x6e8] sm:$0xff]  ;;  %v337_v53 = vld [vmem:[#allocation5 + $0x6f8] sm:$0xff] }
 0x312   :  { %v1007_v28 = vunpack.c.h.s8.bf16 %v303_v19  ;;  %v1009_v29 = vunpack.c.h.s8.bf16 %v305_v20  ;;  %v334_v19 = vld [vmem:[#allocation5 + $0x6e0] sm:$0xff]  ;;  %v336_v20 = vld [vmem:[#allocation5 + $0x6f0] sm:$0xff] }
 0x314   :  { %2515 = vmatpush1.bf16.msra.mxu0 %v926_v25  ;;  %2843 = vmatpush1.bf16.msra.mxu1 %v928_v51  ;;  %v302_v25 = vld [vmem:[#allocation5 + $0x5e0] sm:$0xff]  ;;  %v304_v51 = vld [vmem:[#allocation5 + $0x5f0] sm:$0xff] }
 0x315   :  { %2516 = vmatprep.subr.bf16.mxu0 %v935_v36  ;;  %2844 = vmatprep.subr.bf16.mxu1 %v937_v27  ;;  %v998_v36 = vunpack.c.l.s8.bf16 %v302_v25  ;;  %v1000_v27 = vunpack.c.l.s8.bf16 %v304_v51 }
 0x318   :  { %2517 = vmatpush1.bf16.msra.mxu0 %v934_v30  ;;  %2845 = vmatpush1.bf16.msra.mxu1 %v936_v32  ;;  %v311_v30 = vld [vmem:[#allocation5 + $0x628] sm:$0xff]  ;;  %v313_v32 = vld [vmem:[#allocation5 + $0x638] sm:$0xff] }
 0x319   :  { %2518 = vmatprep.subr.bf16.mxu0 %v943_v33  ;;  %2846 = vmatprep.subr.bf16.mxu1 %v945_v34  ;;  %v1006_v33 = vunpack.c.h.s8.bf16 %v302_v25  ;;  %v1008_v34 = vunpack.c.h.s8.bf16 %v304_v51  ;;  %v1015_v37 = vunpack.c.l.s8.bf16 %v311_v30  ;;  %v1017_v38 = vunpack.c.l.s8.bf16 %v313_v32 }
 0x31a   :  { %v1023_v45 = vunpack.c.h.s8.bf16 %v311_v30  ;;  %v1025_v46 = vunpack.c.h.s8.bf16 %v313_v32  ;;  %v1071_v30 = vunpack.c.h.s8.bf16 %v335_v15  ;;  %v1073_v32 = vunpack.c.h.s8.bf16 %v337_v53 }
 0x31c   :  { %2519 = vmatpush1.bf16.msra.mxu0 %v942_v39  ;;  %2847 = vmatpush1.bf16.msra.mxu1 %v944_v42  ;;  %v310_v39 = vld [vmem:[#allocation5 + $0x620] sm:$0xff]  ;;  %v312_v42 = vld [vmem:[#allocation5 + $0x630] sm:$0xff] }
 0x31d   :  { %2520 = vmatprep.subr.bf16.mxu0 %v951_v43  ;;  %2848 = vmatprep.subr.bf16.mxu1 %v953_v44  ;;  %v1014_v43 = vunpack.c.l.s8.bf16 %v310_v39  ;;  %v1016_v44 = vunpack.c.l.s8.bf16 %v312_v42 }
 0x320   :  { %2521 = vmatpush1.bf16.msra.mxu0 %v950_v47  ;;  %2849 = vmatpush1.bf16.msra.mxu1 %v952_v49  ;;  %v319_v47 = vld [vmem:[#allocation5 + $0x668] sm:$0xff]  ;;  %v321_v49 = vld [vmem:[#allocation5 + $0x678] sm:$0xff] }
 0x321   :  { %2522 = vmatprep.subr.bf16.mxu0 %v959_v52  ;;  %2850 = vmatprep.subr.bf16.mxu1 %v961_v50  ;;  %v1022_v52 = vunpack.c.h.s8.bf16 %v310_v39  ;;  %v1024_v50 = vunpack.c.h.s8.bf16 %v312_v42  ;;  %v1031_v54 = vunpack.c.l.s8.bf16 %v319_v47  ;;  %v1033_v55 = vunpack.c.l.s8.bf16 %v321_v49 }
 0x322   :  { %v1041_v1 = vunpack.c.h.s8.bf16 %v321_v49 }
 0x324   :  { %2523 = vmatpush1.bf16.msra.mxu0 %v958_v56  ;;  %2851 = vmatpush1.bf16.msra.mxu1 %v960_v57  ;;  %v318_v56 = vld [vmem:[#allocation5 + $0x660] sm:$0xff]  ;;  %v320_v57 = vld [vmem:[#allocation5 + $0x670] sm:$0xff] }
 0x325   :  { %2524 = vmatprep.subr.bf16.mxu0 %v967_v63  ;;  %2852 = vmatprep.subr.bf16.mxu1 %v969_v0  ;;  %v1030_v63 = vunpack.c.l.s8.bf16 %v318_v56  ;;  %v1032_v0 = vunpack.c.l.s8.bf16 %v320_v57 }
 0x328   :  { %2525 = vmatpush1.bf16.msra.mxu0 %v966_v59  ;;  %2853 = vmatpush1.bf16.msra.mxu1 %v968_v35  ;;  %v329_v59 = vld [vmem:[#allocation5 + $0x6b8] sm:$0xff]  ;;  %v1038_v35 = vunpack.c.h.s8.bf16 %v318_v56 }
 0x329   :  { %2526 = vmatprep.subr.bf16.mxu0 %v975_v48  ;;  %2854 = vmatprep.subr.bf16.mxu1 %v977_v7  ;;  %v1040_v48 = vunpack.c.h.s8.bf16 %v320_v57  ;;  %v1047_v7 = vunpack.c.l.s8.bf16 %v327_v2  ;;  %v1049_v8 = vunpack.c.l.s8.bf16 %v329_v59 }
 0x32c   :  { %2527 = vmatpush1.bf16.msra.mxu0 %v974_v31  ;;  %2855 = vmatpush1.bf16.msra.mxu1 %v976_v11  ;;  %v1046_v31 = vunpack.c.l.s8.bf16 %v326_v9 }
 0x32d   :  { %2528 = vmatprep.subr.bf16.mxu0 %v983_v12  ;;  %2856 = vmatprep.subr.bf16.mxu1 %v985_v13  ;;  %v1055_v12 = vunpack.c.h.s8.bf16 %v327_v2  ;;  %v1057_v13 = vunpack.c.h.s8.bf16 %v329_v59 }
 0x330   :  { %2529 = vmatpush1.bf16.msra.mxu0 %v982_v16  ;;  %2857 = vmatpush1.bf16.msra.mxu1 %v984_v17  ;;  %v1054_v16 = vunpack.c.h.s8.bf16 %v326_v9 }
 0x331   :  { %2530 = vmatprep.subr.bf16.mxu0 %v991_v18  ;;  %2858 = vmatprep.subr.bf16.mxu1 %v993_v40  ;;  %v1063_v18 = vunpack.c.l.s8.bf16 %v335_v15  ;;  %v1065_v40 = vunpack.c.l.s8.bf16 %v337_v53 }
 0x334   :  { %2531 = vmatpush1.bf16.msra.mxu0 %v990_v23  ;;  %2859 = vmatpush1.bf16.msra.mxu1 %v992_v22 }
 0x335   :  { %2532 = vmatprep.subr.bf16.mxu0 %v999_v24  ;;  %2860 = vmatprep.subr.bf16.mxu1 %v1001_v60 }
 0x338   :  { %2533 = vmatpush1.bf16.msra.mxu0 %v998_v36  ;;  %2861 = vmatpush1.bf16.msra.mxu1 %v1000_v27  ;;  %v1062_v36 = vunpack.c.l.s8.bf16 %v334_v19  ;;  %v1064_v27 = vunpack.c.l.s8.bf16 %v336_v20 }
 0x339   :  { %2534 = vmatprep.subr.bf16.mxu0 %v1007_v28  ;;  %2862 = vmatprep.subr.bf16.mxu1 %v1009_v29 }
 0x33c   :  { %2535 = vmatpush1.bf16.msra.mxu0 %v1006_v33  ;;  %2863 = vmatpush1.bf16.msra.mxu1 %v1008_v34  ;;  %v343_v33 = vld [vmem:[#allocation5 + $0x728] sm:$0xff]  ;;  %v345_v34 = vld [vmem:[#allocation5 + $0x738] sm:$0xff] }
 0x33d   :  { %2545 = vmatprep.subr.bf16.mxu0 %v1015_v37  ;;  %2873 = vmatprep.subr.bf16.mxu1 %v1017_v38  ;;  %v1070_v37 = vunpack.c.h.s8.bf16 %v334_v19  ;;  %v1072_v38 = vunpack.c.h.s8.bf16 %v336_v20  ;;  %v1079_v39 = vunpack.c.l.s8.bf16 %v343_v33  ;;  %v1081_v42 = vunpack.c.l.s8.bf16 %v345_v34 }
 0x33e   :  { %v1089_v49 = vunpack.c.h.s8.bf16 %v345_v34 }
 0x33f   :  { %2537 = vmatmul.mubr.bf16.vlgmr.msra.gmra.mrb[4].mxu0 %v5344_v14  ;;  %2865 = vmatmul.mubr.bf16.vlgmr.msra.gmra.mrb[4].mxu1 %v5344_v14  ;;  %v1039_v14 = vunpack.c.h.s8.bf16 %v319_v47  ;;  %v1087_v47 = vunpack.c.h.s8.bf16 %v343_v33 }
 0x340   :  { %2546 = vmatpush1.bf16.msra.mxu0 %v1014_v43  ;;  %2874 = vmatpush1.bf16.msra.mxu1 %v1016_v44  ;;  %v342_v43 = vld [vmem:[#allocation5 + $0x720] sm:$0xff]  ;;  %v344_v44 = vld [vmem:[#allocation5 + $0x730] sm:$0xff] }
 0x341   :  { %2547 = vmatprep.subr.bf16.mxu0 %v1023_v45  ;;  %2875 = vmatprep.subr.bf16.mxu1 %v1025_v46  ;;  %v1078_v45 = vunpack.c.l.s8.bf16 %v342_v43  ;;  %v1080_v46 = vunpack.c.l.s8.bf16 %v344_v44 }
 0x342   :  { %2577 = vmatprep.mubr.bf16.mxu0 %v5348_v21  ;;  %2905 = vmatprep.mubr.bf16.mxu1 %v5348_v21  ;;  %v328_v21 = vld [vmem:[#allocation5 + $0x6b0] sm:$0xff] }
 0x343   :  { %v1048_v11 = vunpack.c.l.s8.bf16 %v328_v21  ;;  %v1056_v17 = vunpack.c.h.s8.bf16 %v328_v21 }
 0x344   :  { %2548 = vmatpush1.bf16.msra.mxu0 %v1022_v52  ;;  %2876 = vmatpush1.bf16.msra.mxu1 %v1024_v50  ;;  %v351_v52 = vld [vmem:[#allocation5 + $0x768] sm:$0xff]  ;;  %v353_v50 = vld [vmem:[#allocation5 + $0x778] sm:$0xff] }
 0x345   :  { %2549 = vmatprep.subr.bf16.mxu0 %v1031_v54  ;;  %2877 = vmatprep.subr.bf16.mxu1 %v1033_v55  ;;  %v1086_v54 = vunpack.c.h.s8.bf16 %v342_v43  ;;  %v1088_v55 = vunpack.c.h.s8.bf16 %v344_v44  ;;  %v1095_v56 = vunpack.c.l.s8.bf16 %v351_v52  ;;  %v1097_v57 = vunpack.c.l.s8.bf16 %v353_v50 }
 0x346   :  { %v1103_v2 = vunpack.c.h.s8.bf16 %v351_v52  ;;  %v1105_v59 = vunpack.c.h.s8.bf16 %v353_v50 }
 0x348   :  { %2550 = vmatpush1.bf16.msra.mxu0 %v1030_v63  ;;  %2878 = vmatpush1.bf16.msra.mxu1 %v1032_v0  ;;  %v350_v63 = vld [vmem:[#allocation5 + $0x760] sm:$0xff]  ;;  %v352_v0 = vld [vmem:[#allocation5 + $0x770] sm:$0xff] }
 0x349   :  { %2551 = vmatprep.subr.bf16.mxu0 %v1039_v14  ;;  %2879 = vmatprep.subr.bf16.mxu1 %v1041_v1  ;;  %v1094_v14 = vunpack.c.l.s8.bf16 %v350_v63  ;;  %v1096_v1 = vunpack.c.l.s8.bf16 %v352_v0 }
 0x34c   :  { %2552 = vmatpush1.bf16.msra.mxu0 %v1038_v35  ;;  %2880 = vmatpush1.bf16.msra.mxu1 %v1040_v48  ;;  %v359_v35 = vld [vmem:[#allocation5 + $0x7a8] sm:$0xff]  ;;  %v361_v48 = vld [vmem:[#allocation5 + $0x7b8] sm:$0xff] }
 0x34d   :  { %2553 = vmatprep.subr.bf16.mxu0 %v1047_v7  ;;  %2881 = vmatprep.subr.bf16.mxu1 %v1049_v8  ;;  %v1102_v7 = vunpack.c.h.s8.bf16 %v350_v63  ;;  %v1104_v8 = vunpack.c.h.s8.bf16 %v352_v0  ;;  %v1111_v9 = vunpack.c.l.s8.bf16 %v359_v35  ;;  %v1113_v21 = vunpack.c.l.s8.bf16 %v361_v48 }
 0x34e   :  { %v1119_v15 = vunpack.c.h.s8.bf16 %v359_v35  ;;  %v1121_v53 = vunpack.c.h.s8.bf16 %v361_v48 }
 0x350   :  { %2554 = vmatpush1.bf16.msra.mxu0 %v1046_v31  ;;  %2882 = vmatpush1.bf16.msra.mxu1 %v1048_v11  ;;  %v358_v31 = vld [vmem:[#allocation5 + $0x7a0] sm:$0xff]  ;;  %v360_v11 = vld [vmem:[#allocation5 + $0x7b0] sm:$0xff] }
 0x351   :  { %2555 = vmatprep.subr.bf16.mxu0 %v1055_v12  ;;  %2883 = vmatprep.subr.bf16.mxu1 %v1057_v13  ;;  %v1110_v12 = vunpack.c.l.s8.bf16 %v358_v31  ;;  %v1112_v13 = vunpack.c.l.s8.bf16 %v360_v11 }
 0x352   :  { %v5435_v23 = vpop.f32.mrb[0].mxu0  ;;  %v5437_v22 = vpop.f32.mrb[0].mxu1 }
 0x353   :  { %v5439_v24 = vpop.f32.mrb[1].mxu0  ;;  %v5441_v60 = vpop.f32.mrb[1].mxu1 }
 0x354   :  { %v2091_v25 = vpop.f32.mrb[2].mxu0  ;;  %v2419_v51 = vpop.f32.mrb[2].mxu1  ;;  %2556 = vmatpush1.bf16.msra.mxu0 %v1054_v16  ;;  %2884 = vmatpush1.bf16.msra.mxu1 %v1056_v17  ;;  %v367_v16 = vld [vmem:[#allocation5 + $0x7e8] sm:$0xff]  ;;  %v369_v17 = vld [vmem:[#allocation5 + $0x7f8] sm:$0xff] }
 0x355   :  { %v2092_v28 = vpop.f32.mrb[3].mxu0  ;;  %v2420_v29 = vpop.f32.mrb[3].mxu1  ;;  %2557 = vmatprep.subr.bf16.mxu0 %v1063_v18  ;;  %2885 = vmatprep.subr.bf16.mxu1 %v1065_v40  ;;  %v1118_v18 = vunpack.c.h.s8.bf16 %v358_v31  ;;  %v1120_v40 = vunpack.c.h.s8.bf16 %v360_v11  ;;  %v1127_v19 = vunpack.c.l.s8.bf16 %v367_v16  ;;  %v1129_v20 = vunpack.c.l.s8.bf16 %v369_v17  ;;  %v366_v25 = vld [vmem:[#allocation5 + $0x7e0] sm:$0xff]  ;;  %v368_v51 = vld [vmem:[#allocation5 + $0x7f0] sm:$0xff] }
 0x356   :  { %v1135_v28 = vunpack.c.h.s8.bf16 %v367_v16  ;;  %v1137_v29 = vunpack.c.h.s8.bf16 %v369_v17  ;;  %v1134_v33 = vunpack.c.h.s8.bf16 %v366_v25  ;;  %v1136_v34 = vunpack.c.h.s8.bf16 %v368_v51 }
 0x358   :  { %2558 = vmatpush1.bf16.msra.mxu0 %v1062_v36  ;;  %2886 = vmatpush1.bf16.msra.mxu1 %v1064_v27  ;;  %v1126_v36 = vunpack.c.l.s8.bf16 %v366_v25  ;;  %v1128_v27 = vunpack.c.l.s8.bf16 %v368_v51 }
 0x359   :  { %2559 = vmatprep.subr.bf16.mxu0 %v1071_v30  ;;  %2887 = vmatprep.subr.bf16.mxu1 %v1073_v32  ;;  %v375_v30 = vld [vmem:[#allocation5 + $0x828] sm:$0xff]  ;;  %v377_v32 = vld [vmem:[#allocation5 + $0x838] sm:$0xff] }
 0x35c   :  { %2560 = vmatpush1.bf16.msra.mxu0 %v1070_v37  ;;  %2888 = vmatpush1.bf16.msra.mxu1 %v1072_v38  ;;  %v1143_v37 = vunpack.c.l.s8.bf16 %v375_v30  ;;  %v1145_v38 = vunpack.c.l.s8.bf16 %v377_v32 }
 0x35d   :  { %2561 = vmatprep.subr.bf16.mxu0 %v1079_v39  ;;  %2889 = vmatprep.subr.bf16.mxu1 %v1081_v42  ;;  %v374_v39 = vld [vmem:[#allocation5 + $0x820] sm:$0xff]  ;;  %v376_v42 = vld [vmem:[#allocation5 + $0x830] sm:$0xff] }
 0x35e   :  { %v1142_v43 = vunpack.c.l.s8.bf16 %v374_v39  ;;  %v1144_v44 = vunpack.c.l.s8.bf16 %v376_v42  ;;  %v1150_v52 = vunpack.c.h.s8.bf16 %v374_v39  ;;  %v1152_v50 = vunpack.c.h.s8.bf16 %v376_v42 }
 0x360   :  { %2562 = vmatpush1.bf16.msra.mxu0 %v1078_v45  ;;  %2890 = vmatpush1.bf16.msra.mxu1 %v1080_v46  ;;  %v1151_v45 = vunpack.c.h.s8.bf16 %v375_v30  ;;  %v1153_v46 = vunpack.c.h.s8.bf16 %v377_v32 }
 0x361   :  { %2563 = vmatprep.subr.bf16.mxu0 %v1087_v47  ;;  %2891 = vmatprep.subr.bf16.mxu1 %v1089_v49  ;;  %v383_v47 = vld [vmem:[#allocation5 + $0x868] sm:$0xff]  ;;  %v385_v49 = vld [vmem:[#allocation5 + $0x878] sm:$0xff] }
 0x364   :  { %2564 = vmatpush1.bf16.msra.mxu0 %v1086_v54  ;;  %2892 = vmatpush1.bf16.msra.mxu1 %v1088_v55  ;;  %v1159_v54 = vunpack.c.l.s8.bf16 %v383_v47  ;;  %v1161_v55 = vunpack.c.l.s8.bf16 %v385_v49 }
 0x365   :  { %2565 = vmatprep.subr.bf16.mxu0 %v1095_v56  ;;  %2893 = vmatprep.subr.bf16.mxu1 %v1097_v57  ;;  %v382_v56 = vld [vmem:[#allocation5 + $0x860] sm:$0xff]  ;;  %v384_v57 = vld [vmem:[#allocation5 + $0x870] sm:$0xff] }
 0x366   :  { %v1158_v63 = vunpack.c.l.s8.bf16 %v382_v56  ;;  %v1160_v0 = vunpack.c.l.s8.bf16 %v384_v57  ;;  %v1168_v35 = vunpack.c.h.s8.bf16 %v384_v57 }
 0x368   :  { %2566 = vmatpush1.bf16.msra.mxu0 %v1094_v14  ;;  %2894 = vmatpush1.bf16.msra.mxu1 %v1096_v1  ;;  %v1169_v14 = vunpack.c.h.s8.bf16 %v385_v49  ;;  %v391_v1 = vld [vmem:[#allocation5 + $0x8a8] sm:$0xff] }
 0x369   :  { %2567 = vmatprep.subr.bf16.mxu0 %v1103_v2  ;;  %2895 = vmatprep.subr.bf16.mxu1 %v1105_v59  ;;  %v393_v2 = vld [vmem:[#allocation5 + $0x8b8] sm:$0xff]  ;;  %v1166_v59 = vunpack.c.h.s8.bf16 %v382_v56  ;;  %v1175_v48 = vunpack.c.l.s8.bf16 %v391_v1  ;;  %v1183_v31 = vunpack.c.h.s8.bf16 %v391_v1 }
 0x36a   :  { %v1185_v11 = vunpack.c.h.s8.bf16 %v393_v2 }
 0x36c   :  { %2568 = vmatpush1.bf16.msra.mxu0 %v1102_v7  ;;  %2896 = vmatpush1.bf16.msra.mxu1 %v1104_v8  ;;  %v1177_v7 = vunpack.c.l.s8.bf16 %v393_v2  ;;  %v390_v8 = vld [vmem:[#allocation5 + $0x8a0] sm:$0xff] }
 0x36d   :  { %2569 = vmatprep.subr.bf16.mxu0 %v1111_v9  ;;  %2897 = vmatprep.subr.bf16.mxu1 %v1113_v21  ;;  %v1174_v9 = vunpack.c.l.s8.bf16 %v390_v8 }
 0x370   :  { %2570 = vmatpush1.bf16.msra.mxu0 %v1110_v12  ;;  %2898 = vmatpush1.bf16.msra.mxu1 %v1112_v13  ;;  %v399_v12 = vld [vmem:[#allocation5 + $0x8e8] sm:$0xff]  ;;  %v401_v13 = vld [vmem:[#allocation5 + $0x8f8] sm:$0xff] }
 0x371   :  { %2571 = vmatprep.subr.bf16.mxu0 %v1119_v15  ;;  %2899 = vmatprep.subr.bf16.mxu1 %v1121_v53  ;;  %v1182_v15 = vunpack.c.h.s8.bf16 %v390_v8  ;;  %v1191_v16 = vunpack.c.l.s8.bf16 %v399_v12  ;;  %v1193_v17 = vunpack.c.l.s8.bf16 %v401_v13  ;;  %v1199_v25 = vunpack.c.h.s8.bf16 %v399_v12 }
 0x372   :  { %v1201_v51 = vunpack.c.h.s8.bf16 %v401_v13 }
 0x374   :  { %2572 = vmatpush1.bf16.msra.mxu0 %v1118_v18  ;;  %2900 = vmatpush1.bf16.msra.mxu1 %v1120_v40  ;;  %v398_v18 = vld [vmem:[#allocation5 + $0x8e0] sm:$0xff]  ;;  %v400_v40 = vld [vmem:[#allocation5 + $0x8f0] sm:$0xff] }
 0x375   :  { %2573 = vmatprep.subr.bf16.mxu0 %v1127_v19  ;;  %2901 = vmatprep.subr.bf16.mxu1 %v1129_v20  ;;  %v1190_v19 = vunpack.c.l.s8.bf16 %v398_v18  ;;  %v1192_v20 = vunpack.c.l.s8.bf16 %v400_v40 }
 0x378   :  { %2574 = vmatpush1.bf16.msra.mxu0 %v1126_v36  ;;  %2902 = vmatpush1.bf16.msra.mxu1 %v1128_v27  ;;  %v407_v36 = vld [vmem:[#allocation5 + $0x928] sm:$0xff]  ;;  %v409_v27 = vld [vmem:[#allocation5 + $0x938] sm:$0xff] }
 0x379   :  { %2575 = vmatprep.subr.bf16.mxu0 %v1135_v28  ;;  %2903 = vmatprep.subr.bf16.mxu1 %v1137_v29  ;;  %v1198_v28 = vunpack.c.h.s8.bf16 %v398_v18  ;;  %v1200_v29 = vunpack.c.h.s8.bf16 %v400_v40  ;;  %v1207_v30 = vunpack.c.l.s8.bf16 %v407_v36  ;;  %v1209_v32 = vunpack.c.l.s8.bf16 %v409_v27 }
 0x37a   :  { %v1215_v39 = vunpack.c.h.s8.bf16 %v407_v36  ;;  %v1217_v42 = vunpack.c.h.s8.bf16 %v409_v27 }
 0x37c   :  { %2576 = vmatpush1.bf16.msra.mxu0 %v1134_v33  ;;  %2904 = vmatpush1.bf16.msra.mxu1 %v1136_v34  ;;  %v406_v33 = vld [vmem:[#allocation5 + $0x920] sm:$0xff]  ;;  %v408_v34 = vld [vmem:[#allocation5 + $0x930] sm:$0xff] }
 0x37d   :  { %2586 = vmatprep.subr.bf16.mxu0 %v1143_v37  ;;  %2914 = vmatprep.subr.bf16.mxu1 %v1145_v38  ;;  %v1206_v37 = vunpack.c.l.s8.bf16 %v406_v33  ;;  %v1208_v38 = vunpack.c.l.s8.bf16 %v408_v34 }
 0x37f   :  { %2578 = vmatmul.mubr.bf16.vlgmr.msra.gmra.mrb[4].mxu0 %v5364_v3  ;;  %2906 = vmatmul.mubr.bf16.vlgmr.msra.gmra.mrb[4].mxu1 %v5364_v3  ;;  %v1167_v3 = vunpack.c.h.s8.bf16 %v383_v47 }
 0x380   :  { %2587 = vmatpush1.bf16.msra.mxu0 %v1142_v43  ;;  %2915 = vmatpush1.bf16.msra.mxu1 %v1144_v44  ;;  %v415_v43 = vld [vmem:[#allocation5 + $0x968] sm:$0xff]  ;;  %v417_v44 = vld [vmem:[#allocation5 + $0x978] sm:$0xff] }
 0x381   :  { %2588 = vmatprep.subr.bf16.mxu0 %v1151_v45  ;;  %2916 = vmatprep.subr.bf16.mxu1 %v1153_v46  ;;  %v1214_v45 = vunpack.c.h.s8.bf16 %v406_v33  ;;  %v1216_v46 = vunpack.c.h.s8.bf16 %v408_v34  ;;  %v1223_v47 = vunpack.c.l.s8.bf16 %v415_v43  ;;  %v1225_v49 = vunpack.c.l.s8.bf16 %v417_v44 }
 0x382   :  { %2618 = vmatprep.mubr.bf16.mxu0 %v5367_v10  ;;  %2946 = vmatprep.mubr.bf16.mxu1 %v5367_v10  ;;  %v392_v10 = vld [vmem:[#allocation5 + $0x8b0] sm:$0xff]  ;;  %v1231_v56 = vunpack.c.h.s8.bf16 %v415_v43  ;;  %v1233_v57 = vunpack.c.h.s8.bf16 %v417_v44 }
 0x383   :  { %v1176_v21 = vunpack.c.l.s8.bf16 %v392_v10  ;;  %v1184_v53 = vunpack.c.h.s8.bf16 %v392_v10 }
 0x384   :  { %2589 = vmatpush1.bf16.msra.mxu0 %v1150_v52  ;;  %2917 = vmatpush1.bf16.msra.mxu1 %v1152_v50  ;;  %v414_v52 = vld [vmem:[#allocation5 + $0x960] sm:$0xff]  ;;  %v416_v50 = vld [vmem:[#allocation5 + $0x970] sm:$0xff] }
 0x385   :  { %2590 = vmatprep.subr.bf16.mxu0 %v1159_v54  ;;  %2918 = vmatprep.subr.bf16.mxu1 %v1161_v55  ;;  %v1222_v54 = vunpack.c.l.s8.bf16 %v414_v52  ;;  %v1224_v55 = vunpack.c.l.s8.bf16 %v416_v50 }
 0x388   :  { %2591 = vmatpush1.bf16.msra.mxu0 %v1158_v63  ;;  %2919 = vmatpush1.bf16.msra.mxu1 %v1160_v0  ;;  %v423_v63 = vld [vmem:[#allocation5 + $0x9a8] sm:$0xff]  ;;  %v425_v0 = vld [vmem:[#allocation5 + $0x9b8] sm:$0xff] }
 0x389   :  { %2592 = vmatprep.subr.bf16.mxu0 %v1167_v3  ;;  %2920 = vmatprep.subr.bf16.mxu1 %v1169_v14  ;;  %v1230_v3 = vunpack.c.h.s8.bf16 %v414_v52  ;;  %v1232_v14 = vunpack.c.h.s8.bf16 %v416_v50  ;;  %v1239_v1 = vunpack.c.l.s8.bf16 %v423_v63  ;;  %v1241_v2 = vunpack.c.l.s8.bf16 %v425_v0  ;;  %v455_v50 = vld [vmem:[#allocation5 + $0xaa8] sm:$0xff] }
 0x38a   :  { %v1247_v8 = vunpack.c.h.s8.bf16 %v423_v63  ;;  %v1249_v10 = vunpack.c.h.s8.bf16 %v425_v0  ;;  %v454_v0 = vld [vmem:[#allocation5 + $0xaa0] sm:$0xff] }
 0x38c   :  { %2593 = vmatpush1.bf16.msra.mxu0 %v1166_v59  ;;  %2921 = vmatpush1.bf16.msra.mxu1 %v1168_v35  ;;  %v422_v59 = vld [vmem:[#allocation5 + $0x9a0] sm:$0xff]  ;;  %v424_v35 = vld [vmem:[#allocation5 + $0x9b0] sm:$0xff] }
 0x38d   :  { %2594 = vmatprep.subr.bf16.mxu0 %v1175_v48  ;;  %2922 = vmatprep.subr.bf16.mxu1 %v1177_v7  ;;  %v1238_v48 = vunpack.c.l.s8.bf16 %v422_v59  ;;  %v1240_v7 = vunpack.c.l.s8.bf16 %v424_v35 }
 0x390   :  { %2595 = vmatpush1.bf16.msra.mxu0 %v1174_v9  ;;  %2923 = vmatpush1.bf16.msra.mxu1 %v1176_v21  ;;  %v431_v9 = vld [vmem:[#allocation5 + $0x9e8] sm:$0xff]  ;;  %v433_v21 = vld [vmem:[#allocation5 + $0x9f8] sm:$0xff] }
 0x391   :  { %2596 = vmatprep.subr.bf16.mxu0 %v1183_v31  ;;  %2924 = vmatprep.subr.bf16.mxu1 %v1185_v11  ;;  %v1246_v31 = vunpack.c.h.s8.bf16 %v422_v59  ;;  %v1248_v11 = vunpack.c.h.s8.bf16 %v424_v35  ;;  %v1255_v12 = vunpack.c.l.s8.bf16 %v431_v9  ;;  %v1257_v13 = vunpack.c.l.s8.bf16 %v433_v21  ;;  %v463_v59 = vld [vmem:[#allocation5 + $0xae8] sm:$0xff]  ;;  %v465_v35 = vld [vmem:[#allocation5 + $0xaf8] sm:$0xff] }
 0x392   :  { %v1263_v18 = vunpack.c.h.s8.bf16 %v431_v9  ;;  %v1265_v40 = vunpack.c.h.s8.bf16 %v433_v21  ;;  %v462_v9 = vld [vmem:[#allocation5 + $0xae0] sm:$0xff]  ;;  %v464_v21 = vld [vmem:[#allocation5 + $0xaf0] sm:$0xff] }
 0x394   :  { %2597 = vmatpush1.bf16.msra.mxu0 %v1182_v15  ;;  %2925 = vmatpush1.bf16.msra.mxu1 %v1184_v53  ;;  %v430_v15 = vld [vmem:[#allocation5 + $0x9e0] sm:$0xff]  ;;  %v432_v53 = vld [vmem:[#allocation5 + $0x9f0] sm:$0xff] }
 0x395   :  { %2598 = vmatprep.subr.bf16.mxu0 %v1191_v16  ;;  %2926 = vmatprep.subr.bf16.mxu1 %v1193_v17  ;;  %v1254_v16 = vunpack.c.l.s8.bf16 %v430_v15  ;;  %v1256_v17 = vunpack.c.l.s8.bf16 %v432_v53 }
 0x398   :  { %2599 = vmatpush1.bf16.msra.mxu0 %v1190_v19  ;;  %2927 = vmatpush1.bf16.msra.mxu1 %v1192_v20  ;;  %v439_v19 = vld [vmem:[#allocation5 + $0xa28] sm:$0xff]  ;;  %v441_v20 = vld [vmem:[#allocation5 + $0xa38] sm:$0xff] }
 0x399   :  { %2600 = vmatprep.subr.bf16.mxu0 %v1199_v25  ;;  %2928 = vmatprep.subr.bf16.mxu1 %v1201_v51  ;;  %v1262_v25 = vunpack.c.h.s8.bf16 %v430_v15  ;;  %v1264_v51 = vunpack.c.h.s8.bf16 %v432_v53  ;;  %v1271_v36 = vunpack.c.l.s8.bf16 %v439_v19  ;;  %v1273_v27 = vunpack.c.l.s8.bf16 %v441_v20  ;;  %v471_v15 = vld [vmem:[#allocation5 + $0xb28] sm:$0xff]  ;;  %v473_v53 = vld [vmem:[#allocation5 + $0xb38] sm:$0xff] }
 0x39a   :  { %v1279_v33 = vunpack.c.h.s8.bf16 %v439_v19  ;;  %v1281_v34 = vunpack.c.h.s8.bf16 %v441_v20  ;;  %v470_v19 = vld [vmem:[#allocation5 + $0xb20] sm:$0xff]  ;;  %v472_v20 = vld [vmem:[#allocation5 + $0xb30] sm:$0xff] }
 0x39c   :  { %2601 = vmatpush1.bf16.msra.mxu0 %v1198_v28  ;;  %2929 = vmatpush1.bf16.msra.mxu1 %v1200_v29  ;;  %v438_v28 = vld [vmem:[#allocation5 + $0xa20] sm:$0xff]  ;;  %v440_v29 = vld [vmem:[#allocation5 + $0xa30] sm:$0xff] }
 0x39d   :  { %2602 = vmatprep.subr.bf16.mxu0 %v1207_v30  ;;  %2930 = vmatprep.subr.bf16.mxu1 %v1209_v32  ;;  %v1270_v30 = vunpack.c.l.s8.bf16 %v438_v28  ;;  %v1272_v32 = vunpack.c.l.s8.bf16 %v440_v29 }
 0x3a0   :  { %2603 = vmatpush1.bf16.msra.mxu0 %v1206_v37  ;;  %2931 = vmatpush1.bf16.msra.mxu1 %v1208_v38  ;;  %v447_v37 = vld [vmem:[#allocation5 + $0xa68] sm:$0xff]  ;;  %v449_v38 = vld [vmem:[#allocation5 + $0xa78] sm:$0xff] }
 0x3a1   :  { %2604 = vmatprep.subr.bf16.mxu0 %v1215_v39  ;;  %2932 = vmatprep.subr.bf16.mxu1 %v1217_v42  ;;  %v1278_v39 = vunpack.c.h.s8.bf16 %v438_v28  ;;  %v1280_v42 = vunpack.c.h.s8.bf16 %v440_v29  ;;  %v1287_v43 = vunpack.c.l.s8.bf16 %v447_v37  ;;  %v1289_v44 = vunpack.c.l.s8.bf16 %v449_v38  ;;  %v479_v28 = vld [vmem:[#allocation5 + $0xb68] sm:$0xff]  ;;  %v481_v29 = vld [vmem:[#allocation5 + $0xb78] sm:$0xff] }
 0x3a2   :  { %v1297_v52 = vunpack.c.h.s8.bf16 %v449_v38  ;;  %v480_v38 = vld [vmem:[#allocation5 + $0xb70] sm:$0xff] }
 0x3a4   :  { %2605 = vmatpush1.bf16.msra.mxu0 %v1214_v45  ;;  %2933 = vmatpush1.bf16.msra.mxu1 %v1216_v46  ;;  %v446_v45 = vld [vmem:[#allocation5 + $0xa60] sm:$0xff]  ;;  %v448_v46 = vld [vmem:[#allocation5 + $0xa70] sm:$0xff] }
 0x3a5   :  { %2606 = vmatprep.subr.bf16.mxu0 %v1223_v47  ;;  %2934 = vmatprep.subr.bf16.mxu1 %v1225_v49  ;;  %v1286_v47 = vunpack.c.l.s8.bf16 %v446_v45  ;;  %v1288_v49 = vunpack.c.l.s8.bf16 %v448_v46 }
 0x3a8   :  { %2607 = vmatpush1.bf16.msra.mxu0 %v1222_v54  ;;  %2935 = vmatpush1.bf16.msra.mxu1 %v1224_v55  ;;  %v457_v54 = vld [vmem:[#allocation5 + $0xab8] sm:$0xff]  ;;  %v1294_v55 = vunpack.c.h.s8.bf16 %v446_v45  ;;  %v487_v45 = vld [vmem:[#allocation5 + $0xba8] sm:$0xff] }
 0x3a9   :  { %2608 = vmatprep.subr.bf16.mxu0 %v1231_v56  ;;  %2936 = vmatprep.subr.bf16.mxu1 %v1233_v57  ;;  %v1296_v56 = vunpack.c.h.s8.bf16 %v448_v46  ;;  %v1303_v57 = vunpack.c.l.s8.bf16 %v455_v50  ;;  %v1305_v63 = vunpack.c.l.s8.bf16 %v457_v54  ;;  %v489_v46 = vld [vmem:[#allocation5 + $0xbb8] sm:$0xff] }
 0x3ac   :  { %2609 = vmatpush1.bf16.msra.mxu0 %v1230_v3  ;;  %2937 = vmatpush1.bf16.msra.mxu1 %v1232_v14  ;;  %v1302_v3 = vunpack.c.l.s8.bf16 %v454_v0 }
 0x3ad   :  { %2610 = vmatprep.subr.bf16.mxu0 %v1239_v1  ;;  %2938 = vmatprep.subr.bf16.mxu1 %v1241_v2  ;;  %v1311_v1 = vunpack.c.h.s8.bf16 %v455_v50  ;;  %v1313_v2 = vunpack.c.h.s8.bf16 %v457_v54  ;;  %v486_v50 = vld [vmem:[#allocation5 + $0xba0] sm:$0xff]  ;;  %v488_v54 = vld [vmem:[#allocation5 + $0xbb0] sm:$0xff] }
 0x3b0   :  { %2611 = vmatpush1.bf16.msra.mxu0 %v1238_v48  ;;  %2939 = vmatpush1.bf16.msra.mxu1 %v1240_v7  ;;  %v1310_v48 = vunpack.c.h.s8.bf16 %v454_v0  ;;  %v495_v0 = vld [vmem:[#allocation5 + $0xbe8] sm:$0xff] }
 0x3b1   :  { %2612 = vmatprep.subr.bf16.mxu0 %v1247_v8  ;;  %2940 = vmatprep.subr.bf16.mxu1 %v1249_v10  ;;  %v1319_v8 = vunpack.c.l.s8.bf16 %v463_v59  ;;  %v1321_v10 = vunpack.c.l.s8.bf16 %v465_v35 }
 0x3b4   :  { %2613 = vmatpush1.bf16.msra.mxu0 %v1246_v31  ;;  %2941 = vmatpush1.bf16.msra.mxu1 %v1248_v11  ;;  %v1318_v31 = vunpack.c.l.s8.bf16 %v462_v9  ;;  %v1320_v11 = vunpack.c.l.s8.bf16 %v464_v21 }
 0x3b5   :  { %2614 = vmatprep.subr.bf16.mxu0 %v1255_v12  ;;  %2942 = vmatprep.subr.bf16.mxu1 %v1257_v13  ;;  %v1327_v12 = vunpack.c.h.s8.bf16 %v463_v59  ;;  %v1329_v13 = vunpack.c.h.s8.bf16 %v465_v35  ;;  %v494_v59 = vld [vmem:[#allocation5 + $0xbe0] sm:$0xff]  ;;  %v496_v35 = vld [vmem:[#allocation5 + $0xbf0] sm:$0xff] }
 0x3b8   :  { %2615 = vmatpush1.bf16.msra.mxu0 %v1254_v16  ;;  %2943 = vmatpush1.bf16.msra.mxu1 %v1256_v17  ;;  %v1326_v16 = vunpack.c.h.s8.bf16 %v462_v9  ;;  %v1328_v17 = vunpack.c.h.s8.bf16 %v464_v21  ;;  %v503_v9 = vld [vmem:[#allocation5 + $0xc28] sm:$0xff]  ;;  %v505_v21 = vld [vmem:[#allocation5 + $0xc38] sm:$0xff] }
 0x3b9   :  { %2616 = vmatprep.subr.bf16.mxu0 %v1263_v18  ;;  %2944 = vmatprep.subr.bf16.mxu1 %v1265_v40  ;;  %v1335_v18 = vunpack.c.l.s8.bf16 %v471_v15  ;;  %v1337_v40 = vunpack.c.l.s8.bf16 %v473_v53 }
 0x3bc   :  { %2617 = vmatpush1.bf16.msra.mxu0 %v1262_v25  ;;  %2945 = vmatpush1.bf16.msra.mxu1 %v1264_v51  ;;  %v1334_v25 = vunpack.c.l.s8.bf16 %v470_v19  ;;  %v1336_v51 = vunpack.c.l.s8.bf16 %v472_v20 }
 0x3bd   :  { %2627 = vmatprep.subr.bf16.mxu0 %v1271_v36  ;;  %2955 = vmatprep.subr.bf16.mxu1 %v1273_v27  ;;  %v1343_v36 = vunpack.c.h.s8.bf16 %v471_v15  ;;  %v1345_v27 = vunpack.c.h.s8.bf16 %v473_v53  ;;  %v502_v15 = vld [vmem:[#allocation5 + $0xc20] sm:$0xff]  ;;  %v504_v53 = vld [vmem:[#allocation5 + $0xc30] sm:$0xff] }
 0x3bf   :  { %2619 = vmatmul.mubr.bf16.vlgmr.msra.gmra.mrb[4].mxu0 %v5375_v61  ;;  %2947 = vmatmul.mubr.bf16.vlgmr.msra.gmra.mrb[4].mxu1 %v5375_v61  ;;  %v1295_v61 = vunpack.c.h.s8.bf16 %v447_v37  ;;  %v478_v37 = vld [vmem:[#allocation5 + $0xb60] sm:$0xff] }
 0x3c0   :  { %2628 = vmatpush1.bf16.msra.mxu0 %v1270_v30  ;;  %2956 = vmatpush1.bf16.msra.mxu1 %v1272_v32  ;;  %v1342_v30 = vunpack.c.h.s8.bf16 %v470_v19  ;;  %v1344_v32 = vunpack.c.h.s8.bf16 %v472_v20  ;;  %v511_v19 = vld [vmem:[#allocation5 + $0xc68] sm:$0xff]  ;;  %v513_v20 = vld [vmem:[#allocation5 + $0xc78] sm:$0xff] }
 0x3c1   :  { %2629 = vmatprep.subr.bf16.mxu0 %v1279_v33  ;;  %2957 = vmatprep.subr.bf16.mxu1 %v1281_v34  ;;  %v1351_v33 = vunpack.c.l.s8.bf16 %v479_v28  ;;  %v1353_v34 = vunpack.c.l.s8.bf16 %v481_v29 }
 0x3c2   :  { %2659 = vmatprep.mubr.bf16.mxu0 %v5379_v5  ;;  %2987 = vmatprep.mubr.bf16.mxu1 %v5379_v5  ;;  %v456_v5 = vld [vmem:[#allocation5 + $0xab0] sm:$0xff] }
 0x3c3   :  { %v1304_v14 = vunpack.c.l.s8.bf16 %v456_v5  ;;  %v1312_v7 = vunpack.c.h.s8.bf16 %v456_v5  ;;  %v497_v5 = vld [vmem:[#allocation5 + $0xbf8] sm:$0xff] }
 0x3c4   :  { %2630 = vmatpush1.bf16.msra.mxu0 %v1278_v39  ;;  %2958 = vmatpush1.bf16.msra.mxu1 %v1280_v42  ;;  %v1350_v39 = vunpack.c.l.s8.bf16 %v478_v37  ;;  %v1352_v42 = vunpack.c.l.s8.bf16 %v480_v38 }
 0x3c5   :  { %2631 = vmatprep.subr.bf16.mxu0 %v1287_v43  ;;  %2959 = vmatprep.subr.bf16.mxu1 %v1289_v44  ;;  %v1359_v43 = vunpack.c.h.s8.bf16 %v479_v28  ;;  %v1361_v44 = vunpack.c.h.s8.bf16 %v481_v29  ;;  %v510_v28 = vld [vmem:[#allocation5 + $0xc60] sm:$0xff]  ;;  %v512_v29 = vld [vmem:[#allocation5 + $0xc70] sm:$0xff] }
 0x3c8   :  { %2632 = vmatpush1.bf16.msra.mxu0 %v1286_v47  ;;  %2960 = vmatpush1.bf16.msra.mxu1 %v1288_v49  ;;  %v1358_v47 = vunpack.c.h.s8.bf16 %v478_v37  ;;  %v1360_v49 = vunpack.c.h.s8.bf16 %v480_v38  ;;  %v521_v37 = vld [vmem:[#allocation5 + $0xcb8] sm:$0xff]  ;;  %v1422_v38 = vunpack.c.h.s8.bf16 %v510_v28 }
 0x3c9   :  { %2633 = vmatprep.subr.bf16.mxu0 %v1295_v61  ;;  %2961 = vmatprep.subr.bf16.mxu1 %v1297_v52  ;;  %v1367_v61 = vunpack.c.l.s8.bf16 %v487_v45  ;;  %v1369_v52 = vunpack.c.l.s8.bf16 %v489_v46 }
 0x3cc   :  { %2634 = vmatpush1.bf16.msra.mxu0 %v1294_v55  ;;  %2962 = vmatpush1.bf16.msra.mxu1 %v1296_v56  ;;  %v1366_v55 = vunpack.c.l.s8.bf16 %v486_v50  ;;  %v1368_v56 = vunpack.c.l.s8.bf16 %v488_v54 }
 0x3cd   :  { %2635 = vmatprep.subr.bf16.mxu0 %v1303_v57  ;;  %2963 = vmatprep.subr.bf16.mxu1 %v1305_v63  ;;  %v1375_v57 = vunpack.c.h.s8.bf16 %v487_v45  ;;  %v1377_v63 = vunpack.c.h.s8.bf16 %v489_v46 }
 0x3d0   :  { %2636 = vmatpush1.bf16.msra.mxu0 %v1302_v3  ;;  %2964 = vmatpush1.bf16.msra.mxu1 %v1304_v14  ;;  %v1374_v3 = vunpack.c.h.s8.bf16 %v486_v50  ;;  %v1376_v14 = vunpack.c.h.s8.bf16 %v488_v54 }
 0x3d1   :  { %2637 = vmatprep.subr.bf16.mxu0 %v1311_v1  ;;  %2965 = vmatprep.subr.bf16.mxu1 %v1313_v2  ;;  %v1383_v1 = vunpack.c.l.s8.bf16 %v495_v0  ;;  %v1385_v2 = vunpack.c.l.s8.bf16 %v497_v5 }
 0x3d4   :  { %2638 = vmatpush1.bf16.msra.mxu0 %v1310_v48  ;;  %2966 = vmatpush1.bf16.msra.mxu1 %v1312_v7  ;;  %v1382_v48 = vunpack.c.l.s8.bf16 %v494_v59  ;;  %v1384_v7 = vunpack.c.l.s8.bf16 %v496_v35 }
 0x3d5   :  { %2639 = vmatprep.subr.bf16.mxu0 %v1319_v8  ;;  %2967 = vmatprep.subr.bf16.mxu1 %v1321_v10  ;;  %v1391_v8 = vunpack.c.h.s8.bf16 %v495_v0  ;;  %v1393_v10 = vunpack.c.h.s8.bf16 %v497_v5 }
 0x3d8   :  { %2640 = vmatpush1.bf16.msra.mxu0 %v1318_v31  ;;  %2968 = vmatpush1.bf16.msra.mxu1 %v1320_v11  ;;  %v1390_v31 = vunpack.c.h.s8.bf16 %v494_v59  ;;  %v1392_v11 = vunpack.c.h.s8.bf16 %v496_v35 }
 0x3d9   :  { %2641 = vmatprep.subr.bf16.mxu0 %v1327_v12  ;;  %2969 = vmatprep.subr.bf16.mxu1 %v1329_v13  ;;  %v1399_v12 = vunpack.c.l.s8.bf16 %v503_v9  ;;  %v1401_v13 = vunpack.c.l.s8.bf16 %v505_v21 }
 0x3dc   :  { %2642 = vmatpush1.bf16.msra.mxu0 %v1326_v16  ;;  %2970 = vmatpush1.bf16.msra.mxu1 %v1328_v17  ;;  %v1398_v16 = vunpack.c.l.s8.bf16 %v502_v15  ;;  %v1400_v17 = vunpack.c.l.s8.bf16 %v504_v53 }
 0x3dd   :  { %2643 = vmatprep.subr.bf16.mxu0 %v1335_v18  ;;  %2971 = vmatprep.subr.bf16.mxu1 %v1337_v40  ;;  %v1407_v18 = vunpack.c.h.s8.bf16 %v503_v9  ;;  %v1409_v40 = vunpack.c.h.s8.bf16 %v505_v21 }
 0x3e0   :  { %2644 = vmatpush1.bf16.msra.mxu0 %v1334_v25  ;;  %2972 = vmatpush1.bf16.msra.mxu1 %v1336_v51  ;;  %v1406_v25 = vunpack.c.h.s8.bf16 %v502_v15  ;;  %v1408_v51 = vunpack.c.h.s8.bf16 %v504_v53 }
 0x3e1   :  { %2645 = vmatprep.subr.bf16.mxu0 %v1343_v36  ;;  %2973 = vmatprep.subr.bf16.mxu1 %v1345_v27  ;;  %v1415_v36 = vunpack.c.l.s8.bf16 %v511_v19  ;;  %v1417_v27 = vunpack.c.l.s8.bf16 %v513_v20 }
 0x3e4   :  { %2646 = vmatpush1.bf16.msra.mxu0 %v1342_v30  ;;  %2974 = vmatpush1.bf16.msra.mxu1 %v1344_v32  ;;  %v1414_v30 = vunpack.c.l.s8.bf16 %v510_v28  ;;  %v1416_v32 = vunpack.c.l.s8.bf16 %v512_v29 }
 0x3e5   :  { %2647 = vmatprep.subr.bf16.mxu0 %v1351_v33  ;;  %2975 = vmatprep.subr.bf16.mxu1 %v1353_v34  ;;  %v1425_v33 = vunpack.c.h.s8.bf16 %v513_v20  ;;  %v519_v34 = vld [vmem:[#allocation5 + $0xca8] sm:$0xff] }
 0x3e8   :  { %2648 = vmatpush1.bf16.msra.mxu0 %v1350_v39  ;;  %2976 = vmatpush1.bf16.msra.mxu1 %v1352_v42  ;;  %v1424_v39 = vunpack.c.h.s8.bf16 %v512_v29  ;;  %v1431_v42 = vunpack.c.l.s8.bf16 %v519_v34 }
 0x3e9   :  { %2649 = vmatprep.subr.bf16.mxu0 %v1359_v43  ;;  %2977 = vmatprep.subr.bf16.mxu1 %v1361_v44  ;;  %v1433_v43 = vunpack.c.l.s8.bf16 %v521_v37  ;;  %v518_v44 = vld [vmem:[#allocation5 + $0xca0] sm:$0xff] }
 0x3ea   :  { %v1430_v45 = vunpack.c.l.s8.bf16 %v518_v44  ;;  %v1438_v50 = vunpack.c.h.s8.bf16 %v518_v44 }
 0x3ec   :  { %2650 = vmatpush1.bf16.msra.mxu0 %v1358_v47  ;;  %2978 = vmatpush1.bf16.msra.mxu1 %v1360_v49  ;;  %v1439_v47 = vunpack.c.h.s8.bf16 %v519_v34  ;;  %v1441_v49 = vunpack.c.h.s8.bf16 %v521_v37 }
 0x3ed   :  { %2651 = vmatprep.subr.bf16.mxu0 %v1367_v61  ;;  %2979 = vmatprep.subr.bf16.mxu1 %v1369_v52  ;;  %v527_v61 = vld [vmem:[#allocation5 + $0xce8] sm:$0xff]  ;;  %v529_v52 = vld [vmem:[#allocation5 + $0xcf8] sm:$0xff] }
 0x3f0   :  { %2652 = vmatpush1.bf16.msra.mxu0 %v1366_v55  ;;  %2980 = vmatpush1.bf16.msra.mxu1 %v1368_v56  ;;  %v1447_v55 = vunpack.c.l.s8.bf16 %v527_v61  ;;  %v1449_v56 = vunpack.c.l.s8.bf16 %v529_v52 }
 0x3f1   :  { %2653 = vmatprep.subr.bf16.mxu0 %v1375_v57  ;;  %2981 = vmatprep.subr.bf16.mxu1 %v1377_v63  ;;  %v526_v57 = vld [vmem:[#allocation5 + $0xce0] sm:$0xff]  ;;  %v528_v63 = vld [vmem:[#allocation5 + $0xcf0] sm:$0xff] }
 0x3f2   :  { %v1446_v0 = vunpack.c.l.s8.bf16 %v526_v57  ;;  %v1448_v5 = vunpack.c.l.s8.bf16 %v528_v63  ;;  %v1454_v59 = vunpack.c.h.s8.bf16 %v526_v57  ;;  %v1456_v35 = vunpack.c.h.s8.bf16 %v528_v63 }
 0x3f4   :  { %2654 = vmatpush1.bf16.msra.mxu0 %v1374_v3  ;;  %2982 = vmatpush1.bf16.msra.mxu1 %v1376_v14  ;;  %v1455_v3 = vunpack.c.h.s8.bf16 %v527_v61  ;;  %v1457_v14 = vunpack.c.h.s8.bf16 %v529_v52 }
 0x3f5   :  { %2655 = vmatprep.subr.bf16.mxu0 %v1383_v1  ;;  %2983 = vmatprep.subr.bf16.mxu1 %v1385_v2  ;;  %v535_v1 = vld [vmem:[#allocation5 + $0xd28] sm:$0xff]  ;;  %v537_v2 = vld [vmem:[#allocation5 + $0xd38] sm:$0xff] }
 0x3f8   :  { %2656 = vmatpush1.bf16.msra.mxu0 %v1382_v48  ;;  %2984 = vmatpush1.bf16.msra.mxu1 %v1384_v7  ;;  %v1463_v48 = vunpack.c.l.s8.bf16 %v535_v1  ;;  %v1465_v7 = vunpack.c.l.s8.bf16 %v537_v2 }
 0x3f9   :  { %2657 = vmatprep.subr.bf16.mxu0 %v1391_v8  ;;  %2985 = vmatprep.subr.bf16.mxu1 %v1393_v10  ;;  %v534_v8 = vld [vmem:[#allocation5 + $0xd20] sm:$0xff]  ;;  %v536_v10 = vld [vmem:[#allocation5 + $0xd30] sm:$0xff] }
 0x3fa   :  { %v1462_v9 = vunpack.c.l.s8.bf16 %v534_v8  ;;  %v1464_v21 = vunpack.c.l.s8.bf16 %v536_v10  ;;  %v1470_v15 = vunpack.c.h.s8.bf16 %v534_v8  ;;  %v1472_v53 = vunpack.c.h.s8.bf16 %v536_v10 }
 0x3fc   :  { %2658 = vmatpush1.bf16.msra.mxu0 %v1390_v31  ;;  %2986 = vmatpush1.bf16.msra.mxu1 %v1392_v11  ;;  %v1471_v31 = vunpack.c.h.s8.bf16 %v535_v1  ;;  %v1473_v11 = vunpack.c.h.s8.bf16 %v537_v2 }
 0x3fd   :  { %2668 = vmatprep.subr.bf16.mxu0 %v1399_v12  ;;  %2996 = vmatprep.subr.bf16.mxu1 %v1401_v13  ;;  %v543_v12 = vld [vmem:[#allocation5 + $0xd68] sm:$0xff]  ;;  %v545_v13 = vld [vmem:[#allocation5 + $0xd78] sm:$0xff] }
 0x3ff   :  { %2660 = vmatmul.mubr.bf16.vlgmr.msra.gmra.mrb[4].mxu0 %v5394_v58  ;;  %2988 = vmatmul.mubr.bf16.vlgmr.msra.gmra.mrb[4].mxu1 %v5394_v58  ;;  %v1423_v58 = vunpack.c.h.s8.bf16 %v511_v19 }
 0x400   :  { %2669 = vmatpush1.bf16.msra.mxu0 %v1398_v16  ;;  %2997 = vmatpush1.bf16.msra.mxu1 %v1400_v17  ;;  %v1479_v16 = vunpack.c.l.s8.bf16 %v543_v12  ;;  %v1481_v17 = vunpack.c.l.s8.bf16 %v545_v13 }
 0x401   :  { %2670 = vmatprep.subr.bf16.mxu0 %v1407_v18  ;;  %2998 = vmatprep.subr.bf16.mxu1 %v1409_v40  ;;  %v542_v18 = vld [vmem:[#allocation5 + $0xd60] sm:$0xff]  ;;  %v544_v40 = vld [vmem:[#allocation5 + $0xd70] sm:$0xff] }
 0x402   :  { %2700 = vmatprep.mubr.bf16.mxu0 %v5397_v4  ;;  %3028 = vmatprep.mubr.bf16.mxu1 %v5397_v4  ;;  %v520_v4 = vld [vmem:[#allocation5 + $0xcb0] sm:$0xff]  ;;  %v1478_v19 = vunpack.c.l.s8.bf16 %v542_v18  ;;  %v1480_v20 = vunpack.c.l.s8.bf16 %v544_v40  ;;  %v1486_v28 = vunpack.c.h.s8.bf16 %v542_v18  ;;  %v1488_v29 = vunpack.c.h.s8.bf16 %v544_v40 }
 0x403   :  { %v1432_v46 = vunpack.c.l.s8.bf16 %v520_v4  ;;  %v1440_v54 = vunpack.c.h.s8.bf16 %v520_v4 }
 0x404   :  { %2671 = vmatpush1.bf16.msra.mxu0 %v1406_v25  ;;  %2999 = vmatpush1.bf16.msra.mxu1 %v1408_v51  ;;  %v1487_v25 = vunpack.c.h.s8.bf16 %v543_v12  ;;  %v1489_v51 = vunpack.c.h.s8.bf16 %v545_v13 }
 0x405   :  { %2672 = vmatprep.subr.bf16.mxu0 %v1415_v36  ;;  %3000 = vmatprep.subr.bf16.mxu1 %v1417_v27  ;;  %v551_v36 = vld [vmem:[#allocation5 + $0xda8] sm:$0xff]  ;;  %v553_v27 = vld [vmem:[#allocation5 + $0xdb8] sm:$0xff] }
 0x408   :  { %2673 = vmatpush1.bf16.msra.mxu0 %v1414_v30  ;;  %3001 = vmatpush1.bf16.msra.mxu1 %v1416_v32  ;;  %v1495_v30 = vunpack.c.l.s8.bf16 %v551_v36  ;;  %v1497_v32 = vunpack.c.l.s8.bf16 %v553_v27 }
 0x409   :  { %2674 = vmatprep.subr.bf16.mxu0 %v1423_v58  ;;  %3002 = vmatprep.subr.bf16.mxu1 %v1425_v33  ;;  %v550_v58 = vld [vmem:[#allocation5 + $0xda0] sm:$0xff]  ;;  %v552_v33 = vld [vmem:[#allocation5 + $0xdb0] sm:$0xff] }
 0x40a   :  { %v1494_v34 = vunpack.c.l.s8.bf16 %v550_v58  ;;  %v1496_v37 = vunpack.c.l.s8.bf16 %v552_v33  ;;  %v1502_v44 = vunpack.c.h.s8.bf16 %v550_v58  ;;  %v1504_v4 = vunpack.c.h.s8.bf16 %v552_v33 }
 0x40c   :  { %2675 = vmatpush1.bf16.msra.mxu0 %v1422_v38  ;;  %3003 = vmatpush1.bf16.msra.mxu1 %v1424_v39  ;;  %v1503_v38 = vunpack.c.h.s8.bf16 %v551_v36  ;;  %v1505_v39 = vunpack.c.h.s8.bf16 %v553_v27 }
 0x40d   :  { %2676 = vmatprep.subr.bf16.mxu0 %v1431_v42  ;;  %3004 = vmatprep.subr.bf16.mxu1 %v1433_v43  ;;  %v559_v42 = vld [vmem:[#allocation5 + $0xde8] sm:$0xff]  ;;  %v561_v43 = vld [vmem:[#allocation5 + $0xdf8] sm:$0xff] }
 0x410   :  { %2677 = vmatpush1.bf16.msra.mxu0 %v1430_v45  ;;  %3005 = vmatpush1.bf16.msra.mxu1 %v1432_v46  ;;  %v1511_v45 = vunpack.c.l.s8.bf16 %v559_v42  ;;  %v1513_v46 = vunpack.c.l.s8.bf16 %v561_v43 }
 0x411   :  { %2678 = vmatprep.subr.bf16.mxu0 %v1439_v47  ;;  %3006 = vmatprep.subr.bf16.mxu1 %v1441_v49  ;;  %v558_v47 = vld [vmem:[#allocation5 + $0xde0] sm:$0xff]  ;;  %v560_v49 = vld [vmem:[#allocation5 + $0xdf0] sm:$0xff] }
 0x412   :  { %v1510_v61 = vunpack.c.l.s8.bf16 %v558_v47  ;;  %v1512_v52 = vunpack.c.l.s8.bf16 %v560_v49  ;;  %v1518_v57 = vunpack.c.h.s8.bf16 %v558_v47  ;;  %v1520_v63 = vunpack.c.h.s8.bf16 %v560_v49 }
 0x414   :  { %2679 = vmatpush1.bf16.msra.mxu0 %v1438_v50  ;;  %3007 = vmatpush1.bf16.msra.mxu1 %v1440_v54  ;;  %v1519_v50 = vunpack.c.h.s8.bf16 %v559_v42  ;;  %v1521_v54 = vunpack.c.h.s8.bf16 %v561_v43 }
 0x415   :  { %2680 = vmatprep.subr.bf16.mxu0 %v1447_v55  ;;  %3008 = vmatprep.subr.bf16.mxu1 %v1449_v56  ;;  %v567_v55 = vld [vmem:[#allocation5 + $0xe28] sm:$0xff]  ;;  %v569_v56 = vld [vmem:[#allocation5 + $0xe38] sm:$0xff] }
 0x418   :  { %2681 = vmatpush1.bf16.msra.mxu0 %v1446_v0  ;;  %3009 = vmatpush1.bf16.msra.mxu1 %v1448_v5  ;;  %v1527_v0 = vunpack.c.l.s8.bf16 %v567_v55  ;;  %v1529_v5 = vunpack.c.l.s8.bf16 %v569_v56 }
 0x419   :  { %2682 = vmatprep.subr.bf16.mxu0 %v1455_v3  ;;  %3010 = vmatprep.subr.bf16.mxu1 %v1457_v14  ;;  %v566_v3 = vld [vmem:[#allocation5 + $0xe20] sm:$0xff]  ;;  %v568_v14 = vld [vmem:[#allocation5 + $0xe30] sm:$0xff] }
 0x41a   :  { %v1526_v1 = vunpack.c.l.s8.bf16 %v566_v3  ;;  %v1528_v2 = vunpack.c.l.s8.bf16 %v568_v14  ;;  %v1534_v8 = vunpack.c.h.s8.bf16 %v566_v3  ;;  %v1536_v10 = vunpack.c.h.s8.bf16 %v568_v14 }
 0x41c   :  { %2683 = vmatpush1.bf16.msra.mxu0 %v1454_v59  ;;  %3011 = vmatpush1.bf16.msra.mxu1 %v1456_v35  ;;  %v1535_v59 = vunpack.c.h.s8.bf16 %v567_v55  ;;  %v1537_v35 = vunpack.c.h.s8.bf16 %v569_v56 }
 0x41d   :  { %2684 = vmatprep.subr.bf16.mxu0 %v1463_v48  ;;  %3012 = vmatprep.subr.bf16.mxu1 %v1465_v7  ;;  %v575_v48 = vld [vmem:[#allocation5 + $0xe68] sm:$0xff]  ;;  %v577_v7 = vld [vmem:[#allocation5 + $0xe78] sm:$0xff] }
 0x420   :  { %2685 = vmatpush1.bf16.msra.mxu0 %v1462_v9  ;;  %3013 = vmatpush1.bf16.msra.mxu1 %v1464_v21  ;;  %v1543_v9 = vunpack.c.l.s8.bf16 %v575_v48  ;;  %v1545_v21 = vunpack.c.l.s8.bf16 %v577_v7 }
 0x421   :  { %2686 = vmatprep.subr.bf16.mxu0 %v1471_v31  ;;  %3014 = vmatprep.subr.bf16.mxu1 %v1473_v11  ;;  %v574_v31 = vld [vmem:[#allocation5 + $0xe60] sm:$0xff]  ;;  %v576_v11 = vld [vmem:[#allocation5 + $0xe70] sm:$0xff] }
 0x422   :  { %v1542_v12 = vunpack.c.l.s8.bf16 %v574_v31  ;;  %v1544_v13 = vunpack.c.l.s8.bf16 %v576_v11  ;;  %v1552_v18 = vunpack.c.h.s8.bf16 %v576_v11 }
 0x424   :  { %2687 = vmatpush1.bf16.msra.mxu0 %v1470_v15  ;;  %3015 = vmatpush1.bf16.msra.mxu1 %v1472_v53  ;;  %v1553_v15 = vunpack.c.h.s8.bf16 %v577_v7  ;;  %v583_v53 = vld [vmem:[#allocation5 + $0xea8] sm:$0xff] }
 0x425   :  { %2688 = vmatprep.subr.bf16.mxu0 %v1479_v16  ;;  %3016 = vmatprep.subr.bf16.mxu1 %v1481_v17  ;;  %v585_v16 = vld [vmem:[#allocation5 + $0xeb8] sm:$0xff]  ;;  %v1550_v17 = vunpack.c.h.s8.bf16 %v574_v31  ;;  %v1559_v40 = vunpack.c.l.s8.bf16 %v583_v53  ;;  %v1567_v36 = vunpack.c.h.s8.bf16 %v583_v53 }
 0x426   :  { %v1569_v27 = vunpack.c.h.s8.bf16 %v585_v16 }
 0x428   :  { %2689 = vmatpush1.bf16.msra.mxu0 %v1478_v19  ;;  %3017 = vmatpush1.bf16.msra.mxu1 %v1480_v20  ;;  %v1561_v19 = vunpack.c.l.s8.bf16 %v585_v16  ;;  %v582_v20 = vld [vmem:[#allocation5 + $0xea0] sm:$0xff] }
 0x429   :  { %2690 = vmatprep.subr.bf16.mxu0 %v1487_v25  ;;  %3018 = vmatprep.subr.bf16.mxu1 %v1489_v51  ;;  %v1558_v25 = vunpack.c.l.s8.bf16 %v582_v20 }
 0x42c   :  { %2691 = vmatpush1.bf16.msra.mxu0 %v1486_v28  ;;  %3019 = vmatpush1.bf16.msra.mxu1 %v1488_v29  ;;  %v591_v28 = vld [vmem:[#allocation5 + $0xee8] sm:$0xff]  ;;  %v593_v29 = vld [vmem:[#allocation5 + $0xef8] sm:$0xff] }
 0x42d   :  { %2692 = vmatprep.subr.bf16.mxu0 %v1495_v30  ;;  %3020 = vmatprep.subr.bf16.mxu1 %v1497_v32  ;;  %v1566_v30 = vunpack.c.h.s8.bf16 %v582_v20  ;;  %v1575_v58 = vunpack.c.l.s8.bf16 %v591_v28  ;;  %v1577_v33 = vunpack.c.l.s8.bf16 %v593_v29  ;;  %v1583_v42 = vunpack.c.h.s8.bf16 %v591_v28  ;;  %v625_v20 = vld [vmem:[#allocation5 + $0xff8] sm:$0xff]  ;;  %v622_v28 = vld [vmem:[#allocation5 + $0xfe0] sm:$0xff] }
 0x42e   :  { %v1585_v43 = vunpack.c.h.s8.bf16 %v593_v29  ;;  %v624_v29 = vld [vmem:[#allocation5 + $0xff0] sm:$0xff] }
 0x430   :  { %2693 = vmatpush1.bf16.msra.mxu0 %v1494_v34  ;;  %3021 = vmatpush1.bf16.msra.mxu1 %v1496_v37  ;;  %v590_v34 = vld [vmem:[#allocation5 + $0xee0] sm:$0xff]  ;;  %v592_v37 = vld [vmem:[#allocation5 + $0xef0] sm:$0xff] }
 0x431   :  { %2694 = vmatprep.subr.bf16.mxu0 %v1503_v38  ;;  %3022 = vmatprep.subr.bf16.mxu1 %v1505_v39  ;;  %v1574_v38 = vunpack.c.l.s8.bf16 %v590_v34  ;;  %v1576_v39 = vunpack.c.l.s8.bf16 %v592_v37 }
 0x434   :  { %2695 = vmatpush1.bf16.msra.mxu0 %v1502_v44  ;;  %3023 = vmatpush1.bf16.msra.mxu1 %v1504_v4  ;;  %v599_v44 = vld [vmem:[#allocation5 + $0xf28] sm:$0xff]  ;;  %v601_v4 = vld [vmem:[#allocation5 + $0xf38] sm:$0xff] }
 0x435   :  { %2696 = vmatprep.subr.bf16.mxu0 %v1511_v45  ;;  %3024 = vmatprep.subr.bf16.mxu1 %v1513_v46  ;;  %v1582_v45 = vunpack.c.h.s8.bf16 %v590_v34  ;;  %v1584_v46 = vunpack.c.h.s8.bf16 %v592_v37  ;;  %v1591_v47 = vunpack.c.l.s8.bf16 %v599_v44  ;;  %v1593_v49 = vunpack.c.l.s8.bf16 %v601_v4 }
 0x436   :  { %v1599_v55 = vunpack.c.h.s8.bf16 %v599_v44  ;;  %v1601_v56 = vunpack.c.h.s8.bf16 %v601_v4  ;;  %v1649_v37 = vunpack.c.h.s8.bf16 %v625_v20  ;;  %v1648_v44 = vunpack.c.h.s8.bf16 %v624_v29 }
 0x438   :  { %2697 = vmatpush1.bf16.msra.mxu0 %v1510_v61  ;;  %3025 = vmatpush1.bf16.msra.mxu1 %v1512_v52  ;;  %v598_v61 = vld [vmem:[#allocation5 + $0xf20] sm:$0xff]  ;;  %v600_v52 = vld [vmem:[#allocation5 + $0xf30] sm:$0xff] }
 0x439   :  { %2698 = vmatprep.subr.bf16.mxu0 %v1519_v50  ;;  %3026 = vmatprep.subr.bf16.mxu1 %v1521_v54  ;;  %v1590_v50 = vunpack.c.l.s8.bf16 %v598_v61  ;;  %v1592_v54 = vunpack.c.l.s8.bf16 %v600_v52 }
 0x43c   :  { %2699 = vmatpush1.bf16.msra.mxu0 %v1518_v57  ;;  %3027 = vmatpush1.bf16.msra.mxu1 %v1520_v63  ;;  %v607_v57 = vld [vmem:[#allocation5 + $0xf68] sm:$0xff]  ;;  %v609_v63 = vld [vmem:[#allocation5 + $0xf78] sm:$0xff] }
 0x43d   :  { %2709 = vmatprep.subr.bf16.mxu0 %v1527_v0  ;;  %3037 = vmatprep.subr.bf16.mxu1 %v1529_v5  ;;  %v1598_v0 = vunpack.c.h.s8.bf16 %v598_v61  ;;  %v1600_v5 = vunpack.c.h.s8.bf16 %v600_v52  ;;  %v1607_v3 = vunpack.c.l.s8.bf16 %v607_v57  ;;  %v1609_v14 = vunpack.c.l.s8.bf16 %v609_v63 }
 0x43e   :  { %v1617_v7 = vunpack.c.h.s8.bf16 %v609_v63 }
 0x43f   :  { %2701 = vmatmul.mubr.bf16.vlgmr.msra.gmra.mrb[4].mxu0 %v5405_v41  ;;  %3029 = vmatmul.mubr.bf16.vlgmr.msra.gmra.mrb[4].mxu1 %v5405_v41  ;;  %v1551_v41 = vunpack.c.h.s8.bf16 %v575_v48  ;;  %v1615_v48 = vunpack.c.h.s8.bf16 %v607_v57 }
 0x440   :  { %2710 = vmatpush1.bf16.msra.mxu0 %v1526_v1  ;;  %3038 = vmatpush1.bf16.msra.mxu1 %v1528_v2  ;;  %v606_v1 = vld [vmem:[#allocation5 + $0xf60] sm:$0xff]  ;;  %v608_v2 = vld [vmem:[#allocation5 + $0xf70] sm:$0xff] }
 0x441   :  { %2711 = vmatprep.subr.bf16.mxu0 %v1535_v59  ;;  %3039 = vmatprep.subr.bf16.mxu1 %v1537_v35  ;;  %v1606_v59 = vunpack.c.l.s8.bf16 %v606_v1  ;;  %v1608_v35 = vunpack.c.l.s8.bf16 %v608_v2 }
 0x442   :  { %2741 = vmatprep.mubr.bf16.mxu0 %v5409_v6  ;;  %3069 = vmatprep.mubr.bf16.mxu1 %v5409_v6  ;;  %v584_v6 = vld [vmem:[#allocation5 + $0xeb0] sm:$0xff] }
 0x443   :  { %v1560_v51 = vunpack.c.l.s8.bf16 %v584_v6  ;;  %v1568_v32 = vunpack.c.h.s8.bf16 %v584_v6  ;;  %v5466_v6 = vld [vmem:[#allocation8] sm:$0xff] }
 0x444   :  { %2712 = vmatpush1.bf16.msra.mxu0 %v1534_v8  ;;  %3040 = vmatpush1.bf16.msra.mxu1 %v1536_v10  ;;  %v615_v8 = vld [vmem:[#allocation5 + $0xfa8] sm:$0xff]  ;;  %v617_v10 = vld [vmem:[#allocation5 + $0xfb8] sm:$0xff] }
 0x445   :  { %2713 = vmatprep.subr.bf16.mxu0 %v1543_v9  ;;  %3041 = vmatprep.subr.bf16.mxu1 %v1545_v21  ;;  %v1614_v9 = vunpack.c.h.s8.bf16 %v606_v1  ;;  %v1616_v21 = vunpack.c.h.s8.bf16 %v608_v2  ;;  %v1623_v31 = vunpack.c.l.s8.bf16 %v615_v8  ;;  %v1625_v11 = vunpack.c.l.s8.bf16 %v617_v10 }
 0x448   :  { %2714 = vmatpush1.bf16.msra.mxu0 %v1542_v12  ;;  %3042 = vmatpush1.bf16.msra.mxu1 %v1544_v13  ;;  %v614_v12 = vld [vmem:[#allocation5 + $0xfa0] sm:$0xff]  ;;  %v616_v13 = vld [vmem:[#allocation5 + $0xfb0] sm:$0xff] }
 0x449   :  { %2715 = vmatprep.subr.bf16.mxu0 %v1551_v41  ;;  %3043 = vmatprep.subr.bf16.mxu1 %v1553_v15  ;;  %v5460_v41 = vsub.s32 1, %v5294_v26  ;;  %v5462_v15 = vld [vmem:[#allocation7] sm:$0xff]  ;;  %v1622_v53 = vunpack.c.l.s8.bf16 %v614_v12  ;;  %v1624_v16 = vunpack.c.l.s8.bf16 %v616_v13 }
 0x44c   :  { %2716 = vmatpush1.bf16.msra.mxu0 %v1550_v17  ;;  %3044 = vmatpush1.bf16.msra.mxu1 %v1552_v18  ;;  %v1631_v17 = vunpack.c.h.s8.bf16 %v615_v8  ;;  %v1633_v18 = vunpack.c.h.s8.bf16 %v617_v10 }
 0x44d   :  { %2717 = vmatprep.subr.bf16.mxu0 %v1559_v40  ;;  %3045 = vmatprep.subr.bf16.mxu1 %v1561_v19  ;;  %v3087_v40 = vrot.slane %v5462_v15, %v5460_v41  ;;  %v623_v19 = vld [vmem:[#allocation5 + $0xfe8] sm:$0xff] }
 0x44e   :  { %v1647_v34 = vunpack.c.h.s8.bf16 %v623_v19 }
 0x450   :  { %2718 = vmatpush1.bf16.msra.mxu0 %v1558_v25  ;;  %3046 = vmatpush1.bf16.msra.mxu1 %v1560_v51  ;;  %v1630_v25 = vunpack.c.h.s8.bf16 %v614_v12  ;;  %v1632_v51 = vunpack.c.h.s8.bf16 %v616_v13 }
 0x451   :  { %2719 = vmatprep.subr.bf16.mxu0 %v1567_v36  ;;  %3047 = vmatprep.subr.bf16.mxu1 %v1569_v27  ;;  %v1639_v36 = vunpack.c.l.s8.bf16 %v623_v19  ;;  %v1641_v27 = vunpack.c.l.s8.bf16 %v625_v20  ;;  %v3210_v20 = vld [vmem:[#allocation10 + $0xc0] sm:$0xff] }
 0x454   :  { %2720 = vmatpush1.bf16.msra.mxu0 %v1566_v30  ;;  %3048 = vmatpush1.bf16.msra.mxu1 %v1568_v32  ;;  %v3121_v30 = vmul.f32 %v3087_v40, %v5439_v24  ;;  %v3137_v32 = vrot.slane %v5466_v6, %v5460_v41 }
 0x455   :  { %2721 = vmatprep.subr.bf16.mxu0 %v1575_v58  ;;  %3049 = vmatprep.subr.bf16.mxu1 %v1577_v33  ;;  %v1638_v58 = vunpack.c.l.s8.bf16 %v622_v28  ;;  %v1640_v33 = vunpack.c.l.s8.bf16 %v624_v29 }
 0x458   :  { %2722 = vmatpush1.bf16.msra.mxu0 %v1574_v38  ;;  %3050 = vmatpush1.bf16.msra.mxu1 %v1576_v39  ;;  %v3171_v38 = vadd.f32 %v3137_v32, %v3121_v30  ;;  %v3187_v39 = vld [vmem:[#allocation10 + $0x8] sm:$0xff]  ;;  %v3221_v32 = vld [vmem:[#allocation10 + $0x118] sm:$0xff] }
 0x459   :  { %2723 = vmatprep.subr.bf16.mxu0 %v1583_v42  ;;  %3051 = vmatprep.subr.bf16.mxu1 %v1585_v43  ;;  %v3189_v42 = vld [vmem:[#allocation10 + $0x18] sm:$0xff]  ;;  %v1646_v43 = vunpack.c.h.s8.bf16 %v622_v28  ;;  %v3443_v24 = vunpack.c.l.s8.bf16 %v3187_v39  ;;  %v3219_v30 = vld [vmem:[#allocation10 + $0x108] sm:$0xff] }
 0x45a   :  { %v3445_v4 = vunpack.c.l.s8.bf16 %v3189_v42 }
 0x45c   :  { %2724 = vmatpush1.bf16.msra.mxu0 %v1582_v45  ;;  %3052 = vmatpush1.bf16.msra.mxu1 %v1584_v46  ;;  %v3186_v45 = vld [vmem:[#allocation10] sm:$0xff]  ;;  %v3179_v46 = vmax.f32 %v3171_v38, 0.0  ;;  %v3509_v38 = vunpack.c.l.s8.bf16 %v3221_v32 }
 0x45d   :  { %2725 = vmatprep.subr.bf16.mxu0 %v1591_v47  ;;  %3053 = vmatprep.subr.bf16.mxu1 %v1593_v49  ;;  %v3188_v47 = vld [vmem:[#allocation10 + $0x10] sm:$0xff]  ;;  %v3442_v49 = vunpack.c.l.s8.bf16 %v3186_v45  ;;  %v3450_v57 = vunpack.c.h.s8.bf16 %v3186_v45  ;;  %v3229_v45 = vld [vmem:[#allocation10 + $0x158] sm:$0xff] }
 0x45e   :  { %v3444_v61 = vunpack.c.l.s8.bf16 %v3188_v47  ;;  %v5471_v52 = vpack.c.bf16 %v3179_v46, %v3179_v46  ;;  %v3452_v63 = vunpack.c.h.s8.bf16 %v3188_v47 }
 0x460   :  { %2726 = vmatpush1.bf16.msra.mxu0 %v1590_v50  ;;  %3054 = vmatpush1.bf16.msra.mxu1 %v1592_v54  ;;  %v3451_v50 = vunpack.c.h.s8.bf16 %v3187_v39  ;;  %v3453_v54 = vunpack.c.h.s8.bf16 %v3189_v42  ;;  %v3220_v39 = vld [vmem:[#allocation10 + $0x110] sm:$0xff] }
 0x461   :  { %2727 = vmatprep.subr.bf16.mxu0 %v1599_v55  ;;  %3055 = vmatprep.subr.bf16.mxu1 %v1601_v56  ;;  %v3195_v55 = vld [vmem:[#allocation10 + $0x48] sm:$0xff]  ;;  %v3197_v56 = vld [vmem:[#allocation10 + $0x58] sm:$0xff]  ;;  %v3516_v47 = vunpack.c.h.s8.bf16 %v3220_v39 }
 0x462   :  { %v3467_v2 = vunpack.c.h.s8.bf16 %v3195_v55 }
 0x464   :  { %2728 = vmatpush1.bf16.msra.mxu0 %v1598_v0  ;;  %3056 = vmatpush1.bf16.msra.mxu1 %v1600_v5  ;;  %v3459_v0 = vunpack.c.l.s8.bf16 %v3195_v55  ;;  %v3194_v5 = vld [vmem:[#allocation10 + $0x40] sm:$0xff] }
 0x465   :  { %2729 = vmatprep.subr.bf16.mxu0 %v1607_v3  ;;  %3057 = vmatprep.subr.bf16.mxu1 %v1609_v14  ;;  %v3461_v3 = vunpack.c.l.s8.bf16 %v3197_v56  ;;  %v3196_v14 = vld [vmem:[#allocation10 + $0x50] sm:$0xff]  ;;  %v3458_v1 = vunpack.c.l.s8.bf16 %v3194_v5 }
 0x466   :  { %v3468_v8 = vunpack.c.h.s8.bf16 %v3196_v14 }
 0x468   :  { %2730 = vmatpush1.bf16.msra.mxu0 %v1606_v59  ;;  %3058 = vmatpush1.bf16.msra.mxu1 %v1608_v35  ;;  %v3469_v59 = vunpack.c.h.s8.bf16 %v3197_v56  ;;  %v3203_v35 = vld [vmem:[#allocation10 + $0x88] sm:$0xff] }
 0x469   :  { %2731 = vmatprep.subr.bf16.mxu0 %v1615_v48  ;;  %3059 = vmatprep.subr.bf16.mxu1 %v1617_v7  ;;  %v3205_v48 = vld [vmem:[#allocation10 + $0x98] sm:$0xff]  ;;  %v3466_v7 = vunpack.c.h.s8.bf16 %v3194_v5  ;;  %v3475_v10 = vunpack.c.l.s8.bf16 %v3203_v35  ;;  %v3483_v13 = vunpack.c.h.s8.bf16 %v3203_v35  ;;  %v3236_v35 = vld [vmem:[#allocation10 + $0x190] sm:$0xff] }
 0x46a   :  { %v3237_v5 = vld [vmem:[#allocation10 + $0x198] sm:$0xff] }
 0x46c   :  { %2732 = vmatpush1.bf16.msra.mxu0 %v1614_v9  ;;  %3060 = vmatpush1.bf16.msra.mxu1 %v1616_v21  ;;  %v3202_v9 = vld [vmem:[#allocation10 + $0x80] sm:$0xff]  ;;  %v3477_v21 = vunpack.c.l.s8.bf16 %v3205_v48 }
 0x46d   :  { %2733 = vmatprep.subr.bf16.mxu0 %v1623_v31  ;;  %3061 = vmatprep.subr.bf16.mxu1 %v1625_v11  ;;  %v3204_v31 = vld [vmem:[#allocation10 + $0x90] sm:$0xff]  ;;  %v3474_v11 = vunpack.c.l.s8.bf16 %v3202_v9 }
 0x46e   :  { %v3476_v12 = vunpack.c.l.s8.bf16 %v3204_v31  ;;  %v3484_v40 = vunpack.c.h.s8.bf16 %v3204_v31  ;;  %v3243_v31 = vld [vmem:[#allocation10 + $0x1c8] sm:$0xff] }
 0x470   :  { %2734 = vmatpush1.bf16.msra.mxu0 %v1622_v53  ;;  %3062 = vmatpush1.bf16.msra.mxu1 %v1624_v16  ;;  %v3485_v53 = vunpack.c.h.s8.bf16 %v3205_v48  ;;  %v3211_v16 = vld [vmem:[#allocation10 + $0xc8] sm:$0xff]  ;;  %v5481_v48 = vsub.s32 3, %v5294_v26 }
 0x471   :  { %2735 = vmatprep.subr.bf16.mxu0 %v1631_v17  ;;  %3063 = vmatprep.subr.bf16.mxu1 %v1633_v18  ;;  %v3213_v17 = vld [vmem:[#allocation10 + $0xd8] sm:$0xff]  ;;  %v3482_v18 = vunpack.c.h.s8.bf16 %v3202_v9  ;;  %v3491_v19 = vunpack.c.l.s8.bf16 %v3211_v16  ;;  %v3499_v28 = vunpack.c.h.s8.bf16 %v3211_v16 }
 0x472   :  { %v3501_v29 = vunpack.c.h.s8.bf16 %v3213_v17 }
 0x474   :  { %2736 = vmatpush1.bf16.msra.mxu0 %v1630_v25  ;;  %3064 = vmatpush1.bf16.msra.mxu1 %v1632_v51  ;;  %v3493_v25 = vunpack.c.l.s8.bf16 %v3213_v17  ;;  %v3212_v51 = vld [vmem:[#allocation10 + $0xd0] sm:$0xff]  ;;  %v3548_v17 = vunpack.c.h.s8.bf16 %v3236_v35 }
 0x475   :  { %2737 = vmatprep.subr.bf16.mxu0 %v1639_v36  ;;  %3065 = vmatprep.subr.bf16.mxu1 %v1641_v27  ;;  %v3490_v36 = vunpack.c.l.s8.bf16 %v3210_v20  ;;  %v3492_v27 = vunpack.c.l.s8.bf16 %v3212_v51 }
 0x478   :  { %2738 = vmatpush1.bf16.msra.mxu0 %v1638_v58  ;;  %3066 = vmatpush1.bf16.msra.mxu1 %v1640_v33  ;;  %v3498_v58 = vunpack.c.h.s8.bf16 %v3210_v20  ;;  %v3500_v33 = vunpack.c.h.s8.bf16 %v3212_v51  ;;  %v3244_v20 = vld [vmem:[#allocation10 + $0x1d0] sm:$0xff]  ;;  %v3145_v51 = vrot.slane %v5466_v6, %v5481_v48 }
 0x479   :  { %2739 = vmatprep.subr.bf16.mxu0 %v1647_v34  ;;  %3067 = vmatprep.subr.bf16.mxu1 %v1649_v37  ;;  %v3507_v34 = vunpack.c.l.s8.bf16 %v3219_v30  ;;  %v3218_v37 = vld [vmem:[#allocation10 + $0x100] sm:$0xff] }
 0x47a   :  { %v3506_v42 = vunpack.c.l.s8.bf16 %v3218_v37  ;;  %v3514_v46 = vunpack.c.h.s8.bf16 %v3218_v37 }
 0x47c   :  { %2740 = vmatpush1.bf16.msra.mxu0 %v1646_v43  ;;  %3068 = vmatpush1.bf16.msra.mxu1 %v1648_v44  ;;  %v3508_v43 = vunpack.c.l.s8.bf16 %v3220_v39  ;;  %v3515_v44 = vunpack.c.h.s8.bf16 %v3219_v30  ;;  %v3251_v30 = vld [vmem:[#allocation10 + $0x208] sm:$0xff] }
 0x47d   :  { %3962 = vmatprep.subr.bf16.mxu0 %v3443_v24  ;;  %4126 = vmatprep.subr.bf16.mxu1 %v3445_v4  ;;  %v3517_v24 = vunpack.c.h.s8.bf16 %v3221_v32  ;;  %v3227_v4 = vld [vmem:[#allocation10 + $0x148] sm:$0xff]  ;;  %v3571_v37 = vunpack.c.l.s8.bf16 %v3251_v30 }
 0x47f   :  { %2742 = vmatmul.mubr.bf16.vlgmr.msra.gmra.mrb[4].mxu0 %v5417_v62  ;;  %3070 = vmatmul.mubr.bf16.vlgmr.msra.gmra.mrb[4].mxu1 %v5417_v62  ;;  %v3460_v62 = vunpack.c.l.s8.bf16 %v3196_v14  ;;  %v5478_v14 = vsub.s32 0, %v5294_v26 }
 0x480   :  { %3963 = vmatpush1.bf16.msra.mxu0 %v3442_v49  ;;  %3994 = vmatprep.mubr.bf16.mxu0 %v5471_v52  ;;  %v3523_v49 = vunpack.c.l.s8.bf16 %v3227_v4 }
 0x481   :  { %4127 = vmatpush1.bf16.msra.mxu1 %v3444_v61  ;;  %4158 = vmatprep.mubr.bf16.mxu1 %v5471_v52  ;;  %v3226_v61 = vld [vmem:[#allocation10 + $0x140] sm:$0xff]  ;;  %v3133_v16 = vrot.slane %v5466_v6, %v5478_v14 }
 0x482   :  { %3964 = vmatprep.subr.bf16.mxu0 %v3451_v50  ;;  %4128 = vmatprep.subr.bf16.mxu1 %v3453_v54  ;;  %v3525_v50 = vunpack.c.l.s8.bf16 %v3229_v45  ;;  %v3228_v54 = vld [vmem:[#allocation10 + $0x150] sm:$0xff]  ;;  %v3522_v55 = vunpack.c.l.s8.bf16 %v3226_v61 }
 0x483   :  { %v3524_v56 = vunpack.c.l.s8.bf16 %v3228_v54 }
 0x484   :  { %3965 = vmatpush1.bf16.msra.mxu0 %v3450_v57  ;;  %v3531_v57 = vunpack.c.h.s8.bf16 %v3227_v4 }
 0x485   :  { %4129 = vmatpush1.bf16.msra.mxu1 %v3452_v63  ;;  %3966 = vmatprep.subr.bf16.mxu0 %v3459_v0  ;;  %v3533_v63 = vunpack.c.h.s8.bf16 %v3229_v45  ;;  %v3235_v0 = vld [vmem:[#allocation10 + $0x188] sm:$0xff]  ;;  %v3579_v45 = vunpack.c.h.s8.bf16 %v3251_v30 }
 0x486   :  { %4130 = vmatprep.subr.bf16.mxu1 %v3461_v3  ;;  %v3530_v3 = vunpack.c.h.s8.bf16 %v3226_v61  ;;  %v3547_v9 = vunpack.c.h.s8.bf16 %v3235_v0  ;;  %v3261_v61 = vld [vmem:[#allocation10 + $0x258] sm:$0xff] }
 0x488   :  { %3967 = vmatpush1.bf16.msra.mxu0 %v3458_v1  ;;  %v3532_v1 = vunpack.c.h.s8.bf16 %v3228_v54 }
 0x489   :  { %4131 = vmatpush1.bf16.msra.mxu1 %v3460_v62  ;;  %3968 = vmatprep.subr.bf16.mxu0 %v3467_v2  ;;  %v3539_v62 = vunpack.c.l.s8.bf16 %v3235_v0  ;;  %v3234_v2 = vld [vmem:[#allocation10 + $0x180] sm:$0xff] }
 0x48a   :  { %4132 = vmatprep.subr.bf16.mxu1 %v3469_v59  ;;  %v3541_v59 = vunpack.c.l.s8.bf16 %v3237_v5 }
 0x48c   :  { %3969 = vmatpush1.bf16.msra.mxu0 %v3466_v7  ;;  %v3538_v7 = vunpack.c.l.s8.bf16 %v3234_v2 }
 0x48d   :  { %4133 = vmatpush1.bf16.msra.mxu1 %v3468_v8  ;;  %3970 = vmatprep.subr.bf16.mxu0 %v3475_v10  ;;  %v3083_v8 = vrot.slane %v5462_v15, %v5478_v14  ;;  %v3540_v10 = vunpack.c.l.s8.bf16 %v3236_v35 }
 0x48e   :  { %4134 = vmatprep.subr.bf16.mxu1 %v3477_v21  ;;  %v3549_v21 = vunpack.c.h.s8.bf16 %v3237_v5 }
 0x490   :  { %3971 = vmatpush1.bf16.msra.mxu0 %v3474_v11  ;;  %v3095_v11 = vrot.slane %v5462_v15, %v5481_v48 }
 0x491   :  { %4135 = vmatpush1.bf16.msra.mxu1 %v3476_v12  ;;  %3972 = vmatprep.subr.bf16.mxu0 %v3483_v13  ;;  %v3245_v12 = vld [vmem:[#allocation10 + $0x1d8] sm:$0xff]  ;;  %v3546_v13 = vunpack.c.h.s8.bf16 %v3234_v2 }
 0x492   :  { %4136 = vmatprep.subr.bf16.mxu1 %v3485_v53  ;;  %v3120_v53 = vmul.f32 %v3083_v8, %v5435_v23  ;;  %v3556_v23 = vunpack.c.l.s8.bf16 %v3244_v20  ;;  %v3269_v2 = vld [vmem:[#allocation10 + $0x298] sm:$0xff]  ;;  %v3266_v8 = vld [vmem:[#allocation10 + $0x280] sm:$0xff] }
 0x494   :  { %3973 = vmatpush1.bf16.msra.mxu0 %v3482_v18  ;;  %v3555_v18 = vunpack.c.l.s8.bf16 %v3243_v31 }
 0x495   :  { %4137 = vmatpush1.bf16.msra.mxu1 %v3484_v40  ;;  %3974 = vmatprep.subr.bf16.mxu0 %v3491_v19  ;;  %v3242_v40 = vld [vmem:[#allocation10 + $0x1c0] sm:$0xff]  ;;  %v3557_v19 = vunpack.c.l.s8.bf16 %v3245_v12 }
 0x496   :  { %4138 = vmatprep.subr.bf16.mxu1 %v3493_v25  ;;  %v3123_v25 = vmul.f32 %v3095_v11, %v5441_v60  ;;  %v3564_v60 = vunpack.c.h.s8.bf16 %v3244_v20  ;;  %v3276_v20 = vld [vmem:[#allocation10 + $0x2d0] sm:$0xff] }
 0x497   :  { %v3628_v30 = vunpack.c.h.s8.bf16 %v3276_v20 }
 0x498   :  { %3975 = vmatpush1.bf16.msra.mxu0 %v3490_v36  ;;  %v3554_v36 = vunpack.c.l.s8.bf16 %v3242_v40  ;;  %v3173_v32 = vadd.f32 %v3145_v51, %v3123_v25  ;;  %v3620_v51 = vunpack.c.l.s8.bf16 %v3276_v20 }
 0x499   :  { %4139 = vmatpush1.bf16.msra.mxu1 %v3492_v27  ;;  %3976 = vmatprep.subr.bf16.mxu0 %v3499_v28  ;;  %v3170_v27 = vadd.f32 %v3133_v16, %v3120_v53  ;;  %v3563_v28 = vunpack.c.h.s8.bf16 %v3243_v31  ;;  %v3277_v53 = vld [vmem:[#allocation10 + $0x2d8] sm:$0xff]  ;;  %v3610_v16 = vunpack.c.h.s8.bf16 %v3266_v8 }
 0x49a   :  { %4140 = vmatprep.subr.bf16.mxu1 %v3501_v29  ;;  %v3565_v29 = vunpack.c.h.s8.bf16 %v3245_v12  ;;  %v3613_v12 = vunpack.c.h.s8.bf16 %v3269_v2 }
 0x49c   :  { %3977 = vmatpush1.bf16.msra.mxu0 %v3498_v58  ;;  %v3253_v58 = vld [vmem:[#allocation10 + $0x218] sm:$0xff] }
 0x49d   :  { %4141 = vmatpush1.bf16.msra.mxu1 %v3500_v33  ;;  %3978 = vmatprep.subr.bf16.mxu0 %v3507_v34  ;;  %v3562_v33 = vunpack.c.h.s8.bf16 %v3242_v40  ;;  %v3178_v34 = vmax.f32 %v3170_v27, 0.0  ;;  %v3573_v39 = vunpack.c.l.s8.bf16 %v3253_v58  ;;  %v3274_v40 = vld [vmem:[#allocation10 + $0x2c0] sm:$0xff]  ;;  %v3629_v27 = vunpack.c.h.s8.bf16 %v3277_v53 }
 0x49e   :  { %4142 = vmatprep.subr.bf16.mxu1 %v3509_v38  ;;  %v3250_v38 = vld [vmem:[#allocation10 + $0x200] sm:$0xff]  ;;  %v3618_v25 = vunpack.c.l.s8.bf16 %v3274_v40 }
 0x4a0   :  { %3979 = vmatpush1.bf16.msra.mxu0 %v3506_v42  ;;  %v3252_v42 = vld [vmem:[#allocation10 + $0x210] sm:$0xff] }
 0x4a1   :  { %4143 = vmatpush1.bf16.msra.mxu1 %v3508_v43  ;;  %3980 = vmatprep.subr.bf16.mxu0 %v3515_v44  ;;  %v3181_v43 = vmax.f32 %v3173_v32, 0.0  ;;  %v3570_v44 = vunpack.c.l.s8.bf16 %v3250_v38  ;;  %v3572_v4 = vunpack.c.l.s8.bf16 %v3252_v42  ;;  %v3580_v54 = vunpack.c.h.s8.bf16 %v3252_v42  ;;  %v3291_v42 = vld [vmem:[#allocation10 + $0x348] sm:$0xff] }
 0x4a2   :  { %4144 = vmatprep.subr.bf16.mxu1 %v3517_v24  ;;  %v5493_v24 = vpack.c.bf16 %v3178_v34, %v3178_v34  ;;  %v3284_v34 = vld [vmem:[#allocation10 + $0x310] sm:$0xff] }
 0x4a4   :  { %3981 = vmatpush1.bf16.msra.mxu0 %v3514_v46  ;;  %v3259_v46 = vld [vmem:[#allocation10 + $0x248] sm:$0xff] }
 0x4a5   :  { %4145 = vmatpush1.bf16.msra.mxu1 %v3516_v47  ;;  %3982 = vmatprep.subr.bf16.mxu0 %v3523_v49  ;;  %v5495_v47 = vpack.c.bf16 %v3181_v43, %v3181_v43  ;;  %v3581_v49 = vunpack.c.h.s8.bf16 %v3253_v58  ;;  %v3282_v58 = vld [vmem:[#allocation10 + $0x300] sm:$0xff]  ;;  %v3293_v43 = vld [vmem:[#allocation10 + $0x358] sm:$0xff] }
 0x4a6   :  { %4146 = vmatprep.subr.bf16.mxu1 %v3525_v50  ;;  %v3578_v50 = vunpack.c.h.s8.bf16 %v3250_v38 }
 0x4a8   :  { %3983 = vmatpush1.bf16.msra.mxu0 %v3522_v55  ;;  %v3587_v55 = vunpack.c.l.s8.bf16 %v3259_v46 }
 0x4a9   :  { %4147 = vmatpush1.bf16.msra.mxu1 %v3524_v56  ;;  %3984 = vmatprep.subr.bf16.mxu0 %v3531_v57  ;;  %v3258_v56 = vld [vmem:[#allocation10 + $0x240] sm:$0xff]  ;;  %v3589_v57 = vunpack.c.l.s8.bf16 %v3261_v61 }
 0x4aa   :  { %4148 = vmatprep.subr.bf16.mxu1 %v3533_v63  ;;  %v3260_v63 = vld [vmem:[#allocation10 + $0x250] sm:$0xff]  ;;  %v3586_v0 = vunpack.c.l.s8.bf16 %v3258_v56 }
 0x4ab   :  { %v3588_v5 = vunpack.c.l.s8.bf16 %v3260_v63  ;;  %v3596_v35 = vunpack.c.h.s8.bf16 %v3260_v63  ;;  %v3301_v63 = vld [vmem:[#allocation10 + $0x398] sm:$0xff] }
 0x4ac   :  { %3985 = vmatpush1.bf16.msra.mxu0 %v3530_v3  ;;  %v3595_v3 = vunpack.c.h.s8.bf16 %v3259_v46  ;;  %v3290_v46 = vld [vmem:[#allocation10 + $0x340] sm:$0xff] }
 0x4ad   :  { %4149 = vmatpush1.bf16.msra.mxu1 %v3532_v1  ;;  %3986 = vmatprep.subr.bf16.mxu0 %v3539_v62  ;;  %v3597_v1 = vunpack.c.h.s8.bf16 %v3261_v61  ;;  %v3267_v62 = vld [vmem:[#allocation10 + $0x288] sm:$0xff]  ;;  %v3292_v61 = vld [vmem:[#allocation10 + $0x350] sm:$0xff] }
 0x4ae   :  { %4150 = vmatprep.subr.bf16.mxu1 %v3541_v59  ;;  %v3594_v59 = vunpack.c.h.s8.bf16 %v3258_v56  ;;  %v3611_v11 = vunpack.c.h.s8.bf16 %v3267_v62  ;;  %v3661_v56 = vunpack.c.h.s8.bf16 %v3293_v43 }
 0x4b0   :  { %3987 = vmatpush1.bf16.msra.mxu0 %v3538_v7  ;;  %v3603_v7 = vunpack.c.l.s8.bf16 %v3267_v62  ;;  %v3298_v62 = vld [vmem:[#allocation10 + $0x380] sm:$0xff] }
 0x4b1   :  { %4151 = vmatpush1.bf16.msra.mxu1 %v3540_v10  ;;  %3988 = vmatprep.subr.bf16.mxu0 %v3547_v9  ;;  %v3605_v10 = vunpack.c.l.s8.bf16 %v3269_v2  ;;  %v3268_v9 = vld [vmem:[#allocation10 + $0x290] sm:$0xff]  ;;  %v3669_v2 = vunpack.c.l.s8.bf16 %v3301_v63 }
 0x4b2   :  { %4152 = vmatprep.subr.bf16.mxu1 %v3549_v21  ;;  %v3602_v21 = vunpack.c.l.s8.bf16 %v3266_v8  ;;  %v3604_v31 = vunpack.c.l.s8.bf16 %v3268_v9 }
 0x4b4   :  { %3989 = vmatpush1.bf16.msra.mxu0 %v3546_v13  ;;  %v3275_v13 = vld [vmem:[#allocation10 + $0x2c8] sm:$0xff] }
 0x4b5   :  { %4153 = vmatpush1.bf16.msra.mxu1 %v3548_v17  ;;  %3990 = vmatprep.subr.bf16.mxu0 %v3555_v18  ;;  %v3612_v17 = vunpack.c.h.s8.bf16 %v3268_v9  ;;  %v3619_v18 = vunpack.c.l.s8.bf16 %v3275_v13  ;;  %v3677_v9 = vunpack.c.h.s8.bf16 %v3301_v63 }
 0x4b6   :  { %4154 = vmatprep.subr.bf16.mxu1 %v3557_v19  ;;  %v3621_v19 = vunpack.c.l.s8.bf16 %v3277_v53 }
 0x4b8   :  { %3991 = vmatpush1.bf16.msra.mxu0 %v3554_v36  ;;  %v3627_v36 = vunpack.c.h.s8.bf16 %v3275_v13 }
 0x4b9   :  { %4155 = vmatpush1.bf16.msra.mxu1 %v3556_v23  ;;  %3992 = vmatprep.subr.bf16.mxu0 %v3563_v28  ;;  %v3283_v23 = vld [vmem:[#allocation10 + $0x308] sm:$0xff]  ;;  %v3285_v28 = vld [vmem:[#allocation10 + $0x318] sm:$0xff] }
 0x4ba   :  { %4156 = vmatprep.subr.bf16.mxu1 %v3565_v29  ;;  %v3626_v29 = vunpack.c.h.s8.bf16 %v3274_v40  ;;  %v3635_v32 = vunpack.c.l.s8.bf16 %v3283_v23  ;;  %v3643_v38 = vunpack.c.h.s8.bf16 %v3283_v23 }
 0x4bc   :  { %3993 = vmatpush1.bf16.msra.mxu0 %v3562_v33  ;;  %v3637_v33 = vunpack.c.l.s8.bf16 %v3285_v28 }
 0x4bd   :  { %4157 = vmatpush1.bf16.msra.mxu1 %v3564_v60  ;;  %4003 = vmatprep.subr.bf16.mxu0 %v3571_v37  ;;  %v3634_v60 = vunpack.c.l.s8.bf16 %v3282_v58  ;;  %v3636_v37 = vunpack.c.l.s8.bf16 %v3284_v34 }
 0x4be   :  { %4167 = vmatprep.subr.bf16.mxu1 %v3573_v39  ;;  %v3645_v39 = vunpack.c.h.s8.bf16 %v3285_v28 }
 0x4bf   :  { %3995 = vmatmul.mubr.bf16.vlgmr.msra.gmra.mrb[8].mxu0 %v5493_v24 }
 0x4c0   :  { %4159 = vmatmul.mubr.bf16.vlgmr.msra.gmra.mrb[8].mxu1 %v5493_v24  ;;  %4004 = vmatpush1.bf16.msra.mxu0 %v3570_v44  ;;  %v3642_v44 = vunpack.c.h.s8.bf16 %v3282_v58 }
 0x4c1   :  { %4035 = vmatprep.mubr.bf16.mxu0 %v5495_v47  ;;  %4168 = vmatpush1.bf16.msra.mxu1 %v3572_v4  ;;  %v3644_v4 = vunpack.c.h.s8.bf16 %v3284_v34 }
 0x4c2   :  { %4199 = vmatprep.mubr.bf16.mxu1 %v5495_v47  ;;  %4005 = vmatprep.subr.bf16.mxu0 %v3579_v45  ;;  %v3651_v45 = vunpack.c.l.s8.bf16 %v3291_v42 }
 0x4c3   :  { %4169 = vmatprep.subr.bf16.mxu1 %v3581_v49  ;;  %v3653_v49 = vunpack.c.l.s8.bf16 %v3293_v43 }
 0x4c4   :  { %4006 = vmatpush1.bf16.msra.mxu0 %v3578_v50  ;;  %v3650_v50 = vunpack.c.l.s8.bf16 %v3290_v46 }
 0x4c5   :  { %4170 = vmatpush1.bf16.msra.mxu1 %v3580_v54  ;;  %4007 = vmatprep.subr.bf16.mxu0 %v3587_v55  ;;  %v3652_v54 = vunpack.c.l.s8.bf16 %v3292_v61  ;;  %v3659_v55 = vunpack.c.h.s8.bf16 %v3291_v42 }
 0x4c6   :  { %4171 = vmatprep.subr.bf16.mxu1 %v3589_v57  ;;  %v3299_v57 = vld [vmem:[#allocation10 + $0x388] sm:$0xff] }
 0x4c8   :  { %4008 = vmatpush1.bf16.msra.mxu0 %v3586_v0  ;;  %v3658_v0 = vunpack.c.h.s8.bf16 %v3290_v46  ;;  %v3324_v46 = vld [vmem:[#allocation10 + $0x450] sm:$0xff] }
 0x4c9   :  { %4172 = vmatpush1.bf16.msra.mxu1 %v3588_v5  ;;  %4009 = vmatprep.subr.bf16.mxu0 %v3595_v3  ;;  %v5502_v5 = vsub.s32 2, %v5294_v26  ;;  %v3660_v3 = vunpack.c.h.s8.bf16 %v3292_v61  ;;  %v3716_v61 = vunpack.c.l.s8.bf16 %v3324_v46  ;;  %v3724_v63 = vunpack.c.h.s8.bf16 %v3324_v46 }
 0x4ca   :  { %4173 = vmatprep.subr.bf16.mxu1 %v3597_v1  ;;  %v3667_v1 = vunpack.c.l.s8.bf16 %v3299_v57 }
 0x4cb   :  { %v3141_v13 = vrot.slane %v5466_v6, %v5502_v5 }
 0x4cc   :  { %4010 = vmatpush1.bf16.msra.mxu0 %v3594_v59  ;;  %v3300_v59 = vld [vmem:[#allocation10 + $0x390] sm:$0xff] }
 0x4cd   :  { %4174 = vmatpush1.bf16.msra.mxu1 %v3596_v35  ;;  %4011 = vmatprep.subr.bf16.mxu0 %v3603_v7  ;;  %v3666_v35 = vunpack.c.l.s8.bf16 %v3298_v62  ;;  %v3091_v7 = vrot.slane %v5462_v15, %v5502_v5  ;;  %v3668_v8 = vunpack.c.l.s8.bf16 %v3300_v59  ;;  %v3676_v53 = vunpack.c.h.s8.bf16 %v3300_v59  ;;  %v3306_v15 = vld [vmem:[#allocation10 + $0x3c0] sm:$0xff] }
 0x4ce   :  { %4175 = vmatprep.subr.bf16.mxu1 %v3605_v10  ;;  %v3675_v10 = vunpack.c.h.s8.bf16 %v3299_v57  ;;  %v3682_v40 = vunpack.c.l.s8.bf16 %v3306_v15  ;;  %v3690_v6 = vunpack.c.h.s8.bf16 %v3306_v15 }
 0x4d0   :  { %4012 = vmatpush1.bf16.msra.mxu0 %v3602_v21  ;;  %v3307_v21 = vld [vmem:[#allocation10 + $0x3c8] sm:$0xff] }
 0x4d1   :  { %4176 = vmatpush1.bf16.msra.mxu1 %v3604_v31  ;;  %4013 = vmatprep.subr.bf16.mxu0 %v3611_v11  ;;  %v3309_v31 = vld [vmem:[#allocation10 + $0x3d8] sm:$0xff]  ;;  %v3674_v11 = vunpack.c.h.s8.bf16 %v3298_v62  ;;  %v3332_v62 = vld [vmem:[#allocation10 + $0x490] sm:$0xff] }
 0x4d2   :  { %4177 = vmatprep.subr.bf16.mxu1 %v3613_v12  ;;  %v3122_v12 = vmul.f32 %v3091_v7, %v5437_v22  ;;  %v3693_v22 = vunpack.c.h.s8.bf16 %v3309_v31  ;;  %v3732_v59 = vunpack.c.l.s8.bf16 %v3332_v62 }
 0x4d4   :  { %4014 = vmatpush1.bf16.msra.mxu0 %v3610_v16  ;;  %v3683_v16 = vunpack.c.l.s8.bf16 %v3307_v21 }
 0x4d5   :  { %4178 = vmatpush1.bf16.msra.mxu1 %v3612_v17  ;;  %4015 = vmatprep.subr.bf16.mxu0 %v3619_v18  ;;  %v3685_v17 = vunpack.c.l.s8.bf16 %v3309_v31  ;;  %v3308_v18 = vld [vmem:[#allocation10 + $0x3d0] sm:$0xff] }
 0x4d6   :  { %4179 = vmatprep.subr.bf16.mxu1 %v3621_v19  ;;  %v3172_v19 = vadd.f32 %v3141_v13, %v3122_v12  ;;  %v3684_v20 = vunpack.c.l.s8.bf16 %v3308_v18  ;;  %v3692_v23 = vunpack.c.h.s8.bf16 %v3308_v18  ;;  %v3340_v13 = vld [vmem:[#allocation10 + $0x4d0] sm:$0xff]  ;;  %v3347_v18 = vld [vmem:[#allocation10 + $0x508] sm:$0xff] }
 0x4d8   :  { %4016 = vmatpush1.bf16.msra.mxu0 %v3618_v25  ;;  %v3691_v25 = vunpack.c.h.s8.bf16 %v3307_v21  ;;  %v3740_v21 = vunpack.c.h.s8.bf16 %v3332_v62 }
 0x4d9   :  { %4180 = vmatpush1.bf16.msra.mxu1 %v3620_v51  ;;  %4017 = vmatprep.subr.bf16.mxu0 %v3627_v36  ;;  %v3315_v51 = vld [vmem:[#allocation10 + $0x408] sm:$0xff]  ;;  %v3317_v36 = vld [vmem:[#allocation10 + $0x418] sm:$0xff] }
 0x4da   :  { %4181 = vmatprep.subr.bf16.mxu1 %v3629_v27  ;;  %v3180_v27 = vmax.f32 %v3172_v19, 0.0  ;;  %v3699_v28 = vunpack.c.l.s8.bf16 %v3315_v51 }
 0x4dc   :  { %4018 = vmatpush1.bf16.msra.mxu0 %v3626_v29  ;;  %v3314_v29 = vld [vmem:[#allocation10 + $0x400] sm:$0xff] }
 0x4dd   :  { %4182 = vmatpush1.bf16.msra.mxu1 %v3628_v30  ;;  %4019 = vmatprep.subr.bf16.mxu0 %v3635_v32  ;;  %v3701_v30 = vunpack.c.l.s8.bf16 %v3317_v36  ;;  %v3316_v32 = vld [vmem:[#allocation10 + $0x410] sm:$0xff]  ;;  %v3698_v58 = vunpack.c.l.s8.bf16 %v3314_v29  ;;  %v3706_v42 = vunpack.c.h.s8.bf16 %v3314_v29  ;;  %v3355_v29 = vld [vmem:[#allocation10 + $0x548] sm:$0xff] }
 0x4de   :  { %4183 = vmatprep.subr.bf16.mxu1 %v3637_v33  ;;  %v5509_v33 = vpack.c.bf16 %v3180_v27, %v3180_v27  ;;  %v3700_v34 = vunpack.c.l.s8.bf16 %v3316_v32  ;;  %v3708_v43 = vunpack.c.h.s8.bf16 %v3316_v32 }
 0x4e0   :  { %4020 = vmatpush1.bf16.msra.mxu0 %v3634_v60  ;;  %v3707_v60 = vunpack.c.h.s8.bf16 %v3315_v51 }
 0x4e1   :  { %4184 = vmatpush1.bf16.msra.mxu1 %v3636_v37  ;;  %4021 = vmatprep.subr.bf16.mxu0 %v3643_v38  ;;  %v3709_v37 = vunpack.c.h.s8.bf16 %v3317_v36  ;;  %v3323_v38 = vld [vmem:[#allocation10 + $0x448] sm:$0xff]  ;;  %v3348_v36 = vld [vmem:[#allocation10 + $0x510] sm:$0xff] }
 0x4e2   :  { %4185 = vmatprep.subr.bf16.mxu1 %v3645_v39  ;;  %v3325_v39 = vld [vmem:[#allocation10 + $0x458] sm:$0xff]  ;;  %v3764_v27 = vunpack.c.l.s8.bf16 %v3348_v36 }
 0x4e4   :  { %4022 = vmatpush1.bf16.msra.mxu0 %v3642_v44  ;;  %v3715_v44 = vunpack.c.l.s8.bf16 %v3323_v38 }
 0x4e5   :  { %4186 = vmatpush1.bf16.msra.mxu1 %v3644_v4  ;;  %4023 = vmatprep.subr.bf16.mxu0 %v3651_v45  ;;  %v3322_v4 = vld [vmem:[#allocation10 + $0x440] sm:$0xff]  ;;  %v3717_v45 = vunpack.c.l.s8.bf16 %v3325_v39 }
 0x4e6   :  { %4187 = vmatprep.subr.bf16.mxu1 %v3653_v49  ;;  %v3714_v49 = vunpack.c.l.s8.bf16 %v3322_v4  ;;  %v3722_v57 = vunpack.c.h.s8.bf16 %v3322_v4  ;;  %v3363_v4 = vld [vmem:[#allocation10 + $0x588] sm:$0xff] }
 0x4e8   :  { %4024 = vmatpush1.bf16.msra.mxu0 %v3650_v50  ;;  %v3723_v50 = vunpack.c.h.s8.bf16 %v3323_v38  ;;  %v3356_v38 = vld [vmem:[#allocation10 + $0x550] sm:$0xff] }
 0x4e9   :  { %4188 = vmatpush1.bf16.msra.mxu1 %v3652_v54  ;;  %4025 = vmatprep.subr.bf16.mxu0 %v3659_v55  ;;  %v3725_v54 = vunpack.c.h.s8.bf16 %v3325_v39  ;;  %v3331_v55 = vld [vmem:[#allocation10 + $0x488] sm:$0xff] }
 0x4ea   :  { %4189 = vmatprep.subr.bf16.mxu1 %v3661_v56  ;;  %v3333_v56 = vld [vmem:[#allocation10 + $0x498] sm:$0xff] }
 0x4eb   :  { %v3741_v7 = vunpack.c.h.s8.bf16 %v3333_v56 }
 0x4ec   :  { %4026 = vmatpush1.bf16.msra.mxu0 %v3658_v0  ;;  %v3731_v0 = vunpack.c.l.s8.bf16 %v3331_v55 }
 0x4ed   :  { %4190 = vmatpush1.bf16.msra.mxu1 %v3660_v3  ;;  %4027 = vmatprep.subr.bf16.mxu0 %v3667_v1  ;;  %v3330_v3 = vld [vmem:[#allocation10 + $0x480] sm:$0xff]  ;;  %v3733_v1 = vunpack.c.l.s8.bf16 %v3333_v56 }
 0x4ee   :  { %4191 = vmatprep.subr.bf16.mxu1 %v3669_v2  ;;  %v3730_v2 = vunpack.c.l.s8.bf16 %v3330_v3 }
 0x4f0   :  { %4028 = vmatpush1.bf16.msra.mxu0 %v3666_v35  ;;  %v3739_v35 = vunpack.c.h.s8.bf16 %v3331_v55  ;;  %v3364_v55 = vld [vmem:[#allocation10 + $0x590] sm:$0xff] }
 0x4f1   :  { %4192 = vmatpush1.bf16.msra.mxu1 %v3668_v8  ;;  %4029 = vmatprep.subr.bf16.mxu0 %v3675_v10  ;;  %v3339_v8 = vld [vmem:[#allocation10 + $0x4c8] sm:$0xff]  ;;  %v3341_v10 = vld [vmem:[#allocation10 + $0x4d8] sm:$0xff] }
 0x4f2   :  { %4193 = vmatprep.subr.bf16.mxu1 %v3677_v9  ;;  %v3738_v9 = vunpack.c.h.s8.bf16 %v3330_v3  ;;  %v3747_v31 = vunpack.c.l.s8.bf16 %v3339_v8  ;;  %v3749_v12 = vunpack.c.l.s8.bf16 %v3341_v10  ;;  %v3755_v15 = vunpack.c.h.s8.bf16 %v3339_v8  ;;  %v3371_v3 = vld [vmem:[#allocation10 + $0x5c8] sm:$0xff]  ;;  %v3372_v8 = vld [vmem:[#allocation10 + $0x5d0] sm:$0xff] }
 0x4f4   :  { %4030 = vmatpush1.bf16.msra.mxu0 %v3674_v11  ;;  %v3338_v11 = vld [vmem:[#allocation10 + $0x4c0] sm:$0xff] }
 0x4f5   :  { %4194 = vmatpush1.bf16.msra.mxu1 %v3676_v53  ;;  %4031 = vmatprep.subr.bf16.mxu0 %v3683_v16  ;;  %v3746_v53 = vunpack.c.l.s8.bf16 %v3338_v11  ;;  %v3748_v16 = vunpack.c.l.s8.bf16 %v3340_v13  ;;  %v3754_v19 = vunpack.c.h.s8.bf16 %v3338_v11  ;;  %v5513_v11 = vld [vmem:[#allocation10 + $0x608] sm:$0xff] }
 0x4f6   :  { %4195 = vmatprep.subr.bf16.mxu1 %v3685_v17  ;;  %v3757_v17 = vunpack.c.h.s8.bf16 %v3341_v10 }
 0x4f8   :  { %4032 = vmatpush1.bf16.msra.mxu0 %v3682_v40  ;;  %v3349_v40 = vld [vmem:[#allocation10 + $0x518] sm:$0xff] }
 0x4f9   :  { %4196 = vmatpush1.bf16.msra.mxu1 %v3684_v20  ;;  %4033 = vmatprep.subr.bf16.mxu0 %v3691_v25  ;;  %v3756_v20 = vunpack.c.h.s8.bf16 %v3340_v13  ;;  %v3763_v25 = vunpack.c.l.s8.bf16 %v3347_v18  ;;  %v3765_v51 = vunpack.c.l.s8.bf16 %v3349_v40 }
 0x4fa   :  { %4197 = vmatprep.subr.bf16.mxu1 %v3693_v22  ;;  %v3346_v22 = vld [vmem:[#allocation10 + $0x500] sm:$0xff] }
 0x4fb   :  { %v3770_v32 = vunpack.c.h.s8.bf16 %v3346_v22 }
 0x4fc   :  { %4034 = vmatpush1.bf16.msra.mxu0 %v3690_v6  ;;  %v3762_v6 = vunpack.c.l.s8.bf16 %v3346_v22 }
 0x4fd   :  { %4198 = vmatpush1.bf16.msra.mxu1 %v3692_v23  ;;  %4044 = vmatprep.subr.bf16.mxu0 %v3699_v28  ;;  %v3771_v23 = vunpack.c.h.s8.bf16 %v3347_v18  ;;  %v3773_v28 = vunpack.c.h.s8.bf16 %v3349_v40  ;;  %v5523_v18 = vsub.s32 5, %v5294_v26  ;;  %v5526_v40 = vsub.s32 7, %v5294_v26 }
 0x4fe   :  { %4208 = vmatprep.subr.bf16.mxu1 %v3701_v30  ;;  %v3357_v30 = vld [vmem:[#allocation10 + $0x558] sm:$0xff] }
 0x4ff   :  { %4036 = vmatmul.mubr.bf16.vlgmr.msra.gmra.mrb[8].mxu0 %v5509_v33 }
 0x500   :  { %4200 = vmatmul.mubr.bf16.vlgmr.msra.gmra.mrb[8].mxu1 %v5509_v33  ;;  %4045 = vmatpush1.bf16.msra.mxu0 %v3698_v58  ;;  %v3772_v58 = vunpack.c.h.s8.bf16 %v3348_v36 }
 0x501   :  { %4209 = vmatpush1.bf16.msra.mxu1 %v3700_v34  ;;  %4046 = vmatprep.subr.bf16.mxu0 %v3707_v60  ;;  %v3779_v34 = vunpack.c.l.s8.bf16 %v3355_v29  ;;  %v3354_v60 = vld [vmem:[#allocation10 + $0x540] sm:$0xff] }
 0x502   :  { %4210 = vmatprep.subr.bf16.mxu1 %v3709_v37  ;;  %v3781_v37 = vunpack.c.l.s8.bf16 %v3357_v30  ;;  %v3778_v39 = vunpack.c.l.s8.bf16 %v3354_v60  ;;  %v3786_v46 = vunpack.c.h.s8.bf16 %v3354_v60 }
 0x504   :  { %4047 = vmatpush1.bf16.msra.mxu0 %v3706_v42  ;;  %v3780_v42 = vunpack.c.l.s8.bf16 %v3356_v38 }
 0x505   :  { %4211 = vmatpush1.bf16.msra.mxu1 %v3708_v43  ;;  %4048 = vmatprep.subr.bf16.mxu0 %v3715_v44  ;;  %v3787_v43 = vunpack.c.h.s8.bf16 %v3355_v29  ;;  %v3789_v44 = vunpack.c.h.s8.bf16 %v3357_v30 }
 0x506   :  { %4212 = vmatprep.subr.bf16.mxu1 %v3717_v45  ;;  %v3365_v45 = vld [vmem:[#allocation10 + $0x598] sm:$0xff] }
 0x508   :  { %4049 = vmatpush1.bf16.msra.mxu0 %v3714_v49  ;;  %v3788_v49 = vunpack.c.h.s8.bf16 %v3356_v38 }
 0x509   :  { %4213 = vmatpush1.bf16.msra.mxu1 %v3716_v61  ;;  %4050 = vmatprep.subr.bf16.mxu0 %v3723_v50  ;;  %v3795_v61 = vunpack.c.l.s8.bf16 %v3363_v4  ;;  %v3362_v50 = vld [vmem:[#allocation10 + $0x580] sm:$0xff] }
 0x50a   :  { %4214 = vmatprep.subr.bf16.mxu1 %v3725_v54  ;;  %v3797_v54 = vunpack.c.l.s8.bf16 %v3365_v45  ;;  %v3794_v56 = vunpack.c.l.s8.bf16 %v3362_v50  ;;  %v3802_v62 = vunpack.c.h.s8.bf16 %v3362_v50 }
 0x50c   :  { %4051 = vmatpush1.bf16.msra.mxu0 %v3722_v57  ;;  %v3796_v57 = vunpack.c.l.s8.bf16 %v3364_v55 }
 0x50d   :  { %4215 = vmatpush1.bf16.msra.mxu1 %v3724_v63  ;;  %4052 = vmatprep.subr.bf16.mxu0 %v3731_v0  ;;  %v3803_v63 = vunpack.c.h.s8.bf16 %v3363_v4  ;;  %v3805_v0 = vunpack.c.h.s8.bf16 %v3365_v45  ;;  %v3378_v45 = vld [vmem:[#allocation10 + $0x600] sm:$0xff] }
 0x50e   :  { %4216 = vmatprep.subr.bf16.mxu1 %v3733_v1  ;;  %v3373_v1 = vld [vmem:[#allocation10 + $0x5d8] sm:$0xff] }
 0x510   :  { %4053 = vmatpush1.bf16.msra.mxu0 %v3730_v2  ;;  %v3804_v2 = vunpack.c.h.s8.bf16 %v3364_v55 }
 0x511   :  { %4217 = vmatpush1.bf16.msra.mxu1 %v3732_v59  ;;  %4054 = vmatprep.subr.bf16.mxu0 %v3739_v35  ;;  %v3811_v59 = vunpack.c.l.s8.bf16 %v3371_v3  ;;  %v3370_v35 = vld [vmem:[#allocation10 + $0x5c0] sm:$0xff] }
 0x512   :  { %4218 = vmatprep.subr.bf16.mxu1 %v3741_v7  ;;  %v3813_v7 = vunpack.c.l.s8.bf16 %v3373_v1  ;;  %v3810_v10 = vunpack.c.l.s8.bf16 %v3370_v35  ;;  %v3818_v13 = vunpack.c.h.s8.bf16 %v3370_v35 }
 0x514   :  { %4055 = vmatpush1.bf16.msra.mxu0 %v3738_v9  ;;  %v3812_v9 = vunpack.c.l.s8.bf16 %v3372_v8 }
 0x515   :  { %4219 = vmatpush1.bf16.msra.mxu1 %v3740_v21  ;;  %4056 = vmatprep.subr.bf16.mxu0 %v3747_v31  ;;  %v3819_v21 = vunpack.c.h.s8.bf16 %v3371_v3  ;;  %v3821_v31 = vunpack.c.h.s8.bf16 %v3373_v1  ;;  %v3389_v3 = vld [vmem:[#allocation10 + $0x658] sm:$0xff] }
 0x516   :  { %4220 = vmatprep.subr.bf16.mxu1 %v3749_v12  ;;  %v5515_v12 = vld [vmem:[#allocation10 + $0x618] sm:$0xff]  ;;  %v3845_v35 = vunpack.c.l.s8.bf16 %v3389_v3 }
 0x518   :  { %4057 = vmatpush1.bf16.msra.mxu0 %v3746_v53  ;;  %v3820_v53 = vunpack.c.h.s8.bf16 %v3372_v8  ;;  %v3388_v8 = vld [vmem:[#allocation10 + $0x650] sm:$0xff] }
 0x519   :  { %4221 = vmatpush1.bf16.msra.mxu1 %v3748_v16  ;;  %4058 = vmatprep.subr.bf16.mxu0 %v3755_v15  ;;  %v3827_v16 = vunpack.c.l.s8.bf16 %v5513_v11  ;;  %v3829_v15 = vunpack.c.l.s8.bf16 %v5515_v12 }
 0x51a   :  { %4222 = vmatprep.subr.bf16.mxu1 %v3757_v17  ;;  %v5520_v17 = vsub.s32 4, %v5294_v26 }
 0x51c   :  { %4059 = vmatpush1.bf16.msra.mxu0 %v3754_v19  ;;  %v5528_v19 = vld [vmem:[#allocation7] sm:$0xff] }
 0x51d   :  { %4223 = vmatpush1.bf16.msra.mxu1 %v3756_v20  ;;  %4060 = vmatprep.subr.bf16.mxu0 %v3763_v25  ;;  %v3099_v20 = vrot.slane %v5528_v19, %v5520_v17  ;;  %v3103_v25 = vrot.slane %v5528_v19, %v5523_v18  ;;  %v3111_v22 = vrot.slane %v5528_v19, %v5526_v40 }
 0x51e   :  { %4224 = vmatprep.subr.bf16.mxu1 %v3765_v51  ;;  %v5536_v51 = vld [vmem:[#allocation8] sm:$0xff] }
 0x51f   :  { %v3149_v36 = vrot.slane %v5536_v51, %v5520_v17 }
 0x520   :  { %4061 = vmatpush1.bf16.msra.mxu0 %v3762_v6 }
 0x521   :  { %4225 = vmatpush1.bf16.msra.mxu1 %v3764_v27  ;;  %4062 = vmatprep.subr.bf16.mxu0 %v3771_v23  ;;  %v3153_v23 = vrot.slane %v5536_v51, %v5523_v18 }
 0x522   :  { %4226 = vmatprep.subr.bf16.mxu1 %v3773_v28  ;;  %v3161_v28 = vrot.slane %v5536_v51, %v5526_v40 }
 0x524   :  { %4063 = vmatpush1.bf16.msra.mxu0 %v3770_v32 }
 0x525   :  { %4227 = vmatpush1.bf16.msra.mxu1 %v3772_v58  ;;  %4064 = vmatprep.subr.bf16.mxu0 %v3779_v34 }
 0x526   :  { %4228 = vmatprep.subr.bf16.mxu1 %v3781_v37 }
 0x528   :  { %4065 = vmatpush1.bf16.msra.mxu0 %v3778_v39 }
 0x529   :  { %4229 = vmatpush1.bf16.msra.mxu1 %v3780_v42  ;;  %4066 = vmatprep.subr.bf16.mxu0 %v3787_v43 }
 0x52a   :  { %4230 = vmatprep.subr.bf16.mxu1 %v3789_v44 }
 0x52c   :  { %4067 = vmatpush1.bf16.msra.mxu0 %v3786_v46  ;;  %v3380_v46 = vld [vmem:[#allocation10 + $0x610] sm:$0xff] }
 0x52d   :  { %4231 = vmatpush1.bf16.msra.mxu1 %v3788_v49  ;;  %4068 = vmatprep.subr.bf16.mxu0 %v3795_v61  ;;  %v3828_v55 = vunpack.c.l.s8.bf16 %v3380_v46 }
 0x52e   :  { %4232 = vmatprep.subr.bf16.mxu1 %v3797_v54  ;;  %v3826_v54 = vunpack.c.l.s8.bf16 %v3378_v45 }
 0x530   :  { %4069 = vmatpush1.bf16.msra.mxu0 %v3794_v56 }
 0x531   :  { %4233 = vmatpush1.bf16.msra.mxu1 %v3796_v57  ;;  %4070 = vmatprep.subr.bf16.mxu0 %v3803_v63  ;;  %v3835_v57 = vunpack.c.h.s8.bf16 %v5513_v11  ;;  %v3837_v63 = vunpack.c.h.s8.bf16 %v5515_v12  ;;  %v3395_v11 = vld [vmem:[#allocation10 + $0x688] sm:$0xff]  ;;  %v3397_v12 = vld [vmem:[#allocation10 + $0x698] sm:$0xff] }
 0x532   :  { %4234 = vmatprep.subr.bf16.mxu1 %v3805_v0  ;;  %v3387_v0 = vld [vmem:[#allocation10 + $0x648] sm:$0xff] }
 0x534   :  { %4071 = vmatpush1.bf16.msra.mxu0 %v3802_v62  ;;  %v3834_v62 = vunpack.c.h.s8.bf16 %v3378_v45 }
 0x535   :  { %4235 = vmatpush1.bf16.msra.mxu1 %v3804_v2  ;;  %4072 = vmatprep.subr.bf16.mxu0 %v3811_v59  ;;  %v3836_v2 = vunpack.c.h.s8.bf16 %v3380_v46  ;;  %v3843_v59 = vunpack.c.l.s8.bf16 %v3387_v0 }
 0x536   :  { %4236 = vmatprep.subr.bf16.mxu1 %v3813_v7  ;;  %v3386_v7 = vld [vmem:[#allocation10 + $0x640] sm:$0xff] }
 0x538   :  { %4073 = vmatpush1.bf16.msra.mxu0 %v3810_v10  ;;  %v3842_v10 = vunpack.c.l.s8.bf16 %v3386_v7 }
 0x539   :  { %4237 = vmatpush1.bf16.msra.mxu1 %v3812_v9  ;;  %4074 = vmatprep.subr.bf16.mxu0 %v3819_v21  ;;  %v3844_v9 = vunpack.c.l.s8.bf16 %v3388_v8  ;;  %v3851_v21 = vunpack.c.h.s8.bf16 %v3387_v0 }
 0x53a   :  { %4238 = vmatprep.subr.bf16.mxu1 %v3821_v31  ;;  %v3853_v31 = vunpack.c.h.s8.bf16 %v3389_v3 }
 0x53c   :  { %4075 = vmatpush1.bf16.msra.mxu0 %v3818_v13  ;;  %v3850_v13 = vunpack.c.h.s8.bf16 %v3386_v7 }
 0x53d   :  { %4239 = vmatpush1.bf16.msra.mxu1 %v3820_v53  ;;  %4085 = vmatprep.subr.bf16.mxu0 %v3827_v16  ;;  %v3852_v53 = vunpack.c.h.s8.bf16 %v3388_v8  ;;  %v3859_v16 = vunpack.c.l.s8.bf16 %v3395_v11 }
 0x53e   :  { %4249 = vmatprep.subr.bf16.mxu1 %v3829_v15  ;;  %v3861_v15 = vunpack.c.l.s8.bf16 %v3397_v12 }
 0x552   :  { %v2743_v6 = vpop.f32.mrb[4].mxu0  ;;  %v5540_v27 = vpop.f32.mrb[4].mxu1 }
 0x553   :  { %v3124_v29 = vmul.f32 %v3099_v20, %v2743_v6  ;;  %v2745_v30 = vpop.f32.mrb[5].mxu0  ;;  %v3073_v32 = vpop.f32.mrb[5].mxu1  ;;  %v3394_v20 = vld [vmem:[#allocation10 + $0x680] sm:$0xff]  ;;  %v3867_v6 = vunpack.c.h.s8.bf16 %v3395_v11 }
 0x554   :  { %v3125_v58 = vmul.f32 %v3103_v25, %v2745_v30  ;;  %v3127_v34 = vmul.f32 %v3111_v22, %v3073_v32  ;;  %v2747_v60 = vpop.f32.mrb[6].mxu0  ;;  %v3075_v37 = vpop.f32.mrb[6].mxu1  ;;  %v3396_v25 = vld [vmem:[#allocation10 + $0x690] sm:$0xff]  ;;  %v3858_v22 = vunpack.c.l.s8.bf16 %v3394_v20  ;;  %v3866_v30 = vunpack.c.h.s8.bf16 %v3394_v20 }
 0x555   :  { %v3174_v38 = vadd.f32 %v3149_v36, %v3124_v29  ;;  %v2748_v39 = vpop.f32.mrb[7].mxu0  ;;  %v3076_v42 = vpop.f32.mrb[7].mxu1  ;;  %v3860_v36 = vunpack.c.l.s8.bf16 %v3396_v25  ;;  %v3405_v29 = vld [vmem:[#allocation10 + $0x6d8] sm:$0xff]  ;;  %v3868_v32 = vunpack.c.h.s8.bf16 %v3396_v25  ;;  %v3402_v60 = vld [vmem:[#allocation10 + $0x6c0] sm:$0xff]  ;;  %v3404_v37 = vld [vmem:[#allocation10 + $0x6d0] sm:$0xff]  ;;  %v5561_v20 = vsub.s32 6, %v5294_v26 }
 0x556   :  { %v3175_v43 = vadd.f32 %v3153_v23, %v3125_v58  ;;  %v3177_v44 = vadd.f32 %v3161_v28, %v3127_v34  ;;  %v3869_v23 = vunpack.c.h.s8.bf16 %v3397_v12  ;;  %v3403_v28 = vld [vmem:[#allocation10 + $0x6c8] sm:$0xff]  ;;  %v3877_v34 = vunpack.c.l.s8.bf16 %v3405_v29 }
 0x557   :  { %v3182_v4 = vmax.f32 %v3174_v38, 0.0  ;;  %v3875_v58 = vunpack.c.l.s8.bf16 %v3403_v28  ;;  %v3874_v38 = vunpack.c.l.s8.bf16 %v3402_v60  ;;  %v3876_v39 = vunpack.c.l.s8.bf16 %v3404_v37 }
 0x558   :  { %v3183_v49 = vmax.f32 %v3175_v43, 0.0  ;;  %v3185_v61 = vmax.f32 %v3177_v44, 0.0  ;;  %v3883_v42 = vunpack.c.h.s8.bf16 %v3403_v28  ;;  %v3885_v43 = vunpack.c.h.s8.bf16 %v3405_v29  ;;  %v3411_v44 = vld [vmem:[#allocation10 + $0x708] sm:$0xff] }
 0x559   :  { %v5548_v56 = vpack.c.bf16 %v3182_v4, %v3182_v4  ;;  %v3413_v4 = vld [vmem:[#allocation10 + $0x718] sm:$0xff]  ;;  %v3882_v45 = vunpack.c.h.s8.bf16 %v3402_v60  ;;  %v3884_v46 = vunpack.c.h.s8.bf16 %v3404_v37  ;;  %v3899_v0 = vunpack.c.h.s8.bf16 %v3411_v44 }
 0x55a   :  { %v5546_v50 = vpack.c.bf16 %v3183_v49, %v3183_v49  ;;  %v5554_v1 = vpack.c.bf16 %v3185_v61, %v3185_v61  ;;  %v3891_v49 = vunpack.c.l.s8.bf16 %v3411_v44  ;;  %v3893_v61 = vunpack.c.l.s8.bf16 %v3413_v4  ;;  %v3436_v44 = vld [vmem:[#allocation10 + $0x7d0] sm:$0xff] }
 0x55b   :  { %v3901_v3 = vunpack.c.h.s8.bf16 %v3413_v4  ;;  %v3107_v29 = vrot.slane %v5528_v19, %v5561_v20  ;;  %v3434_v19 = vld [vmem:[#allocation10 + $0x7c0] sm:$0xff] }
 0x55c   :  { %4076 = vmatprep.mubr.bf16.mxu0 %v5546_v50  ;;  %4240 = vmatprep.mubr.bf16.mxu1 %v5546_v50  ;;  %v3938_v4 = vunpack.c.l.s8.bf16 %v3434_v19 }
 0x55d   :  { %4077 = vmatmul.mubr.bf16.vlgmr.msra.gmra.mrb[8].mxu0 %v5548_v56  ;;  %4241 = vmatmul.mubr.bf16.vlgmr.msra.gmra.mrb[8].mxu1 %v5548_v56 }
 0x55e   :  { %4086 = vmatpush1.bf16.msra.mxu0 %v3826_v54  ;;  %4250 = vmatpush1.bf16.msra.mxu1 %v3828_v55  ;;  %v3410_v54 = vld [vmem:[#allocation10 + $0x700] sm:$0xff]  ;;  %v3412_v55 = vld [vmem:[#allocation10 + $0x710] sm:$0xff] }
 0x55f   :  { %4117 = vmatprep.mubr.bf16.mxu0 %v5554_v1  ;;  %4281 = vmatprep.mubr.bf16.mxu1 %v5554_v1 }
 0x560   :  { %4087 = vmatprep.subr.bf16.mxu0 %v3835_v57  ;;  %4251 = vmatprep.subr.bf16.mxu1 %v3837_v63  ;;  %v3890_v57 = vunpack.c.l.s8.bf16 %v3410_v54  ;;  %v3892_v63 = vunpack.c.l.s8.bf16 %v3412_v55 }
 0x562   :  { %4088 = vmatpush1.bf16.msra.mxu0 %v3834_v62  ;;  %4252 = vmatpush1.bf16.msra.mxu1 %v3836_v2  ;;  %v3419_v62 = vld [vmem:[#allocation10 + $0x748] sm:$0xff]  ;;  %v3421_v2 = vld [vmem:[#allocation10 + $0x758] sm:$0xff] }
 0x563   :  { %4089 = vmatprep.subr.bf16.mxu0 %v3843_v59  ;;  %4253 = vmatprep.subr.bf16.mxu1 %v3845_v35  ;;  %v3898_v59 = vunpack.c.h.s8.bf16 %v3410_v54  ;;  %v3900_v35 = vunpack.c.h.s8.bf16 %v3412_v55  ;;  %v3907_v7 = vunpack.c.l.s8.bf16 %v3419_v62  ;;  %v3909_v8 = vunpack.c.l.s8.bf16 %v3421_v2  ;;  %v3191_v54 = vld [vmem:[#allocation10 + $0x28] sm:$0xff] }
 0x564   :  { %v3915_v11 = vunpack.c.h.s8.bf16 %v3419_v62  ;;  %v3917_v12 = vunpack.c.h.s8.bf16 %v3421_v2  ;;  %v3948_v55 = vunpack.c.h.s8.bf16 %v3436_v44  ;;  %v3192_v62 = vld [vmem:[#allocation10 + $0x30] sm:$0xff] }
 0x566   :  { %4090 = vmatpush1.bf16.msra.mxu0 %v3842_v10  ;;  %4254 = vmatpush1.bf16.msra.mxu1 %v3844_v9  ;;  %v3418_v10 = vld [vmem:[#allocation10 + $0x740] sm:$0xff]  ;;  %v3420_v9 = vld [vmem:[#allocation10 + $0x750] sm:$0xff] }
 0x567   :  { %4091 = vmatprep.subr.bf16.mxu0 %v3851_v21  ;;  %4255 = vmatprep.subr.bf16.mxu1 %v3853_v31  ;;  %v3906_v21 = vunpack.c.l.s8.bf16 %v3418_v10  ;;  %v3908_v31 = vunpack.c.l.s8.bf16 %v3420_v9 }
 0x56a   :  { %4092 = vmatpush1.bf16.msra.mxu0 %v3850_v13  ;;  %4256 = vmatpush1.bf16.msra.mxu1 %v3852_v53  ;;  %v3427_v13 = vld [vmem:[#allocation10 + $0x788] sm:$0xff]  ;;  %v3429_v53 = vld [vmem:[#allocation10 + $0x798] sm:$0xff] }
 0x56b   :  { %4093 = vmatprep.subr.bf16.mxu0 %v3859_v16  ;;  %4257 = vmatprep.subr.bf16.mxu1 %v3861_v15  ;;  %v3914_v16 = vunpack.c.h.s8.bf16 %v3418_v10  ;;  %v3916_v15 = vunpack.c.h.s8.bf16 %v3420_v9  ;;  %v3923_v25 = vunpack.c.l.s8.bf16 %v3427_v13  ;;  %v3199_v10 = vld [vmem:[#allocation10 + $0x68] sm:$0xff]  ;;  %v3201_v9 = vld [vmem:[#allocation10 + $0x78] sm:$0xff] }
 0x56e   :  { %4094 = vmatpush1.bf16.msra.mxu0 %v3858_v22  ;;  %4258 = vmatpush1.bf16.msra.mxu1 %v3860_v36  ;;  %v3925_v22 = vunpack.c.l.s8.bf16 %v3429_v53  ;;  %v3426_v36 = vld [vmem:[#allocation10 + $0x780] sm:$0xff] }
 0x56f   :  { %4095 = vmatprep.subr.bf16.mxu0 %v3867_v6  ;;  %4259 = vmatprep.subr.bf16.mxu1 %v3869_v23  ;;  %v3428_v6 = vld [vmem:[#allocation10 + $0x790] sm:$0xff]  ;;  %v3922_v23 = vunpack.c.l.s8.bf16 %v3426_v36  ;;  %v3930_v60 = vunpack.c.h.s8.bf16 %v3426_v36  ;;  %v3207_v36 = vld [vmem:[#allocation10 + $0xa8] sm:$0xff] }
 0x570   :  { %v3924_v28 = vunpack.c.l.s8.bf16 %v3428_v6  ;;  %v3932_v37 = vunpack.c.h.s8.bf16 %v3428_v6  ;;  %v3209_v6 = vld [vmem:[#allocation10 + $0xb8] sm:$0xff] }
 0x572   :  { %4096 = vmatpush1.bf16.msra.mxu0 %v3866_v30  ;;  %4260 = vmatpush1.bf16.msra.mxu1 %v3868_v32  ;;  %v3931_v30 = vunpack.c.h.s8.bf16 %v3427_v13  ;;  %v3933_v32 = vunpack.c.h.s8.bf16 %v3429_v53  ;;  %v3465_v13 = vunpack.c.l.s8.bf16 %v3201_v9  ;;  %v3200_v53 = vld [vmem:[#allocation10 + $0x70] sm:$0xff] }
 0x573   :  { %4097 = vmatprep.subr.bf16.mxu0 %v3875_v58  ;;  %4261 = vmatprep.subr.bf16.mxu1 %v3877_v34  ;;  %v3435_v58 = vld [vmem:[#allocation10 + $0x7c8] sm:$0xff]  ;;  %v3437_v34 = vld [vmem:[#allocation10 + $0x7d8] sm:$0xff] }
 0x576   :  { %4098 = vmatpush1.bf16.msra.mxu0 %v3874_v38  ;;  %4262 = vmatpush1.bf16.msra.mxu1 %v3876_v39  ;;  %v3126_v38 = vmul.f32 %v3107_v29, %v5540_v27  ;;  %v3157_v39 = vrot.slane %v5536_v51, %v5561_v20  ;;  %v3193_v27 = vld [vmem:[#allocation10 + $0x38] sm:$0xff]  ;;  %v3946_v51 = vunpack.c.h.s8.bf16 %v3434_v19  ;;  %v3206_v29 = vld [vmem:[#allocation10 + $0xa0] sm:$0xff] }
 0x577   :  { %4099 = vmatprep.subr.bf16.mxu0 %v3883_v42  ;;  %4263 = vmatprep.subr.bf16.mxu1 %v3885_v43  ;;  %v3939_v42 = vunpack.c.l.s8.bf16 %v3435_v58  ;;  %v3941_v43 = vunpack.c.l.s8.bf16 %v3437_v34 }
 0x57a   :  { %4100 = vmatpush1.bf16.msra.mxu0 %v3882_v45  ;;  %4264 = vmatpush1.bf16.msra.mxu1 %v3884_v46  ;;  %v3940_v45 = vunpack.c.l.s8.bf16 %v3436_v44  ;;  %v3176_v46 = vadd.f32 %v3157_v39, %v3126_v38  ;;  %v3215_v38 = vld [vmem:[#allocation10 + $0xe8] sm:$0xff]  ;;  %v3217_v39 = vld [vmem:[#allocation10 + $0xf8] sm:$0xff]  ;;  %v3214_v44 = vld [vmem:[#allocation10 + $0xe0] sm:$0xff] }
 0x57b   :  { %4101 = vmatprep.subr.bf16.mxu0 %v3891_v49  ;;  %4265 = vmatprep.subr.bf16.mxu1 %v3893_v61  ;;  %v3947_v49 = vunpack.c.h.s8.bf16 %v3435_v58  ;;  %v3949_v61 = vunpack.c.h.s8.bf16 %v3437_v34  ;;  %v3478_v58 = vunpack.c.l.s8.bf16 %v3206_v29  ;;  %v3495_v19 = vunpack.c.l.s8.bf16 %v3215_v38 }
 0x57e   :  { %4102 = vmatpush1.bf16.msra.mxu0 %v3890_v57  ;;  %4266 = vmatpush1.bf16.msra.mxu1 %v3892_v63  ;;  %v3184_v57 = vmax.f32 %v3176_v46, 0.0  ;;  %v3447_v63 = vunpack.c.l.s8.bf16 %v3191_v54  ;;  %v3494_v46 = vunpack.c.l.s8.bf16 %v3214_v44 }
 0x57f   :  { %4103 = vmatprep.subr.bf16.mxu0 %v3899_v0  ;;  %4267 = vmatprep.subr.bf16.mxu1 %v3901_v3  ;;  %v3449_v0 = vunpack.c.l.s8.bf16 %v3193_v27  ;;  %v3190_v3 = vld [vmem:[#allocation10 + $0x20] sm:$0xff] }
 0x580   :  { %v3446_v2 = vunpack.c.l.s8.bf16 %v3190_v3 }
 0x582   :  { %4104 = vmatpush1.bf16.msra.mxu0 %v3898_v59  ;;  %4268 = vmatpush1.bf16.msra.mxu1 %v3900_v35  ;;  %v5568_v59 = vpack.c.bf16 %v3184_v57, %v3184_v57  ;;  %v3448_v35 = vunpack.c.l.s8.bf16 %v3192_v62 }
 0x583   :  { %4105 = vmatprep.subr.bf16.mxu0 %v3907_v7  ;;  %4269 = vmatprep.subr.bf16.mxu1 %v3909_v8  ;;  %v3455_v7 = vunpack.c.h.s8.bf16 %v3191_v54  ;;  %v3457_v8 = vunpack.c.h.s8.bf16 %v3193_v27  ;;  %v3505_v54 = vunpack.c.h.s8.bf16 %v3217_v39  ;;  %v3223_v27 = vld [vmem:[#allocation10 + $0x128] sm:$0xff] }
 0x586   :  { %4106 = vmatpush1.bf16.msra.mxu0 %v3906_v21  ;;  %4270 = vmatpush1.bf16.msra.mxu1 %v3908_v31  ;;  %v3454_v21 = vunpack.c.h.s8.bf16 %v3190_v3  ;;  %v3456_v31 = vunpack.c.h.s8.bf16 %v3192_v62  ;;  %v3224_v62 = vld [vmem:[#allocation10 + $0x130] sm:$0xff] }
 0x587   :  { %4107 = vmatprep.subr.bf16.mxu0 %v3915_v11  ;;  %4271 = vmatprep.subr.bf16.mxu1 %v3917_v12  ;;  %v3463_v11 = vunpack.c.l.s8.bf16 %v3199_v10  ;;  %v3198_v12 = vld [vmem:[#allocation10 + $0x60] sm:$0xff] }
 0x58a   :  { %4108 = vmatpush1.bf16.msra.mxu0 %v3914_v16  ;;  %4272 = vmatpush1.bf16.msra.mxu1 %v3916_v15  ;;  %v3462_v16 = vunpack.c.l.s8.bf16 %v3198_v12  ;;  %v3464_v15 = vunpack.c.l.s8.bf16 %v3200_v53 }
 0x58b   :  { %4109 = vmatprep.subr.bf16.mxu0 %v3923_v25  ;;  %4273 = vmatprep.subr.bf16.mxu1 %v3925_v22  ;;  %v3471_v25 = vunpack.c.h.s8.bf16 %v3199_v10  ;;  %v3473_v22 = vunpack.c.h.s8.bf16 %v3201_v9  ;;  %v3231_v10 = vld [vmem:[#allocation10 + $0x168] sm:$0xff]  ;;  %v3233_v9 = vld [vmem:[#allocation10 + $0x178] sm:$0xff] }
 0x58e   :  { %4110 = vmatpush1.bf16.msra.mxu0 %v3922_v23  ;;  %4274 = vmatpush1.bf16.msra.mxu1 %v3924_v28  ;;  %v3470_v23 = vunpack.c.h.s8.bf16 %v3198_v12  ;;  %v3479_v28 = vunpack.c.l.s8.bf16 %v3207_v36  ;;  %v3230_v12 = vld [vmem:[#allocation10 + $0x160] sm:$0xff] }
 0x58f   :  { %4111 = vmatprep.subr.bf16.mxu0 %v3931_v30  ;;  %4275 = vmatprep.subr.bf16.mxu1 %v3933_v32  ;;  %v3481_v30 = vunpack.c.l.s8.bf16 %v3209_v6  ;;  %v3208_v32 = vld [vmem:[#allocation10 + $0xb0] sm:$0xff] }
 0x590   :  { %v3480_v34 = vunpack.c.l.s8.bf16 %v3208_v32 }
 0x592   :  { %4112 = vmatpush1.bf16.msra.mxu0 %v3930_v60  ;;  %4276 = vmatpush1.bf16.msra.mxu1 %v3932_v37  ;;  %v3487_v60 = vunpack.c.h.s8.bf16 %v3207_v36  ;;  %v3489_v37 = vunpack.c.h.s8.bf16 %v3209_v6  ;;  %v3239_v36 = vld [vmem:[#allocation10 + $0x1a8] sm:$0xff]  ;;  %v3241_v6 = vld [vmem:[#allocation10 + $0x1b8] sm:$0xff] }
 0x593   :  { %4113 = vmatprep.subr.bf16.mxu0 %v3939_v42  ;;  %4277 = vmatprep.subr.bf16.mxu1 %v3941_v43  ;;  %v3486_v42 = vunpack.c.h.s8.bf16 %v3206_v29  ;;  %v3488_v43 = vunpack.c.h.s8.bf16 %v3208_v32  ;;  %v3238_v29 = vld [vmem:[#allocation10 + $0x1a0] sm:$0xff]  ;;  %v3240_v32 = vld [vmem:[#allocation10 + $0x1b0] sm:$0xff] }
 0x596   :  { %4114 = vmatpush1.bf16.msra.mxu0 %v3938_v4  ;;  %4278 = vmatpush1.bf16.msra.mxu1 %v3940_v45  ;;  %v3497_v4 = vunpack.c.l.s8.bf16 %v3217_v39  ;;  %v3216_v45 = vld [vmem:[#allocation10 + $0xf0] sm:$0xff]  ;;  %v3249_v39 = vld [vmem:[#allocation10 + $0x1f8] sm:$0xff] }
 0x597   :  { %4115 = vmatprep.subr.bf16.mxu0 %v3947_v49  ;;  %4279 = vmatprep.subr.bf16.mxu1 %v3949_v61  ;;  %v3496_v49 = vunpack.c.l.s8.bf16 %v3216_v45  ;;  %v3503_v61 = vunpack.c.h.s8.bf16 %v3215_v38  ;;  %v3504_v57 = vunpack.c.h.s8.bf16 %v3216_v45  ;;  %v3247_v38 = vld [vmem:[#allocation10 + $0x1e8] sm:$0xff]  ;;  %v3248_v45 = vld [vmem:[#allocation10 + $0x1f0] sm:$0xff] }
 0x59a   :  { %4116 = vmatpush1.bf16.msra.mxu0 %v3946_v51  ;;  %4280 = vmatpush1.bf16.msra.mxu1 %v3948_v55  ;;  %v3225_v51 = vld [vmem:[#allocation10 + $0x138] sm:$0xff]  ;;  %v3502_v55 = vunpack.c.h.s8.bf16 %v3214_v44  ;;  %v3246_v44 = vld [vmem:[#allocation10 + $0x1e0] sm:$0xff] }
 0x59b   :  { %4290 = vmatprep.subr.bf16.mxu0 %v3447_v63  ;;  %4454 = vmatprep.subr.bf16.mxu1 %v3449_v0  ;;  %v3511_v63 = vunpack.c.l.s8.bf16 %v3223_v27  ;;  %v3222_v0 = vld [vmem:[#allocation10 + $0x120] sm:$0xff]  ;;  %v3513_v3 = vunpack.c.l.s8.bf16 %v3225_v51 }
 0x59d   :  { %4118 = vmatmul.mubr.bf16.vlgmr.msra.gmra.mrb[8].mxu0 %v5568_v59  ;;  %4282 = vmatmul.mubr.bf16.vlgmr.msra.gmra.mrb[8].mxu1 %v5568_v59 }
 0x59e   :  { %4291 = vmatpush1.bf16.msra.mxu0 %v3446_v2  ;;  %4322 = vmatprep.mubr.bf16.mxu0 %v5471_v52  ;;  %v3510_v2 = vunpack.c.l.s8.bf16 %v3222_v0 }
 0x59f   :  { %4455 = vmatpush1.bf16.msra.mxu1 %v3448_v35  ;;  %4486 = vmatprep.mubr.bf16.mxu1 %v5471_v52  ;;  %v3472_v52 = vunpack.c.h.s8.bf16 %v3200_v53  ;;  %v3512_v35 = vunpack.c.l.s8.bf16 %v3224_v62  ;;  %v3232_v53 = vld [vmem:[#allocation10 + $0x170] sm:$0xff] }
 0x5a0   :  { %4292 = vmatprep.subr.bf16.mxu0 %v3455_v7  ;;  %4456 = vmatprep.subr.bf16.mxu1 %v3457_v8  ;;  %v3519_v7 = vunpack.c.h.s8.bf16 %v3223_v27  ;;  %v3521_v8 = vunpack.c.h.s8.bf16 %v3225_v51  ;;  %v3255_v27 = vld [vmem:[#allocation10 + $0x228] sm:$0xff]  ;;  %v3257_v51 = vld [vmem:[#allocation10 + $0x238] sm:$0xff] }
 0x5a2   :  { %4293 = vmatpush1.bf16.msra.mxu0 %v3454_v21  ;;  %v3518_v21 = vunpack.c.h.s8.bf16 %v3222_v0  ;;  %v3254_v0 = vld [vmem:[#allocation10 + $0x220] sm:$0xff] }
 0x5a3   :  { %4457 = vmatpush1.bf16.msra.mxu1 %v3456_v31  ;;  %4294 = vmatprep.subr.bf16.mxu0 %v3463_v11  ;;  %v3520_v31 = vunpack.c.h.s8.bf16 %v3224_v62  ;;  %v3527_v11 = vunpack.c.l.s8.bf16 %v3231_v10  ;;  %v3256_v62 = vld [vmem:[#allocation10 + $0x230] sm:$0xff] }
 0x5a4   :  { %4458 = vmatprep.subr.bf16.mxu1 %v3465_v13  ;;  %v3529_v13 = vunpack.c.l.s8.bf16 %v3233_v9 }
 0x5a6   :  { %4295 = vmatpush1.bf16.msra.mxu0 %v3462_v16  ;;  %v3526_v16 = vunpack.c.l.s8.bf16 %v3230_v12 }
 0x5a7   :  { %4459 = vmatpush1.bf16.msra.mxu1 %v3464_v15  ;;  %4296 = vmatprep.subr.bf16.mxu0 %v3471_v25  ;;  %v3528_v15 = vunpack.c.l.s8.bf16 %v3232_v53  ;;  %v3535_v25 = vunpack.c.h.s8.bf16 %v3231_v10  ;;  %v3585_v10 = vunpack.c.h.s8.bf16 %v3257_v51 }
 0x5a8   :  { %4460 = vmatprep.subr.bf16.mxu1 %v3473_v22  ;;  %v3537_v22 = vunpack.c.h.s8.bf16 %v3233_v9  ;;  %v3265_v9 = vld [vmem:[#allocation10 + $0x278] sm:$0xff] }
 0x5aa   :  { %4297 = vmatpush1.bf16.msra.mxu0 %v3470_v23  ;;  %v3534_v23 = vunpack.c.h.s8.bf16 %v3230_v12  ;;  %v3262_v12 = vld [vmem:[#allocation10 + $0x260] sm:$0xff] }
 0x5ab   :  { %4461 = vmatpush1.bf16.msra.mxu1 %v3472_v52  ;;  %4298 = vmatprep.subr.bf16.mxu0 %v3479_v28  ;;  %v3536_v52 = vunpack.c.h.s8.bf16 %v3232_v53  ;;  %v3543_v28 = vunpack.c.l.s8.bf16 %v3239_v36  ;;  %v3264_v53 = vld [vmem:[#allocation10 + $0x270] sm:$0xff] }
 0x5ac   :  { %4462 = vmatprep.subr.bf16.mxu1 %v3481_v30  ;;  %v3545_v30 = vunpack.c.l.s8.bf16 %v3241_v6 }
 0x5ae   :  { %4299 = vmatpush1.bf16.msra.mxu0 %v3478_v58  ;;  %v3542_v58 = vunpack.c.l.s8.bf16 %v3238_v29 }
 0x5af   :  { %4463 = vmatpush1.bf16.msra.mxu1 %v3480_v34  ;;  %4300 = vmatprep.subr.bf16.mxu0 %v3487_v60  ;;  %v3544_v34 = vunpack.c.l.s8.bf16 %v3240_v32  ;;  %v3551_v60 = vunpack.c.h.s8.bf16 %v3239_v36  ;;  %v3273_v36 = vld [vmem:[#allocation10 + $0x2b8] sm:$0xff] }
 0x5b0   :  { %4464 = vmatprep.subr.bf16.mxu1 %v3489_v37  ;;  %v3553_v37 = vunpack.c.h.s8.bf16 %v3241_v6  ;;  %v3598_v6 = vunpack.c.h.s8.bf16 %v3262_v12 }
 0x5b2   :  { %4301 = vmatpush1.bf16.msra.mxu0 %v3486_v42  ;;  %v3550_v42 = vunpack.c.h.s8.bf16 %v3238_v29  ;;  %v3272_v29 = vld [vmem:[#allocation10 + $0x2b0] sm:$0xff] }
 0x5b3   :  { %4465 = vmatpush1.bf16.msra.mxu1 %v3488_v43  ;;  %4302 = vmatprep.subr.bf16.mxu0 %v3495_v19  ;;  %v3552_v43 = vunpack.c.h.s8.bf16 %v3240_v32  ;;  %v3559_v19 = vunpack.c.l.s8.bf16 %v3247_v38  ;;  %v3608_v32 = vunpack.c.l.s8.bf16 %v3272_v29 }
 0x5b4   :  { %4466 = vmatprep.subr.bf16.mxu1 %v3497_v4  ;;  %v3561_v4 = vunpack.c.l.s8.bf16 %v3249_v39 }
 0x5b6   :  { %4303 = vmatpush1.bf16.msra.mxu0 %v3494_v46  ;;  %v3558_v46 = vunpack.c.l.s8.bf16 %v3246_v44 }
 0x5b7   :  { %4467 = vmatpush1.bf16.msra.mxu1 %v3496_v49  ;;  %4304 = vmatprep.subr.bf16.mxu0 %v3503_v61  ;;  %v3560_v49 = vunpack.c.l.s8.bf16 %v3248_v45  ;;  %v3567_v61 = vunpack.c.h.s8.bf16 %v3247_v38 }
 0x5b8   :  { %4468 = vmatprep.subr.bf16.mxu1 %v3505_v54  ;;  %v3569_v54 = vunpack.c.h.s8.bf16 %v3249_v39  ;;  %v3616_v39 = vunpack.c.h.s8.bf16 %v3272_v29 }
 0x5ba   :  { %4305 = vmatpush1.bf16.msra.mxu0 %v3502_v55  ;;  %v3566_v55 = vunpack.c.h.s8.bf16 %v3246_v44  ;;  %v3280_v44 = vld [vmem:[#allocation10 + $0x2f0] sm:$0xff] }
 0x5bb   :  { %4469 = vmatpush1.bf16.msra.mxu1 %v3504_v57  ;;  %4306 = vmatprep.subr.bf16.mxu0 %v3511_v63  ;;  %v3568_v57 = vunpack.c.h.s8.bf16 %v3248_v45  ;;  %v3575_v63 = vunpack.c.l.s8.bf16 %v3255_v27  ;;  %v3624_v45 = vunpack.c.l.s8.bf16 %v3280_v44 }
 0x5bc   :  { %4470 = vmatprep.subr.bf16.mxu1 %v3513_v3  ;;  %v3577_v3 = vunpack.c.l.s8.bf16 %v3257_v51  ;;  %v3632_v51 = vunpack.c.h.s8.bf16 %v3280_v44 }
 0x5be   :  { %4307 = vmatpush1.bf16.msra.mxu0 %v3510_v2  ;;  %v3574_v2 = vunpack.c.l.s8.bf16 %v3254_v0 }
 0x5bf   :  { %4471 = vmatpush1.bf16.msra.mxu1 %v3512_v35  ;;  %4308 = vmatprep.subr.bf16.mxu0 %v3519_v7  ;;  %v3576_v35 = vunpack.c.l.s8.bf16 %v3256_v62  ;;  %v3583_v7 = vunpack.c.h.s8.bf16 %v3255_v27 }
 0x5c0   :  { %4472 = vmatprep.subr.bf16.mxu1 %v3521_v8  ;;  %v3263_v8 = vld [vmem:[#allocation10 + $0x268] sm:$0xff] }
 0x5c2   :  { %4309 = vmatpush1.bf16.msra.mxu0 %v3518_v21  ;;  %v3582_v21 = vunpack.c.h.s8.bf16 %v3254_v0  ;;  %v3288_v0 = vld [vmem:[#allocation10 + $0x330] sm:$0xff] }
 0x5c3   :  { %4473 = vmatpush1.bf16.msra.mxu1 %v3520_v31  ;;  %4310 = vmatprep.subr.bf16.mxu0 %v3527_v11  ;;  %v3584_v31 = vunpack.c.h.s8.bf16 %v3256_v62  ;;  %v3591_v11 = vunpack.c.l.s8.bf16 %v3263_v8  ;;  %v3640_v62 = vunpack.c.l.s8.bf16 %v3288_v0 }
 0x5c4   :  { %4474 = vmatprep.subr.bf16.mxu1 %v3529_v13  ;;  %v3593_v13 = vunpack.c.l.s8.bf16 %v3265_v9 }
 0x5c6   :  { %4311 = vmatpush1.bf16.msra.mxu0 %v3526_v16  ;;  %v3590_v16 = vunpack.c.l.s8.bf16 %v3262_v12  ;;  %v3296_v12 = vld [vmem:[#allocation10 + $0x370] sm:$0xff] }
 0x5c7   :  { %4475 = vmatpush1.bf16.msra.mxu1 %v3528_v15  ;;  %4312 = vmatprep.subr.bf16.mxu0 %v3535_v25  ;;  %v3592_v15 = vunpack.c.l.s8.bf16 %v3264_v53  ;;  %v3601_v25 = vunpack.c.h.s8.bf16 %v3265_v9  ;;  %v3648_v9 = vunpack.c.h.s8.bf16 %v3288_v0 }
 0x5c8   :  { %4476 = vmatprep.subr.bf16.mxu1 %v3537_v22  ;;  %v3271_v22 = vld [vmem:[#allocation10 + $0x2a8] sm:$0xff] }
 0x5ca   :  { %4313 = vmatpush1.bf16.msra.mxu0 %v3534_v23  ;;  %v3600_v23 = vunpack.c.h.s8.bf16 %v3264_v53  ;;  %v3656_v53 = vunpack.c.l.s8.bf16 %v3296_v12 }
 0x5cb   :  { %4477 = vmatpush1.bf16.msra.mxu1 %v3536_v52  ;;  %4314 = vmatprep.subr.bf16.mxu0 %v3543_v28  ;;  %v3270_v52 = vld [vmem:[#allocation10 + $0x2a0] sm:$0xff]  ;;  %v3609_v28 = vunpack.c.l.s8.bf16 %v3273_v36 }
 0x5cc   :  { %4478 = vmatprep.subr.bf16.mxu1 %v3545_v30  ;;  %v3606_v30 = vunpack.c.l.s8.bf16 %v3270_v52  ;;  %v3614_v38 = vunpack.c.h.s8.bf16 %v3270_v52  ;;  %v3304_v52 = vld [vmem:[#allocation10 + $0x3b0] sm:$0xff] }
 0x5cd   :  { %v3672_v29 = vunpack.c.l.s8.bf16 %v3304_v52 }
 0x5ce   :  { %4315 = vmatpush1.bf16.msra.mxu0 %v3542_v58  ;;  %v3615_v58 = vunpack.c.h.s8.bf16 %v3271_v22 }
 0x5cf   :  { %4479 = vmatpush1.bf16.msra.mxu1 %v3544_v34  ;;  %4316 = vmatprep.subr.bf16.mxu0 %v3551_v60  ;;  %v3617_v34 = vunpack.c.h.s8.bf16 %v3273_v36  ;;  %v3279_v60 = vld [vmem:[#allocation10 + $0x2e8] sm:$0xff]  ;;  %v3664_v36 = vunpack.c.h.s8.bf16 %v3296_v12 }
 0x5d0   :  { %4480 = vmatprep.subr.bf16.mxu1 %v3553_v37  ;;  %v3281_v37 = vld [vmem:[#allocation10 + $0x2f8] sm:$0xff] }
 0x5d2   :  { %4317 = vmatpush1.bf16.msra.mxu0 %v3550_v42  ;;  %v3623_v42 = vunpack.c.l.s8.bf16 %v3279_v60 }
 0x5d3   :  { %4481 = vmatpush1.bf16.msra.mxu1 %v3552_v43  ;;  %4318 = vmatprep.subr.bf16.mxu0 %v3559_v19  ;;  %v3278_v43 = vld [vmem:[#allocation10 + $0x2e0] sm:$0xff]  ;;  %v3625_v19 = vunpack.c.l.s8.bf16 %v3281_v37 }
 0x5d4   :  { %4482 = vmatprep.subr.bf16.mxu1 %v3561_v4  ;;  %v3622_v4 = vunpack.c.l.s8.bf16 %v3278_v43  ;;  %v3630_v27 = vunpack.c.h.s8.bf16 %v3278_v43  ;;  %v3312_v43 = vld [vmem:[#allocation10 + $0x3f0] sm:$0xff] }
 0x5d5   :  { %v3688_v44 = vunpack.c.l.s8.bf16 %v3312_v43 }
 0x5d6   :  { %4319 = vmatpush1.bf16.msra.mxu0 %v3558_v46  ;;  %v3631_v46 = vunpack.c.h.s8.bf16 %v3279_v60 }
 0x5d7   :  { %4483 = vmatpush1.bf16.msra.mxu1 %v3560_v49  ;;  %4320 = vmatprep.subr.bf16.mxu0 %v3567_v61  ;;  %v3633_v49 = vunpack.c.h.s8.bf16 %v3281_v37  ;;  %v3287_v61 = vld [vmem:[#allocation10 + $0x328] sm:$0xff]  ;;  %v3680_v37 = vunpack.c.h.s8.bf16 %v3304_v52 }
 0x5d8   :  { %4484 = vmatprep.subr.bf16.mxu1 %v3569_v54  ;;  %v3289_v54 = vld [vmem:[#allocation10 + $0x338] sm:$0xff] }
 0x5da   :  { %4321 = vmatpush1.bf16.msra.mxu0 %v3566_v55  ;;  %v3639_v55 = vunpack.c.l.s8.bf16 %v3287_v61 }
 0x5db   :  { %4485 = vmatpush1.bf16.msra.mxu1 %v3568_v57  ;;  %4331 = vmatprep.subr.bf16.mxu0 %v3575_v63  ;;  %v3286_v57 = vld [vmem:[#allocation10 + $0x320] sm:$0xff]  ;;  %v3641_v63 = vunpack.c.l.s8.bf16 %v3289_v54 }
 0x5dc   :  { %4495 = vmatprep.subr.bf16.mxu1 %v3577_v3  ;;  %v3638_v3 = vunpack.c.l.s8.bf16 %v3286_v57 }
 0x5dd   :  { %4323 = vmatmul.mubr.bf16.vlgmr.msra.gmra.mrb[12].mxu0 %v5493_v24 }
 0x5de   :  { %4487 = vmatmul.mubr.bf16.vlgmr.msra.gmra.mrb[12].mxu1 %v5493_v24  ;;  %4332 = vmatpush1.bf16.msra.mxu0 %v3574_v2  ;;  %v3599_v24 = vunpack.c.h.s8.bf16 %v3263_v8  ;;  %v3647_v2 = vunpack.c.h.s8.bf16 %v3287_v61  ;;  %v3297_v8 = vld [vmem:[#allocation10 + $0x378] sm:$0xff] }
 0x5df   :  { %4363 = vmatprep.mubr.bf16.mxu0 %v5495_v47  ;;  %4496 = vmatpush1.bf16.msra.mxu1 %v3576_v35  ;;  %v3649_v35 = vunpack.c.h.s8.bf16 %v3289_v54  ;;  %v3696_v54 = vunpack.c.h.s8.bf16 %v3312_v43 }
 0x5e0   :  { %4527 = vmatprep.mubr.bf16.mxu1 %v5495_v47  ;;  %4333 = vmatprep.subr.bf16.mxu0 %v3583_v7  ;;  %v3607_v47 = vunpack.c.l.s8.bf16 %v3271_v22  ;;  %v3295_v7 = vld [vmem:[#allocation10 + $0x368] sm:$0xff] }
 0x5e1   :  { %4497 = vmatprep.subr.bf16.mxu1 %v3585_v10  ;;  %v3646_v10 = vunpack.c.h.s8.bf16 %v3286_v57  ;;  %v3320_v57 = vld [vmem:[#allocation10 + $0x430] sm:$0xff] }
 0x5e2   :  { %4334 = vmatpush1.bf16.msra.mxu0 %v3582_v21  ;;  %v3655_v21 = vunpack.c.l.s8.bf16 %v3295_v7  ;;  %v3704_v0 = vunpack.c.l.s8.bf16 %v3320_v57 }
 0x5e3   :  { %4498 = vmatpush1.bf16.msra.mxu1 %v3584_v31  ;;  %4335 = vmatprep.subr.bf16.mxu0 %v3591_v11  ;;  %v3294_v31 = vld [vmem:[#allocation10 + $0x360] sm:$0xff]  ;;  %v3657_v11 = vunpack.c.l.s8.bf16 %v3297_v8 }
 0x5e4   :  { %4499 = vmatprep.subr.bf16.mxu1 %v3593_v13  ;;  %v3654_v13 = vunpack.c.l.s8.bf16 %v3294_v31  ;;  %v3662_v22 = vunpack.c.h.s8.bf16 %v3294_v31  ;;  %v3328_v31 = vld [vmem:[#allocation10 + $0x470] sm:$0xff] }
 0x5e5   :  { %v3720_v12 = vunpack.c.l.s8.bf16 %v3328_v31 }
 0x5e6   :  { %4336 = vmatpush1.bf16.msra.mxu0 %v3590_v16  ;;  %v3663_v16 = vunpack.c.h.s8.bf16 %v3295_v7 }
 0x5e7   :  { %4500 = vmatpush1.bf16.msra.mxu1 %v3592_v15  ;;  %4337 = vmatprep.subr.bf16.mxu0 %v3599_v24  ;;  %v3665_v15 = vunpack.c.h.s8.bf16 %v3297_v8  ;;  %v3303_v24 = vld [vmem:[#allocation10 + $0x3a8] sm:$0xff]  ;;  %v3712_v8 = vunpack.c.h.s8.bf16 %v3320_v57 }
 0x5e8   :  { %4501 = vmatprep.subr.bf16.mxu1 %v3601_v25  ;;  %v3305_v25 = vld [vmem:[#allocation10 + $0x3b8] sm:$0xff] }
 0x5ea   :  { %4338 = vmatpush1.bf16.msra.mxu0 %v3598_v6  ;;  %v3671_v6 = vunpack.c.l.s8.bf16 %v3303_v24 }
 0x5eb   :  { %4502 = vmatpush1.bf16.msra.mxu1 %v3600_v23  ;;  %4339 = vmatprep.subr.bf16.mxu0 %v3607_v47  ;;  %v3302_v23 = vld [vmem:[#allocation10 + $0x3a0] sm:$0xff]  ;;  %v3673_v47 = vunpack.c.l.s8.bf16 %v3305_v25 }
 0x5ec   :  { %4503 = vmatprep.subr.bf16.mxu1 %v3609_v28  ;;  %v3670_v28 = vunpack.c.l.s8.bf16 %v3302_v23  ;;  %v3678_v60 = vunpack.c.h.s8.bf16 %v3302_v23 }
 0x5ee   :  { %4340 = vmatpush1.bf16.msra.mxu0 %v3606_v30  ;;  %v3679_v30 = vunpack.c.h.s8.bf16 %v3303_v24  ;;  %v3728_v24 = vunpack.c.h.s8.bf16 %v3328_v31 }
 0x5ef   :  { %4504 = vmatpush1.bf16.msra.mxu1 %v3608_v32  ;;  %4341 = vmatprep.subr.bf16.mxu0 %v3615_v58  ;;  %v3681_v32 = vunpack.c.h.s8.bf16 %v3305_v25  ;;  %v3311_v58 = vld [vmem:[#allocation10 + $0x3e8] sm:$0xff]  ;;  %v3334_v25 = vld [vmem:[#allocation10 + $0x4a0] sm:$0xff] }
 0x5f0   :  { %4505 = vmatprep.subr.bf16.mxu1 %v3617_v34  ;;  %v3313_v34 = vld [vmem:[#allocation10 + $0x3f8] sm:$0xff] }
 0x5f2   :  { %4342 = vmatpush1.bf16.msra.mxu0 %v3614_v38  ;;  %v3687_v38 = vunpack.c.l.s8.bf16 %v3311_v58 }
 0x5f3   :  { %4506 = vmatpush1.bf16.msra.mxu1 %v3616_v39  ;;  %4343 = vmatprep.subr.bf16.mxu0 %v3623_v42  ;;  %v3310_v39 = vld [vmem:[#allocation10 + $0x3e0] sm:$0xff]  ;;  %v3689_v42 = vunpack.c.l.s8.bf16 %v3313_v34 }
 0x5f4   :  { %4507 = vmatprep.subr.bf16.mxu1 %v3625_v19  ;;  %v3686_v19 = vunpack.c.l.s8.bf16 %v3310_v39  ;;  %v3694_v61 = vunpack.c.h.s8.bf16 %v3310_v39 }
 0x5f6   :  { %4344 = vmatpush1.bf16.msra.mxu0 %v3622_v4  ;;  %v3695_v4 = vunpack.c.h.s8.bf16 %v3311_v58 }
 0x5f7   :  { %4508 = vmatpush1.bf16.msra.mxu1 %v3624_v45  ;;  %4345 = vmatprep.subr.bf16.mxu0 %v3631_v46  ;;  %v3697_v45 = vunpack.c.h.s8.bf16 %v3313_v34  ;;  %v3319_v46 = vld [vmem:[#allocation10 + $0x428] sm:$0xff]  ;;  %v3342_v34 = vld [vmem:[#allocation10 + $0x4e0] sm:$0xff] }
 0x5f8   :  { %4509 = vmatprep.subr.bf16.mxu1 %v3633_v49  ;;  %v3321_v49 = vld [vmem:[#allocation10 + $0x438] sm:$0xff] }
 0x5fa   :  { %4346 = vmatpush1.bf16.msra.mxu0 %v3630_v27  ;;  %v3703_v27 = vunpack.c.l.s8.bf16 %v3319_v46 }
 0x5fb   :  { %4510 = vmatpush1.bf16.msra.mxu1 %v3632_v51  ;;  %4347 = vmatprep.subr.bf16.mxu0 %v3639_v55  ;;  %v3318_v51 = vld [vmem:[#allocation10 + $0x420] sm:$0xff]  ;;  %v3705_v55 = vunpack.c.l.s8.bf16 %v3321_v49 }
 0x5fc   :  { %4511 = vmatprep.subr.bf16.mxu1 %v3641_v63  ;;  %v3702_v63 = vunpack.c.l.s8.bf16 %v3318_v51  ;;  %v3710_v7 = vunpack.c.h.s8.bf16 %v3318_v51 }
 0x5fe   :  { %4348 = vmatpush1.bf16.msra.mxu0 %v3638_v3  ;;  %v3711_v3 = vunpack.c.h.s8.bf16 %v3319_v46 }
 0x5ff   :  { %4512 = vmatpush1.bf16.msra.mxu1 %v3640_v62  ;;  %4349 = vmatprep.subr.bf16.mxu0 %v3647_v2  ;;  %v3327_v62 = vld [vmem:[#allocation10 + $0x468] sm:$0xff]  ;;  %v3713_v2 = vunpack.c.h.s8.bf16 %v3321_v49  ;;  %v3350_v49 = vld [vmem:[#allocation10 + $0x520] sm:$0xff] }
 0x600   :  { %4513 = vmatprep.subr.bf16.mxu1 %v3649_v35  ;;  %v3329_v35 = vld [vmem:[#allocation10 + $0x478] sm:$0xff] }
 0x602   :  { %4350 = vmatpush1.bf16.msra.mxu0 %v3646_v10  ;;  %v3719_v10 = vunpack.c.l.s8.bf16 %v3327_v62 }
 0x603   :  { %4514 = vmatpush1.bf16.msra.mxu1 %v3648_v9  ;;  %4351 = vmatprep.subr.bf16.mxu0 %v3655_v21  ;;  %v3326_v9 = vld [vmem:[#allocation10 + $0x460] sm:$0xff]  ;;  %v3721_v21 = vunpack.c.l.s8.bf16 %v3329_v35 }
 0x604   :  { %4515 = vmatprep.subr.bf16.mxu1 %v3657_v11  ;;  %v3718_v11 = vunpack.c.l.s8.bf16 %v3326_v9 }
 0x606   :  { %4352 = vmatpush1.bf16.msra.mxu0 %v3654_v13  ;;  %v3729_v13 = vunpack.c.h.s8.bf16 %v3329_v35  ;;  %v3358_v35 = vld [vmem:[#allocation10 + $0x560] sm:$0xff] }
 0x607   :  { %4516 = vmatpush1.bf16.msra.mxu1 %v3656_v53  ;;  %4353 = vmatprep.subr.bf16.mxu0 %v3663_v16  ;;  %v3335_v53 = vld [vmem:[#allocation10 + $0x4a8] sm:$0xff]  ;;  %v3337_v16 = vld [vmem:[#allocation10 + $0x4b8] sm:$0xff] }
 0x608   :  { %4517 = vmatprep.subr.bf16.mxu1 %v3665_v15  ;;  %v3726_v15 = vunpack.c.h.s8.bf16 %v3326_v9  ;;  %v3745_v52 = vunpack.c.h.s8.bf16 %v3337_v16 }
 0x60a   :  { %4354 = vmatpush1.bf16.msra.mxu0 %v3662_v22  ;;  %v3737_v22 = vunpack.c.l.s8.bf16 %v3337_v16  ;;  %v3366_v16 = vld [vmem:[#allocation10 + $0x5a0] sm:$0xff] }
 0x60b   :  { %4518 = vmatpush1.bf16.msra.mxu1 %v3664_v36  ;;  %4355 = vmatprep.subr.bf16.mxu0 %v3671_v6  ;;  %v3336_v36 = vld [vmem:[#allocation10 + $0x4b0] sm:$0xff]  ;;  %v3734_v6 = vunpack.c.l.s8.bf16 %v3334_v25 }
 0x60c   :  { %4519 = vmatprep.subr.bf16.mxu1 %v3673_v47  ;;  %v3736_v23 = vunpack.c.l.s8.bf16 %v3336_v36  ;;  %v3743_v47 = vunpack.c.h.s8.bf16 %v3335_v53 }
 0x60e   :  { %4356 = vmatpush1.bf16.msra.mxu0 %v3670_v28  ;;  %v3343_v28 = vld [vmem:[#allocation10 + $0x4e8] sm:$0xff] }
 0x60f   :  { %4520 = vmatpush1.bf16.msra.mxu1 %v3672_v29  ;;  %4357 = vmatprep.subr.bf16.mxu0 %v3679_v30  ;;  %v3345_v29 = vld [vmem:[#allocation10 + $0x4f8] sm:$0xff]  ;;  %v3742_v30 = vunpack.c.h.s8.bf16 %v3334_v25  ;;  %v3751_v58 = vunpack.c.l.s8.bf16 %v3343_v28 }
 0x610   :  { %4521 = vmatprep.subr.bf16.mxu1 %v3681_v32  ;;  %v3744_v32 = vunpack.c.h.s8.bf16 %v3336_v36  ;;  %v3761_v43 = vunpack.c.h.s8.bf16 %v3345_v29 }
 0x612   :  { %4358 = vmatpush1.bf16.msra.mxu0 %v3678_v60  ;;  %v3753_v60 = vunpack.c.l.s8.bf16 %v3345_v29  ;;  %v3374_v29 = vld [vmem:[#allocation10 + $0x5e0] sm:$0xff] }
 0x613   :  { %4522 = vmatpush1.bf16.msra.mxu1 %v3680_v37  ;;  %4359 = vmatprep.subr.bf16.mxu0 %v3687_v38  ;;  %v3344_v37 = vld [vmem:[#allocation10 + $0x4f0] sm:$0xff]  ;;  %v3750_v38 = vunpack.c.l.s8.bf16 %v3342_v34 }
 0x614   :  { %4523 = vmatprep.subr.bf16.mxu1 %v3689_v42  ;;  %v3752_v39 = vunpack.c.l.s8.bf16 %v3344_v37  ;;  %v3759_v42 = vunpack.c.h.s8.bf16 %v3343_v28 }
 0x616   :  { %4360 = vmatpush1.bf16.msra.mxu0 %v3686_v19  ;;  %v3351_v19 = vld [vmem:[#allocation10 + $0x528] sm:$0xff] }
 0x617   :  { %4524 = vmatpush1.bf16.msra.mxu1 %v3688_v44  ;;  %4361 = vmatprep.subr.bf16.mxu0 %v3695_v4  ;;  %v3353_v44 = vld [vmem:[#allocation10 + $0x538] sm:$0xff]  ;;  %v3758_v4 = vunpack.c.h.s8.bf16 %v3342_v34  ;;  %v3767_v46 = vunpack.c.l.s8.bf16 %v3351_v19 }
 0x618   :  { %4525 = vmatprep.subr.bf16.mxu1 %v3697_v45  ;;  %v3760_v45 = vunpack.c.h.s8.bf16 %v3344_v37  ;;  %v3777_v57 = vunpack.c.h.s8.bf16 %v3353_v44 }
 0x61a   :  { %4362 = vmatpush1.bf16.msra.mxu0 %v3694_v61  ;;  %v3769_v61 = vunpack.c.l.s8.bf16 %v3353_v44  ;;  %v3382_v44 = vld [vmem:[#allocation10 + $0x620] sm:$0xff] }
 0x61b   :  { %4526 = vmatpush1.bf16.msra.mxu1 %v3696_v54  ;;  %4372 = vmatprep.subr.bf16.mxu0 %v3703_v27  ;;  %v3352_v54 = vld [vmem:[#allocation10 + $0x530] sm:$0xff]  ;;  %v3766_v27 = vunpack.c.l.s8.bf16 %v3350_v49 }
 0x61c   :  { %4536 = vmatprep.subr.bf16.mxu1 %v3705_v55  ;;  %v3768_v51 = vunpack.c.l.s8.bf16 %v3352_v54  ;;  %v3775_v55 = vunpack.c.h.s8.bf16 %v3351_v19 }
 0x61d   :  { %4364 = vmatmul.mubr.bf16.vlgmr.msra.gmra.mrb[12].mxu0 %v5509_v33 }
 0x61e   :  { %4528 = vmatmul.mubr.bf16.vlgmr.msra.gmra.mrb[12].mxu1 %v5509_v33  ;;  %4373 = vmatpush1.bf16.msra.mxu0 %v3702_v63  ;;  %v3727_v33 = vunpack.c.h.s8.bf16 %v3327_v62  ;;  %v3359_v63 = vld [vmem:[#allocation10 + $0x568] sm:$0xff]  ;;  %v3776_v62 = vunpack.c.h.s8.bf16 %v3352_v54 }
 0x61f   :  { %4404 = vmatprep.mubr.bf16.mxu0 %v5546_v50  ;;  %4537 = vmatpush1.bf16.msra.mxu1 %v3704_v0  ;;  %v3361_v0 = vld [vmem:[#allocation10 + $0x578] sm:$0xff]  ;;  %v3391_v54 = vld [vmem:[#allocation10 + $0x668] sm:$0xff] }
 0x620   :  { %4568 = vmatprep.mubr.bf16.mxu1 %v5546_v50  ;;  %4374 = vmatprep.subr.bf16.mxu0 %v3711_v3  ;;  %v3735_v50 = vunpack.c.l.s8.bf16 %v3335_v53  ;;  %v3774_v3 = vunpack.c.h.s8.bf16 %v3350_v49  ;;  %v3793_v31 = vunpack.c.h.s8.bf16 %v3361_v0 }
 0x621   :  { %4538 = vmatprep.subr.bf16.mxu1 %v3713_v2  ;;  %v3783_v2 = vunpack.c.l.s8.bf16 %v3359_v63 }
 0x622   :  { %4375 = vmatpush1.bf16.msra.mxu0 %v3710_v7  ;;  %v3785_v7 = vunpack.c.l.s8.bf16 %v3361_v0  ;;  %v3390_v0 = vld [vmem:[#allocation10 + $0x660] sm:$0xff] }
 0x623   :  { %4539 = vmatpush1.bf16.msra.mxu1 %v3712_v8  ;;  %4376 = vmatprep.subr.bf16.mxu0 %v3719_v10  ;;  %v3360_v8 = vld [vmem:[#allocation10 + $0x570] sm:$0xff]  ;;  %v3782_v10 = vunpack.c.l.s8.bf16 %v3358_v35 }
 0x624   :  { %4540 = vmatprep.subr.bf16.mxu1 %v3721_v21  ;;  %v3784_v9 = vunpack.c.l.s8.bf16 %v3360_v8  ;;  %v3791_v21 = vunpack.c.h.s8.bf16 %v3359_v63  ;;  %v3847_v63 = vunpack.c.l.s8.bf16 %v3391_v54 }
 0x626   :  { %4377 = vmatpush1.bf16.msra.mxu0 %v3718_v11  ;;  %v3367_v11 = vld [vmem:[#allocation10 + $0x5a8] sm:$0xff] }
 0x627   :  { %4541 = vmatpush1.bf16.msra.mxu1 %v3720_v12  ;;  %4378 = vmatprep.subr.bf16.mxu0 %v3727_v33  ;;  %v3369_v12 = vld [vmem:[#allocation10 + $0x5b8] sm:$0xff]  ;;  %v3790_v33 = vunpack.c.h.s8.bf16 %v3358_v35  ;;  %v3799_v53 = vunpack.c.l.s8.bf16 %v3367_v11 }
 0x628   :  { %4542 = vmatprep.subr.bf16.mxu1 %v3729_v13  ;;  %v3792_v13 = vunpack.c.h.s8.bf16 %v3360_v8  ;;  %v3809_v36 = vunpack.c.h.s8.bf16 %v3369_v12  ;;  %v3399_v8 = vld [vmem:[#allocation10 + $0x6a8] sm:$0xff] }
 0x62a   :  { %4379 = vmatpush1.bf16.msra.mxu0 %v3726_v15  ;;  %v3801_v15 = vunpack.c.l.s8.bf16 %v3369_v12  ;;  %v3400_v12 = vld [vmem:[#allocation10 + $0x6b0] sm:$0xff] }
 0x62b   :  { %4543 = vmatpush1.bf16.msra.mxu1 %v3728_v24  ;;  %4380 = vmatprep.subr.bf16.mxu0 %v3735_v50  ;;  %v3368_v24 = vld [vmem:[#allocation10 + $0x5b0] sm:$0xff]  ;;  %v3798_v50 = vunpack.c.l.s8.bf16 %v3366_v16 }
 0x62c   :  { %4544 = vmatprep.subr.bf16.mxu1 %v3737_v22  ;;  %v3800_v25 = vunpack.c.l.s8.bf16 %v3368_v24  ;;  %v3807_v22 = vunpack.c.h.s8.bf16 %v3367_v11 }
 0x62e   :  { %4381 = vmatpush1.bf16.msra.mxu0 %v3734_v6  ;;  %v3375_v6 = vld [vmem:[#allocation10 + $0x5e8] sm:$0xff] }
 0x62f   :  { %4545 = vmatpush1.bf16.msra.mxu1 %v3736_v23  ;;  %4382 = vmatprep.subr.bf16.mxu0 %v3743_v47  ;;  %v3377_v23 = vld [vmem:[#allocation10 + $0x5f8] sm:$0xff]  ;;  %v3806_v47 = vunpack.c.h.s8.bf16 %v3366_v16  ;;  %v3815_v28 = vunpack.c.l.s8.bf16 %v3375_v6  ;;  %v3871_v16 = vunpack.c.h.s8.bf16 %v3399_v8 }
 0x630   :  { %4546 = vmatprep.subr.bf16.mxu1 %v3745_v52  ;;  %v3808_v52 = vunpack.c.h.s8.bf16 %v3368_v24  ;;  %v3825_v37 = vunpack.c.h.s8.bf16 %v3377_v23 }
 0x632   :  { %4383 = vmatpush1.bf16.msra.mxu0 %v3742_v30  ;;  %v3817_v30 = vunpack.c.l.s8.bf16 %v3377_v23  ;;  %v5162_v23 = vmov 1983009808  }
 0x633   :  { %4547 = vmatpush1.bf16.msra.mxu1 %v3744_v32  ;;  %4384 = vmatprep.subr.bf16.mxu0 %v3751_v58  ;;  %v3376_v32 = vld [vmem:[#allocation10 + $0x5f0] sm:$0xff]  ;;  %v3814_v58 = vunpack.c.l.s8.bf16 %v3374_v29 }
 0x634   :  { %4548 = vmatprep.subr.bf16.mxu1 %v3753_v60  ;;  %v3816_v34 = vunpack.c.l.s8.bf16 %v3376_v32  ;;  %v3823_v60 = vunpack.c.h.s8.bf16 %v3375_v6 }
 0x636   :  { %4385 = vmatpush1.bf16.msra.mxu0 %v3750_v38  ;;  %v3383_v38 = vld [vmem:[#allocation10 + $0x628] sm:$0xff] }
 0x637   :  { %4549 = vmatpush1.bf16.msra.mxu1 %v3752_v39  ;;  %4386 = vmatprep.subr.bf16.mxu0 %v3759_v42  ;;  %v3385_v39 = vld [vmem:[#allocation10 + $0x638] sm:$0xff]  ;;  %v3822_v42 = vunpack.c.h.s8.bf16 %v3374_v29  ;;  %v3831_v19 = vunpack.c.l.s8.bf16 %v3383_v38 }
 0x638   :  { %4550 = vmatprep.subr.bf16.mxu1 %v3761_v43  ;;  %v3824_v43 = vunpack.c.h.s8.bf16 %v3376_v32  ;;  %v3872_v32 = vunpack.c.h.s8.bf16 %v3400_v12 }
 0x63a   :  { %4387 = vmatpush1.bf16.msra.mxu0 %v3758_v4  ;;  %v3833_v4 = vunpack.c.l.s8.bf16 %v3385_v39 }
 0x63b   :  { %4551 = vmatpush1.bf16.msra.mxu1 %v3760_v45  ;;  %4388 = vmatprep.subr.bf16.mxu0 %v3767_v46  ;;  %v3384_v45 = vld [vmem:[#allocation10 + $0x630] sm:$0xff]  ;;  %v3830_v46 = vunpack.c.l.s8.bf16 %v3382_v44 }
 0x63c   :  { %4552 = vmatprep.subr.bf16.mxu1 %v3769_v61  ;;  %v3832_v49 = vunpack.c.l.s8.bf16 %v3384_v45  ;;  %v3839_v61 = vunpack.c.h.s8.bf16 %v3383_v38 }
 0x63e   :  { %4389 = vmatpush1.bf16.msra.mxu0 %v3766_v27  ;;  %v3841_v27 = vunpack.c.h.s8.bf16 %v3385_v39 }
 0x63f   :  { %4553 = vmatpush1.bf16.msra.mxu1 %v3768_v51  ;;  %4390 = vmatprep.subr.bf16.mxu0 %v3775_v55  ;;  %v3393_v51 = vld [vmem:[#allocation10 + $0x678] sm:$0xff]  ;;  %v3838_v55 = vunpack.c.h.s8.bf16 %v3382_v44 }
 0x640   :  { %4554 = vmatprep.subr.bf16.mxu1 %v3777_v57  ;;  %v3840_v57 = vunpack.c.h.s8.bf16 %v3384_v45 }
 0x642   :  { %4391 = vmatpush1.bf16.msra.mxu0 %v3774_v3  ;;  %v3849_v3 = vunpack.c.l.s8.bf16 %v3393_v51 }
 0x643   :  { %4555 = vmatpush1.bf16.msra.mxu1 %v3776_v62  ;;  %4392 = vmatprep.subr.bf16.mxu0 %v3783_v2  ;;  %v3392_v62 = vld [vmem:[#allocation10 + $0x670] sm:$0xff]  ;;  %v3846_v2 = vunpack.c.l.s8.bf16 %v3390_v0 }
 0x644   :  { %4556 = vmatprep.subr.bf16.mxu1 %v3785_v7  ;;  %v3848_v35 = vunpack.c.l.s8.bf16 %v3392_v62  ;;  %v3857_v7 = vunpack.c.h.s8.bf16 %v3393_v51 }
 0x646   :  { %4393 = vmatpush1.bf16.msra.mxu0 %v3782_v10  ;;  %v3401_v10 = vld [vmem:[#allocation10 + $0x6b8] sm:$0xff] }
 0x647   :  { %4557 = vmatpush1.bf16.msra.mxu1 %v3784_v9  ;;  %4394 = vmatprep.subr.bf16.mxu0 %v3791_v21  ;;  %v3854_v9 = vunpack.c.h.s8.bf16 %v3390_v0  ;;  %v3856_v21 = vunpack.c.h.s8.bf16 %v3392_v62  ;;  %v3865_v11 = vunpack.c.l.s8.bf16 %v3401_v10  ;;  %v3873_v24 = vunpack.c.h.s8.bf16 %v3401_v10  ;;  %v3415_v62 = vld [vmem:[#allocation10 + $0x728] sm:$0xff] }
 0x648   :  { %4558 = vmatprep.subr.bf16.mxu1 %v3793_v31  ;;  %v3398_v31 = vld [vmem:[#allocation10 + $0x6a0] sm:$0xff] }
 0x64a   :  { %4395 = vmatpush1.bf16.msra.mxu0 %v3790_v33  ;;  %v3862_v33 = vunpack.c.l.s8.bf16 %v3398_v31 }
 0x64b   :  { %4559 = vmatpush1.bf16.msra.mxu1 %v3792_v13  ;;  %4396 = vmatprep.subr.bf16.mxu0 %v3799_v53  ;;  %v5586_v13 = vld [vmem:[#allocation11] sm:$0xff]  ;;  %v3864_v53 = vunpack.c.l.s8.bf16 %v3400_v12 }
 0x64c   :  { %4560 = vmatprep.subr.bf16.mxu1 %v3801_v15  ;;  %v5588_v15 = vld [vmem:[#allocation13] sm:$0xff]  ;;  %v4627_v6 = vrot.slane %v5586_v13, %v5460_v41 }
 0x64d   :  { %v4673_v29 = vrot.slane %v5588_v15, %v5478_v14  ;;  %v4677_v38 = vrot.slane %v5588_v15, %v5460_v41  ;;  %v4685_v39 = vrot.slane %v5588_v15, %v5481_v48 }
 0x64e   :  { %4397 = vmatpush1.bf16.msra.mxu0 %v3798_v50  ;;  %v3407_v50 = vld [vmem:[#allocation10 + $0x6e8] sm:$0xff] }
 0x64f   :  { %4561 = vmatpush1.bf16.msra.mxu1 %v3800_v25  ;;  %4398 = vmatprep.subr.bf16.mxu0 %v3807_v22  ;;  %v4623_v25 = vrot.slane %v5586_v13, %v5478_v14  ;;  %v4631_v22 = vrot.slane %v5586_v13, %v5502_v5 }
 0x650   :  { %4562 = vmatprep.subr.bf16.mxu1 %v3809_v36  ;;  %v3409_v36 = vld [vmem:[#allocation10 + $0x6f8] sm:$0xff] }
 0x652   :  { %4399 = vmatpush1.bf16.msra.mxu0 %v3806_v47  ;;  %v4737_v47 = vunpack.c.l.s4 %v5162_v23  ;;  %v3425_v23 = vld [vmem:[#allocation10 + $0x778] sm:$0xff] }
 0x653   :  { %4563 = vmatpush1.bf16.msra.mxu1 %v3808_v52  ;;  %4400 = vmatprep.subr.bf16.mxu0 %v3815_v28  ;;  %v4635_v52 = vrot.slane %v5586_v13, %v5481_v48  ;;  %v3870_v28 = vunpack.c.h.s8.bf16 %v3398_v31  ;;  %v3414_v31 = vld [vmem:[#allocation10 + $0x720] sm:$0xff] }
 0x654   :  { %4564 = vmatprep.subr.bf16.mxu1 %v3817_v30  ;;  %v4681_v30 = vrot.slane %v5588_v15, %v5502_v5  ;;  %v4738_v45 = vunpack.c.0.s8 %v4737_v47  ;;  %v3902_v47 = vunpack.c.h.s8.bf16 %v3414_v31 }
 0x656   :  { %4401 = vmatpush1.bf16.msra.mxu0 %v3814_v58  ;;  %v3879_v58 = vunpack.c.l.s8.bf16 %v3407_v50 }
 0x657   :  { %4565 = vmatpush1.bf16.msra.mxu1 %v3816_v34  ;;  %4402 = vmatprep.subr.bf16.mxu0 %v3823_v60  ;;  %v3406_v34 = vld [vmem:[#allocation10 + $0x6e0] sm:$0xff] }
 0x658   :  { %4566 = vmatprep.subr.bf16.mxu1 %v3825_v37 }
 0x65a   :  { %4403 = vmatpush1.bf16.msra.mxu0 %v3822_v42  ;;  %v3881_v42 = vunpack.c.l.s8.bf16 %v3409_v36 }
 0x65b   :  { %4567 = vmatpush1.bf16.msra.mxu1 %v3824_v43  ;;  %4413 = vmatprep.subr.bf16.mxu0 %v3831_v19  ;;  %v3408_v43 = vld [vmem:[#allocation10 + $0x6f0] sm:$0xff] }
 0x65c   :  { %4577 = vmatprep.subr.bf16.mxu1 %v3833_v4  ;;  %v3880_v48 = vunpack.c.l.s8.bf16 %v3408_v43 }
 0x65d   :  { %4405 = vmatmul.mubr.bf16.vlgmr.msra.gmra.mrb[12].mxu0 %v5548_v56 }
 0x65e   :  { %4569 = vmatmul.mubr.bf16.vlgmr.msra.gmra.mrb[12].mxu1 %v5548_v56  ;;  %4414 = vmatpush1.bf16.msra.mxu0 %v3830_v46  ;;  %v3855_v56 = vunpack.c.h.s8.bf16 %v3391_v54  ;;  %v3878_v54 = vunpack.c.l.s8.bf16 %v3406_v34 }
 0x65f   :  { %4445 = vmatprep.mubr.bf16.mxu0 %v5554_v1  ;;  %4578 = vmatpush1.bf16.msra.mxu1 %v3832_v49 }
 0x660   :  { %4609 = vmatprep.mubr.bf16.mxu1 %v5554_v1  ;;  %4415 = vmatprep.subr.bf16.mxu0 %v3839_v61  ;;  %v3863_v1 = vunpack.c.l.s8.bf16 %v3399_v8  ;;  %v5607_v8 = vsub.s32 %v4738_v45, %v5294_v26  ;;  %v3894_v26 = vunpack.c.l.s8.bf16 %v3414_v31  ;;  %v4697_v31 = vrot.slane %v5588_v15, %v5561_v20 }
 0x661   :  { %4579 = vmatprep.subr.bf16.mxu1 %v3841_v27 }
 0x662   :  { %4416 = vmatpush1.bf16.msra.mxu0 %v3838_v55 }
 0x663   :  { %4580 = vmatpush1.bf16.msra.mxu1 %v3840_v57  ;;  %4417 = vmatprep.subr.bf16.mxu0 %v3847_v63  ;;  %v3887_v57 = vunpack.c.h.s8.bf16 %v3407_v50 }
 0x664   :  { %4581 = vmatprep.subr.bf16.mxu1 %v3849_v3  ;;  %v3889_v3 = vunpack.c.h.s8.bf16 %v3409_v36  ;;  %v3423_v36 = vld [vmem:[#allocation10 + $0x768] sm:$0xff] }
 0x666   :  { %4418 = vmatpush1.bf16.msra.mxu0 %v3846_v2 }
 0x667   :  { %4582 = vmatpush1.bf16.msra.mxu1 %v3848_v35  ;;  %4419 = vmatprep.subr.bf16.mxu0 %v3855_v56  ;;  %v3417_v56 = vld [vmem:[#allocation10 + $0x738] sm:$0xff] }
 0x668   :  { %4583 = vmatprep.subr.bf16.mxu1 %v3857_v7 }
 0x66a   :  { %4420 = vmatpush1.bf16.msra.mxu0 %v3854_v9  ;;  %v3886_v9 = vunpack.c.h.s8.bf16 %v3406_v34 }
 0x66b   :  { %4584 = vmatpush1.bf16.msra.mxu1 %v3856_v21  ;;  %4421 = vmatprep.subr.bf16.mxu0 %v3863_v1  ;;  %v3888_v21 = vunpack.c.h.s8.bf16 %v3408_v43  ;;  %v3895_v1 = vunpack.c.l.s8.bf16 %v3415_v62 }
 0x66c   :  { %4585 = vmatprep.subr.bf16.mxu1 %v3865_v11 }
 0x66e   :  { %4422 = vmatpush1.bf16.msra.mxu0 %v3862_v33  ;;  %v3897_v33 = vunpack.c.l.s8.bf16 %v3417_v56 }
 0x66f   :  { %4586 = vmatpush1.bf16.msra.mxu1 %v3864_v53  ;;  %4423 = vmatprep.subr.bf16.mxu0 %v3871_v16  ;;  %v3416_v53 = vld [vmem:[#allocation10 + $0x730] sm:$0xff] }
 0x670   :  { %v4119_v60 = vpop.f32.mrb[8].mxu0  ;;  %v4283_v37 = vpop.f32.mrb[8].mxu1  ;;  %4587 = vmatprep.subr.bf16.mxu1 %v3873_v24  ;;  %v3896_v50 = vunpack.c.l.s8.bf16 %v3416_v53 }
 0x671   :  { %v4660_v19 = vmul.f32 %v4623_v25, %v4119_v60  ;;  %v4662_v14 = vmul.f32 %v4631_v22, %v4283_v37  ;;  %v4121_v44 = vpop.f32.mrb[9].mxu0  ;;  %v4285_v4 = vpop.f32.mrb[9].mxu1  ;;  %v3903_v25 = vunpack.c.h.s8.bf16 %v3415_v62  ;;  %v3905_v22 = vunpack.c.h.s8.bf16 %v3417_v56 }
 0x672   :  { %v4661_v5 = vmul.f32 %v4627_v6, %v4121_v44  ;;  %v4663_v46 = vmul.f32 %v4635_v52, %v4285_v4  ;;  %v4123_v49 = vpop.f32.mrb[10].mxu0  ;;  %v4287_v61 = vpop.f32.mrb[10].mxu1  ;;  %4424 = vmatpush1.bf16.msra.mxu0 %v3870_v28  ;;  %v3904_v52 = vunpack.c.h.s8.bf16 %v3416_v53  ;;  %v3911_v28 = vunpack.c.l.s8.bf16 %v3423_v36  ;;  %v3432_v4 = vld [vmem:[#allocation10 + $0x7b0] sm:$0xff] }
 0x673   :  { %v4710_v27 = vadd.f32 %v4673_v29, %v4660_v19  ;;  %v4712_v51 = vadd.f32 %v4681_v30, %v4662_v14  ;;  %4588 = vmatpush1.bf16.msra.mxu1 %v3872_v32  ;;  %v4124_v41 = vpop.f32.mrb[11].mxu0  ;;  %v4288_v55 = vpop.f32.mrb[11].mxu1  ;;  %4425 = vmatprep.subr.bf16.mxu0 %v3879_v58  ;;  %v3422_v29 = vld [vmem:[#allocation10 + $0x760] sm:$0xff]  ;;  %v3913_v30 = vunpack.c.l.s8.bf16 %v3425_v23  ;;  %v3424_v32 = vld [vmem:[#allocation10 + $0x770] sm:$0xff]  ;;  %v3919_v60 = vunpack.c.h.s8.bf16 %v3423_v36  ;;  %v3439_v61 = vld [vmem:[#allocation10 + $0x7e8] sm:$0xff] }
 0x674   :  { %v4711_v63 = vadd.f32 %v4677_v38, %v4661_v5  ;;  %v4713_v0 = vadd.f32 %v4685_v39, %v4663_v46  ;;  %4589 = vmatprep.subr.bf16.mxu1 %v3881_v42  ;;  %v3910_v58 = vunpack.c.l.s8.bf16 %v3422_v29  ;;  %v3912_v34 = vunpack.c.l.s8.bf16 %v3424_v32  ;;  %v3431_v38 = vld [vmem:[#allocation10 + $0x7a8] sm:$0xff]  ;;  %v3433_v39 = vld [vmem:[#allocation10 + $0x7b8] sm:$0xff]  ;;  %v3430_v14 = vld [vmem:[#allocation10 + $0x7a0] sm:$0xff] }
 0x675   :  { %v4718_v2 = vmax.f32 %v4710_v27, 0.0  ;;  %v4720_v35 = vmax.f32 %v4712_v51, 0.0  ;;  %v3921_v37 = vunpack.c.h.s8.bf16 %v3425_v23  ;;  %v3918_v42 = vunpack.c.h.s8.bf16 %v3422_v29  ;;  %v3438_v55 = vld [vmem:[#allocation10 + $0x7e0] sm:$0xff] }
 0x676   :  { %v4719_v7 = vmax.f32 %v4711_v63, 0.0  ;;  %v4721_v10 = vmax.f32 %v4713_v0, 0.0  ;;  %4426 = vmatpush1.bf16.msra.mxu0 %v3878_v54  ;;  %v3920_v43 = vunpack.c.h.s8.bf16 %v3424_v32  ;;  %v3927_v19 = vunpack.c.l.s8.bf16 %v3431_v38  ;;  %v3441_v54 = vld [vmem:[#allocation10 + $0x7f8] sm:$0xff] }
 0x677   :  { %4590 = vmatpush1.bf16.msra.mxu1 %v3880_v48  ;;  %4427 = vmatprep.subr.bf16.mxu0 %v3887_v57  ;;  %v3929_v44 = vunpack.c.l.s8.bf16 %v3433_v39  ;;  %v3926_v5 = vunpack.c.l.s8.bf16 %v3430_v14  ;;  %v3928_v45 = vunpack.c.l.s8.bf16 %v3432_v4  ;;  %v3935_v46 = vunpack.c.h.s8.bf16 %v3431_v38  ;;  %v3440_v57 = vld [vmem:[#allocation10 + $0x7f0] sm:$0xff] }
 0x678   :  { %v4734_v11 = vcombine.low %v4718_v2, %v4719_v7  ;;  %v4735_v12 = vcombine.low %v4720_v35, %v4721_v10  ;;  %4591 = vmatprep.subr.bf16.mxu1 %v3889_v3  ;;  %v3937_v49 = vunpack.c.h.s8.bf16 %v3433_v39  ;;  %v3934_v27 = vunpack.c.h.s8.bf16 %v3430_v14 }
 0x679   :  { %v3936_v51 = vunpack.c.h.s8.bf16 %v3432_v4  ;;  %v3943_v41 = vunpack.c.l.s8.bf16 %v3439_v61  ;;  %v3945_v48 = vunpack.c.l.s8.bf16 %v3441_v54  ;;  %v3942_v63 = vunpack.c.l.s8.bf16 %v3438_v55 }
 0x67a   :  { %v4742_v16 = vrot.slane %v4734_v11, %v5607_v8  ;;  %v4749_v24 = vrot.slane %v4735_v12, %v5607_v8  ;;  %4428 = vmatpush1.bf16.msra.mxu0 %v3886_v9  ;;  %v3944_v0 = vunpack.c.l.s8.bf16 %v3440_v57  ;;  %v3951_v3 = vunpack.c.h.s8.bf16 %v3439_v61 }
 0x67b   :  { %4592 = vmatpush1.bf16.msra.mxu1 %v3888_v21  ;;  %4429 = vmatprep.subr.bf16.mxu0 %v3895_v1  ;;  %v3953_v62 = vunpack.c.h.s8.bf16 %v3441_v54  ;;  %v3950_v2 = vunpack.c.h.s8.bf16 %v3438_v55  ;;  %v3952_v35 = vunpack.c.h.s8.bf16 %v3440_v57  ;;  %v4639_v56 = vrot.slane %v5586_v13, %v5520_v17 }
 0x67c   :  { %4593 = vmatprep.subr.bf16.mxu1 %v3897_v33  ;;  %v4750_v6 = vcombine.low %v4742_v16, %v4749_v24  ;;  %v4647_v7 = vrot.slane %v5586_v13, %v5561_v20  ;;  %v4643_v10 = vrot.slane %v5586_v13, %v5523_v18  ;;  %v4689_v9 = vrot.slane %v5588_v15, %v5520_v17 }
 0x67d   :  { %v4651_v21 = vrot.slane %v5586_v13, %v5526_v40  ;;  %v4701_v53 = vrot.slane %v5588_v15, %v5526_v40 }
 0x67e   :  { %4430 = vmatpush1.bf16.msra.mxu0 %v3894_v26  ;;  %4770 = vst [vmem:[#allocation14] sm:$0xff] %v4750_v6 }
 0x67f   :  { %4594 = vmatpush1.bf16.msra.mxu1 %v3896_v50  ;;  %4431 = vmatprep.subr.bf16.mxu0 %v3903_v25 }
 0x680   :  { %4595 = vmatprep.subr.bf16.mxu1 %v3905_v22 }
 0x682   :  { %4432 = vmatpush1.bf16.msra.mxu0 %v3902_v47 }
 0x683   :  { %4596 = vmatpush1.bf16.msra.mxu1 %v3904_v52  ;;  %4433 = vmatprep.subr.bf16.mxu0 %v3911_v28 }
 0x684   :  { %4597 = vmatprep.subr.bf16.mxu1 %v3913_v30 }
 0x686   :  { %4434 = vmatpush1.bf16.msra.mxu0 %v3910_v58 }
 0x687   :  { %4598 = vmatpush1.bf16.msra.mxu1 %v3912_v34  ;;  %4435 = vmatprep.subr.bf16.mxu0 %v3919_v60 }
 0x688   :  { %4599 = vmatprep.subr.bf16.mxu1 %v3921_v37 }
 0x68a   :  { %4436 = vmatpush1.bf16.msra.mxu0 %v3918_v42 }
 0x68b   :  { %4600 = vmatpush1.bf16.msra.mxu1 %v3920_v43  ;;  %4437 = vmatprep.subr.bf16.mxu0 %v3927_v19 }
 0x68c   :  { %4601 = vmatprep.subr.bf16.mxu1 %v3929_v44 }
 0x68e   :  { %4438 = vmatpush1.bf16.msra.mxu0 %v3926_v5 }
 0x68f   :  { %4602 = vmatpush1.bf16.msra.mxu1 %v3928_v45  ;;  %4439 = vmatprep.subr.bf16.mxu0 %v3935_v46 }
 0x690   :  { %4603 = vmatprep.subr.bf16.mxu1 %v3937_v49 }
 0x692   :  { %4440 = vmatpush1.bf16.msra.mxu0 %v3934_v27 }
 0x693   :  { %4604 = vmatpush1.bf16.msra.mxu1 %v3936_v51  ;;  %4441 = vmatprep.subr.bf16.mxu0 %v3943_v41 }
 0x694   :  { %4605 = vmatprep.subr.bf16.mxu1 %v3945_v48 }
 0x696   :  { %4442 = vmatpush1.bf16.msra.mxu0 %v3942_v63 }
 0x697   :  { %4606 = vmatpush1.bf16.msra.mxu1 %v3944_v0  ;;  %4443 = vmatprep.subr.bf16.mxu0 %v3951_v3 }
 0x698   :  { %4607 = vmatprep.subr.bf16.mxu1 %v3953_v62 }
 0x69a   :  { %4444 = vmatpush1.bf16.msra.mxu0 %v3950_v2 }
 0x69b   :  { %4608 = vmatpush1.bf16.msra.mxu1 %v3952_v35 }
 0x69d   :  { %4446 = vmatmul.mubr.bf16.vlgmr.msra.gmra.mrb[12].mxu0 %v5568_v59 }
 0x69e   :  { %4610 = vmatmul.mubr.bf16.vlgmr.msra.gmra.mrb[12].mxu1 %v5568_v59  ;;  %v4693_v59 = vrot.slane %v5588_v15, %v5523_v18 }
 0x770   :  { %v4447_v1 = vpop.f32.mrb[12].mxu0 }
 0x771   :  { %v4664_v11 = vmul.f32 %v4639_v56, %v4447_v1  ;;  %v4611_v12 = vpop.f32.mrb[12].mxu1  ;;  %v4449_v33 = vpop.f32.mrb[13].mxu0 }
 0x772   :  { %v4666_v16 = vmul.f32 %v4647_v7, %v4611_v12  ;;  %v4665_v24 = vmul.f32 %v4643_v10, %v4449_v33  ;;  %v4613_v26 = vpop.f32.mrb[13].mxu1  ;;  %v4451_v17 = vpop.f32.mrb[14].mxu0 }
 0x773   :  { %v4714_v50 = vadd.f32 %v4689_v9, %v4664_v11  ;;  %v4667_v25 = vmul.f32 %v4651_v21, %v4613_v26  ;;  %v4615_v13 = vpop.f32.mrb[14].mxu1  ;;  %v4452_v22 = vpop.f32.mrb[15].mxu0 }
 0x774   :  { %v4716_v36 = vadd.f32 %v4697_v31, %v4666_v16  ;;  %v4715_v6 = vadd.f32 %v4693_v59, %v4665_v24  ;;  %v4616_v20 = vpop.f32.mrb[15].mxu1 }
 0x775   :  { %v4722_v23 = vmax.f32 %v4714_v50, 0.0  ;;  %v4717_v47 = vadd.f32 %v4701_v53, %v4667_v25 }
 0x776   :  { %v4724_v18 = vmax.f32 %v4716_v36, 0.0  ;;  %v4723_v52 = vmax.f32 %v4715_v6, 0.0 }
 0x777   :  { %v4725_v28 = vmax.f32 %v4717_v47, 0.0 }
 0x778   :  { %v4751_v29 = vcombine.low %v4722_v23, %v4723_v52 }
 0x779   :  { %v4752_v30 = vcombine.low %v4724_v18, %v4725_v28 }
 0x77a   :  { %v4759_v40 = vrot.slane %v4751_v29, %v5607_v8 }
 0x77b   :  { %v4766_v15 = vrot.slane %v4752_v30, %v5607_v8 }
 0x77d   :  { %v4767_v32 = vcombine.low %v4759_v40, %v4766_v15 }
 0x77f   :  { %4771 = vst [vmem:[#allocation14 + $0x8] sm:$0xff] %v4767_v32 }
 0x780   :  { %5131 = shalt.err (!%p5128_p4)
}
 0x781   :  { %s5132_s3 = scalar_lea.hbm %s5650_s7, 256 }
 0x782   :  { %p5133_p5 = scmp.ne.s32.totalorder %s5650_s7, %s5132_s3  ;;  %p5136_p6 = scmp.lt.u32.totalorder %s5132_s3, %s5650_s7 }
 0x784   :  { %p5138_p7 = pnand %p5136_p6, %p5133_p5 }
 0x786   :  { %5141 = shalt.err (!%p5138_p7)
}
 0x787   :  { %4781 = dma.vmem_to_hbm [thread:$0]  %s4779_s12, 256, %s5650_s7, [#allocation4]  }
 0x788   :  { %5150 = dma.done.wait [#allocation4], 256  }
 0x789   :  { %5151 = vsyncadd [#allocation4], 4294967040 }
 0x78a   :  { %4785 = vsyncpa [#allocation3], 1 }
 0x78b   :  { %4786 = vsyncpa [#allocation6], 1 }
 0x78c   :  { %4787 = vsyncpa [#allocation9], 1 }
 0x78d   :  { %4788 = vsyncpa [#allocation12], 1 }
 0x78e   :  { %4789 = vsyncpa [#allocation4], 1 }

</bundles_post_ra>
